<compile_context>
chip_gen: v5e
topology: v5e:2x2
jax: 0.10.0
libtpu: 0.0.40
codegen_flags: <defaults>
</compile_context>

<pallas_src>
import jax
import jax.numpy as jnp
from jax.experimental import pallas as pl
from jax.experimental.pallas import tpu as pltpu

LANE = 128
TM_MAX = 1024        # max points per grid step


def _cdiv(a, b):
    return -(-a // b)


def _round_up(a, m):
    return _cdiv(a, m) * m


def _tpu_generation():
    try:
        kind = jax.devices()[0].device_kind.lower()
    except Exception:
        return 0
    for g in (7, 6, 5, 4, 3, 2):
        if f"v{g}" in kind:
            return g
    return 0


def _num_tensorcores():
    # v7x exposes 2 TensorCores to one Pallas grid; v5e/v6e have 1.
    return 2 if _tpu_generation() >= 7 else 1


def _choose_tm(n, n_cores=1):
    # 1-TC chips: one full-N step for small N (no forced split), TM_MAX steps otherwise.
    if n <= TM_MAX and (n_cores <= 1 or n <= 2 * LANE):
        return n
    if n_cores <= 1:
        return TM_MAX
    # 2-TC chips: grid a multiple of n_cores, >=2 steps per core at large N.
    steps = n_cores * max(2, _cdiv(n, n_cores * TM_MAX))
    tm = _round_up(_cdiv(n, steps), LANE)
    return max(LANE, min(tm, TM_MAX))


def _const_index_map(ndim):
    return lambda i, _nd=ndim: (0,) * _nd


# ---------------------------------------------------------------------------
# Kernel
# ---------------------------------------------------------------------------
def _make_deform_kernel(kinds, has_skip, has_plain, softmax):
    """kinds[j] in {'first','skip','plain'}; one MXU matmul per layer."""

    def kernel(x_ref, w0_ref, *rest):
        r = 0
        skw_ref = rest[r] if has_skip else None
        r += int(has_skip)
        plw_ref = rest[r] if has_plain else None
        r += int(has_plain)
        b_ref, wo_ref, bo_ref, out_ref = rest[r], rest[r + 1], rest[r + 2], rest[r + 3]

        xb = x_ref[...].astype(jnp.bfloat16)            # lane-padded input tile
        h = None
        s = p = 0
        for j, kind in enumerate(kinds):
            if kind == "first":
                acc = jnp.dot(xb, w0_ref[...], preferred_element_type=jnp.float32)
            elif kind == "skip":
                # torch: h = Linear(cat([input_point_time, h], -1)); both pieces are
                # 128-aligned, so the concat is lane-aligned and the layer is ONE matmul.
                lhs = jnp.concatenate([xb, h], axis=-1)
                acc = jnp.dot(lhs, skw_ref[s], preferred_element_type=jnp.float32)
                s += 1
            else:
                acc = jnp.dot(h, plw_ref[p], preferred_element_type=jnp.float32)
                p += 1
            # fused bias + ReLU (f32 VPU — safe on v5e) + cast; h stays bf16 between layers.
            h = jnp.maximum(acc + b_ref[j], 0.0).astype(jnp.bfloat16)

        o = jnp.dot(h, wo_ref[...], preferred_element_type=jnp.float32) + bo_ref[...]
        if softmax:                                      # deform_type == 'weights'
            m = jnp.max(o, axis=-1, keepdims=True)
            e = jnp.exp(o - m)
            o = e / jnp.sum(e, axis=-1, keepdims=True)
        out_ref[...] = o

    return kernel


# ---------------------------------------------------------------------------
# Wrapper
# ---------------------------------------------------------------------------
def deform_field(x, kp, *, tm=None):
    """Forward pass of DeformField.  x: (N, input_ch) float32; kp: pack_deform_params(...)."""
    n, in_ch = x.shape
    pad_in = kp["pad_in"]
    if in_ch != pad_in:
        # Host-side once: aligns K to 128 and makes the skip-concat lane-aligned.
        x = jnp.pad(x, ((0, 0), (0, pad_in - in_ch)))
    if tm is None:
        tm = _choose_tm(n, _num_tensorcores())
    out_ch = kp["wo"].shape[1]

    flat = [kp["w0"]]
    if kp["skw"] is not None:
        flat.append(kp["skw"])
    if kp["plw"] is not None:
        flat.append(kp["plw"])
    flat += [kp["b"], kp["wo"], kp["bo"]]

    kernel = _make_deform_kernel(kp["kinds"], kp["skw"] is not None,
                                 kp["plw"] is not None, kp["softmax"])

    in_specs = [pl.BlockSpec((tm, pad_in), lambda i: (i, 0))]
    in_specs += [pl.BlockSpec(a.shape, _const_index_map(a.ndim)) for a in flat]

    bytes_accessed = (x.size * x.dtype.itemsize
                      + sum(int(a.size) * a.dtype.itemsize for a in flat)
                      + n * out_ch * 4)

    return pl.pallas_call(
        kernel,
        out_shape=jax.ShapeDtypeStruct((n, out_ch), jnp.float32),
        grid_spec=pltpu.PrefetchScalarGridSpec(
            num_scalar_prefetch=0,
            grid=(_cdiv(n, tm),),
            in_specs=in_specs,
            out_specs=pl.BlockSpec((tm, out_ch), lambda i: (i, 0)),
        ),
        compiler_params=pltpu.CompilerParams(
            dimension_semantics=("parallel",),
            vmem_limit_bytes=64 * 1024 * 1024,
        ),
        cost_estimate=pl.CostEstimate(
            flops=int(2 * n * kp["macs"]),
            transcendentals=int(n * out_ch) if kp["softmax"] else 0,
            bytes_accessed=int(bytes_accessed),
        ),
    )(x, *flat)


# ---------------------------------------------------------------------------
# Parameters (torch-like layout) + packing for the kernel + f32 reference
# ---------------------------------------------------------------------------
def init_deform_params(key, input_ch, D=8, W=256, output_ch=3, skips=(4,),
                       deform_type="weights"):
    skips = tuple(int(s) for s in skips)
    keys = jax.random.split(key, D + 1)
    layers = []
    for j in range(D):
        c_in = input_ch if j == 0 else (W + input_ch if (j - 1) in skips else W)
        kw, kb = jax.random.split(keys[j])
        w = 0.05 * jax.random.normal(kw, (c_in, W), jnp.float32)
        b = 0.01 * jax.random.normal(kb, (W,), jnp.float32)
        layers.append((w, b))
    if deform_type == "correction":       # torch: output layer constant-initialized to 0
        wo = jnp.zeros((W, output_ch), jnp.float32)
        bo = jnp.zeros((output_ch,), jnp.float32)
    else:
        kw, kb = jax.random.split(keys[D])
        wo = 0.05 * jax.random.normal(kw, (W, output_ch), jnp.float32)
        bo = 0.01 * jax.random.normal(kb, (output_ch,), jnp.float32)
    return dict(layers=layers, out=(wo, bo), input_ch=input_ch, D=D, W=W,
                output_ch=output_ch, skips=skips, deform_type=deform_type)


def pack_deform_params(p):
    input_ch, D, W, skips = p["input_ch"], p["D"], p["W"], p["skips"]
    pad_in = max(LANE, _round_up(input_ch, LANE))
    kinds = ["first"] + ["skip" if (j - 1) in skips else "plain" for j in range(1, D)]

    def pad_rows(w):
        return jnp.pad(w, ((0, pad_in - input_ch), (0, 0)))

    w0 = None
    skw, plw, biases = [], [], []
    for kind, (w, b) in zip(kinds, p["layers"]):
        biases.append(b.reshape(1, W))
        if kind == "first":
            w0 = pad_rows(w).astype(jnp.bfloat16)
        elif kind == "skip":
            # torch row order is [input_point_time ; h]; zero-pad the input rows.
            skw.append(jnp.concatenate([pad_rows(w[:input_ch]), w[input_ch:]],
                                       axis=0).astype(jnp.bfloat16))
        else:
            plw.append(w.astype(jnp.bfloat16))
    wo, bo = p["out"]
    macs = sum(int(w.shape[0]) * int(w.shape[1]) for w, _ in p["layers"]) + int(wo.size)
    return dict(
        kinds=tuple(kinds), pad_in=pad_in,
        softmax=(p["deform_type"] == "weights"),
        w0=w0,
        skw=(jnp.stack(skw) if skw else None),            # (n_skip, pad_in+W, W) bf16
        plw=(jnp.stack(plw) if plw else None),            # (n_plain, W, W) bf16
        b=jnp.stack(biases),                               # (D, 1, W) f32
        wo=wo.astype(jnp.bfloat16),                        # (W, out_ch) bf16
        bo=bo.reshape(1, -1).astype(jnp.float32),          # (1, out_ch) f32
        macs=macs,
    )


def deform_field_reference(x, p):
    """Pure-JAX f32 replica of the PyTorch forward (for tolerance validation)."""
    h = x
    for j, (w, b) in enumerate(p["layers"]):
        h = jnp.maximum(h @ w + b, 0.0)
        if j in p["skips"]:
            h = jnp.concatenate([x, h], axis=-1)
    wo, bo = p["out"]
    o = h @ wo + bo
    if p["deform_type"] == "weights":
        o = jax.nn.softmax(o, axis=-1)
    return o


# ---------------------------------------------------------------------------
if __name__ == "__main__":
    key = jax.random.PRNGKey(0)
    k1, k2, k3, kx1, kx2 = jax.random.split(key, 5)

    # 1) Default DeformField: D=8, W=256, input_ch=3, output_ch=3, skips=[4], 'weights'.
    N1 = 256
    x1 = jax.random.normal(kx1, (N1, 3), jnp.float32)
    p1 = init_deform_params(k1, input_ch=3, D=8, W=256, output_ch=3, skips=(4,),
                            deform_type="weights")
    out1 = deform_field(x1, pack_deform_params(p1))
    ref1 = deform_field_reference(x1, p1)
    jax.block_until_ready((out1, ref1))
    assert out1.shape == (N1, 3)
    assert bool(jnp.all(jnp.abs(jnp.sum(out1, axis=-1) - 1.0) < 1e-3))
    err1 = float(jnp.max(jnp.abs(out1 - ref1)))
    assert err1 < 2e-2, f"softmax output mismatch vs f32 reference: {err1}"

    # 2) MPS-NeRF fused-input style: input_ch=143 (pos-enc 39 + joint-diff 72 + feat 32),
    #    ragged N (not a multiple of 8) exercising the single full-N block path.
    N2 = 200
    x2 = jax.random.normal(kx2, (N2, 143), jnp.float32)
    p2 = init_deform_params(k2, input_ch=143, D=8, W=256, output_ch=3, skips=(4,),
                            deform_type="weights")
    out2 = deform_field(x2, pack_deform_params(p2))
    ref2 = deform_field_reference(x2, p2)
    jax.block_until_ready((out2, ref2))
    assert out2.shape == (N2, 3)
    err2 = float(jnp.max(jnp.abs(out2 - ref2)))
    assert err2 < 2e-2, f"fused-input output mismatch vs f32 reference: {err2}"

    # 3) deform_type='correction': output layer zero-initialized -> exactly zero output.
    p3 = init_deform_params(k3, input_ch=143, D=8, W=256, output_ch=3, skips=(4,),
                            deform_type="correction")
    out3 = deform_field(x2, pack_deform_params(p3))
    jax.block_until_ready(out3)
    assert out3.shape == (N2, 3)
    assert bool(jnp.all(out3 == 0.0))

    print("KERNEL_OK")
</pallas_src>

<mosaic_0001>
module attributes {stable_mosaic.version = 11 : i64} {
  func.func @kernel(%arg0: i32, %arg1: memref<256x128xf32, #tpu.memory_space<vmem>>, %arg2: memref<128x256xbf16, #tpu.memory_space<vmem>>, %arg3: memref<1x384x256xbf16, #tpu.memory_space<vmem>>, %arg4: memref<6x256x256xbf16, #tpu.memory_space<vmem>>, %arg5: memref<8x1x256xf32, #tpu.memory_space<vmem>>, %arg6: memref<256x3xbf16, #tpu.memory_space<vmem>>, %arg7: memref<1x3xf32, #tpu.memory_space<vmem>>, %arg8: memref<256x3xf32, #tpu.memory_space<vmem>>) attributes {dimension_semantics = [#tpu.dimension_semantics<parallel>], iteration_bounds = array<i64: 1>, scalar_prefetch = 0 : i64, scratch_operands = 0 : i64, tpu.core_type = #tpu.core_type<tc>, window_params = [{transform_indices = @transform_0, window_bounds = array<i64: 256, 128>}, {pipeline_mode = #tpu.pipeline_mode<synchronous>, transform_indices = @transform_1, window_bounds = array<i64: 128, 256>}, {pipeline_mode = #tpu.pipeline_mode<synchronous>, transform_indices = @transform_2, window_bounds = array<i64: 1, 384, 256>}, {pipeline_mode = #tpu.pipeline_mode<synchronous>, transform_indices = @transform_3, window_bounds = array<i64: 6, 256, 256>}, {pipeline_mode = #tpu.pipeline_mode<synchronous>, transform_indices = @transform_4, window_bounds = array<i64: 8, 1, 256>}, {pipeline_mode = #tpu.pipeline_mode<synchronous>, transform_indices = @transform_5, window_bounds = array<i64: 256, 3>}, {pipeline_mode = #tpu.pipeline_mode<synchronous>, transform_indices = @transform_6, window_bounds = array<i64: 1, 3>}, {transform_indices = @transform_7, window_bounds = array<i64: 256, 3>}]} {
    %c0 = arith.constant 0 : index
    %c0_0 = arith.constant 0 : index
    %0 = vector.load %arg1[%c0, %c0_0] : memref<256x128xf32, #tpu.memory_space<vmem>>, vector<256x128xf32>
    %1 = arith.truncf %0 : vector<256x128xf32> to vector<256x128xbf16>
    %c0_1 = arith.constant 0 : index
    %c0_2 = arith.constant 0 : index
    %2 = vector.load %arg2[%c0_1, %c0_2] : memref<128x256xbf16, #tpu.memory_space<vmem>>, vector<128x256xbf16>
    %cst = arith.constant dense<0.000000e+00> : vector<256x256xf32>
    %3 = tpu.matmul %1, %2, %cst {dimension_numbers = #tpu.dot_dimension_numbers<[1], [0], [0], [1], [0, 0, 1, 1], [], []>} : vector<256x128xbf16>, vector<128x256xbf16>, vector<256x256xf32> -> vector<256x256xf32>
    %c0_3 = arith.constant 0 : index
    %c0_4 = arith.constant 0 : index
    %c0_5 = arith.constant 0 : index
    %4 = vector.load %arg5[%c0_3, %c0_4, %c0_5] : memref<8x1x256xf32, #tpu.memory_space<vmem>>, vector<1x1x256xf32>
    %5 = vector.shape_cast %4 : vector<1x1x256xf32> to vector<1x256xf32>
    %6 = vector.broadcast %5 : vector<1x256xf32> to vector<256x256xf32>
    %7 = arith.addf %3, %6 : vector<256x256xf32>
    %cst_6 = arith.constant 0.000000e+00 : f32
    %8 = vector.broadcast %cst_6 : f32 to vector<256x256xf32>
    %9 = arith.maximumf %7, %8 : vector<256x256xf32>
    %10 = arith.truncf %9 : vector<256x256xf32> to vector<256x256xbf16>
    %c0_7 = arith.constant 0 : index
    %c0_8 = arith.constant 0 : index
    %c0_9 = arith.constant 0 : index
    %11 = vector.load %arg4[%c0_7, %c0_8, %c0_9] : memref<6x256x256xbf16, #tpu.memory_space<vmem>>, vector<1x256x256xbf16>
    %12 = vector.shape_cast %11 : vector<1x256x256xbf16> to vector<256x256xbf16>
    %cst_10 = arith.constant dense<0.000000e+00> : vector<256x256xf32>
    %13 = tpu.matmul %10, %12, %cst_10 {dimension_numbers = #tpu.dot_dimension_numbers<[1], [0], [0], [1], [0, 0, 1, 1], [], []>} : vector<256x256xbf16>, vector<256x256xbf16>, vector<256x256xf32> -> vector<256x256xf32>
    %c1 = arith.constant 1 : index
    %c0_11 = arith.constant 0 : index
    %c0_12 = arith.constant 0 : index
    %14 = vector.load %arg5[%c1, %c0_11, %c0_12] : memref<8x1x256xf32, #tpu.memory_space<vmem>>, vector<1x1x256xf32>
    %15 = vector.shape_cast %14 : vector<1x1x256xf32> to vector<1x256xf32>
    %16 = vector.broadcast %15 : vector<1x256xf32> to vector<256x256xf32>
    %17 = arith.addf %13, %16 : vector<256x256xf32>
    %cst_13 = arith.constant 0.000000e+00 : f32
    %18 = vector.broadcast %cst_13 : f32 to vector<256x256xf32>
    %19 = arith.maximumf %17, %18 : vector<256x256xf32>
    %20 = arith.truncf %19 : vector<256x256xf32> to vector<256x256xbf16>
    %c1_14 = arith.constant 1 : index
    %c0_15 = arith.constant 0 : index
    %c0_16 = arith.constant 0 : index
    %21 = vector.load %arg4[%c1_14, %c0_15, %c0_16] : memref<6x256x256xbf16, #tpu.memory_space<vmem>>, vector<1x256x256xbf16>
    %22 = vector.shape_cast %21 : vector<1x256x256xbf16> to vector<256x256xbf16>
    %cst_17 = arith.constant dense<0.000000e+00> : vector<256x256xf32>
    %23 = tpu.matmul %20, %22, %cst_17 {dimension_numbers = #tpu.dot_dimension_numbers<[1], [0], [0], [1], [0, 0, 1, 1], [], []>} : vector<256x256xbf16>, vector<256x256xbf16>, vector<256x256xf32> -> vector<256x256xf32>
    %c2 = arith.constant 2 : index
    %c0_18 = arith.constant 0 : index
    %c0_19 = arith.constant 0 : index
    %24 = vector.load %arg5[%c2, %c0_18, %c0_19] : memref<8x1x256xf32, #tpu.memory_space<vmem>>, vector<1x1x256xf32>
    %25 = vector.shape_cast %24 : vector<1x1x256xf32> to vector<1x256xf32>
    %26 = vector.broadcast %25 : vector<1x256xf32> to vector<256x256xf32>
    %27 = arith.addf %23, %26 : vector<256x256xf32>
    %cst_20 = arith.constant 0.000000e+00 : f32
    %28 = vector.broadcast %cst_20 : f32 to vector<256x256xf32>
    %29 = arith.maximumf %27, %28 : vector<256x256xf32>
    %30 = arith.truncf %29 : vector<256x256xf32> to vector<256x256xbf16>
    %c2_21 = arith.constant 2 : index
    %c0_22 = arith.constant 0 : index
    %c0_23 = arith.constant 0 : index
    %31 = vector.load %arg4[%c2_21, %c0_22, %c0_23] : memref<6x256x256xbf16, #tpu.memory_space<vmem>>, vector<1x256x256xbf16>
    %32 = vector.shape_cast %31 : vector<1x256x256xbf16> to vector<256x256xbf16>
    %cst_24 = arith.constant dense<0.000000e+00> : vector<256x256xf32>
    %33 = tpu.matmul %30, %32, %cst_24 {dimension_numbers = #tpu.dot_dimension_numbers<[1], [0], [0], [1], [0, 0, 1, 1], [], []>} : vector<256x256xbf16>, vector<256x256xbf16>, vector<256x256xf32> -> vector<256x256xf32>
    %c3 = arith.constant 3 : index
    %c0_25 = arith.constant 0 : index
    %c0_26 = arith.constant 0 : index
    %34 = vector.load %arg5[%c3, %c0_25, %c0_26] : memref<8x1x256xf32, #tpu.memory_space<vmem>>, vector<1x1x256xf32>
    %35 = vector.shape_cast %34 : vector<1x1x256xf32> to vector<1x256xf32>
    %36 = vector.broadcast %35 : vector<1x256xf32> to vector<256x256xf32>
    %37 = arith.addf %33, %36 : vector<256x256xf32>
    %cst_27 = arith.constant 0.000000e+00 : f32
    %38 = vector.broadcast %cst_27 : f32 to vector<256x256xf32>
    %39 = arith.maximumf %37, %38 : vector<256x256xf32>
    %40 = arith.truncf %39 : vector<256x256xf32> to vector<256x256xbf16>
    %c3_28 = arith.constant 3 : index
    %c0_29 = arith.constant 0 : index
    %c0_30 = arith.constant 0 : index
    %41 = vector.load %arg4[%c3_28, %c0_29, %c0_30] : memref<6x256x256xbf16, #tpu.memory_space<vmem>>, vector<1x256x256xbf16>
    %42 = vector.shape_cast %41 : vector<1x256x256xbf16> to vector<256x256xbf16>
    %cst_31 = arith.constant dense<0.000000e+00> : vector<256x256xf32>
    %43 = tpu.matmul %40, %42, %cst_31 {dimension_numbers = #tpu.dot_dimension_numbers<[1], [0], [0], [1], [0, 0, 1, 1], [], []>} : vector<256x256xbf16>, vector<256x256xbf16>, vector<256x256xf32> -> vector<256x256xf32>
    %c4 = arith.constant 4 : index
    %c0_32 = arith.constant 0 : index
    %c0_33 = arith.constant 0 : index
    %44 = vector.load %arg5[%c4, %c0_32, %c0_33] : memref<8x1x256xf32, #tpu.memory_space<vmem>>, vector<1x1x256xf32>
    %45 = vector.shape_cast %44 : vector<1x1x256xf32> to vector<1x256xf32>
    %46 = vector.broadcast %45 : vector<1x256xf32> to vector<256x256xf32>
    %47 = arith.addf %43, %46 : vector<256x256xf32>
    %cst_34 = arith.constant 0.000000e+00 : f32
    %48 = vector.broadcast %cst_34 : f32 to vector<256x256xf32>
    %49 = arith.maximumf %47, %48 : vector<256x256xf32>
    %50 = arith.truncf %49 : vector<256x256xf32> to vector<256x256xbf16>
    %51 = tpu.concatenate %1, %50 in 1 : vector<256x128xbf16>, vector<256x256xbf16> -> vector<256x384xbf16>
    %c0_35 = arith.constant 0 : index
    %c0_36 = arith.constant 0 : index
    %c0_37 = arith.constant 0 : index
    %52 = vector.load %arg3[%c0_35, %c0_36, %c0_37] : memref<1x384x256xbf16, #tpu.memory_space<vmem>>, vector<1x384x256xbf16>
    %53 = vector.shape_cast %52 : vector<1x384x256xbf16> to vector<384x256xbf16>
    %cst_38 = arith.constant dense<0.000000e+00> : vector<256x256xf32>
    %54 = tpu.matmul %51, %53, %cst_38 {dimension_numbers = #tpu.dot_dimension_numbers<[1], [0], [0], [1], [0, 0, 1, 1], [], []>} : vector<256x384xbf16>, vector<384x256xbf16>, vector<256x256xf32> -> vector<256x256xf32>
    %c5 = arith.constant 5 : index
    %c0_39 = arith.constant 0 : index
    %c0_40 = arith.constant 0 : index
    %55 = vector.load %arg5[%c5, %c0_39, %c0_40] : memref<8x1x256xf32, #tpu.memory_space<vmem>>, vector<1x1x256xf32>
    %56 = vector.shape_cast %55 : vector<1x1x256xf32> to vector<1x256xf32>
    %57 = vector.broadcast %56 : vector<1x256xf32> to vector<256x256xf32>
    %58 = arith.addf %54, %57 : vector<256x256xf32>
    %cst_41 = arith.constant 0.000000e+00 : f32
    %59 = vector.broadcast %cst_41 : f32 to vector<256x256xf32>
    %60 = arith.maximumf %58, %59 : vector<256x256xf32>
    %61 = arith.truncf %60 : vector<256x256xf32> to vector<256x256xbf16>
    %c4_42 = arith.constant 4 : index
    %c0_43 = arith.constant 0 : index
    %c0_44 = arith.constant 0 : index
    %62 = vector.load %arg4[%c4_42, %c0_43, %c0_44] : memref<6x256x256xbf16, #tpu.memory_space<vmem>>, vector<1x256x256xbf16>
    %63 = vector.shape_cast %62 : vector<1x256x256xbf16> to vector<256x256xbf16>
    %cst_45 = arith.constant dense<0.000000e+00> : vector<256x256xf32>
    %64 = tpu.matmul %61, %63, %cst_45 {dimension_numbers = #tpu.dot_dimension_numbers<[1], [0], [0], [1], [0, 0, 1, 1], [], []>} : vector<256x256xbf16>, vector<256x256xbf16>, vector<256x256xf32> -> vector<256x256xf32>
    %c6 = arith.constant 6 : index
    %c0_46 = arith.constant 0 : index
    %c0_47 = arith.constant 0 : index
    %65 = vector.load %arg5[%c6, %c0_46, %c0_47] : memref<8x1x256xf32, #tpu.memory_space<vmem>>, vector<1x1x256xf32>
    %66 = vector.shape_cast %65 : vector<1x1x256xf32> to vector<1x256xf32>
    %67 = vector.broadcast %66 : vector<1x256xf32> to vector<256x256xf32>
    %68 = arith.addf %64, %67 : vector<256x256xf32>
    %cst_48 = arith.constant 0.000000e+00 : f32
    %69 = vector.broadcast %cst_48 : f32 to vector<256x256xf32>
    %70 = arith.maximumf %68, %69 : vector<256x256xf32>
    %71 = arith.truncf %70 : vector<256x256xf32> to vector<256x256xbf16>
    %c5_49 = arith.constant 5 : index
    %c0_50 = arith.constant 0 : index
    %c0_51 = arith.constant 0 : index
    %72 = vector.load %arg4[%c5_49, %c0_50, %c0_51] : memref<6x256x256xbf16, #tpu.memory_space<vmem>>, vector<1x256x256xbf16>
    %73 = vector.shape_cast %72 : vector<1x256x256xbf16> to vector<256x256xbf16>
    %cst_52 = arith.constant dense<0.000000e+00> : vector<256x256xf32>
    %74 = tpu.matmul %71, %73, %cst_52 {dimension_numbers = #tpu.dot_dimension_numbers<[1], [0], [0], [1], [0, 0, 1, 1], [], []>} : vector<256x256xbf16>, vector<256x256xbf16>, vector<256x256xf32> -> vector<256x256xf32>
    %c7 = arith.constant 7 : index
    %c0_53 = arith.constant 0 : index
    %c0_54 = arith.constant 0 : index
    %75 = vector.load %arg5[%c7, %c0_53, %c0_54] : memref<8x1x256xf32, #tpu.memory_space<vmem>>, vector<1x1x256xf32>
    %76 = vector.shape_cast %75 : vector<1x1x256xf32> to vector<1x256xf32>
    %77 = vector.broadcast %76 : vector<1x256xf32> to vector<256x256xf32>
    %78 = arith.addf %74, %77 : vector<256x256xf32>
    %cst_55 = arith.constant 0.000000e+00 : f32
    %79 = vector.broadcast %cst_55 : f32 to vector<256x256xf32>
    %80 = arith.maximumf %78, %79 : vector<256x256xf32>
    %81 = arith.truncf %80 : vector<256x256xf32> to vector<256x256xbf16>
    %c0_56 = arith.constant 0 : index
    %c0_57 = arith.constant 0 : index
    %82 = vector.load %arg6[%c0_56, %c0_57] : memref<256x3xbf16, #tpu.memory_space<vmem>>, vector<256x3xbf16>
    %cst_58 = arith.constant dense<0.000000e+00> : vector<256x3xf32>
    %83 = tpu.matmul %81, %82, %cst_58 {dimension_numbers = #tpu.dot_dimension_numbers<[1], [0], [0], [1], [0, 0, 1, 1], [], []>} : vector<256x256xbf16>, vector<256x3xbf16>, vector<256x3xf32> -> vector<256x3xf32>
    %c0_59 = arith.constant 0 : index
    %c0_60 = arith.constant 0 : index
    %84 = vector.load %arg7[%c0_59, %c0_60] : memref<1x3xf32, #tpu.memory_space<vmem>>, vector<1x3xf32>
    %85 = vector.broadcast %84 : vector<1x3xf32> to vector<256x3xf32>
    %86 = arith.addf %83, %85 : vector<256x3xf32>
    %cst_61 = arith.constant dense<0xFF800000> : vector<256xf32>
    %87 = vector.multi_reduction <maximumf>, %86, %cst_61 [1] : vector<256x3xf32> to vector<256xf32>
    %88 = vector.shape_cast %87 : vector<256xf32> to vector<256x1xf32>
    %89 = vector.broadcast %88 : vector<256x1xf32> to vector<256x3xf32>
    %90 = arith.subf %86, %89 : vector<256x3xf32>
    %91 = math.exp %90 : vector<256x3xf32>
    %cst_62 = arith.constant dense<0.000000e+00> : vector<256xf32>
    %92 = vector.multi_reduction <add>, %91, %cst_62 [1] : vector<256x3xf32> to vector<256xf32>
    %93 = vector.shape_cast %92 : vector<256xf32> to vector<256x1xf32>
    %94 = vector.broadcast %93 : vector<256x1xf32> to vector<256x3xf32>
    %95 = arith.divf %91, %94 : vector<256x3xf32>
    %c0_63 = arith.constant 0 : index
    %c0_64 = arith.constant 0 : index
    %96 = vector.load %arg8[%c0_63, %c0_64] : memref<256x3xf32, #tpu.memory_space<vmem>>, vector<256x3xf32>
    tpu.vector_store %arg8[%c0_63, %c0_64], %95 {strides = array<i32>} : memref<256x3xf32, #tpu.memory_space<vmem>>, vector<256x3xf32>,
    return
  }
  func.func @transform_0(%arg0: i32) -> (i32, i32) {
    %c0_i32 = arith.constant 0 : i32
    %c0_i32_0 = arith.constant 0 : i32
    return %arg0, %c0_i32 : i32, i32
  }
  func.func @transform_1(%arg0: i32) -> (i32, i32) {
    %c0_i32 = arith.constant 0 : i32
    %c0_i32_0 = arith.constant 0 : i32
    %c0_i32_1 = arith.constant 0 : i32
    return %c0_i32, %c0_i32_0 : i32, i32
  }
  func.func @transform_2(%arg0: i32) -> (i32, i32, i32) {
    %c0_i32 = arith.constant 0 : i32
    %c0_i32_0 = arith.constant 0 : i32
    %c0_i32_1 = arith.constant 0 : i32
    %c0_i32_2 = arith.constant 0 : i32
    return %c0_i32, %c0_i32_0, %c0_i32_1 : i32, i32, i32
  }
  func.func @transform_3(%arg0: i32) -> (i32, i32, i32) {
    %c0_i32 = arith.constant 0 : i32
    %c0_i32_0 = arith.constant 0 : i32
    %c0_i32_1 = arith.constant 0 : i32
    %c0_i32_2 = arith.constant 0 : i32
    return %c0_i32, %c0_i32_0, %c0_i32_1 : i32, i32, i32
  }
  func.func @transform_4(%arg0: i32) -> (i32, i32, i32) {
    %c0_i32 = arith.constant 0 : i32
    %c0_i32_0 = arith.constant 0 : i32
    %c0_i32_1 = arith.constant 0 : i32
    %c0_i32_2 = arith.constant 0 : i32
    return %c0_i32, %c0_i32_0, %c0_i32_1 : i32, i32, i32
  }
  func.func @transform_5(%arg0: i32) -> (i32, i32) {
    %c0_i32 = arith.constant 0 : i32
    %c0_i32_0 = arith.constant 0 : i32
    %c0_i32_1 = arith.constant 0 : i32
    return %c0_i32, %c0_i32_0 : i32, i32
  }
  func.func @transform_6(%arg0: i32) -> (i32, i32) {
    %c0_i32 = arith.constant 0 : i32
    %c0_i32_0 = arith.constant 0 : i32
    %c0_i32_1 = arith.constant 0 : i32
    return %c0_i32, %c0_i32_0 : i32, i32
  }
  func.func @transform_7(%arg0: i32) -> (i32, i32) {
    %c0_i32 = arith.constant 0 : i32
    %c0_i32_0 = arith.constant 0 : i32
    return %arg0, %c0_i32 : i32, i32
  }
}

</mosaic_0001>

<bundles_post_ra>
// kernel: tpu_custom_call.1
= control target key start
LH: loop header
LB: loop body
LE: loop exit
PB: predicated region body
PF: predicated region fallthrough
CT: control target
= control target key end

     0   :  { %12 = vsyncpa [#allocation3], 0  ;;  %s11102_s0 = inlined_call_operand.hbm [shape: f32[256,128], index: 0, kind: input, shape index: {}]   ;;  %s11103_s1 = inlined_call_operand.vmem [shape: bf16[128,256], index: 1, kind: input, shape index: {}]   ;;  %s11104_s2 = inlined_call_operand.hbm [shape: bf16[1,384,256], index: 2, kind: input, shape index: {}]   ;;  %s11105_s3 = inlined_call_operand.hbm [shape: bf16[6,256,256], index: 3, kind: input, shape index: {}]   ;;  %s11106_s4 = inlined_call_operand.hbm [shape: f32[8,1,256], index: 4, kind: input, shape index: {}]   ;;  %s11107_s5 = inlined_call_operand.vmem [shape: bf16[256,3], index: 5, kind: input, shape index: {}]   ;;  %s11108_s6 = inlined_call_operand.vmem [shape: f32[1,3], index: 6, kind: input, shape index: {}]   ;;  %s11109_s7 = inlined_call_operand.vmem [shape: f32[256,3], index: 7, kind: output, shape index: {}]  }
   0x1   :  { %13 = vsyncpa [#allocation5], 0 }
   0x2   :  { %14 = vsyncpa [#allocation8], 0  ;;  %s34_s26 = sshll.u32 %s11104_s2, 4  ;;  %s8354_s27 = smov [#allocation4]   ;;  %s35_s26 = int_to_ptr.hbm [resolvable:$true] %s34_s26 }
   0x3   :  { %s36_s28 = sshll.u32 %s8354_s27, 4  ;;  %s19_s8 = sshll.u32 %s11102_s0, 4  ;;  %s37_s28 = int_to_ptr.vmem [resolvable:$true] %s36_s28  ;;  %s20_s8 = int_to_ptr.hbm [resolvable:$true] %s19_s8 }
   0x4   :  { %s8355_s9 = smov 128   ;;  %s8356_s10 = smov 8  }
   0x5   :  { %42 = dma.hbm_to_vmem [thread:$0]  %s35_s26, 6144, %s37_s28, [#allocation5], %s8355_s9, %s8355_s9, %s8356_s10  }
   0x6   :  { %s8357_s11 = smov [#allocation2]   ;;  %s47_s15 = sshll.u32 %s11105_s3, 4  ;;  %s48_s15 = int_to_ptr.hbm [resolvable:$true] %s47_s15 }
   0x7   :  { %s21_s12 = sshll.u32 %s8357_s11, 4  ;;  %s60_s17 = sshll.u32 %s11106_s4, 4  ;;  %s22_s12 = int_to_ptr.vmem [resolvable:$true] %s21_s12  ;;  %s61_s17 = int_to_ptr.hbm [resolvable:$true] %s60_s17 }
   0x8   :  { %27 = dma.hbm_to_vmem [thread:$0]  %s20_s8, 4096, %s22_s12, [#allocation3], %s8355_s9, %s8355_s9, %s8356_s10  }
   0x9   :  { %s8358_s18 = smov [#allocation6]   ;;  %s8359_s0 = smov [#allocation7]  }
   0xa   :  { %s49_s19 = sshll.u32 %s8358_s18, 4  ;;  %s62_s20 = sshll.u32 %s8359_s0, 4  ;;  %s50_s19 = int_to_ptr.vmem [resolvable:$true] %s49_s19  ;;  %s63_s20 = int_to_ptr.vmem [resolvable:$true] %s62_s20 }
   0xb   :  { %55 = dma.hbm_to_vmem [thread:$0]  %s48_s15, 24576, %s50_s19, [#allocation5], %s8355_s9, %s8355_s9, %s8356_s10  }
   0xc   :  { %s8360_s21 = smov 32   ;;  %s8361_s22 = smov 2  }
   0xd   :  { %68 = dma.hbm_to_vmem [thread:$0]  %s61_s17, 256, %s63_s20, [#allocation8], %s8360_s21, %s8360_s21, %s8361_s22  }
   0xe   :  { %8348 = dma.done.wait [#allocation3], 4096  }
   0xf   :  { %8349 = vsyncadd [#allocation3], 4294963200 }
  0x10   :  { %8350 = dma.done.wait [#allocation5], 30720  }
  0x11   :  { %8351 = vsyncadd [#allocation5], 4294936576 }
  0x12   :  { %8352 = dma.done.wait [#allocation8], 256  }
  0x13   :  { %8353 = vsyncadd [#allocation8], 4294967040  ;;  %v6797_v0 = vld [vmem:[%s11103_s1 + $0x70] sm:$0xf]  ;;  %v7842_v1 = vld [vmem:[%s11103_s1 + $0x74] sm:$0xf0] }
  0x14   :  { %v7841_v2 = vld [vmem:[%s11103_s1 + $0x74] sm:$0xf]  ;;  %v6798_v3 = vor.u32 %v7842_v1, %v6797_v0  ;;  %v6799_v4 = vld [vmem:[%s11103_s1 + $0x78] sm:$0xf0]  ;;  %v6789_v5 = vld [vmem:[%s11103_s1 + $0x60] sm:$0xf] }
  0x15   :  { %v7840_v6 = vld [vmem:[%s11103_s1 + $0x64] sm:$0xf0]  ;;  %v6802_v7 = vor.u32 %v7841_v2, %v6799_v4  ;;  %v7839_v8 = vld [vmem:[%s11103_s1 + $0x64] sm:$0xf]  ;;  %v6791_v9 = vld [vmem:[%s11103_s1 + $0x68] sm:$0xf0] }
  0x16   :  { %351 = vmatpush.bf16.msra.mxu0 %v6798_v3  ;;  %8099 = vmatpush.bf16.msra.mxu2 %v6798_v3  ;;  %v6790_v10 = vor.u32 %v7840_v6, %v6789_v5  ;;  %v6794_v11 = vor.u32 %v7839_v8, %v6791_v9  ;;  %v6781_v12 = vld [vmem:[%s11103_s1 + $0x50] sm:$0xf]  ;;  %v7838_v13 = vld [vmem:[%s11103_s1 + $0x54] sm:$0xf0]  ;;  %v7837_v14 = vld [vmem:[%s11103_s1 + $0x54] sm:$0xf] }
  0x17   :  { %440 = vmatpush.bf16.msra.mxu1 %v6802_v7  ;;  %8107 = vmatpush.bf16.msra.mxu3 %v6802_v7  ;;  %v6783_v15 = vld [vmem:[%s11103_s1 + $0x58] sm:$0xf0]  ;;  %v6782_v16 = vor.u32 %v7838_v13, %v6781_v12  ;;  %v6773_v18 = vld [vmem:[%s11103_s1 + $0x40] sm:$0xf]  ;;  %v7836_v19 = vld [vmem:[%s11103_s1 + $0x44] sm:$0xf0] }
  0x18   :  { %v6786_v17 = vor.u32 %v7837_v14, %v6783_v15  ;;  %v7835_v20 = vld [vmem:[%s11103_s1 + $0x44] sm:$0xf]  ;;  %v6775_v21 = vld [vmem:[%s11103_s1 + $0x48] sm:$0xf0]  ;;  %v6774_v22 = vor.u32 %v7836_v19, %v6773_v18  ;;  %v6765_v24 = vld [vmem:[%s11103_s1 + $0x30] sm:$0xf] }
  0x19   :  { %v6778_v23 = vor.u32 %v7835_v20, %v6775_v21  ;;  %v7834_v25 = vld [vmem:[%s11103_s1 + $0x34] sm:$0xf0]  ;;  %v7833_v26 = vld [vmem:[%s11103_s1 + $0x34] sm:$0xf]  ;;  %v6767_v27 = vld [vmem:[%s11103_s1 + $0x38] sm:$0xf0] }
  0x1a   :  { %352 = vmatpush.bf16.msra.mxu0 %v6790_v10  ;;  %8100 = vmatpush.bf16.msra.mxu2 %v6790_v10  ;;  %v6766_v28 = vor.u32 %v7834_v25, %v6765_v24  ;;  %v6770_v29 = vor.u32 %v7833_v26, %v6767_v27  ;;  %v6757_v30 = vld [vmem:[%s11103_s1 + $0x20] sm:$0xf]  ;;  %v7832_v31 = vld [vmem:[%s11103_s1 + $0x24] sm:$0xf0]  ;;  %v7831_v32 = vld [vmem:[%s11103_s1 + $0x24] sm:$0xf] }
  0x1b   :  { %441 = vmatpush.bf16.msra.mxu1 %v6794_v11  ;;  %8108 = vmatpush.bf16.msra.mxu3 %v6794_v11  ;;  %v6759_v33 = vld [vmem:[%s11103_s1 + $0x28] sm:$0xf0]  ;;  %v89_v34 = vld [vmem:[#allocation2] sm:$0xff]  ;;  %v6758_v35 = vor.u32 %v7832_v31, %v6757_v30  ;;  %v6749_v40 = vld [vmem:[%s11103_s1 + $0x10] sm:$0xf]  ;;  %vm5931_vm0 = vcmask 23552  }
  0x1c   :  { %v90_v36 = vld [vmem:[#allocation2 + $0x8] sm:$0xff]  ;;  %v105_v37 = vld [vmem:[#allocation2 + $0x80] sm:$0xff]  ;;  %v6762_v39 = vor.u32 %v7831_v32, %v6759_v33  ;;  %v7830_v41 = vld [vmem:[%s11103_s1 + $0x14] sm:$0xf0]  ;;  %v121_v44 = vpack.c.bf16 %v89_v34, %v89_v34 }
  0x1d   :  { %v106_v38 = vld [vmem:[#allocation2 + $0x88] sm:$0xff]  ;;  %v7829_v42 = vld [vmem:[%s11103_s1 + $0x14] sm:$0xf]  ;;  %v6751_v43 = vld [vmem:[%s11103_s1 + $0x18] sm:$0xf0]  ;;  %v122_v45 = vpack.c.bf16 %v90_v36, %v90_v36  ;;  %v137_v46 = vpack.c.bf16 %v105_v37, %v105_v37  ;;  %v6750_v48 = vor.u32 %v7830_v41, %v6749_v40 }
  0x1e   :  { %353 = vmatpush.bf16.msra.mxu0 %v6782_v16  ;;  %8101 = vmatpush.bf16.msra.mxu2 %v6782_v16  ;;  %v138_v47 = vpack.c.bf16 %v106_v38, %v106_v38  ;;  %v6754_v49 = vor.u32 %v7829_v42, %v6751_v43  ;;  %v6741_v50 = vld [vmem:[%s11103_s1] sm:$0xf]  ;;  %v7828_v51 = vld [vmem:[%s11103_s1 + $0x4] sm:$0xf0]  ;;  %v7827_v52 = vld [vmem:[%s11103_s1 + $0x4] sm:$0xf]  ;;  %v207_v55 = vunpack.c.l.b16 %v121_v44 }
  0x1f   :  { %442 = vmatpush.bf16.msra.mxu1 %v6786_v17  ;;  %8109 = vmatpush.bf16.msra.mxu3 %v6786_v17  ;;  %v6743_v53 = vld [vmem:[%s11103_s1 + $0x8] sm:$0xf0]  ;;  %v6861_v54 = vld [vmem:[#allocation6 + $0x70] sm:$0xf]  ;;  %v208_v56 = vunpack.c.l.b16 %v122_v45  ;;  %v223_v57 = vunpack.c.l.b16 %v137_v46  ;;  %v7858_v59 = vld [vmem:[#allocation6 + $0x74] sm:$0xf0]  ;;  %v6742_v62 = vor.u32 %v7828_v51, %v6741_v50 }
  0x20   :  { %v224_v58 = vunpack.c.l.b16 %v138_v47  ;;  %v6925_v60 = vld [vmem:[#allocation6 + $0xf0] sm:$0xf]  ;;  %v7874_v61 = vld [vmem:[#allocation6 + $0xf4] sm:$0xf0]  ;;  %v6746_v63 = vor.u32 %v7827_v52, %v6743_v53  ;;  %v6862_v0 = vor.u32 %v7858_v59, %v6861_v54  ;;  %v6853_v2 = vld [vmem:[#allocation6 + $0x60] sm:$0xf] }
  0x21   :  { %v6926_v1 = vor.u32 %v7874_v61, %v6925_v60  ;;  %v8510_v3 = vpack.c.b16 %v208_v56, %v207_v55  ;;  %v7856_v5 = vld [vmem:[#allocation6 + $0x64] sm:$0xf0]  ;;  %v6917_v6 = vld [vmem:[#allocation6 + $0xe0] sm:$0xf]  ;;  %v91_v8 = vld [vmem:[#allocation2 + $0x10] sm:$0xff] }
  0x22   :  { %354 = vmatpush.bf16.msra.mxu0 %v6774_v22  ;;  %8102 = vmatpush.bf16.msra.mxu2 %v6774_v22  ;;  %v8512_v4 = vpack.c.b16 %v224_v58, %v223_v57  ;;  %v7872_v7 = vld [vmem:[#allocation6 + $0xe4] sm:$0xf0]  ;;  %v6854_v9 = vor.u32 %v7856_v5, %v6853_v2  ;;  %v92_v11 = vld [vmem:[#allocation2 + $0x18] sm:$0xff]  ;;  %v107_v12 = vld [vmem:[#allocation2 + $0x90] sm:$0xff]  ;;  %v123_v20 = vpack.c.bf16 %v91_v8, %v91_v8 }
  0x23   :  { %443 = vmatpush.bf16.msra.mxu1 %v6778_v23  ;;  %8110 = vmatpush.bf16.msra.mxu3 %v6778_v23  ;;  %v6918_v10 = vor.u32 %v7872_v7, %v6917_v6  ;;  %v108_v13 = vld [vmem:[#allocation2 + $0x98] sm:$0xff]  ;;  %v6845_v14 = vld [vmem:[#allocation6 + $0x50] sm:$0xf]  ;;  %v124_v21 = vpack.c.bf16 %v92_v11, %v92_v11  ;;  %v139_v22 = vpack.c.bf16 %v107_v12, %v107_v12  ;;  %v93_v30 = vld [vmem:[#allocation2 + $0x20] sm:$0xff] }
  0x24   :  { %v7854_v15 = vld [vmem:[#allocation6 + $0x54] sm:$0xf0]  ;;  %v6909_v16 = vld [vmem:[#allocation6 + $0xd0] sm:$0xf]  ;;  %v140_v23 = vpack.c.bf16 %v108_v13, %v108_v13  ;;  %v209_v24 = vunpack.c.l.b16 %v123_v20  ;;  %v94_v31 = vld [vmem:[#allocation2 + $0x28] sm:$0xff]  ;;  %v125_v40 = vpack.c.bf16 %v93_v30, %v93_v30 }
  0x25   :  { %v7870_v17 = vld [vmem:[#allocation6 + $0xd4] sm:$0xf0]  ;;  %v6846_v18 = vor.u32 %v7854_v15, %v6845_v14  ;;  %v210_v25 = vunpack.c.l.b16 %v124_v21  ;;  %v225_v26 = vunpack.c.l.b16 %v139_v22  ;;  %v109_v32 = vld [vmem:[#allocation2 + $0xa0] sm:$0xff]  ;;  %v110_v33 = vld [vmem:[#allocation2 + $0xa8] sm:$0xff]  ;;  %v126_v41 = vpack.c.bf16 %v94_v31, %v94_v31 }
  0x26   :  { %355 = vmatpush.bf16.msra.mxu0 %v6766_v28  ;;  %8103 = vmatpush.bf16.msra.mxu2 %v6766_v28  ;;  %v6910_v19 = vor.u32 %v7870_v17, %v6909_v16  ;;  %v226_v27 = vunpack.c.l.b16 %v140_v23  ;;  %v6837_v34 = vld [vmem:[#allocation6 + $0x40] sm:$0xf]  ;;  %v7868_v38 = vld [vmem:[#allocation6 + $0xc4] sm:$0xf0]  ;;  %v141_v42 = vpack.c.bf16 %v109_v32, %v109_v32  ;;  %v142_v43 = vpack.c.bf16 %v110_v33, %v110_v33  ;;  %v95_v50 = vld [vmem:[#allocation2 + $0x30] sm:$0xff] }
  0x27   :  { %444 = vmatpush.bf16.msra.mxu1 %v6770_v29  ;;  %8111 = vmatpush.bf16.msra.mxu3 %v6770_v29  ;;  %v8518_v28 = vpack.c.b16 %v210_v25, %v209_v24  ;;  %v6901_v36 = vld [vmem:[#allocation6 + $0xc0] sm:$0xf]  ;;  %v211_v44 = vunpack.c.l.b16 %v125_v40  ;;  %v212_v45 = vunpack.c.l.b16 %v126_v41  ;;  %v96_v51 = vld [vmem:[#allocation2 + $0x38] sm:$0xff]  ;;  %v111_v52 = vld [vmem:[#allocation2 + $0xb0] sm:$0xff]  ;;  %v127_v60 = vpack.c.bf16 %v95_v50, %v95_v50 }
  0x28   :  { %v8520_v29 = vpack.c.b16 %v226_v27, %v225_v26  ;;  %v227_v46 = vunpack.c.l.b16 %v141_v42  ;;  %v228_v47 = vunpack.c.l.b16 %v142_v43  ;;  %v112_v53 = vld [vmem:[#allocation2 + $0xb8] sm:$0xff]  ;;  %v6829_v54 = vld [vmem:[#allocation6 + $0x30] sm:$0xf]  ;;  %v128_v61 = vpack.c.bf16 %v96_v51, %v96_v51  ;;  %v97_v8 = vld [vmem:[#allocation2 + $0x40] sm:$0xff] }
  0x29   :  { %v7850_v55 = vld [vmem:[#allocation6 + $0x34] sm:$0xf0]  ;;  %v6893_v56 = vld [vmem:[#allocation6 + $0xb0] sm:$0xf]  ;;  %v114_v11 = vld [vmem:[#allocation2 + $0xc8] sm:$0xff] }
  0x2a   :  { %356 = vmatpush.bf16.msra.mxu0 %v6758_v35  ;;  %8104 = vmatpush.bf16.msra.mxu2 %v6758_v35  ;;  %v7852_v35 = vld [vmem:[#allocation6 + $0x44] sm:$0xf0]  ;;  %v6830_v57 = vor.u32 %v7850_v55, %v6829_v54  ;;  %v7866_v58 = vld [vmem:[#allocation6 + $0xb4] sm:$0xf0]  ;;  %v6821_v12 = vld [vmem:[#allocation6 + $0x20] sm:$0xf]  ;;  %v146_v21 = vpack.c.bf16 %v114_v11, %v114_v11 }
  0x2b   :  { %445 = vmatpush.bf16.msra.mxu1 %v6762_v39  ;;  %8112 = vmatpush.bf16.msra.mxu3 %v6762_v39  ;;  %v6838_v37 = vor.u32 %v7852_v35, %v6837_v34  ;;  %v6902_v39 = vor.u32 %v7868_v38, %v6901_v36  ;;  %v6894_v59 = vor.u32 %v7866_v58, %v6893_v56  ;;  %v7848_v13 = vld [vmem:[#allocation6 + $0x24] sm:$0xf0]  ;;  %v6885_v14 = vld [vmem:[#allocation6 + $0xa0] sm:$0xf]  ;;  %v99_v30 = vld [vmem:[#allocation2 + $0x50] sm:$0xff] }
  0x2c   :  { %v6822_v15 = vor.u32 %v7848_v13, %v6821_v12  ;;  %v7864_v16 = vld [vmem:[#allocation6 + $0xa4] sm:$0xf0]  ;;  %v232_v25 = vunpack.c.l.b16 %v146_v21  ;;  %v100_v31 = vld [vmem:[#allocation2 + $0x58] sm:$0xff]  ;;  %v115_v32 = vld [vmem:[#allocation2 + $0xd0] sm:$0xff]  ;;  %v131_v41 = vpack.c.bf16 %v99_v30, %v99_v30 }
  0x2d   :  { %v6886_v17 = vor.u32 %v7864_v16, %v6885_v14  ;;  %v116_v33 = vld [vmem:[#allocation2 + $0xd8] sm:$0xff]  ;;  %v6813_v34 = vld [vmem:[#allocation6 + $0x10] sm:$0xf]  ;;  %v7857_v36 = vld [vmem:[#allocation6 + $0x74] sm:$0xf] }
  0x2e   :  { %357 = vmatpush.bf16.msra.mxu0 %v6750_v48  ;;  %8105 = vmatpush.bf16.msra.mxu2 %v6750_v48  ;;  %v8526_v48 = vpack.c.b16 %v212_v45, %v211_v44  ;;  %v7846_v35 = vld [vmem:[#allocation6 + $0x14] sm:$0xf0]  ;;  %v6863_v38 = vld [vmem:[#allocation6 + $0x78] sm:$0xf0]  ;;  %v6877_v44 = vld [vmem:[#allocation6 + $0x90] sm:$0xf]  ;;  %v148_v50 = vpack.c.bf16 %v116_v33, %v116_v33 }
  0x2f   :  { %446 = vmatpush.bf16.msra.mxu1 %v6754_v49  ;;  %8113 = vmatpush.bf16.msra.mxu3 %v6754_v49  ;;  %v8528_v49 = vpack.c.b16 %v228_v47, %v227_v46  ;;  %v6927_v40 = vld [vmem:[#allocation6 + $0xf8] sm:$0xf0]  ;;  %v6866_v42 = vor.u32 %v7857_v36, %v6863_v38  ;;  %v7862_v45 = vld [vmem:[#allocation6 + $0x94] sm:$0xf0]  ;;  %v132_v46 = vpack.c.bf16 %v100_v31, %v100_v31  ;;  %v101_v58 = vld [vmem:[#allocation2 + $0x60] sm:$0xff] }
  0x30   :  { %v147_v47 = vpack.c.bf16 %v115_v32, %v115_v32  ;;  %v6878_v51 = vor.u32 %v7862_v45, %v6877_v44  ;;  %v234_v55 = vunpack.c.l.b16 %v148_v50  ;;  %v6911_v12 = vld [vmem:[#allocation6 + $0xd8] sm:$0xf0]  ;;  %v7851_v14 = vld [vmem:[#allocation6 + $0x44] sm:$0xf]  ;;  %v6805_v16 = vld [vmem:[#allocation6] sm:$0xf] }
  0x31   :  { %v7867_v21 = vld [vmem:[#allocation6 + $0xc4] sm:$0xf]  ;;  %v6831_v36 = vld [vmem:[#allocation6 + $0x38] sm:$0xf0] }
  0x32   :  { %358 = vmatpush.bf16.msra.mxu0 %v6742_v62  ;;  %8106 = vmatpush.bf16.msra.mxu2 %v6742_v62  ;;  %v143_v62 = vpack.c.bf16 %v111_v52, %v111_v52  ;;  %v217_v52 = vunpack.c.l.b16 %v131_v41  ;;  %v233_v54 = vunpack.c.l.b16 %v147_v47  ;;  %v6895_v41 = vld [vmem:[#allocation6 + $0xb8] sm:$0xf0]  ;;  %v7847_v45 = vld [vmem:[#allocation6 + $0x24] sm:$0xf]  ;;  %v119_v47 = vld [vmem:[#allocation2 + $0xf0] sm:$0xff] }
  0x33   :  { %447 = vmatpush.bf16.msra.mxu1 %v6746_v63  ;;  %8114 = vmatpush.bf16.msra.mxu3 %v6746_v63  ;;  %v144_v63 = vpack.c.bf16 %v112_v53, %v112_v53  ;;  %v218_v53 = vunpack.c.l.b16 %v132_v46  ;;  %v104_v44 = vld [vmem:[#allocation2 + $0x78] sm:$0xff]  ;;  %v6823_v46 = vld [vmem:[#allocation6 + $0x28] sm:$0xf0] }
  0x34   :  { %v229_v2 = vunpack.c.l.b16 %v143_v62  ;;  %v7871_v62 = vld [vmem:[#allocation6 + $0xe4] sm:$0xf]  ;;  %v6826_v50 = vor.u32 %v7847_v45, %v6823_v46 }
  0x35   :  { %359 = vmatmul.bf16.vlgmr.msra.gmra.mxu0 %v8510_v3  ;;  %399 = vmatmul.bf16.vlgmr.msra.gmra.mxu2 %v8512_v4  ;;  %v230_v5 = vunpack.c.l.b16 %v144_v63  ;;  %v8550_v56 = vpack.c.b16 %v218_v53, %v217_v52  ;;  %v117_v63 = vld [vmem:[#allocation2 + $0xe0] sm:$0xff]  ;;  %v6887_v52 = vld [vmem:[#allocation6 + $0xa8] sm:$0xf0]  ;;  %v120_v53 = vld [vmem:[#allocation2 + $0xf8] sm:$0xff] }
  0x36   :  { %824 = vmatpush.bf16.msrb.mxu2 %v6862_v0  ;;  %448 = vmatmul.bf16.vlgmr.msra.gmra.mxu1 %v8510_v3  ;;  %v213_v0 = vunpack.c.l.b16 %v127_v60  ;;  %v7855_v60 = vld [vmem:[#allocation6 + $0x64] sm:$0xf] }
  0x37   :  { %913 = vmatpush.bf16.msrb.mxu3 %v6926_v1  ;;  %v214_v1 = vunpack.c.l.b16 %v128_v61  ;;  %v8536_v7 = vpack.c.b16 %v230_v5, %v229_v2  ;;  %1002 = vmatpush.bf16.msrb.mxu0 %v6866_v42  ;;  %v6855_v61 = vld [vmem:[#allocation6 + $0x68] sm:$0xf0] }
  0x38   :  { %488 = vmatmul.bf16.vlgmr.msra.gmra.mxu3 %v8512_v4  ;;  %v6919_v2 = vld [vmem:[#allocation6 + $0xe8] sm:$0xf0] }
  0x39   :  { %v8534_v6 = vpack.c.b16 %v214_v1, %v213_v0  ;;  %11133 = vst [vmem:[#allocation12_spill] sm:$0xff] %v8536_v7  ;;  %v118_v0 = vld [vmem:[#allocation2 + $0xe8] sm:$0xff]  ;;  %v6858_v1 = vor.u32 %v7855_v60, %v6855_v61  ;;  %v6922_v5 = vor.u32 %v7871_v62, %v6919_v2  ;;  %v7845_v61 = vld [vmem:[#allocation6 + $0x14] sm:$0xf]  ;;  %v6815_v62 = vld [vmem:[#allocation6 + $0x18] sm:$0xf0]  ;;  %v152_v2 = vpack.c.bf16 %v120_v53, %v120_v53 }
  0x3a   :  { %825 = vmatpush.bf16.msrb.mxu2 %v6854_v9  ;;  %v98_v9 = vld [vmem:[#allocation2 + $0x48] sm:$0xff] }
  0x3b   :  { %914 = vmatpush.bf16.msrb.mxu3 %v6918_v10  ;;  %v113_v10 = vld [vmem:[#allocation2 + $0xc0] sm:$0xff]  ;;  %1003 = vmatpush.bf16.msrb.mxu0 %v6858_v1  ;;  %v151_v1 = vpack.c.bf16 %v119_v47, %v119_v47 }
  0x3c   :  { %v145_v20 = vpack.c.bf16 %v113_v10, %v113_v10  ;;  %v7869_v10 = vld [vmem:[#allocation6 + $0xd4] sm:$0xf] }
  0x3d   :  { %v6914_v13 = vor.u32 %v7869_v10, %v6911_v12  ;;  %v6807_v12 = vld [vmem:[#allocation6 + $0x8] sm:$0xf0] }
  0x3e   :  { %826 = vmatpush.bf16.msrb.mxu2 %v6846_v18  ;;  %v129_v18 = vpack.c.bf16 %v97_v8, %v97_v8  ;;  %v231_v24 = vunpack.c.l.b16 %v145_v20  ;;  %v7853_v8 = vld [vmem:[#allocation6 + $0x54] sm:$0xf]  ;;  %v150_v20 = vpack.c.bf16 %v118_v0, %v118_v0  ;;  %v136_v0 = vpack.c.bf16 %v104_v44, %v104_v44 }
  0x3f   :  { %915 = vmatpush.bf16.msrb.mxu3 %v6910_v19  ;;  %v130_v19 = vpack.c.bf16 %v98_v9, %v98_v9  ;;  %v6847_v9 = vld [vmem:[#allocation6 + $0x58] sm:$0xf0] }
  0x40   :  { %v215_v22 = vunpack.c.l.b16 %v129_v18  ;;  %v8544_v27 = vpack.c.b16 %v232_v25, %v231_v24  ;;  %v6850_v11 = vor.u32 %v7853_v8, %v6847_v9  ;;  %v6879_v8 = vld [vmem:[#allocation6 + $0x98] sm:$0xf0] }
  0x41   :  { %v216_v23 = vunpack.c.l.b16 %v130_v19  ;;  %v149_v19 = vpack.c.bf16 %v117_v63, %v117_v63  ;;  %v7861_v63 = vld [vmem:[#allocation6 + $0x94] sm:$0xf] }
  0x42   :  { %827 = vmatpush.bf16.msrb.mxu2 %v6838_v37  ;;  %11134 = vst [vmem:[#allocation13_spill] sm:$0xff] %v8544_v27  ;;  %v6814_v37 = vor.u32 %v7846_v35, %v6813_v34  ;;  %1004 = vmatpush.bf16.msrb.mxu0 %v6850_v11  ;;  %v236_v34 = vunpack.c.l.b16 %v150_v20  ;;  %v7849_v35 = vld [vmem:[#allocation6 + $0x34] sm:$0xf]  ;;  %v6882_v9 = vor.u32 %v7861_v63, %v6879_v8  ;;  %v7843_v11 = vld [vmem:[#allocation6 + $0x4] sm:$0xf] }
  0x43   :  { %916 = vmatpush.bf16.msrb.mxu3 %v6902_v39  ;;  %v8542_v26 = vpack.c.b16 %v216_v23, %v215_v22  ;;  %v7873_v39 = vld [vmem:[#allocation6 + $0xf4] sm:$0xf]  ;;  %v6903_v22 = vld [vmem:[#allocation6 + $0xc8] sm:$0xf0]  ;;  %v7844_v23 = vld [vmem:[#allocation6 + $0x4] sm:$0xf0]  ;;  %v235_v33 = vunpack.c.l.b16 %v149_v19 }
  0x44   :  { %v6930_v43 = vor.u32 %v7873_v39, %v6927_v40  ;;  %v6806_v24 = vor.u32 %v7844_v23, %v6805_v16  ;;  %v6906_v30 = vor.u32 %v7867_v21, %v6903_v22  ;;  %v6834_v40 = vor.u32 %v7849_v35, %v6831_v36  ;;  %v6989_v22 = vld [vmem:[#allocation6 + $0x170] sm:$0xf]  ;;  %v7890_v23 = vld [vmem:[#allocation6 + $0x174] sm:$0xf0] }
  0x45   :  { %364 = vmatmul.bf16.gmra.mxu0 %v8518_v28  ;;  %404 = vmatmul.bf16.gmra.mxu2 %v8520_v29  ;;  %v8560_v39 = vpack.c.b16 %v236_v34, %v235_v33  ;;  %v238_v16 = vunpack.c.l.b16 %v152_v2  ;;  %v6981_v2 = vld [vmem:[#allocation6 + $0x160] sm:$0xf] }
  0x46   :  { %453 = vmatmul.bf16.gmra.mxu1 %v8518_v28  ;;  %828 = vmatpush.bf16.msrb.mxu2 %v6830_v57  ;;  %v8552_v57 = vpack.c.b16 %v234_v55, %v233_v54  ;;  %v6869_v54 = vld [vmem:[#allocation6 + $0x80] sm:$0xf]  ;;  %v7860_v55 = vld [vmem:[#allocation6 + $0x84] sm:$0xf0] }
  0x47   :  { %917 = vmatpush.bf16.msrb.mxu3 %v6894_v59  ;;  %1091 = vmatpush.bf16.msrb.mxu1 %v6930_v43  ;;  %v102_v59 = vld [vmem:[#allocation2 + $0x68] sm:$0xff]  ;;  %11136 = vst [vmem:[#allocation15_spill] sm:$0xff] %v8560_v39  ;;  %v103_v43 = vld [vmem:[#allocation2 + $0x70] sm:$0xff] }
  0x48   :  { %493 = vmatmul.bf16.gmra.mxu3 %v8520_v29  ;;  %11135 = vst [vmem:[#allocation14_spill] sm:$0xff] %v8552_v57  ;;  %v134_v18 = vpack.c.bf16 %v102_v59, %v102_v59  ;;  %v6870_v59 = vor.u32 %v7860_v55, %v6869_v54  ;;  %v135_v60 = vpack.c.bf16 %v103_v43, %v103_v43 }
  0x4a   :  { %829 = vmatpush.bf16.msrb.mxu2 %v6822_v15  ;;  %v6839_v15 = vld [vmem:[#allocation6 + $0x48] sm:$0xf0]  ;;  %v220_v32 = vunpack.c.l.b16 %v134_v18  ;;  %v221_v10 = vunpack.c.l.b16 %v135_v60 }
  0x4b   :  { %918 = vmatpush.bf16.msrb.mxu3 %v6886_v17  ;;  %1092 = vmatpush.bf16.msrb.mxu1 %v6922_v5  ;;  %v133_v17 = vpack.c.bf16 %v101_v58, %v101_v58  ;;  %v6842_v25 = vor.u32 %v7851_v14, %v6839_v15  ;;  %v6818_v5 = vor.u32 %v7845_v61, %v6815_v62  ;;  %v222_v14 = vunpack.c.l.b16 %v136_v0  ;;  %v6871_v18 = vld [vmem:[#allocation6 + $0x88] sm:$0xf0] }
  0x4c   :  { %v237_v15 = vunpack.c.l.b16 %v151_v1 }
  0x4d   :  { %v219_v31 = vunpack.c.l.b16 %v133_v17  ;;  %1005 = vmatpush.bf16.msrb.mxu0 %v6842_v25  ;;  %v6810_v17 = vor.u32 %v7843_v11, %v6807_v12  ;;  %v8566_v20 = vpack.c.b16 %v222_v14, %v221_v10  ;;  %v7053_v25 = vld [vmem:[#allocation6 + $0x1f0] sm:$0xf]  ;;  %v7904_v14 = vld [vmem:[#allocation6 + $0x1e4] sm:$0xf0] }
  0x4e   :  { %830 = vmatpush.bf16.msrb.mxu2 %v6814_v37  ;;  %v7865_v37 = vld [vmem:[#allocation6 + $0xb4] sm:$0xf]  ;;  %v8568_v21 = vpack.c.b16 %v238_v16, %v237_v15 }
  0x4f   :  { %919 = vmatpush.bf16.msrb.mxu3 %v6878_v51  ;;  %1093 = vmatpush.bf16.msrb.mxu1 %v6914_v13  ;;  %v8558_v38 = vpack.c.b16 %v220_v32, %v219_v31  ;;  %v6898_v42 = vor.u32 %v7865_v37, %v6895_v41  ;;  %v7863_v51 = vld [vmem:[#allocation6 + $0xa4] sm:$0xf]  ;;  %v169_v32 = vld [vmem:[#allocation7] sm:$0x3] }
  0x50   :  { %v6890_v58 = vor.u32 %v7863_v51, %v6887_v52  ;;  %v7859_v13 = vld [vmem:[#allocation6 + $0x84] sm:$0xf]  ;;  %11137 = vst [vmem:[#allocation16_spill] sm:$0xff] %v8568_v21  ;;  %v8574_v35 = vperm.slane %v169_v32, 0  ;;  %v8576_v36 = vperm.slane %v169_v32, 1 }
  0x51   :  { %1006 = vmatpush.bf16.msrb.mxu0 %v6834_v40  ;;  %v6874_v19 = vor.u32 %v7859_v13, %v6871_v18  ;;  %v7045_v13 = vld [vmem:[#allocation6 + $0x1e0] sm:$0xf] }
  0x52   :  { %831 = vmatpush.bf16.msrb.mxu2 %v6806_v24  ;;  %v6990_v24 = vor.u32 %v7890_v23, %v6989_v22  ;;  %v7046_v16 = vor.u32 %v7904_v14, %v7045_v13 }
  0x53   :  { %1094 = vmatpush.bf16.msrb.mxu1 %v6906_v30  ;;  %920 = vmatpush.bf16.msrb.mxu3 %v6870_v59  ;;  %v7906_v30 = vld [vmem:[#allocation6 + $0x1f4] sm:$0xf0] }
  0x54   :  { %v7054_v31 = vor.u32 %v7906_v30, %v7053_v25 }
  0x55   :  { %369 = vmatmul.bf16.gmra.mxu0 %v8526_v48  ;;  %409 = vmatmul.bf16.gmra.mxu2 %v8528_v49 }
  0x56   :  { %458 = vmatmul.bf16.gmra.mxu1 %v8526_v48  ;;  %1007 = vmatpush.bf16.msrb.mxu0 %v6826_v50 }
  0x57   :  { %1095 = vmatpush.bf16.msrb.mxu1 %v6898_v42  ;;  %1476 = vmatpush.bf16.msra.mxu2 %v6990_v24 }
  0x58   :  { %498 = vmatmul.bf16.gmra.mxu3 %v8528_v49 }
  0x59   :  { %1565 = vmatpush.bf16.msra.mxu3 %v7054_v31 }
  0x5a   :  { %1008 = vmatpush.bf16.msrb.mxu0 %v6818_v5  ;;  %v7888_v5 = vld [vmem:[#allocation6 + $0x164] sm:$0xf0] }
  0x5b   :  { %1096 = vmatpush.bf16.msrb.mxu1 %v6890_v58  ;;  %v6982_v10 = vor.u32 %v7888_v5, %v6981_v2 }
  0x5d   :  { %1477 = vmatpush.bf16.msra.mxu2 %v6982_v10  ;;  %1566 = vmatpush.bf16.msra.mxu3 %v7046_v16 }
  0x5e   :  { %1009 = vmatpush.bf16.msrb.mxu0 %v6810_v17 }
  0x5f   :  { %1097 = vmatpush.bf16.msrb.mxu1 %v6882_v9 }
  0x63   :  { %1098 = vmatpush.bf16.msrb.mxu1 %v6874_v19 }
  0x65   :  { %374 = vmatmul.bf16.gmra.mxu0 %v8534_v6  ;;  %414 = vmatmul.bf16.gmra.mxu2 %v8536_v7 }
  0x66   :  { %463 = vmatmul.bf16.gmra.mxu1 %v8534_v6 }
  0x68   :  { %503 = vmatmul.bf16.gmra.mxu3 %v8536_v7 }
  0x75   :  { %379 = vmatmul.bf16.gmra.mxu0 %v8542_v26  ;;  %419 = vmatmul.bf16.gmra.mxu2 %v8544_v27 }
  0x76   :  { %468 = vmatmul.bf16.gmra.mxu1 %v8542_v26 }
  0x78   :  { %508 = vmatmul.bf16.gmra.mxu3 %v8544_v27 }
  0x85   :  { %384 = vmatmul.bf16.gmra.mxu0 %v8550_v56  ;;  %424 = vmatmul.bf16.gmra.mxu2 %v8552_v57 }
  0x86   :  { %473 = vmatmul.bf16.gmra.mxu1 %v8550_v56 }
  0x88   :  { %513 = vmatmul.bf16.gmra.mxu3 %v8552_v57 }
  0x95   :  { %389 = vmatmul.bf16.gmra.mxu0 %v8558_v38  ;;  %429 = vmatmul.bf16.gmra.mxu2 %v8560_v39 }
  0x96   :  { %478 = vmatmul.bf16.gmra.mxu1 %v8558_v38 }
  0x98   :  { %518 = vmatmul.bf16.gmra.mxu3 %v8560_v39 }
  0xa5   :  { %394 = vmatmul.bf16.gmra.mxu0 %v8566_v20  ;;  %434 = vmatmul.bf16.gmra.mxu2 %v8568_v21 }
  0xa6   :  { %483 = vmatmul.bf16.gmra.mxu1 %v8566_v20 }
  0xa8   :  { %523 = vmatmul.bf16.gmra.mxu3 %v8568_v21 }
  0xb2   :  { %v360_v33 = vpop.f32.mrf.mxu0 }
  0xb3   :  { %v449_v34 = vpop.f32.mrf.mxu1  ;;  %v361_v40 = vadd.f32 %v360_v33, %v8574_v35 }
  0xb4   :  { %v450_v42 = vadd.f32 %v449_v34, %v8576_v36 }
  0xb5   :  { %v529_v47 = vmax.f32 %v361_v40, 0.0 }
  0xb6   :  { %v530_v52 = vmax.f32 %v450_v42, 0.0 }
  0xb8   :  { %v400_v37 = vpop.f32.mrf.mxu2 }
  0xb9   :  { %v401_v51 = vadd.f32 %v400_v37, %v8574_v35 }
  0xba   :  { %v362_v43 = vpop.f32.mrf.mxu0 }
  0xbb   :  { %v489_v41 = vpop.f32.mrf.mxu3  ;;  %v363_v44 = vadd.f32 %v362_v43, %v8574_v35  ;;  %v451_v45 = vpop.f32.mrf.mxu1  ;;  %v561_v60 = vmax.f32 %v401_v51, 0.0 }
  0xbc   :  { %v452_v46 = vadd.f32 %v451_v45, %v8576_v36  ;;  %v490_v54 = vadd.f32 %v489_v41, %v8576_v36 }
  0xbd   :  { %v531_v50 = vmax.f32 %v363_v44, 0.0 }
  0xbe   :  { %v532_v53 = vmax.f32 %v452_v46, 0.0  ;;  %v562_v63 = vmax.f32 %v490_v54, 0.0 }
  0xbf   :  { %v593_v55 = vpack.c.bf16 %v531_v50, %v529_v47 }
  0xc0   :  { %v594_v58 = vpack.c.bf16 %v532_v53, %v530_v52  ;;  %v402_v59 = vpop.f32.mrf.mxu2 }
  0xc1   :  { %832 = vmatmul.bf16.vlgmr.msrb.gmra.mxu2 %v593_v55  ;;  %1010 = vmatmul.bf16.vlgmr.msrb.gmra.mxu0 %v593_v55  ;;  %v403_v61 = vadd.f32 %v402_v59, %v8574_v35 }
  0xc2   :  { %921 = vmatmul.bf16.vlgmr.msrb.gmra.mxu3 %v594_v58  ;;  %1099 = vmatmul.bf16.vlgmr.msrb.gmra.mxu1 %v594_v58  ;;  %v365_v0 = vpop.f32.mrf.mxu0 }
  0xc3   :  { %v491_v62 = vpop.f32.mrf.mxu3  ;;  %v454_v8 = vpop.f32.mrf.mxu1  ;;  %v563_v9 = vmax.f32 %v403_v61, 0.0  ;;  %v366_v18 = vadd.f32 %v365_v0, %v8574_v35 }
  0xc4   :  { %v492_v1 = vadd.f32 %v491_v62, %v8576_v36  ;;  %v455_v22 = vadd.f32 %v454_v8, %v8576_v36 }
  0xc5   :  { %v8586_v12 = vpack.c.bf16 %v563_v9, %v561_v60  ;;  %v533_v31 = vmax.f32 %v366_v18, 0.0 }
  0xc6   :  { %v564_v11 = vmax.f32 %v492_v1, 0.0  ;;  %v534_v34 = vmax.f32 %v455_v22, 0.0 }
  0xc8   :  { %v8588_v15 = vpack.c.bf16 %v564_v11, %v562_v63  ;;  %v405_v17 = vpop.f32.mrf.mxu2 }
  0xc9   :  { %v406_v33 = vadd.f32 %v405_v17, %v8574_v35 }
  0xca   :  { %v367_v23 = vpop.f32.mrf.mxu0 }
  0xcb   :  { %v494_v19 = vpop.f32.mrf.mxu3  ;;  %v368_v24 = vadd.f32 %v367_v23, %v8574_v35  ;;  %v456_v25 = vpop.f32.mrf.mxu1  ;;  %v565_v44 = vmax.f32 %v406_v33, 0.0 }
  0xcc   :  { %v457_v30 = vadd.f32 %v456_v25, %v8576_v36  ;;  %v495_v40 = vadd.f32 %v494_v19, %v8576_v36 }
  0xcd   :  { %v535_v32 = vmax.f32 %v368_v24, 0.0 }
  0xce   :  { %v536_v37 = vmax.f32 %v457_v30, 0.0  ;;  %v566_v47 = vmax.f32 %v495_v40, 0.0  ;;  %v6973_v30 = vld [vmem:[#allocation6 + $0x150] sm:$0xf] }
  0xcf   :  { %v595_v41 = vpack.c.bf16 %v535_v32, %v533_v31  ;;  %v7886_v31 = vld [vmem:[#allocation6 + $0x154] sm:$0xf0] }
  0xd0   :  { %v596_v42 = vpack.c.bf16 %v536_v37, %v534_v34  ;;  %v407_v43 = vpop.f32.mrf.mxu2  ;;  %v6974_v34 = vor.u32 %v7886_v31, %v6973_v30 }
  0xd1   :  { %837 = vmatmul.bf16.gmra.mxu2 %v595_v41  ;;  %1015 = vmatmul.bf16.gmra.mxu0 %v595_v41  ;;  %v408_v45 = vadd.f32 %v407_v43, %v8574_v35  ;;  %v7037_v41 = vld [vmem:[#allocation6 + $0x1d0] sm:$0xf] }
  0xd2   :  { %926 = vmatmul.bf16.gmra.mxu3 %v596_v42  ;;  %1104 = vmatmul.bf16.gmra.mxu1 %v596_v42  ;;  %v370_v50 = vpop.f32.mrf.mxu0  ;;  %v7902_v42 = vld [vmem:[#allocation6 + $0x1d4] sm:$0xf0] }
  0xd3   :  { %v496_v46 = vpop.f32.mrf.mxu3  ;;  %v459_v52 = vpop.f32.mrf.mxu1  ;;  %v567_v53 = vmax.f32 %v408_v45, 0.0  ;;  %v371_v60 = vadd.f32 %v370_v50, %v8574_v35  ;;  %1478 = vmatpush.bf16.msra.mxu2 %v6974_v34 }
  0xd4   :  { %v497_v51 = vadd.f32 %v496_v46, %v8576_v36  ;;  %v460_v62 = vadd.f32 %v459_v52, %v8576_v36 }
  0xd5   :  { %v8598_v55 = vpack.c.bf16 %v567_v53, %v565_v44  ;;  %v537_v5 = vmax.f32 %v371_v60, 0.0  ;;  %v7038_v44 = vor.u32 %v7902_v42, %v7037_v41 }
  0xd6   :  { %v568_v54 = vmax.f32 %v497_v51, 0.0  ;;  %v538_v10 = vmax.f32 %v460_v62, 0.0 }
  0xd7   :  { %1567 = vmatpush.bf16.msra.mxu3 %v7038_v44 }
  0xd8   :  { %v8600_v58 = vpack.c.bf16 %v568_v54, %v566_v47  ;;  %v410_v59 = vpop.f32.mrf.mxu2 }
  0xd9   :  { %v411_v9 = vadd.f32 %v410_v59, %v8574_v35 }
  0xda   :  { %v372_v63 = vpop.f32.mrf.mxu0 }
  0xdb   :  { %v499_v61 = vpop.f32.mrf.mxu3  ;;  %v373_v0 = vadd.f32 %v372_v63, %v8574_v35  ;;  %v461_v1 = vpop.f32.mrf.mxu1  ;;  %v569_v18 = vmax.f32 %v411_v9, 0.0 }
  0xdc   :  { %v462_v2 = vadd.f32 %v461_v1, %v8576_v36  ;;  %v500_v13 = vadd.f32 %v499_v61, %v8576_v36 }
  0xdd   :  { %v539_v8 = vmax.f32 %v373_v0, 0.0 }
  0xde   :  { %v540_v11 = vmax.f32 %v462_v2, 0.0  ;;  %v570_v23 = vmax.f32 %v500_v13, 0.0 }
  0xdf   :  { %v597_v14 = vpack.c.bf16 %v539_v8, %v537_v5 }
  0xe0   :  { %v598_v16 = vpack.c.bf16 %v540_v11, %v538_v10  ;;  %v412_v17 = vpop.f32.mrf.mxu2 }
  0xe1   :  { %842 = vmatmul.bf16.gmra.mxu2 %v597_v14  ;;  %1020 = vmatmul.bf16.gmra.mxu0 %v597_v14  ;;  %v413_v19 = vadd.f32 %v412_v17, %v8574_v35 }
  0xe2   :  { %931 = vmatmul.bf16.gmra.mxu3 %v598_v16  ;;  %1109 = vmatmul.bf16.gmra.mxu1 %v598_v16  ;;  %v375_v24 = vpop.f32.mrf.mxu0 }
  0xe3   :  { %v501_v22 = vpop.f32.mrf.mxu3  ;;  %v464_v32 = vpop.f32.mrf.mxu1  ;;  %v571_v33 = vmax.f32 %v413_v19, 0.0  ;;  %v376_v46 = vadd.f32 %v375_v24, %v8574_v35 }
  0xe4   :  { %v502_v25 = vadd.f32 %v501_v22, %v8576_v36  ;;  %v465_v50 = vadd.f32 %v464_v32, %v8576_v36 }
  0xe5   :  { %v8610_v40 = vpack.c.bf16 %v571_v33, %v569_v18  ;;  %v541_v59 = vmax.f32 %v376_v46, 0.0 }
  0xe6   :  { %v572_v37 = vmax.f32 %v502_v25, 0.0  ;;  %v542_v62 = vmax.f32 %v465_v50, 0.0 }
  0xe8   :  { %v8612_v43 = vpack.c.bf16 %v572_v37, %v570_v23  ;;  %v415_v45 = vpop.f32.mrf.mxu2 }
  0xe9   :  { %v416_v61 = vadd.f32 %v415_v45, %v8574_v35 }
  0xea   :  { %v377_v51 = vpop.f32.mrf.mxu0 }
  0xeb   :  { %v504_v47 = vpop.f32.mrf.mxu3  ;;  %v378_v52 = vadd.f32 %v377_v51, %v8574_v35  ;;  %v466_v53 = vpop.f32.mrf.mxu1  ;;  %v573_v8 = vmax.f32 %v416_v61, 0.0 }
  0xec   :  { %v467_v54 = vadd.f32 %v466_v53, %v8576_v36  ;;  %v505_v0 = vadd.f32 %v504_v47, %v8576_v36 }
  0xed   :  { %v543_v60 = vmax.f32 %v378_v52, 0.0 }
  0xee   :  { %v544_v63 = vmax.f32 %v467_v54, 0.0  ;;  %v574_v11 = vmax.f32 %v505_v0, 0.0 }
  0xef   :  { %v599_v1 = vpack.c.bf16 %v543_v60, %v541_v59 }
  0xf0   :  { %v600_v2 = vpack.c.bf16 %v544_v63, %v542_v62  ;;  %v417_v5 = vpop.f32.mrf.mxu2  ;;  %v6965_v62 = vld [vmem:[#allocation6 + $0x140] sm:$0xf]  ;;  %v7884_v63 = vld [vmem:[#allocation6 + $0x144] sm:$0xf0] }
  0xf1   :  { %847 = vmatmul.bf16.gmra.mxu2 %v599_v1  ;;  %1025 = vmatmul.bf16.gmra.mxu0 %v599_v1  ;;  %v418_v9 = vadd.f32 %v417_v5, %v8574_v35 }
  0xf2   :  { %936 = vmatmul.bf16.gmra.mxu3 %v600_v2  ;;  %1114 = vmatmul.bf16.gmra.mxu1 %v600_v2  ;;  %v380_v13 = vpop.f32.mrf.mxu0  ;;  %v6966_v2 = vor.u32 %v7884_v63, %v6965_v62 }
  0xf3   :  { %v506_v10 = vpop.f32.mrf.mxu3  ;;  %v469_v16 = vpop.f32.mrf.mxu1  ;;  %v575_v17 = vmax.f32 %v418_v9, 0.0  ;;  %v381_v24 = vadd.f32 %v380_v13, %v8574_v35  ;;  %v7029_v9 = vld [vmem:[#allocation6 + $0x1c0] sm:$0xf] }
  0xf4   :  { %v507_v14 = vadd.f32 %v506_v10, %v8576_v36  ;;  %v470_v30 = vadd.f32 %v469_v16, %v8576_v36  ;;  %1479 = vmatpush.bf16.msra.mxu2 %v6966_v2  ;;  %v7900_v10 = vld [vmem:[#allocation6 + $0x1c4] sm:$0xf0] }
  0xf5   :  { %v8622_v19 = vpack.c.bf16 %v575_v17, %v573_v8  ;;  %v545_v37 = vmax.f32 %v381_v24, 0.0  ;;  %v7030_v13 = vor.u32 %v7900_v10, %v7029_v9 }
  0xf6   :  { %v576_v18 = vmax.f32 %v507_v14, 0.0  ;;  %v546_v44 = vmax.f32 %v470_v30, 0.0 }
  0xf7   :  { %1568 = vmatpush.bf16.msra.mxu3 %v7030_v13 }
  0xf8   :  { %v8624_v22 = vpack.c.bf16 %v576_v18, %v574_v11  ;;  %v420_v23 = vpop.f32.mrf.mxu2 }
  0xf9   :  { %v421_v42 = vadd.f32 %v420_v23, %v8574_v35 }
  0xfa   :  { %v382_v31 = vpop.f32.mrf.mxu0 }
  0xfb   :  { %v509_v25 = vpop.f32.mrf.mxu3  ;;  %v383_v32 = vadd.f32 %v382_v31, %v8574_v35  ;;  %v471_v33 = vpop.f32.mrf.mxu1  ;;  %v577_v52 = vmax.f32 %v421_v42, 0.0 }
  0xfc   :  { %v472_v34 = vadd.f32 %v471_v33, %v8576_v36  ;;  %v510_v46 = vadd.f32 %v509_v25, %v8576_v36 }
  0xfd   :  { %v547_v41 = vmax.f32 %v383_v32, 0.0 }
  0xfe   :  { %v548_v45 = vmax.f32 %v472_v34, 0.0  ;;  %v578_v59 = vmax.f32 %v510_v46, 0.0 }
  0xff   :  { %v601_v47 = vpack.c.bf16 %v547_v41, %v545_v37 }
 0x100   :  { %v602_v50 = vpack.c.bf16 %v548_v45, %v546_v44  ;;  %v422_v51 = vpop.f32.mrf.mxu2 }
 0x101   :  { %852 = vmatmul.bf16.gmra.mxu2 %v601_v47  ;;  %1030 = vmatmul.bf16.gmra.mxu0 %v601_v47  ;;  %v423_v53 = vadd.f32 %v422_v51, %v8574_v35 }
 0x102   :  { %941 = vmatmul.bf16.gmra.mxu3 %v602_v50  ;;  %1119 = vmatmul.bf16.gmra.mxu1 %v602_v50  ;;  %v385_v60 = vpop.f32.mrf.mxu0 }
 0x103   :  { %v511_v54 = vpop.f32.mrf.mxu3  ;;  %v474_v0 = vpop.f32.mrf.mxu1  ;;  %v579_v1 = vmax.f32 %v423_v53, 0.0  ;;  %v386_v16 = vadd.f32 %v385_v60, %v8574_v35  ;;  %v7905_v60 = vld [vmem:[#allocation6 + $0x1f4] sm:$0xf] }
 0x104   :  { %v512_v61 = vadd.f32 %v511_v54, %v8576_v36  ;;  %v475_v18 = vadd.f32 %v474_v0, %v8576_v36  ;;  %v7889_v54 = vld [vmem:[#allocation6 + $0x174] sm:$0xf]  ;;  %v7055_v0 = vld [vmem:[#allocation6 + $0x1f8] sm:$0xf0] }
 0x105   :  { %v8634_v8 = vpack.c.bf16 %v579_v1, %v577_v52  ;;  %v549_v31 = vmax.f32 %v386_v16, 0.0  ;;  %v7058_v2 = vor.u32 %v7905_v60, %v7055_v0 }
 0x106   :  { %v580_v5 = vmax.f32 %v512_v61, 0.0  ;;  %v550_v37 = vmax.f32 %v475_v18, 0.0 }
 0x107   :  { %1743 = vmatpush.bf16.msra.mxu1 %v7058_v2 }
 0x108   :  { %v8636_v11 = vpack.c.bf16 %v580_v5, %v578_v59  ;;  %v425_v14 = vpop.f32.mrf.mxu2  ;;  %v6991_v59 = vld [vmem:[#allocation6 + $0x178] sm:$0xf0] }
 0x109   :  { %v426_v33 = vadd.f32 %v425_v14, %v8574_v35  ;;  %v6994_v63 = vor.u32 %v7889_v54, %v6991_v59  ;;  %v6957_v54 = vld [vmem:[#allocation6 + $0x130] sm:$0xf]  ;;  %v7882_v59 = vld [vmem:[#allocation6 + $0x134] sm:$0xf0] }
 0x10a   :  { %v387_v23 = vpop.f32.mrf.mxu0 }
 0x10b   :  { %v514_v17 = vpop.f32.mrf.mxu3  ;;  %v388_v24 = vadd.f32 %v387_v23, %v8574_v35  ;;  %v476_v25 = vpop.f32.mrf.mxu1  ;;  %v581_v46 = vmax.f32 %v426_v33, 0.0  ;;  %1654 = vmatpush.bf16.msra.mxu0 %v6994_v63  ;;  %v7898_v63 = vld [vmem:[#allocation6 + $0x1b4] sm:$0xf0] }
 0x10c   :  { %v477_v30 = vadd.f32 %v476_v25, %v8576_v36  ;;  %v515_v34 = vadd.f32 %v514_v17, %v8576_v36 }
 0x10d   :  { %v551_v32 = vmax.f32 %v388_v24, 0.0 }
 0x10e   :  { %v552_v41 = vmax.f32 %v477_v30, 0.0  ;;  %v582_v47 = vmax.f32 %v515_v34, 0.0 }
 0x10f   :  { %v603_v42 = vpack.c.bf16 %v551_v32, %v549_v31 }
 0x110   :  { %v604_v44 = vpack.c.bf16 %v552_v41, %v550_v37  ;;  %v427_v45 = vpop.f32.mrf.mxu2 }
 0x111   :  { %857 = vmatmul.bf16.gmra.mxu2 %v603_v42  ;;  %1035 = vmatmul.bf16.gmra.mxu0 %v603_v42  ;;  %v428_v50 = vadd.f32 %v427_v45, %v8574_v35 }
 0x112   :  { %946 = vmatmul.bf16.gmra.mxu3 %v604_v44  ;;  %1124 = vmatmul.bf16.gmra.mxu1 %v604_v44  ;;  %v390_v52 = vpop.f32.mrf.mxu0 }
 0x113   :  { %v516_v51 = vpop.f32.mrf.mxu3  ;;  %v479_v61 = vpop.f32.mrf.mxu1  ;;  %v583_v62 = vmax.f32 %v428_v50, 0.0  ;;  %v391_v13 = vadd.f32 %v390_v52, %v8574_v35 }
 0x114   :  { %v517_v53 = vadd.f32 %v516_v51, %v8576_v36  ;;  %v480_v16 = vadd.f32 %v479_v61, %v8576_v36  ;;  %v6958_v61 = vor.u32 %v7882_v59, %v6957_v54 }
 0x115   :  { %v8646_v5 = vpack.c.bf16 %v583_v62, %v581_v46  ;;  %v553_v25 = vmax.f32 %v391_v13, 0.0  ;;  %v7021_v62 = vld [vmem:[#allocation6 + $0x1b0] sm:$0xf] }
 0x116   :  { %v584_v1 = vmax.f32 %v517_v53, 0.0  ;;  %v554_v32 = vmax.f32 %v480_v16, 0.0  ;;  %v7022_v0 = vor.u32 %v7898_v63, %v7021_v62  ;;  %1480 = vmatpush.bf16.msra.mxu2 %v6958_v61  ;;  %v7047_v61 = vld [vmem:[#allocation6 + $0x1e8] sm:$0xf0] }
 0x118   :  { %v8648_v9 = vpack.c.bf16 %v584_v1, %v582_v47  ;;  %v430_v10 = vpop.f32.mrf.mxu2  ;;  %1569 = vmatpush.bf16.msra.mxu3 %v7022_v0 }
 0x119   :  { %v431_v31 = vadd.f32 %v430_v10, %v8574_v35 }
 0x11a   :  { %v392_v17 = vpop.f32.mrf.mxu0 }
 0x11b   :  { %v519_v14 = vpop.f32.mrf.mxu3  ;;  %v393_v18 = vadd.f32 %v392_v17, %v8574_v35  ;;  %v481_v23 = vpop.f32.mrf.mxu1  ;;  %v585_v44 = vmax.f32 %v431_v31, 0.0 }
 0x11c   :  { %v482_v24 = vadd.f32 %v481_v23, %v8576_v36  ;;  %v520_v34 = vadd.f32 %v519_v14, %v8576_v36 }
 0x11d   :  { %v555_v30 = vmax.f32 %v393_v18, 0.0 }
 0x11e   :  { %v556_v33 = vmax.f32 %v482_v24, 0.0  ;;  %v586_v47 = vmax.f32 %v520_v34, 0.0 }
 0x11f   :  { %v605_v37 = vpack.c.bf16 %v555_v30, %v553_v25 }
 0x120   :  { %v606_v41 = vpack.c.bf16 %v556_v33, %v554_v32  ;;  %v432_v42 = vpop.f32.mrf.mxu2 }
 0x121   :  { %862 = vmatmul.bf16.gmra.mxu2 %v605_v37  ;;  %1040 = vmatmul.bf16.gmra.mxu0 %v605_v37  ;;  %v433_v45 = vadd.f32 %v432_v42, %v8574_v35 }
 0x122   :  { %951 = vmatmul.bf16.gmra.mxu3 %v606_v41  ;;  %1129 = vmatmul.bf16.gmra.mxu1 %v606_v41  ;;  %v395_v50 = vpop.f32.mrf.mxu0 }
 0x123   :  { %v521_v46 = vpop.f32.mrf.mxu3  ;;  %v484_v52 = vpop.f32.mrf.mxu1  ;;  %v587_v53 = vmax.f32 %v433_v45, 0.0  ;;  %v396_v13 = vadd.f32 %v395_v50, %v8574_v35 }
 0x124   :  { %v522_v51 = vadd.f32 %v521_v46, %v8576_v36  ;;  %v485_v16 = vadd.f32 %v484_v52, %v8576_v36  ;;  %v7887_v52 = vld [vmem:[#allocation6 + $0x164] sm:$0xf] }
 0x125   :  { %v8658_v1 = vpack.c.bf16 %v587_v53, %v585_v44  ;;  %v557_v25 = vmax.f32 %v396_v13, 0.0  ;;  %v6983_v53 = vld [vmem:[#allocation6 + $0x168] sm:$0xf0] }
 0x126   :  { %v588_v60 = vmax.f32 %v522_v51, 0.0  ;;  %v558_v32 = vmax.f32 %v485_v16, 0.0  ;;  %v6986_v59 = vor.u32 %v7887_v52, %v6983_v53 }
 0x128   :  { %v8660_v2 = vpack.c.bf16 %v588_v60, %v586_v47  ;;  %v435_v10 = vpop.f32.mrf.mxu2  ;;  %v7903_v60 = vld [vmem:[#allocation6 + $0x1e4] sm:$0xf]  ;;  %1655 = vmatpush.bf16.msra.mxu0 %v6986_v59  ;;  %v7885_v59 = vld [vmem:[#allocation6 + $0x154] sm:$0xf] }
 0x129   :  { %v436_v31 = vadd.f32 %v435_v10, %v8574_v35  ;;  %v7050_v62 = vor.u32 %v7903_v60, %v7047_v61  ;;  %v6975_v60 = vld [vmem:[#allocation6 + $0x158] sm:$0xf0] }
 0x12a   :  { %v397_v17 = vpop.f32.mrf.mxu0 }
 0x12b   :  { %v524_v14 = vpop.f32.mrf.mxu3  ;;  %v398_v18 = vadd.f32 %v397_v17, %v8574_v35  ;;  %v486_v23 = vpop.f32.mrf.mxu1  ;;  %v589_v44 = vmax.f32 %v436_v31, 0.0  ;;  %1744 = vmatpush.bf16.msra.mxu1 %v7050_v62  ;;  %v7896_v31 = vld [vmem:[#allocation6 + $0x1a4] sm:$0xf0]  ;;  %v6978_v62 = vor.u32 %v7885_v59, %v6975_v60 }
 0x12c   :  { %v487_v24 = vadd.f32 %v486_v23, %v8576_v36  ;;  %v525_v34 = vadd.f32 %v524_v14, %v8576_v36  ;;  %v7880_v23 = vld [vmem:[#allocation6 + $0x124] sm:$0xf0] }
 0x12d   :  { %v559_v30 = vmax.f32 %v398_v18, 0.0  ;;  %v6949_v18 = vld [vmem:[#allocation6 + $0x120] sm:$0xf]  ;;  %1656 = vmatpush.bf16.msra.mxu0 %v6978_v62 }
 0x12e   :  { %v560_v33 = vmax.f32 %v487_v24, 0.0  ;;  %v590_v47 = vmax.f32 %v525_v34, 0.0 }
 0x12f   :  { %v607_v37 = vpack.c.bf16 %v559_v30, %v557_v25  ;;  %v6950_v25 = vor.u32 %v7880_v23, %v6949_v18  ;;  %v7013_v30 = vld [vmem:[#allocation6 + $0x1a0] sm:$0xf] }
 0x130   :  { %v608_v41 = vpack.c.bf16 %v560_v33, %v558_v32  ;;  %v437_v42 = vpop.f32.mrf.mxu2  ;;  %v7014_v34 = vor.u32 %v7896_v31, %v7013_v30 }
 0x131   :  { %867 = vmatmul.bf16.gmra.mxu2 %v607_v37  ;;  %1045 = vmatmul.bf16.gmra.mxu0 %v607_v37  ;;  %v438_v45 = vadd.f32 %v437_v42, %v8574_v35  ;;  %v658_v35 = vld [vmem:[#allocation7 + $0x2] sm:$0x3] }
 0x132   :  { %956 = vmatmul.bf16.gmra.mxu3 %v608_v41  ;;  %1134 = vmatmul.bf16.gmra.mxu1 %v608_v41  ;;  %v8674_v10 = vperm.slane %v658_v35, 1  ;;  %v8681_v17 = vperm.slane %v658_v35, 0  ;;  %v7901_v35 = vld [vmem:[#allocation6 + $0x1d4] sm:$0xf] }
 0x133   :  { %v526_v46 = vpop.f32.mrf.mxu3  ;;  %v591_v51 = vmax.f32 %v438_v45, 0.0  ;;  %1481 = vmatpush.bf16.msra.mxu2 %v6950_v25  ;;  %1570 = vmatpush.bf16.msra.mxu3 %v7014_v34 }
 0x134   :  { %v527_v50 = vadd.f32 %v526_v46, %v8576_v36 }
 0x135   :  { %v8670_v63 = vpack.c.bf16 %v591_v51, %v589_v44 }
 0x136   :  { %v592_v54 = vmax.f32 %v527_v50, 0.0 }
 0x138   :  { %v8672_v0 = vpack.c.bf16 %v592_v54, %v590_v47 }
 0x13e   :  { %v1011_v13 = vpop.f32.mrf.mxu0 }
 0x13f   :  { %v1012_v36 = vadd.f32 %v1011_v13, %v8674_v10  ;;  %v1100_v14 = vpop.f32.mrf.mxu1  ;;  %v7039_v13 = vld [vmem:[#allocation6 + $0x1d8] sm:$0xf0] }
 0x140   :  { %v7042_v18 = vor.u32 %v7901_v35, %v7039_v13 }
 0x141   :  { %v8677_v16 = vadd.f32 %v1100_v14, %v1012_v36  ;;  %872 = vmatmul.bf16.gmra.mxu2 %v8586_v12  ;;  %1050 = vmatmul.bf16.gmra.mxu0 %v8586_v12 }
 0x142   :  { %961 = vmatmul.bf16.gmra.mxu3 %v8588_v15  ;;  %1139 = vmatmul.bf16.gmra.mxu1 %v8588_v15 }
 0x143   :  { %1745 = vmatpush.bf16.msra.mxu1 %v7042_v18 }
 0x144   :  { %v833_v24 = vpop.f32.mrf.mxu2 }
 0x145   :  { %v834_v32 = vadd.f32 %v833_v24, %v8681_v17  ;;  %v922_v33 = vpop.f32.mrf.mxu3 }
 0x146   :  { %v8686_v37 = vpop.f32.mrf.mxu0 }
 0x147   :  { %v923_v12 = vadd.f32 %v922_v33, %v834_v32  ;;  %v8688_v41 = vpop.f32.mrf.mxu1 }
 0x149   :  { %v1180_v51 = vmax.f32 %v923_v12, 0.0 }
 0x14c   :  { %v835_v42 = vpop.f32.mrf.mxu2 }
 0x14d   :  { %v836_v15 = vadd.f32 %v835_v42, %v8681_v17  ;;  %v924_v44 = vpop.f32.mrf.mxu3 }
 0x14e   :  { %v1016_v45 = vpop.f32.mrf.mxu0 }
 0x14f   :  { %v925_v46 = vadd.f32 %v924_v44, %v836_v15  ;;  %v1017_v47 = vadd.f32 %v1016_v45, %v8674_v10  ;;  %v1105_v50 = vpop.f32.mrf.mxu1  ;;  %v6941_v44 = vld [vmem:[#allocation6 + $0x110] sm:$0xf]  ;;  %v7878_v45 = vld [vmem:[#allocation6 + $0x114] sm:$0xf0] }
 0x151   :  { %v1182_v52 = vmax.f32 %v925_v46, 0.0  ;;  %v8692_v53 = vadd.f32 %v1105_v50, %v1017_v47  ;;  %877 = vmatmul.bf16.gmra.mxu2 %v8598_v55  ;;  %1055 = vmatmul.bf16.gmra.mxu0 %v8598_v55  ;;  %v6942_v50 = vor.u32 %v7878_v45, %v6941_v44  ;;  %v7899_v44 = vld [vmem:[#allocation6 + $0x1c4] sm:$0xf]  ;;  %v7031_v45 = vld [vmem:[#allocation6 + $0x1c8] sm:$0xf0] }
 0x152   :  { %966 = vmatmul.bf16.gmra.mxu3 %v8600_v58  ;;  %1144 = vmatmul.bf16.gmra.mxu1 %v8600_v58 }
 0x153   :  { %v8698_v54 = vpack.c.bf16 %v1182_v52, %v1180_v51  ;;  %v7005_v51 = vld [vmem:[#allocation6 + $0x190] sm:$0xf]  ;;  %v7894_v52 = vld [vmem:[#allocation6 + $0x194] sm:$0xf0]  ;;  %1482 = vmatpush.bf16.msra.mxu2 %v6942_v50 }
 0x154   :  { %v838_v61 = vpop.f32.mrf.mxu2 }
 0x155   :  { %v839_v36 = vadd.f32 %v838_v61, %v8681_v17  ;;  %v927_v14 = vpop.f32.mrf.mxu3  ;;  %v7006_v61 = vor.u32 %v7894_v52, %v7005_v51  ;;  %v7034_v51 = vor.u32 %v7899_v44, %v7031_v45 }
 0x156   :  { %v8701_v23 = vpop.f32.mrf.mxu0 }
 0x157   :  { %v928_v55 = vadd.f32 %v927_v14, %v839_v36  ;;  %v8703_v24 = vpop.f32.mrf.mxu1  ;;  %1571 = vmatpush.bf16.msra.mxu3 %v7006_v61  ;;  %1746 = vmatpush.bf16.msra.mxu1 %v7034_v51 }
 0x159   :  { %v1184_v12 = vmax.f32 %v928_v55, 0.0 }
 0x15c   :  { %v840_v58 = vpop.f32.mrf.mxu2 }
 0x15d   :  { %v841_v25 = vadd.f32 %v840_v58, %v8681_v17  ;;  %v929_v30 = vpop.f32.mrf.mxu3 }
 0x15e   :  { %v1021_v31 = vpop.f32.mrf.mxu0 }
 0x15f   :  { %v930_v32 = vadd.f32 %v929_v30, %v841_v25  ;;  %v1022_v33 = vadd.f32 %v1021_v31, %v8674_v10  ;;  %v1110_v34 = vpop.f32.mrf.mxu1 }
 0x161   :  { %v1186_v42 = vmax.f32 %v930_v32, 0.0  ;;  %v8707_v15 = vadd.f32 %v1110_v34, %v1022_v33  ;;  %882 = vmatmul.bf16.gmra.mxu2 %v8610_v40  ;;  %1060 = vmatmul.bf16.gmra.mxu0 %v8610_v40  ;;  %v7883_v32 = vld [vmem:[#allocation6 + $0x144] sm:$0xf]  ;;  %v6967_v33 = vld [vmem:[#allocation6 + $0x148] sm:$0xf0] }
 0x162   :  { %971 = vmatmul.bf16.gmra.mxu3 %v8612_v43  ;;  %1149 = vmatmul.bf16.gmra.mxu1 %v8612_v43 }
 0x163   :  { %v8713_v46 = vpack.c.bf16 %v1186_v42, %v1184_v12  ;;  %v6970_v42 = vor.u32 %v7883_v32, %v6967_v33 }
 0x164   :  { %v843_v47 = vpop.f32.mrf.mxu2 }
 0x165   :  { %v844_v59 = vadd.f32 %v843_v47, %v8681_v17  ;;  %v932_v60 = vpop.f32.mrf.mxu3  ;;  %1657 = vmatpush.bf16.msra.mxu0 %v6970_v42  ;;  %v7892_v42 = vld [vmem:[#allocation6 + $0x184] sm:$0xf0] }
 0x166   :  { %v8716_v62 = vpop.f32.mrf.mxu0 }
 0x167   :  { %v933_v40 = vadd.f32 %v932_v60, %v844_v59  ;;  %v8718_v35 = vpop.f32.mrf.mxu1 }
 0x169   :  { %v1188_v25 = vmax.f32 %v933_v40, 0.0 }
 0x16c   :  { %v845_v43 = vpop.f32.mrf.mxu2 }
 0x16d   :  { %v846_v13 = vadd.f32 %v845_v43, %v8681_v17  ;;  %v934_v36 = vpop.f32.mrf.mxu3 }
 0x16e   :  { %v1026_v14 = vpop.f32.mrf.mxu0 }
 0x16f   :  { %v935_v18 = vadd.f32 %v934_v36, %v846_v13  ;;  %v1027_v55 = vadd.f32 %v1026_v14, %v8674_v10  ;;  %v1115_v58 = vpop.f32.mrf.mxu1 }
 0x171   :  { %v1190_v30 = vmax.f32 %v935_v18, 0.0  ;;  %v8722_v31 = vadd.f32 %v1115_v58, %v1027_v55  ;;  %887 = vmatmul.bf16.gmra.mxu2 %v8622_v19  ;;  %1065 = vmatmul.bf16.gmra.mxu0 %v8622_v19  ;;  %v6933_v58 = vld [vmem:[#allocation6 + $0x100] sm:$0xf] }
 0x172   :  { %976 = vmatmul.bf16.gmra.mxu3 %v8624_v22  ;;  %1154 = vmatmul.bf16.gmra.mxu1 %v8624_v22 }
 0x173   :  { %v8728_v34 = vpack.c.bf16 %v1190_v30, %v1188_v25  ;;  %v7876_v25 = vld [vmem:[#allocation6 + $0x104] sm:$0xf0] }
 0x174   :  { %v848_v12 = vpop.f32.mrf.mxu2  ;;  %v6934_v33 = vor.u32 %v7876_v25, %v6933_v58 }
 0x175   :  { %v849_v47 = vadd.f32 %v848_v12, %v8681_v17  ;;  %v937_v50 = vpop.f32.mrf.mxu3  ;;  %v6997_v12 = vld [vmem:[#allocation6 + $0x180] sm:$0xf] }
 0x176   :  { %v8731_v52 = vpop.f32.mrf.mxu0  ;;  %1483 = vmatpush.bf16.msra.mxu2 %v6934_v33  ;;  %v7023_v33 = vld [vmem:[#allocation6 + $0x1b8] sm:$0xf0] }
 0x177   :  { %v938_v19 = vadd.f32 %v937_v50, %v849_v47  ;;  %v8733_v59 = vpop.f32.mrf.mxu1  ;;  %v6998_v47 = vor.u32 %v7892_v42, %v6997_v12 }
 0x179   :  { %v1192_v14 = vmax.f32 %v938_v19, 0.0  ;;  %1572 = vmatpush.bf16.msra.mxu3 %v6998_v47  ;;  %v6951_v47 = vld [vmem:[#allocation6 + $0x128] sm:$0xf0] }
 0x17c   :  { %v850_v22 = vpop.f32.mrf.mxu2 }
 0x17d   :  { %v851_v60 = vadd.f32 %v850_v22, %v8681_v17  ;;  %v939_v61 = vpop.f32.mrf.mxu3 }
 0x17e   :  { %v1031_v40 = vpop.f32.mrf.mxu0 }
 0x17f   :  { %v940_v43 = vadd.f32 %v939_v61, %v851_v60  ;;  %v1032_v13 = vadd.f32 %v1031_v40, %v8674_v10  ;;  %v1120_v36 = vpop.f32.mrf.mxu1 }
 0x181   :  { %v1194_v18 = vmax.f32 %v940_v43, 0.0  ;;  %v8737_v55 = vadd.f32 %v1120_v36, %v1032_v13  ;;  %892 = vmatmul.bf16.gmra.mxu2 %v8634_v8  ;;  %1070 = vmatmul.bf16.gmra.mxu0 %v8634_v8  ;;  %v7881_v13 = vld [vmem:[#allocation6 + $0x134] sm:$0xf]  ;;  %v6959_v36 = vld [vmem:[#allocation6 + $0x138] sm:$0xf0] }
 0x182   :  { %981 = vmatmul.bf16.gmra.mxu3 %v8636_v11  ;;  %1159 = vmatmul.bf16.gmra.mxu1 %v8636_v11 }
 0x183   :  { %v8743_v30 = vpack.c.bf16 %v1194_v18, %v1192_v14  ;;  %v7897_v14 = vld [vmem:[#allocation6 + $0x1b4] sm:$0xf] }
 0x184   :  { %v853_v32 = vpop.f32.mrf.mxu2  ;;  %v7026_v12 = vor.u32 %v7897_v14, %v7023_v33  ;;  %v7875_v33 = vld [vmem:[#allocation6 + $0x104] sm:$0xf] }
 0x185   :  { %v854_v44 = vadd.f32 %v853_v32, %v8681_v17  ;;  %v942_v45 = vpop.f32.mrf.mxu3  ;;  %v6962_v32 = vor.u32 %v7881_v13, %v6959_v36  ;;  %v6943_v13 = vld [vmem:[#allocation6 + $0x118] sm:$0xf0]  ;;  %v7893_v36 = vld [vmem:[#allocation6 + $0x194] sm:$0xf] }
 0x186   :  { %v8746_v50 = vpop.f32.mrf.mxu0  ;;  %1747 = vmatpush.bf16.msra.mxu1 %v7026_v12  ;;  %v6935_v12 = vld [vmem:[#allocation6 + $0x108] sm:$0xf0] }
 0x187   :  { %v943_v8 = vadd.f32 %v942_v45, %v854_v44  ;;  %v8748_v51 = vpop.f32.mrf.mxu1  ;;  %1658 = vmatpush.bf16.msra.mxu0 %v6962_v32  ;;  %v7879_v45 = vld [vmem:[#allocation6 + $0x124] sm:$0xf] }
 0x189   :  { %v1196_v18 = vmax.f32 %v943_v8, 0.0  ;;  %v7895_v8 = vld [vmem:[#allocation6 + $0x1a4] sm:$0xf] }
 0x18c   :  { %v855_v11 = vpop.f32.mrf.mxu2 }
 0x18d   :  { %v856_v19 = vadd.f32 %v855_v11, %v8681_v17  ;;  %v944_v22 = vpop.f32.mrf.mxu3 }
 0x18e   :  { %v1036_v60 = vpop.f32.mrf.mxu0 }
 0x18f   :  { %v945_v61 = vadd.f32 %v944_v22, %v856_v19  ;;  %v1037_v40 = vadd.f32 %v1036_v60, %v8674_v10  ;;  %v1125_v43 = vpop.f32.mrf.mxu1  ;;  %v6954_v22 = vor.u32 %v7879_v45, %v6951_v47 }
 0x191   :  { %v1198_v58 = vmax.f32 %v945_v61, 0.0  ;;  %v8752_v25 = vadd.f32 %v1125_v43, %v1037_v40  ;;  %897 = vmatmul.bf16.gmra.mxu2 %v8646_v5  ;;  %1075 = vmatmul.bf16.gmra.mxu0 %v8646_v5  ;;  %v7015_v5 = vld [vmem:[#allocation6 + $0x1a8] sm:$0xf0] }
 0x192   :  { %986 = vmatmul.bf16.gmra.mxu3 %v8648_v9  ;;  %1164 = vmatmul.bf16.gmra.mxu1 %v8648_v9  ;;  %v7018_v61 = vor.u32 %v7895_v8, %v7015_v5  ;;  %v7877_v9 = vld [vmem:[#allocation6 + $0x114] sm:$0xf]  ;;  %v6938_v8 = vor.u32 %v7875_v33, %v6935_v12  ;;  %v7181_v12 = vld [vmem:[#allocation6 + $0x2f0] sm:$0xf] }
 0x193   :  { %v8758_v42 = vpack.c.bf16 %v1198_v58, %v1196_v18  ;;  %1659 = vmatpush.bf16.msra.mxu0 %v6954_v22  ;;  %v6946_v14 = vor.u32 %v7877_v9, %v6943_v13  ;;  %v7007_v18 = vld [vmem:[#allocation6 + $0x198] sm:$0xf0] }
 0x194   :  { %v858_v44 = vpop.f32.mrf.mxu2  ;;  %1748 = vmatpush.bf16.msra.mxu1 %v7018_v61  ;;  %v7010_v58 = vor.u32 %v7893_v36, %v7007_v18  ;;  %v7922_v18 = vld [vmem:[#allocation6 + $0x274] sm:$0xf0] }
 0x195   :  { %v859_v11 = vadd.f32 %v858_v44, %v8681_v17  ;;  %v947_v19 = vpop.f32.mrf.mxu3  ;;  %v7891_v44 = vld [vmem:[#allocation6 + $0x184] sm:$0xf] }
 0x196   :  { %v8761_v60 = vpop.f32.mrf.mxu0 }
 0x197   :  { %v948_v40 = vadd.f32 %v947_v19, %v859_v11  ;;  %v8763_v43 = vpop.f32.mrf.mxu1  ;;  %1660 = vmatpush.bf16.msra.mxu0 %v6946_v14  ;;  %v6999_v11 = vld [vmem:[#allocation6 + $0x188] sm:$0xf0]  ;;  %v7117_v14 = vld [vmem:[#allocation6 + $0x270] sm:$0xf] }
 0x198   :  { %1749 = vmatpush.bf16.msra.mxu1 %v7010_v58  ;;  %v7002_v22 = vor.u32 %v7891_v44, %v6999_v11  ;;  %v7118_v33 = vor.u32 %v7922_v18, %v7117_v14  ;;  %v7938_v44 = vld [vmem:[#allocation6 + $0x2f4] sm:$0xf0] }
 0x199   :  { %v1200_v9 = vmax.f32 %v948_v40, 0.0 }
 0x19a   :  { %2128 = vmatpush.bf16.msrb.mxu2 %v7118_v33  ;;  %v1014_v33 = vadd.f32 %v8686_v37, %v8674_v10 }
 0x19b   :  { %1661 = vmatpush.bf16.msra.mxu0 %v6938_v8 }
 0x19c   :  { %v860_v32 = vpop.f32.mrf.mxu2  ;;  %1750 = vmatpush.bf16.msra.mxu1 %v7002_v22 }
 0x19d   :  { %v861_v45 = vadd.f32 %v860_v32, %v8681_v17  ;;  %v949_v47 = vpop.f32.mrf.mxu3 }
 0x19e   :  { %v1041_v19 = vpop.f32.mrf.mxu0 }
 0x19f   :  { %v950_v5 = vadd.f32 %v949_v47, %v861_v45  ;;  %v1042_v61 = vadd.f32 %v1041_v19, %v8674_v10  ;;  %v1130_v21 = vpop.f32.mrf.mxu1  ;;  %v7182_v45 = vor.u32 %v7938_v44, %v7181_v12 }
 0x1a1   :  { %v1202_v13 = vmax.f32 %v950_v5, 0.0  ;;  %v8767_v36 = vadd.f32 %v1130_v21, %v1042_v61  ;;  %902 = vmatmul.bf16.gmra.mxu2 %v8658_v1  ;;  %1080 = vmatmul.bf16.gmra.mxu0 %v8658_v1 }
 0x1a2   :  { %991 = vmatmul.bf16.gmra.mxu3 %v8660_v2  ;;  %1169 = vmatmul.bf16.gmra.mxu1 %v8660_v2 }
 0x1a3   :  { %v8773_v58 = vpack.c.bf16 %v1202_v13, %v1200_v9  ;;  %2217 = vmatpush.bf16.msrb.mxu3 %v7182_v45 }
 0x1a4   :  { %v863_v32 = vpop.f32.mrf.mxu2 }
 0x1a5   :  { %v864_v40 = vadd.f32 %v863_v32, %v8681_v17  ;;  %v952_v21 = vpop.f32.mrf.mxu3 }
 0x1a6   :  { %v8776_v47 = vpop.f32.mrf.mxu0 }
 0x1a7   :  { %v953_v1 = vadd.f32 %v952_v21, %v864_v40  ;;  %v8778_v8 = vpop.f32.mrf.mxu1 }
 0x1a9   :  { %v1204_v13 = vmax.f32 %v953_v1, 0.0 }
 0x1ac   :  { %v865_v2 = vpop.f32.mrf.mxu2 }
 0x1ad   :  { %v866_v11 = vadd.f32 %v865_v2, %v8681_v17  ;;  %v954_v19 = vpop.f32.mrf.mxu3 }
 0x1ae   :  { %v1046_v22 = vpop.f32.mrf.mxu0 }
 0x1af   :  { %v955_v5 = vadd.f32 %v954_v19, %v866_v11  ;;  %v1047_v61 = vadd.f32 %v1046_v22, %v8674_v10  ;;  %v1135_v9 = vpop.f32.mrf.mxu1  ;;  %v1181_v22 = vmax.f32 %v8677_v16, 0.0  ;;  %v1019_v16 = vadd.f32 %v8701_v23, %v8674_v10 }
 0x1b1   :  { %v1206_v14 = vmax.f32 %v955_v5, 0.0  ;;  %v8782_v18 = vadd.f32 %v1135_v9, %v1047_v61  ;;  %907 = vmatmul.bf16.gmra.mxu2 %v8670_v63  ;;  %1085 = vmatmul.bf16.gmra.mxu0 %v8670_v63  ;;  %v1103_v63 = vadd.f32 %v8688_v41, %v1014_v33  ;;  %v7109_v41 = vld [vmem:[#allocation6 + $0x260] sm:$0xf]  ;;  %v7920_v33 = vld [vmem:[#allocation6 + $0x264] sm:$0xf0] }
 0x1b2   :  { %996 = vmatmul.bf16.gmra.mxu3 %v8672_v0  ;;  %1174 = vmatmul.bf16.gmra.mxu1 %v8672_v0 }
 0x1b3   :  { %v8788_v32 = vpack.c.bf16 %v1206_v14, %v1204_v13  ;;  %v1183_v2 = vmax.f32 %v1103_v63, 0.0 }
 0x1b4   :  { %v868_v12 = vpop.f32.mrf.mxu2 }
 0x1b5   :  { %v869_v44 = vadd.f32 %v868_v12, %v8681_v17  ;;  %v957_v40 = vpop.f32.mrf.mxu3  ;;  %v1245_v13 = vpack.c.bf16 %v1183_v2, %v1181_v22  ;;  %v7173_v2 = vld [vmem:[#allocation6 + $0x2e0] sm:$0xf] }
 0x1b6   :  { %v8793_v21 = vpop.f32.mrf.mxu0 }
 0x1b7   :  { %v958_v45 = vadd.f32 %v957_v40, %v869_v44  ;;  %v8795_v1 = vpop.f32.mrf.mxu1 }
 0x1b9   :  { %v1208_v14 = vmax.f32 %v958_v45, 0.0  ;;  %v7936_v45 = vld [vmem:[#allocation6 + $0x2e4] sm:$0xf0] }
 0x1ba   :  { %v7174_v22 = vor.u32 %v7936_v45, %v7173_v2 }
 0x1bc   :  { %v870_v11 = vpop.f32.mrf.mxu2  ;;  %2218 = vmatpush.bf16.msrb.mxu3 %v7174_v22 }
 0x1bd   :  { %v871_v0 = vadd.f32 %v870_v11, %v8681_v17  ;;  %v959_v19 = vpop.f32.mrf.mxu3  ;;  %v7110_v11 = vor.u32 %v7920_v33, %v7109_v41 }
 0x1be   :  { %v1051_v5 = vpop.f32.mrf.mxu0 }
 0x1bf   :  { %v960_v37 = vadd.f32 %v959_v19, %v871_v0  ;;  %v1052_v61 = vadd.f32 %v1051_v5, %v8674_v10  ;;  %v1140_v9 = vpop.f32.mrf.mxu1  ;;  %2129 = vmatpush.bf16.msrb.mxu2 %v7110_v11 }
 0x1c1   :  { %v1210_v12 = vmax.f32 %v960_v37, 0.0  ;;  %v8801_v44 = vadd.f32 %v1140_v9, %v1052_v61  ;;  %1484 = vmatmul.bf16.vlgmr.msra.gmra.mxu2 %v8698_v54  ;;  %1662 = vmatmul.bf16.vlgmr.msra.gmra.mxu0 %v8698_v54  ;;  %v1108_v61 = vadd.f32 %v8703_v24, %v1019_v16 }
 0x1c2   :  { %1573 = vmatmul.bf16.vlgmr.msra.gmra.mxu3 %v1245_v13  ;;  %1751 = vmatmul.bf16.vlgmr.msra.gmra.mxu1 %v1245_v13 }
 0x1c3   :  { %v8805_v40 = vpack.c.bf16 %v1210_v12, %v1208_v14  ;;  %v1187_v9 = vmax.f32 %v1108_v61, 0.0  ;;  %v1185_v12 = vmax.f32 %v8692_v53, 0.0  ;;  %v1024_v53 = vadd.f32 %v8716_v62, %v8674_v10 }
 0x1c4   :  { %v873_v63 = vpop.f32.mrf.mxu2 }
 0x1c5   :  { %v874_v0 = vadd.f32 %v873_v63, %v8681_v17  ;;  %v962_v19 = vpop.f32.mrf.mxu3  ;;  %v1247_v45 = vpack.c.bf16 %v1187_v9, %v1185_v12 }
 0x1c6   :  { %v8810_v5 = vpop.f32.mrf.mxu0 }
 0x1c7   :  { %v963_v54 = vadd.f32 %v962_v19, %v874_v0  ;;  %v8812_v37 = vpop.f32.mrf.mxu1 }
 0x1c9   :  { %v1212_v11 = vmax.f32 %v963_v54, 0.0 }
 0x1cc   :  { %v875_v13 = vpop.f32.mrf.mxu2 }
 0x1cd   :  { %v876_v23 = vadd.f32 %v875_v13, %v8681_v17  ;;  %v964_v14 = vpop.f32.mrf.mxu3 }
 0x1ce   :  { %v1056_v41 = vpop.f32.mrf.mxu0 }
 0x1cf   :  { %v965_v33 = vadd.f32 %v964_v14, %v876_v23  ;;  %v1057_v63 = vadd.f32 %v1056_v41, %v8674_v10  ;;  %v1145_v2 = vpop.f32.mrf.mxu1  ;;  %v1113_v23 = vadd.f32 %v8718_v35, %v1024_v53  ;;  %v7101_v35 = vld [vmem:[#allocation6 + $0x250] sm:$0xf]  ;;  %v7918_v53 = vld [vmem:[#allocation6 + $0x254] sm:$0xf0] }
 0x1d1   :  { %v1214_v0 = vmax.f32 %v965_v33, 0.0  ;;  %v8818_v19 = vadd.f32 %v1145_v2, %v1057_v63  ;;  %1489 = vmatmul.bf16.gmra.mxu2 %v8713_v46  ;;  %1667 = vmatmul.bf16.gmra.mxu0 %v8713_v46  ;;  %v1191_v14 = vmax.f32 %v1113_v23, 0.0  ;;  %v1189_v33 = vmax.f32 %v8707_v15, 0.0 }
 0x1d2   :  { %1578 = vmatmul.bf16.gmra.mxu3 %v1247_v45  ;;  %1756 = vmatmul.bf16.gmra.mxu1 %v1247_v45  ;;  %v1029_v15 = vadd.f32 %v8731_v52, %v8674_v10 }
 0x1d3   :  { %v8822_v24 = vpack.c.bf16 %v1214_v0, %v1212_v11  ;;  %v1249_v11 = vpack.c.bf16 %v1191_v14, %v1189_v33  ;;  %v7165_v14 = vld [vmem:[#allocation6 + $0x2d0] sm:$0xf] }
 0x1d4   :  { %v878_v16 = vpop.f32.mrf.mxu2 }
 0x1d5   :  { %v879_v22 = vadd.f32 %v878_v16, %v8681_v17  ;;  %v967_v61 = vpop.f32.mrf.mxu3 }
 0x1d6   :  { %v8827_v9 = vpop.f32.mrf.mxu0 }
 0x1d7   :  { %v968_v54 = vadd.f32 %v967_v61, %v879_v22  ;;  %v8829_v13 = vpop.f32.mrf.mxu1 }
 0x1d9   :  { %v1216_v0 = vmax.f32 %v968_v54, 0.0  ;;  %v7934_v54 = vld [vmem:[#allocation6 + $0x2d4] sm:$0xf0] }
 0x1da   :  { %v7166_v33 = vor.u32 %v7934_v54, %v7165_v14 }
 0x1dc   :  { %v880_v46 = vpop.f32.mrf.mxu2  ;;  %2219 = vmatpush.bf16.msrb.mxu3 %v7166_v33 }
 0x1dd   :  { %v881_v12 = vadd.f32 %v880_v46, %v8681_v17  ;;  %v969_v41 = vpop.f32.mrf.mxu3  ;;  %v7102_v46 = vor.u32 %v7918_v53, %v7101_v35 }
 0x1de   :  { %v1061_v63 = vpop.f32.mrf.mxu0 }
 0x1df   :  { %v970_v62 = vadd.f32 %v969_v41, %v881_v12  ;;  %v1062_v2 = vadd.f32 %v1061_v63, %v8674_v10  ;;  %v1150_v45 = vpop.f32.mrf.mxu1  ;;  %2130 = vmatpush.bf16.msrb.mxu2 %v7102_v46 }
 0x1e1   :  { %v1218_v16 = vmax.f32 %v970_v62, 0.0  ;;  %v8835_v22 = vadd.f32 %v1150_v45, %v1062_v2  ;;  %1494 = vmatmul.bf16.gmra.mxu2 %v8728_v34  ;;  %1672 = vmatmul.bf16.gmra.mxu0 %v8728_v34  ;;  %v1118_v2 = vadd.f32 %v8733_v59, %v1029_v15 }
 0x1e2   :  { %1583 = vmatmul.bf16.gmra.mxu3 %v1249_v11  ;;  %1761 = vmatmul.bf16.gmra.mxu1 %v1249_v11 }
 0x1e3   :  { %v8839_v61 = vpack.c.bf16 %v1218_v16, %v1216_v0  ;;  %v1195_v45 = vmax.f32 %v1118_v2, 0.0  ;;  %v1193_v16 = vmax.f32 %v8722_v31, 0.0  ;;  %v1034_v31 = vadd.f32 %v8746_v50, %v8674_v10 }
 0x1e4   :  { %v883_v23 = vpop.f32.mrf.mxu2 }
 0x1e5   :  { %v884_v12 = vadd.f32 %v883_v23, %v8681_v17  ;;  %v972_v41 = vpop.f32.mrf.mxu3  ;;  %v1251_v54 = vpack.c.bf16 %v1195_v45, %v1193_v16 }
 0x1e6   :  { %v8844_v63 = vpop.f32.mrf.mxu0 }
 0x1e7   :  { %v973_v34 = vadd.f32 %v972_v41, %v884_v12  ;;  %v8846_v62 = vpop.f32.mrf.mxu1 }
 0x1e9   :  { %v1220_v46 = vmax.f32 %v973_v34, 0.0 }
 0x1ec   :  { %v885_v11 = vpop.f32.mrf.mxu2 }
 0x1ed   :  { %v886_v52 = vadd.f32 %v885_v11, %v8681_v17  ;;  %v974_v0 = vpop.f32.mrf.mxu3 }
 0x1ee   :  { %v1066_v35 = vpop.f32.mrf.mxu0 }
 0x1ef   :  { %v975_v53 = vadd.f32 %v974_v0, %v886_v52  ;;  %v1067_v23 = vadd.f32 %v1066_v35, %v8674_v10  ;;  %v1155_v14 = vpop.f32.mrf.mxu1  ;;  %v1123_v52 = vadd.f32 %v8748_v51, %v1034_v31  ;;  %v7093_v51 = vld [vmem:[#allocation6 + $0x240] sm:$0xf]  ;;  %v7916_v31 = vld [vmem:[#allocation6 + $0x244] sm:$0xf0] }
 0x1f1   :  { %v1222_v12 = vmax.f32 %v975_v53, 0.0  ;;  %v8852_v41 = vadd.f32 %v1155_v14, %v1067_v23  ;;  %1499 = vmatmul.bf16.gmra.mxu2 %v8743_v30  ;;  %1677 = vmatmul.bf16.gmra.mxu0 %v8743_v30  ;;  %v1199_v0 = vmax.f32 %v1123_v52, 0.0  ;;  %v1197_v53 = vmax.f32 %v8737_v55, 0.0 }
 0x1f2   :  { %1588 = vmatmul.bf16.gmra.mxu3 %v1251_v54  ;;  %1766 = vmatmul.bf16.gmra.mxu1 %v1251_v54  ;;  %v1039_v55 = vadd.f32 %v8761_v60, %v8674_v10 }
 0x1f3   :  { %v8856_v59 = vpack.c.bf16 %v1222_v12, %v1220_v46  ;;  %v1253_v46 = vpack.c.bf16 %v1199_v0, %v1197_v53  ;;  %v7157_v0 = vld [vmem:[#allocation6 + $0x2c0] sm:$0xf] }
 0x1f4   :  { %v888_v15 = vpop.f32.mrf.mxu2 }
 0x1f5   :  { %v889_v33 = vadd.f32 %v888_v15, %v8681_v17  ;;  %v977_v2 = vpop.f32.mrf.mxu3 }
 0x1f6   :  { %v8861_v45 = vpop.f32.mrf.mxu0 }
 0x1f7   :  { %v978_v34 = vadd.f32 %v977_v2, %v889_v33  ;;  %v8863_v11 = vpop.f32.mrf.mxu1 }
 0x1f9   :  { %v1224_v12 = vmax.f32 %v978_v34, 0.0  ;;  %v7932_v34 = vld [vmem:[#allocation6 + $0x2c4] sm:$0xf0] }
 0x1fa   :  { %v7158_v53 = vor.u32 %v7932_v34, %v7157_v0 }
 0x1fc   :  { %v890_v30 = vpop.f32.mrf.mxu2  ;;  %2220 = vmatpush.bf16.msrb.mxu3 %v7158_v53 }
 0x1fd   :  { %v891_v16 = vadd.f32 %v890_v30, %v8681_v17  ;;  %v979_v35 = vpop.f32.mrf.mxu3  ;;  %v7094_v30 = vor.u32 %v7916_v31, %v7093_v51 }
 0x1fe   :  { %v1071_v23 = vpop.f32.mrf.mxu0 }
 0x1ff   :  { %v980_v50 = vadd.f32 %v979_v35, %v891_v16  ;;  %v1072_v14 = vadd.f32 %v1071_v23, %v8674_v10  ;;  %v1160_v54 = vpop.f32.mrf.mxu1  ;;  %2131 = vmatpush.bf16.msrb.mxu2 %v7094_v30 }
 0x201   :  { %v1226_v15 = vmax.f32 %v980_v50, 0.0  ;;  %v8869_v33 = vadd.f32 %v1160_v54, %v1072_v14  ;;  %1504 = vmatmul.bf16.gmra.mxu2 %v8758_v42  ;;  %1682 = vmatmul.bf16.gmra.mxu0 %v8758_v42  ;;  %v1128_v14 = vadd.f32 %v8763_v43, %v1039_v55  ;;  %v7921_v43 = vld [vmem:[#allocation6 + $0x274] sm:$0xf]  ;;  %v7119_v55 = vld [vmem:[#allocation6 + $0x278] sm:$0xf0] }
 0x202   :  { %1593 = vmatmul.bf16.gmra.mxu3 %v1253_v46  ;;  %1771 = vmatmul.bf16.gmra.mxu1 %v1253_v46 }
 0x203   :  { %v8873_v2 = vpack.c.bf16 %v1226_v15, %v1224_v12  ;;  %v1203_v54 = vmax.f32 %v1128_v14, 0.0  ;;  %v1201_v15 = vmax.f32 %v8752_v25, 0.0  ;;  %v1044_v25 = vadd.f32 %v8776_v47, %v8674_v10 }
 0x204   :  { %v893_v52 = vpop.f32.mrf.mxu2 }
 0x205   :  { %v894_v16 = vadd.f32 %v893_v52, %v8681_v17  ;;  %v982_v35 = vpop.f32.mrf.mxu3  ;;  %v1255_v34 = vpack.c.bf16 %v1203_v54, %v1201_v15  ;;  %v7937_v54 = vld [vmem:[#allocation6 + $0x2f4] sm:$0xf] }
 0x206   :  { %v8878_v23 = vpop.f32.mrf.mxu0 }
 0x207   :  { %v983_v42 = vadd.f32 %v982_v35, %v894_v16  ;;  %v8880_v50 = vpop.f32.mrf.mxu1 }
 0x209   :  { %v1228_v30 = vmax.f32 %v983_v42, 0.0  ;;  %v7183_v42 = vld [vmem:[#allocation6 + $0x2f8] sm:$0xf0] }
 0x20a   :  { %v7186_v15 = vor.u32 %v7937_v54, %v7183_v42 }
 0x20c   :  { %v895_v46 = vpop.f32.mrf.mxu2  ;;  %2395 = vmatpush.bf16.msrb.mxu1 %v7186_v15 }
 0x20d   :  { %v896_v60 = vadd.f32 %v895_v46, %v8681_v17  ;;  %v984_v12 = vpop.f32.mrf.mxu3  ;;  %v7122_v46 = vor.u32 %v7921_v43, %v7119_v55 }
 0x20e   :  { %v1076_v51 = vpop.f32.mrf.mxu0 }
 0x20f   :  { %v985_v31 = vadd.f32 %v984_v12, %v896_v60  ;;  %v1077_v52 = vadd.f32 %v1076_v51, %v8674_v10  ;;  %v1165_v0 = vpop.f32.mrf.mxu1  ;;  %2306 = vmatpush.bf16.msrb.mxu0 %v7122_v46 }
 0x211   :  { %v1230_v16 = vmax.f32 %v985_v31, 0.0  ;;  %v8886_v35 = vadd.f32 %v1165_v0, %v1077_v52  ;;  %1509 = vmatmul.bf16.gmra.mxu2 %v8773_v58  ;;  %1687 = vmatmul.bf16.gmra.mxu0 %v8773_v58  ;;  %v1133_v52 = vadd.f32 %v8778_v8, %v1044_v25  ;;  %v7085_v8 = vld [vmem:[#allocation6 + $0x230] sm:$0xf]  ;;  %v7914_v25 = vld [vmem:[#allocation6 + $0x234] sm:$0xf0] }
 0x212   :  { %1598 = vmatmul.bf16.gmra.mxu3 %v1255_v34  ;;  %1776 = vmatmul.bf16.gmra.mxu1 %v1255_v34 }
 0x213   :  { %v8890_v53 = vpack.c.bf16 %v1230_v16, %v1228_v30  ;;  %v1207_v0 = vmax.f32 %v1133_v52, 0.0  ;;  %v1205_v16 = vmax.f32 %v8767_v36, 0.0  ;;  %v1049_v36 = vadd.f32 %v8793_v21, %v8674_v10 }
 0x214   :  { %v898_v14 = vpop.f32.mrf.mxu2 }
 0x215   :  { %v899_v60 = vadd.f32 %v898_v14, %v8681_v17  ;;  %v987_v12 = vpop.f32.mrf.mxu3  ;;  %v1257_v42 = vpack.c.bf16 %v1207_v0, %v1205_v16  ;;  %v7149_v0 = vld [vmem:[#allocation6 + $0x2b0] sm:$0xf] }
 0x216   :  { %v8895_v51 = vpop.f32.mrf.mxu0 }
 0x217   :  { %v988_v58 = vadd.f32 %v987_v12, %v899_v60  ;;  %v8897_v31 = vpop.f32.mrf.mxu1 }
 0x219   :  { %v1232_v46 = vmax.f32 %v988_v58, 0.0  ;;  %v7930_v58 = vld [vmem:[#allocation6 + $0x2b4] sm:$0xf0] }
 0x21a   :  { %v7150_v16 = vor.u32 %v7930_v58, %v7149_v0 }
 0x21c   :  { %v900_v34 = vpop.f32.mrf.mxu2  ;;  %2221 = vmatpush.bf16.msrb.mxu3 %v7150_v16 }
 0x21d   :  { %v901_v47 = vadd.f32 %v900_v34, %v8681_v17  ;;  %v989_v30 = vpop.f32.mrf.mxu3  ;;  %v7086_v34 = vor.u32 %v7914_v25, %v7085_v8 }
 0x21e   :  { %v1081_v43 = vpop.f32.mrf.mxu0 }
 0x21f   :  { %v990_v55 = vadd.f32 %v989_v30, %v901_v47  ;;  %v1082_v14 = vadd.f32 %v1081_v43, %v8674_v10  ;;  %v1170_v54 = vpop.f32.mrf.mxu1  ;;  %2132 = vmatpush.bf16.msrb.mxu2 %v7086_v34 }
 0x221   :  { %v1234_v60 = vmax.f32 %v990_v55, 0.0  ;;  %v8903_v12 = vadd.f32 %v1170_v54, %v1082_v14  ;;  %1514 = vmatmul.bf16.gmra.mxu2 %v8788_v32  ;;  %1692 = vmatmul.bf16.gmra.mxu0 %v8788_v32  ;;  %v1138_v14 = vadd.f32 %v8795_v1, %v1049_v36  ;;  %v7919_v1 = vld [vmem:[#allocation6 + $0x264] sm:$0xf]  ;;  %v7111_v36 = vld [vmem:[#allocation6 + $0x268] sm:$0xf0] }
 0x222   :  { %1603 = vmatmul.bf16.gmra.mxu3 %v1257_v42  ;;  %1781 = vmatmul.bf16.gmra.mxu1 %v1257_v42 }
 0x223   :  { %v8907_v15 = vpack.c.bf16 %v1234_v60, %v1232_v46  ;;  %v1211_v54 = vmax.f32 %v1138_v14, 0.0  ;;  %v1209_v60 = vmax.f32 %v8782_v18, 0.0  ;;  %v1054_v18 = vadd.f32 %v8810_v5, %v8674_v10 }
 0x224   :  { %v903_v52 = vpop.f32.mrf.mxu2 }
 0x225   :  { %v904_v47 = vadd.f32 %v903_v52, %v8681_v17  ;;  %v992_v30 = vpop.f32.mrf.mxu3  ;;  %v1259_v58 = vpack.c.bf16 %v1211_v54, %v1209_v60  ;;  %v7935_v54 = vld [vmem:[#allocation6 + $0x2e4] sm:$0xf] }
 0x226   :  { %v8912_v43 = vpop.f32.mrf.mxu0 }
 0x227   :  { %v993_v32 = vadd.f32 %v992_v30, %v904_v47  ;;  %v8914_v55 = vpop.f32.mrf.mxu1 }
 0x229   :  { %v1236_v34 = vmax.f32 %v993_v32, 0.0  ;;  %v7175_v32 = vld [vmem:[#allocation6 + $0x2e8] sm:$0xf0] }
 0x22a   :  { %v7178_v60 = vor.u32 %v7935_v54, %v7175_v32 }
 0x22c   :  { %v905_v42 = vpop.f32.mrf.mxu2  ;;  %2396 = vmatpush.bf16.msrb.mxu1 %v7178_v60 }
 0x22d   :  { %v906_v21 = vadd.f32 %v905_v42, %v8681_v17  ;;  %v994_v46 = vpop.f32.mrf.mxu3  ;;  %v7114_v42 = vor.u32 %v7919_v1, %v7111_v36  ;;  %v1213_v36 = vmax.f32 %v8801_v44, 0.0  ;;  %v7912_v44 = vld [vmem:[#allocation6 + $0x224] sm:$0xf0] }
 0x22e   :  { %v1086_v8 = vpop.f32.mrf.mxu0 }
 0x22f   :  { %v995_v25 = vadd.f32 %v994_v46, %v906_v21  ;;  %v1087_v52 = vadd.f32 %v1086_v8, %v8674_v10  ;;  %v1175_v0 = vpop.f32.mrf.mxu1  ;;  %2307 = vmatpush.bf16.msrb.mxu0 %v7114_v42 }
 0x231   :  { %v1238_v47 = vmax.f32 %v995_v25, 0.0  ;;  %v8920_v30 = vadd.f32 %v1175_v0, %v1087_v52  ;;  %1519 = vmatmul.bf16.gmra.mxu2 %v8805_v40  ;;  %1697 = vmatmul.bf16.gmra.mxu0 %v8805_v40  ;;  %v1143_v52 = vadd.f32 %v8812_v37, %v1054_v18  ;;  %v1310_v0 = vld [vmem:[#allocation7 + $0x4] sm:$0x3] }
 0x232   :  { %1608 = vmatmul.bf16.gmra.mxu3 %v1259_v58  ;;  %1786 = vmatmul.bf16.gmra.mxu1 %v1259_v58  ;;  %v8934_v58 = vperm.slane %v1310_v0, 1  ;;  %v8943_v37 = vperm.slane %v1310_v0, 0 }
 0x233   :  { %v8924_v16 = vpack.c.bf16 %v1238_v47, %v1236_v34  ;;  %v1215_v5 = vmax.f32 %v1143_v52, 0.0  ;;  %v1059_v52 = vadd.f32 %v8827_v9, %v8674_v10 }
 0x234   :  { %v908_v14 = vpop.f32.mrf.mxu2 }
 0x235   :  { %v909_v21 = vadd.f32 %v908_v14, %v8681_v17  ;;  %v997_v46 = vpop.f32.mrf.mxu3 }
 0x236   :  { %v8929_v8 = vpop.f32.mrf.mxu0 }
 0x237   :  { %v998_v40 = vadd.f32 %v997_v46, %v909_v21  ;;  %v8931_v25 = vpop.f32.mrf.mxu1  ;;  %v1261_v21 = vpack.c.bf16 %v1215_v5, %v1213_v36 }
 0x239   :  { %v1240_v46 = vmax.f32 %v998_v40, 0.0 }
 0x23c   :  { %v910_v34 = vpop.f32.mrf.mxu2 }
 0x23d   :  { %v911_v47 = vadd.f32 %v910_v34, %v8681_v17  ;;  %v999_v1 = vpop.f32.mrf.mxu3  ;;  %v7077_v17 = vld [vmem:[#allocation6 + $0x220] sm:$0xf] }
 0x23e   :  { %v1663_v14 = vpop.f32.mrf.mxu0  ;;  %v7078_v40 = vor.u32 %v7912_v44, %v7077_v17  ;;  %v7141_v34 = vld [vmem:[#allocation6 + $0x2a0] sm:$0xf] }
 0x23f   :  { %v1000_v54 = vadd.f32 %v999_v1, %v911_v47  ;;  %v1664_v42 = vadd.f32 %v1663_v14, %v8934_v58  ;;  %v1752_v32 = vpop.f32.mrf.mxu1  ;;  %v7928_v47 = vld [vmem:[#allocation6 + $0x2a4] sm:$0xf0] }
 0x240   :  { %v7142_v14 = vor.u32 %v7928_v47, %v7141_v34  ;;  %2133 = vmatpush.bf16.msrb.mxu2 %v7078_v40 }
 0x241   :  { %v1242_v60 = vmax.f32 %v1000_v54, 0.0  ;;  %v8939_v39 = vadd.f32 %v1752_v32, %v1664_v42  ;;  %1524 = vmatmul.bf16.gmra.mxu2 %v8822_v24  ;;  %1702 = vmatmul.bf16.gmra.mxu0 %v8822_v24  ;;  %v1148_v42 = vadd.f32 %v8829_v13, %v1059_v52  ;;  %v7917_v52 = vld [vmem:[#allocation6 + $0x254] sm:$0xf] }
 0x242   :  { %1613 = vmatmul.bf16.gmra.mxu3 %v1261_v21  ;;  %1791 = vmatmul.bf16.gmra.mxu1 %v1261_v21 }
 0x243   :  { %v8945_v18 = vpack.c.bf16 %v1242_v60, %v1240_v46  ;;  %2222 = vmatpush.bf16.msrb.mxu3 %v7142_v14  ;;  %v1219_v32 = vmax.f32 %v1148_v42, 0.0  ;;  %v1217_v60 = vmax.f32 %v8818_v19, 0.0  ;;  %v7103_v19 = vld [vmem:[#allocation6 + $0x258] sm:$0xf0]  ;;  %v1064_v14 = vadd.f32 %v8844_v63, %v8674_v10 }
 0x244   :  { %v1485_v5 = vpop.f32.mrf.mxu2 }
 0x245   :  { %v1486_v1 = vadd.f32 %v1485_v5, %v8943_v37  ;;  %v1574_v36 = vpop.f32.mrf.mxu3  ;;  %v1263_v47 = vpack.c.bf16 %v1219_v32, %v1217_v60  ;;  %v7933_v32 = vld [vmem:[#allocation6 + $0x2d4] sm:$0xf] }
 0x246   :  { %v8950_v24 = vpop.f32.mrf.mxu0 }
 0x247   :  { %v1575_v0 = vadd.f32 %v1574_v36, %v1486_v1  ;;  %v8952_v54 = vpop.f32.mrf.mxu1 }
 0x249   :  { %v1832_v40 = vmax.f32 %v1575_v0, 0.0  ;;  %v7167_v0 = vld [vmem:[#allocation6 + $0x2d8] sm:$0xf0] }
 0x24a   :  { %v7170_v60 = vor.u32 %v7933_v32, %v7167_v0 }
 0x24c   :  { %v1487_v21 = vpop.f32.mrf.mxu2  ;;  %2397 = vmatpush.bf16.msrb.mxu1 %v7170_v60 }
 0x24d   :  { %v1488_v9 = vadd.f32 %v1487_v21, %v8943_v37  ;;  %v1576_v46 = vpop.f32.mrf.mxu3  ;;  %v7106_v21 = vor.u32 %v7917_v52, %v7103_v19 }
 0x24e   :  { %v1668_v17 = vpop.f32.mrf.mxu0 }
 0x24f   :  { %v1577_v44 = vadd.f32 %v1576_v46, %v1488_v9  ;;  %v1669_v5 = vadd.f32 %v1668_v17, %v8934_v58  ;;  %v1757_v34 = vpop.f32.mrf.mxu1  ;;  %2308 = vmatpush.bf16.msrb.mxu0 %v7106_v21 }
 0x251   :  { %v1834_v1 = vmax.f32 %v1577_v44, 0.0  ;;  %v8958_v36 = vadd.f32 %v1757_v34, %v1669_v5  ;;  %1529 = vmatmul.bf16.gmra.mxu2 %v8839_v61  ;;  %1707 = vmatmul.bf16.gmra.mxu0 %v8839_v61  ;;  %v1153_v5 = vadd.f32 %v8846_v62, %v1064_v14  ;;  %v7069_v62 = vld [vmem:[#allocation6 + $0x210] sm:$0xf]  ;;  %v7910_v14 = vld [vmem:[#allocation6 + $0x214] sm:$0xf0] }
 0x252   :  { %1618 = vmatmul.bf16.gmra.mxu3 %v1263_v47  ;;  %1796 = vmatmul.bf16.gmra.mxu1 %v1263_v47 }
 0x253   :  { %v8962_v13 = vpack.c.bf16 %v1834_v1, %v1832_v40  ;;  %v1223_v34 = vmax.f32 %v1153_v5, 0.0  ;;  %v1221_v1 = vmax.f32 %v8835_v22, 0.0  ;;  %v1069_v22 = vadd.f32 %v8861_v45, %v8674_v10 }
 0x254   :  { %v1490_v42 = vpop.f32.mrf.mxu2 }
 0x255   :  { %v1491_v9 = vadd.f32 %v1490_v42, %v8943_v37  ;;  %v1579_v46 = vpop.f32.mrf.mxu3  ;;  %v1265_v0 = vpack.c.bf16 %v1223_v34, %v1221_v1  ;;  %v7133_v34 = vld [vmem:[#allocation6 + $0x290] sm:$0xf] }
 0x256   :  { %v8967_v17 = vpop.f32.mrf.mxu0 }
 0x257   :  { %v1580_v61 = vadd.f32 %v1579_v46, %v1491_v9  ;;  %v8969_v44 = vpop.f32.mrf.mxu1 }
 0x259   :  { %v1836_v21 = vmax.f32 %v1580_v61, 0.0  ;;  %v7926_v61 = vld [vmem:[#allocation6 + $0x294] sm:$0xf0] }
 0x25a   :  { %v7134_v1 = vor.u32 %v7926_v61, %v7133_v34 }
 0x25c   :  { %v1492_v47 = vpop.f32.mrf.mxu2  ;;  %2223 = vmatpush.bf16.msrb.mxu3 %v7134_v1 }
 0x25d   :  { %v1493_v63 = vadd.f32 %v1492_v47, %v8943_v37  ;;  %v1581_v40 = vpop.f32.mrf.mxu3  ;;  %v7070_v47 = vor.u32 %v7910_v14, %v7069_v62 }
 0x25e   :  { %v1673_v52 = vpop.f32.mrf.mxu0 }
 0x25f   :  { %v1582_v19 = vadd.f32 %v1581_v40, %v1493_v63  ;;  %v1674_v42 = vadd.f32 %v1673_v52, %v8934_v58  ;;  %v1762_v32 = vpop.f32.mrf.mxu1  ;;  %2134 = vmatpush.bf16.msrb.mxu2 %v7070_v47 }
 0x261   :  { %v1838_v9 = vmax.f32 %v1582_v19, 0.0  ;;  %v8975_v46 = vadd.f32 %v1762_v32, %v1674_v42  ;;  %1534 = vmatmul.bf16.gmra.mxu2 %v8856_v59  ;;  %1712 = vmatmul.bf16.gmra.mxu0 %v8856_v59  ;;  %v1158_v42 = vadd.f32 %v8863_v11, %v1069_v22  ;;  %v7915_v11 = vld [vmem:[#allocation6 + $0x244] sm:$0xf]  ;;  %v7095_v22 = vld [vmem:[#allocation6 + $0x248] sm:$0xf0] }
 0x262   :  { %1623 = vmatmul.bf16.gmra.mxu3 %v1265_v0  ;;  %1801 = vmatmul.bf16.gmra.mxu1 %v1265_v0 }
 0x263   :  { %v8979_v60 = vpack.c.bf16 %v1838_v9, %v1836_v21  ;;  %v1227_v32 = vmax.f32 %v1158_v42, 0.0  ;;  %v1225_v9 = vmax.f32 %v8852_v41, 0.0  ;;  %v1074_v41 = vadd.f32 %v8878_v23, %v8674_v10 }
 0x264   :  { %v1495_v5 = vpop.f32.mrf.mxu2 }
 0x265   :  { %v1496_v63 = vadd.f32 %v1495_v5, %v8943_v37  ;;  %v1584_v40 = vpop.f32.mrf.mxu3  ;;  %v1267_v61 = vpack.c.bf16 %v1227_v32, %v1225_v9  ;;  %v7931_v32 = vld [vmem:[#allocation6 + $0x2c4] sm:$0xf] }
 0x266   :  { %v8984_v52 = vpop.f32.mrf.mxu0 }
 0x267   :  { %v1585_v59 = vadd.f32 %v1584_v40, %v1496_v63  ;;  %v8986_v19 = vpop.f32.mrf.mxu1 }
 0x269   :  { %v1840_v47 = vmax.f32 %v1585_v59, 0.0  ;;  %v7159_v59 = vld [vmem:[#allocation6 + $0x2c8] sm:$0xf0] }
 0x26a   :  { %v7162_v9 = vor.u32 %v7931_v32, %v7159_v59 }
 0x26c   :  { %v1497_v0 = vpop.f32.mrf.mxu2  ;;  %2398 = vmatpush.bf16.msrb.mxu1 %v7162_v9 }
 0x26d   :  { %v1498_v45 = vadd.f32 %v1497_v0, %v8943_v37  ;;  %v1586_v21 = vpop.f32.mrf.mxu3  ;;  %v7098_v0 = vor.u32 %v7915_v11, %v7095_v22 }
 0x26e   :  { %v1678_v62 = vpop.f32.mrf.mxu0 }
 0x26f   :  { %v1587_v14 = vadd.f32 %v1586_v21, %v1498_v45  ;;  %v1679_v5 = vadd.f32 %v1678_v62, %v8934_v58  ;;  %v1767_v34 = vpop.f32.mrf.mxu1  ;;  %2309 = vmatpush.bf16.msrb.mxu0 %v7098_v0 }
 0x271   :  { %v1842_v63 = vmax.f32 %v1587_v14, 0.0  ;;  %v8992_v40 = vadd.f32 %v1767_v34, %v1679_v5  ;;  %1539 = vmatmul.bf16.gmra.mxu2 %v8873_v2  ;;  %1717 = vmatmul.bf16.gmra.mxu0 %v8873_v2  ;;  %v1163_v5 = vadd.f32 %v8880_v50, %v1074_v41  ;;  %v7061_v50 = vld [vmem:[#allocation6 + $0x200] sm:$0xf]  ;;  %v7908_v41 = vld [vmem:[#allocation6 + $0x204] sm:$0xf0] }
 0x272   :  { %1628 = vmatmul.bf16.gmra.mxu3 %v1267_v61  ;;  %1806 = vmatmul.bf16.gmra.mxu1 %v1267_v61 }
 0x273   :  { %v8996_v1 = vpack.c.bf16 %v1842_v63, %v1840_v47  ;;  %v1231_v34 = vmax.f32 %v1163_v5, 0.0  ;;  %v1229_v63 = vmax.f32 %v8869_v33, 0.0  ;;  %v1079_v33 = vadd.f32 %v8895_v51, %v8674_v10 }
 0x274   :  { %v1500_v42 = vpop.f32.mrf.mxu2 }
 0x275   :  { %v1501_v45 = vadd.f32 %v1500_v42, %v8943_v37  ;;  %v1589_v21 = vpop.f32.mrf.mxu3  ;;  %v1269_v59 = vpack.c.bf16 %v1231_v34, %v1229_v63  ;;  %v7125_v34 = vld [vmem:[#allocation6 + $0x280] sm:$0xf] }
 0x276   :  { %v9001_v62 = vpop.f32.mrf.mxu0 }
 0x277   :  { %v1590_v2 = vadd.f32 %v1589_v21, %v1501_v45  ;;  %v9003_v14 = vpop.f32.mrf.mxu1 }
 0x279   :  { %v1844_v0 = vmax.f32 %v1590_v2, 0.0  ;;  %v7924_v2 = vld [vmem:[#allocation6 + $0x284] sm:$0xf0] }
 0x27a   :  { %v7126_v63 = vor.u32 %v7924_v2, %v7125_v34 }
 0x27c   :  { %v1502_v61 = vpop.f32.mrf.mxu2  ;;  %2224 = vmatpush.bf16.msrb.mxu3 %v7126_v63 }
 0x27d   :  { %v1503_v23 = vadd.f32 %v1502_v61, %v8943_v37  ;;  %v1591_v47 = vpop.f32.mrf.mxu3  ;;  %v7062_v61 = vor.u32 %v7908_v41, %v7061_v50 }
 0x27e   :  { %v1683_v11 = vpop.f32.mrf.mxu0 }
 0x27f   :  { %v1592_v22 = vadd.f32 %v1591_v47, %v1503_v23  ;;  %v1684_v42 = vadd.f32 %v1683_v11, %v8934_v58  ;;  %v1772_v32 = vpop.f32.mrf.mxu1  ;;  %2135 = vmatpush.bf16.msrb.mxu2 %v7062_v61  ;;  %v7913_v61 = vld [vmem:[#allocation6 + $0x234] sm:$0xf] }
 0x281   :  { %v1846_v45 = vmax.f32 %v1592_v22, 0.0  ;;  %v9009_v21 = vadd.f32 %v1772_v32, %v1684_v42  ;;  %1544 = vmatmul.bf16.gmra.mxu2 %v8890_v53  ;;  %1722 = vmatmul.bf16.gmra.mxu0 %v8890_v53  ;;  %v1168_v42 = vadd.f32 %v8897_v31, %v1079_v33  ;;  %v7151_v33 = vld [vmem:[#allocation6 + $0x2b8] sm:$0xf0] }
 0x282   :  { %1633 = vmatmul.bf16.gmra.mxu3 %v1269_v59  ;;  %1811 = vmatmul.bf16.gmra.mxu1 %v1269_v59 }
 0x283   :  { %v9013_v9 = vpack.c.bf16 %v1846_v45, %v1844_v0  ;;  %v1235_v32 = vmax.f32 %v1168_v42, 0.0  ;;  %v1233_v45 = vmax.f32 %v8886_v35, 0.0  ;;  %v1084_v42 = vadd.f32 %v8912_v43, %v8674_v10 }
 0x284   :  { %v1505_v5 = vpop.f32.mrf.mxu2 }
 0x285   :  { %v1506_v23 = vadd.f32 %v1505_v5, %v8943_v37  ;;  %v1594_v47 = vpop.f32.mrf.mxu3  ;;  %v1271_v2 = vpack.c.bf16 %v1235_v32, %v1233_v45 }
 0x286   :  { %v9018_v11 = vpop.f32.mrf.mxu0 }
 0x287   :  { %v1595_v53 = vadd.f32 %v1594_v47, %v1506_v23  ;;  %v9020_v22 = vpop.f32.mrf.mxu1  ;;  %v7087_v23 = vld [vmem:[#allocation6 + $0x238] sm:$0xf0]  ;;  %v7929_v47 = vld [vmem:[#allocation6 + $0x2b4] sm:$0xf] }
 0x288   :  { %v7090_v31 = vor.u32 %v7913_v61, %v7087_v23  ;;  %v7154_v35 = vor.u32 %v7929_v47, %v7151_v33  ;;  %v7071_v23 = vld [vmem:[#allocation6 + $0x218] sm:$0xf0]  ;;  %v7925_v47 = vld [vmem:[#allocation6 + $0x294] sm:$0xf] }
 0x289   :  { %v1848_v57 = vmax.f32 %v1595_v53, 0.0  ;;  %v7911_v53 = vld [vmem:[#allocation6 + $0x224] sm:$0xf] }
 0x28a   :  { %2310 = vmatpush.bf16.msrb.mxu0 %v7090_v31  ;;  %2399 = vmatpush.bf16.msrb.mxu1 %v7154_v35  ;;  %v7135_v31 = vld [vmem:[#allocation6 + $0x298] sm:$0xf0] }
 0x28b   :  { %v7138_v33 = vor.u32 %v7925_v47, %v7135_v31 }
 0x28c   :  { %v1507_v59 = vpop.f32.mrf.mxu2 }
 0x28d   :  { %v1508_v51 = vadd.f32 %v1507_v59, %v8943_v37  ;;  %v1596_v0 = vpop.f32.mrf.mxu3 }
 0x28e   :  { %v1688_v50 = vpop.f32.mrf.mxu0 }
 0x28f   :  { %v1597_v41 = vadd.f32 %v1596_v0, %v1508_v51  ;;  %v1689_v5 = vadd.f32 %v1688_v50, %v8934_v58  ;;  %v1777_v34 = vpop.f32.mrf.mxu1  ;;  %v7079_v51 = vld [vmem:[#allocation6 + $0x228] sm:$0xf0]  ;;  %v7927_v0 = vld [vmem:[#allocation6 + $0x2a4] sm:$0xf] }
 0x291   :  { %v1850_v63 = vmax.f32 %v1597_v41, 0.0  ;;  %v9026_v27 = vadd.f32 %v1777_v34, %v1689_v5  ;;  %1549 = vmatmul.bf16.gmra.mxu2 %v8907_v15  ;;  %1727 = vmatmul.bf16.gmra.mxu0 %v8907_v15  ;;  %v7082_v15 = vor.u32 %v7911_v53, %v7079_v51  ;;  %v7143_v41 = vld [vmem:[#allocation6 + $0x2a8] sm:$0xf0]  ;;  %v7907_v53 = vld [vmem:[#allocation6 + $0x204] sm:$0xf] }
 0x292   :  { %1638 = vmatmul.bf16.gmra.mxu3 %v1271_v2  ;;  %1816 = vmatmul.bf16.gmra.mxu1 %v1271_v2  ;;  %v7146_v34 = vor.u32 %v7927_v0, %v7143_v41  ;;  %v1173_v2 = vadd.f32 %v8914_v55, %v1084_v42  ;;  %v7063_v51 = vld [vmem:[#allocation6 + $0x208] sm:$0xf0]  ;;  %v7923_v0 = vld [vmem:[#allocation6 + $0x284] sm:$0xf] }
 0x293   :  { %v9032_v32 = vpack.c.bf16 %v1850_v63, %v1848_v57  ;;  %2311 = vmatpush.bf16.msrb.mxu0 %v7082_v15  ;;  %v7909_v57 = vld [vmem:[#allocation6 + $0x214] sm:$0xf]  ;;  %v1237_v15 = vmax.f32 %v8903_v12, 0.0  ;;  %v7245_v12 = vld [vmem:[#allocation6 + $0x370] sm:$0xf] }
 0x294   :  { %v1510_v59 = vpop.f32.mrf.mxu2  ;;  %2400 = vmatpush.bf16.msrb.mxu1 %v7146_v34  ;;  %v7074_v63 = vor.u32 %v7909_v57, %v7071_v23  ;;  %v1239_v35 = vmax.f32 %v1173_v2, 0.0 }
 0x295   :  { %v1511_v45 = vadd.f32 %v1510_v59, %v8943_v37  ;;  %v1599_v50 = vpop.f32.mrf.mxu3 }
 0x296   :  { %v9035_v5 = vpop.f32.mrf.mxu0  ;;  %v1273_v2 = vpack.c.bf16 %v1239_v35, %v1237_v15 }
 0x297   :  { %v1600_v61 = vadd.f32 %v1599_v50, %v1511_v45  ;;  %v9038_v43 = vpop.f32.mrf.mxu1  ;;  %2312 = vmatpush.bf16.msrb.mxu0 %v7074_v63  ;;  %v7066_v45 = vor.u32 %v7907_v53, %v7063_v51  ;;  %v7127_v50 = vld [vmem:[#allocation6 + $0x288] sm:$0xf0]  ;;  %v1089_v53 = vadd.f32 %v8929_v8, %v8674_v10 }
 0x298   :  { %2401 = vmatpush.bf16.msrb.mxu1 %v7138_v33  ;;  %v7130_v34 = vor.u32 %v7923_v0, %v7127_v50  ;;  %v7954_v33 = vld [vmem:[#allocation6 + $0x374] sm:$0xf0]  ;;  %v7309_v0 = vld [vmem:[#allocation6 + $0x3f0] sm:$0xf] }
 0x299   :  { %v1852_v47 = vmax.f32 %v1600_v61, 0.0  ;;  %v7246_v35 = vor.u32 %v7954_v33, %v7245_v12  ;;  %v7970_v61 = vld [vmem:[#allocation6 + $0x3f4] sm:$0xf0]  ;;  %v1178_v15 = vadd.f32 %v8931_v25, %v1089_v53 }
 0x29b   :  { %2313 = vmatpush.bf16.msrb.mxu0 %v7066_v45  ;;  %2780 = vmatpush.bf16.msra.mxu2 %v7246_v35 }
 0x29c   :  { %v1512_v59 = vpop.f32.mrf.mxu2  ;;  %2402 = vmatpush.bf16.msrb.mxu1 %v7130_v34 }
 0x29d   :  { %v1513_v55 = vadd.f32 %v1512_v59, %v8943_v37  ;;  %v1601_v42 = vpop.f32.mrf.mxu3 }
 0x29e   :  { %v1693_v41 = vpop.f32.mrf.mxu0 }
 0x29f   :  { %v1602_v7 = vadd.f32 %v1601_v42, %v1513_v55  ;;  %v1694_v57 = vadd.f32 %v1693_v41, %v8934_v58  ;;  %v1782_v23 = vpop.f32.mrf.mxu1  ;;  %v7310_v42 = vor.u32 %v7970_v61, %v7309_v0  ;;  %v1243_v41 = vmax.f32 %v1178_v15, 0.0 }
 0x2a1   :  { %v1854_v63 = vmax.f32 %v1602_v7, 0.0  ;;  %v9043_v31 = vadd.f32 %v1782_v23, %v1694_v57  ;;  %1554 = vmatmul.bf16.gmra.mxu2 %v8924_v16  ;;  %1732 = vmatmul.bf16.gmra.mxu0 %v8924_v16  ;;  %v1241_v57 = vmax.f32 %v8920_v30, 0.0  ;;  %v1666_v30 = vadd.f32 %v8950_v24, %v8934_v58 }
 0x2a2   :  { %1643 = vmatmul.bf16.gmra.mxu3 %v1273_v2  ;;  %1821 = vmatmul.bf16.gmra.mxu1 %v1273_v2 }
 0x2a3   :  { %v9047_v59 = vpack.c.bf16 %v1854_v63, %v1852_v47  ;;  %2869 = vmatpush.bf16.msra.mxu3 %v7310_v42  ;;  %v1275_v12 = vpack.c.bf16 %v1243_v41, %v1241_v57 }
 0x2a4   :  { %v1515_v51 = vpop.f32.mrf.mxu2 }
 0x2a5   :  { %v1516_v7 = vadd.f32 %v1515_v51, %v8943_v37  ;;  %v1604_v55 = vpop.f32.mrf.mxu3 }
 0x2a6   :  { %v9052_v45 = vpop.f32.mrf.mxu0 }
 0x2a7   :  { %v1605_v16 = vadd.f32 %v1604_v55, %v1516_v7  ;;  %v9054_v50 = vpop.f32.mrf.mxu1 }
 0x2a9   :  { %v1856_v33 = vmax.f32 %v1605_v16, 0.0  ;;  %v1755_v16 = vadd.f32 %v8952_v54, %v1666_v30  ;;  %v7237_v54 = vld [vmem:[#allocation6 + $0x360] sm:$0xf] }
 0x2ab   :  { %v1835_v15 = vmax.f32 %v1755_v16, 0.0 }
 0x2ac   :  { %v1517_v34 = vpop.f32.mrf.mxu2 }
 0x2ad   :  { %v1518_v10 = vadd.f32 %v1517_v34, %v8943_v37  ;;  %v1606_v8 = vpop.f32.mrf.mxu3 }
 0x2ae   :  { %v1698_v23 = vpop.f32.mrf.mxu0 }
 0x2af   :  { %v1607_v2 = vadd.f32 %v1606_v8, %v1518_v10  ;;  %v1699_v47 = vadd.f32 %v1698_v23, %v8934_v58  ;;  %v1787_v63 = vpop.f32.mrf.mxu1  ;;  %v1833_v10 = vmax.f32 %v8939_v39, 0.0  ;;  %v1671_v39 = vadd.f32 %v8967_v17, %v8934_v58 }
 0x2b1   :  { %v1858_v51 = vmax.f32 %v1607_v2, 0.0  ;;  %v9060_v35 = vadd.f32 %v1787_v63, %v1699_v47  ;;  %1559 = vmatmul.bf16.gmra.mxu2 %v8945_v18  ;;  %1737 = vmatmul.bf16.gmra.mxu0 %v8945_v18  ;;  %v1897_v2 = vpack.c.bf16 %v1835_v15, %v1833_v10 }
 0x2b2   :  { %1648 = vmatmul.bf16.gmra.mxu3 %v1275_v12  ;;  %1826 = vmatmul.bf16.gmra.mxu1 %v1275_v12 }
 0x2b3   :  { %v9064_v25 = vpack.c.bf16 %v1858_v51, %v1856_v33  ;;  %v7952_v33 = vld [vmem:[#allocation6 + $0x364] sm:$0xf0] }
 0x2b4   :  { %v1520_v53 = vpop.f32.mrf.mxu2 }
 0x2b5   :  { %v1521_v0 = vadd.f32 %v1520_v53, %v8943_v37  ;;  %v1609_v61 = vpop.f32.mrf.mxu3  ;;  %v7238_v53 = vor.u32 %v7952_v33, %v7237_v54 }
 0x2b6   :  { %v9069_v7 = vpop.f32.mrf.mxu0 }
 0x2b7   :  { %v1610_v55 = vadd.f32 %v1609_v61, %v1521_v0  ;;  %v9071_v42 = vpop.f32.mrf.mxu1  ;;  %v7301_v0 = vld [vmem:[#allocation6 + $0x3e0] sm:$0xf]  ;;  %v7968_v61 = vld [vmem:[#allocation6 + $0x3e4] sm:$0xf0]  ;;  %2781 = vmatpush.bf16.msra.mxu2 %v7238_v53 }
 0x2b8   :  { %v7302_v15 = vor.u32 %v7968_v61, %v7301_v0 }
 0x2b9   :  { %v1860_v47 = vmax.f32 %v1610_v55, 0.0 }
 0x2ba   :  { %2870 = vmatpush.bf16.msra.mxu3 %v7302_v15 }
 0x2bc   :  { %v1522_v18 = vpop.f32.mrf.mxu2 }
 0x2bd   :  { %v1523_v41 = vadd.f32 %v1522_v18, %v8943_v37  ;;  %v1611_v34 = vpop.f32.mrf.mxu3 }
 0x2be   :  { %v1703_v8 = vpop.f32.mrf.mxu0 }
 0x2bf   :  { %v1612_v24 = vadd.f32 %v1611_v34, %v1523_v41  ;;  %v1704_v57 = vadd.f32 %v1703_v8, %v8934_v58  ;;  %v1792_v23 = vpop.f32.mrf.mxu1  ;;  %v1760_v34 = vadd.f32 %v8969_v44, %v1671_v39 }
 0x2c1   :  { %v1862_v63 = vmax.f32 %v1612_v24, 0.0  ;;  %v9077_v12 = vadd.f32 %v1792_v23, %v1704_v57  ;;  %2136 = vmatmul.bf16.vlgmr.msrb.gmra.mxu2 %v8962_v13  ;;  %2314 = vmatmul.bf16.vlgmr.msrb.gmra.mxu0 %v8962_v13  ;;  %v1839_v10 = vmax.f32 %v1760_v34, 0.0  ;;  %v1837_v57 = vmax.f32 %v8958_v36, 0.0 }
 0x2c2   :  { %2225 = vmatmul.bf16.vlgmr.msrb.gmra.mxu3 %v1897_v2  ;;  %2403 = vmatmul.bf16.vlgmr.msrb.gmra.mxu1 %v1897_v2  ;;  %v1676_v36 = vadd.f32 %v8984_v52, %v8934_v58 }
 0x2c3   :  { %v9081_v51 = vpack.c.bf16 %v1862_v63, %v1860_v47  ;;  %v1899_v54 = vpack.c.bf16 %v1839_v10, %v1837_v57 }
 0x2c4   :  { %v1525_v30 = vpop.f32.mrf.mxu2 }
 0x2c5   :  { %v1526_v55 = vadd.f32 %v1525_v30, %v8943_v37  ;;  %v1614_v16 = vpop.f32.mrf.mxu3 }
 0x2c6   :  { %v9086_v18 = vpop.f32.mrf.mxu0 }
 0x2c7   :  { %v1615_v13 = vadd.f32 %v1614_v16, %v1526_v55  ;;  %v9088_v41 = vpop.f32.mrf.mxu1 }
 0x2c9   :  { %v1864_v33 = vmax.f32 %v1615_v13, 0.0  ;;  %v1765_v13 = vadd.f32 %v8986_v19, %v1676_v36  ;;  %v7229_v19 = vld [vmem:[#allocation6 + $0x350] sm:$0xf] }
 0x2cb   :  { %v1843_v34 = vmax.f32 %v1765_v13, 0.0 }
 0x2cc   :  { %v1527_v8 = vpop.f32.mrf.mxu2 }
 0x2cd   :  { %v1528_v17 = vadd.f32 %v1527_v8, %v8943_v37  ;;  %v1616_v24 = vpop.f32.mrf.mxu3 }
 0x2ce   :  { %v1708_v23 = vpop.f32.mrf.mxu0 }
 0x2cf   :  { %v1617_v2 = vadd.f32 %v1616_v24, %v1528_v17  ;;  %v1709_v47 = vadd.f32 %v1708_v23, %v8934_v58  ;;  %v1797_v63 = vpop.f32.mrf.mxu1  ;;  %v1841_v17 = vmax.f32 %v8975_v46, 0.0  ;;  %v1681_v46 = vadd.f32 %v9001_v62, %v8934_v58 }
 0x2d1   :  { %v1866_v30 = vmax.f32 %v1617_v2, 0.0  ;;  %v9094_v53 = vadd.f32 %v1797_v63, %v1709_v47  ;;  %2141 = vmatmul.bf16.gmra.mxu2 %v8979_v60  ;;  %2319 = vmatmul.bf16.gmra.mxu0 %v8979_v60  ;;  %v1901_v2 = vpack.c.bf16 %v1843_v34, %v1841_v17 }
 0x2d2   :  { %2230 = vmatmul.bf16.gmra.mxu3 %v1899_v54  ;;  %2408 = vmatmul.bf16.gmra.mxu1 %v1899_v54 }
 0x2d3   :  { %v9098_v44 = vpack.c.bf16 %v1866_v30, %v1864_v33  ;;  %v7950_v33 = vld [vmem:[#allocation6 + $0x354] sm:$0xf0] }
 0x2d4   :  { %v1530_v39 = vpop.f32.mrf.mxu2 }
 0x2d5   :  { %v1531_v0 = vadd.f32 %v1530_v39, %v8943_v37  ;;  %v1619_v61 = vpop.f32.mrf.mxu3  ;;  %v7230_v39 = vor.u32 %v7950_v33, %v7229_v19 }
 0x2d6   :  { %v9103_v55 = vpop.f32.mrf.mxu0 }
 0x2d7   :  { %v1620_v16 = vadd.f32 %v1619_v61, %v1531_v0  ;;  %v9105_v15 = vpop.f32.mrf.mxu1  ;;  %v7293_v0 = vld [vmem:[#allocation6 + $0x3d0] sm:$0xf]  ;;  %v7966_v61 = vld [vmem:[#allocation6 + $0x3d4] sm:$0xf0]  ;;  %2782 = vmatpush.bf16.msra.mxu2 %v7230_v39 }
 0x2d8   :  { %v7294_v34 = vor.u32 %v7966_v61, %v7293_v0 }
 0x2d9   :  { %v1868_v47 = vmax.f32 %v1620_v16, 0.0 }
 0x2da   :  { %2871 = vmatpush.bf16.msra.mxu3 %v7294_v34 }
 0x2dc   :  { %v1532_v60 = vpop.f32.mrf.mxu2 }
 0x2dd   :  { %v1533_v10 = vadd.f32 %v1532_v60, %v8943_v37  ;;  %v1621_v8 = vpop.f32.mrf.mxu3 }
 0x2de   :  { %v1713_v24 = vpop.f32.mrf.mxu0 }
 0x2df   :  { %v1622_v52 = vadd.f32 %v1621_v8, %v1533_v10  ;;  %v1714_v57 = vadd.f32 %v1713_v24, %v8934_v58  ;;  %v1802_v23 = vpop.f32.mrf.mxu1  ;;  %v1770_v8 = vadd.f32 %v9003_v14, %v1681_v46 }
 0x2e1   :  { %v1870_v63 = vmax.f32 %v1622_v52, 0.0  ;;  %v9111_v54 = vadd.f32 %v1802_v23, %v1714_v57  ;;  %2146 = vmatmul.bf16.gmra.mxu2 %v8996_v1  ;;  %2324 = vmatmul.bf16.gmra.mxu0 %v8996_v1  ;;  %v1847_v17 = vmax.f32 %v1770_v8, 0.0  ;;  %v1845_v57 = vmax.f32 %v8992_v40, 0.0 }
 0x2e2   :  { %2235 = vmatmul.bf16.gmra.mxu3 %v1901_v2  ;;  %2413 = vmatmul.bf16.gmra.mxu1 %v1901_v2  ;;  %v1686_v40 = vadd.f32 %v9018_v11, %v8934_v58 }
 0x2e3   :  { %v9115_v30 = vpack.c.bf16 %v1870_v63, %v1868_v47  ;;  %v1903_v19 = vpack.c.bf16 %v1847_v17, %v1845_v57 }
 0x2e4   :  { %v1535_v36 = vpop.f32.mrf.mxu2 }
 0x2e5   :  { %v1536_v16 = vadd.f32 %v1535_v36, %v8943_v37  ;;  %v1624_v13 = vpop.f32.mrf.mxu3 }
 0x2e6   :  { %v9120_v60 = vpop.f32.mrf.mxu0 }
 0x2e7   :  { %v1625_v1 = vadd.f32 %v1624_v13, %v1536_v16  ;;  %v9122_v10 = vpop.f32.mrf.mxu1 }
 0x2e9   :  { %v1872_v33 = vmax.f32 %v1625_v1, 0.0  ;;  %v1775_v1 = vadd.f32 %v9020_v22, %v1686_v40  ;;  %v7221_v22 = vld [vmem:[#allocation6 + $0x340] sm:$0xf] }
 0x2eb   :  { %v1851_v8 = vmax.f32 %v1775_v1, 0.0 }
 0x2ec   :  { %v1537_v24 = vpop.f32.mrf.mxu2 }
 0x2ed   :  { %v1538_v62 = vadd.f32 %v1537_v24, %v8943_v37  ;;  %v1626_v52 = vpop.f32.mrf.mxu3 }
 0x2ee   :  { %v1718_v23 = vpop.f32.mrf.mxu0 }
 0x2ef   :  { %v1627_v2 = vadd.f32 %v1626_v52, %v1538_v62  ;;  %v1719_v47 = vadd.f32 %v1718_v23, %v8934_v58  ;;  %v1807_v63 = vpop.f32.mrf.mxu1  ;;  %v1849_v62 = vmax.f32 %v9009_v21, 0.0  ;;  %v1691_v21 = vadd.f32 %v9035_v5, %v8934_v58 }
 0x2f1   :  { %v1874_v36 = vmax.f32 %v1627_v2, 0.0  ;;  %v9128_v39 = vadd.f32 %v1807_v63, %v1719_v47  ;;  %2151 = vmatmul.bf16.gmra.mxu2 %v9013_v9  ;;  %2329 = vmatmul.bf16.gmra.mxu0 %v9013_v9  ;;  %v1905_v2 = vpack.c.bf16 %v1851_v8, %v1849_v62 }
 0x2f2   :  { %2240 = vmatmul.bf16.gmra.mxu3 %v1903_v19  ;;  %2418 = vmatmul.bf16.gmra.mxu1 %v1903_v19 }
 0x2f3   :  { %v9132_v14 = vpack.c.bf16 %v1874_v36, %v1872_v33  ;;  %v7948_v33 = vld [vmem:[#allocation6 + $0x344] sm:$0xf0] }
 0x2f4   :  { %v1540_v46 = vpop.f32.mrf.mxu2 }
 0x2f5   :  { %v1541_v0 = vadd.f32 %v1540_v46, %v8943_v37  ;;  %v1629_v61 = vpop.f32.mrf.mxu3  ;;  %v7222_v46 = vor.u32 %v7948_v33, %v7221_v22 }
 0x2f6   :  { %v9137_v16 = vpop.f32.mrf.mxu0 }
 0x2f7   :  { %v1630_v13 = vadd.f32 %v1629_v61, %v1541_v0  ;;  %v9139_v34 = vpop.f32.mrf.mxu1  ;;  %v7285_v0 = vld [vmem:[#allocation6 + $0x3c0] sm:$0xf]  ;;  %v7964_v61 = vld [vmem:[#allocation6 + $0x3c4] sm:$0xf0]  ;;  %2783 = vmatpush.bf16.msra.mxu2 %v7222_v46 }
 0x2f8   :  { %v7286_v8 = vor.u32 %v7964_v61, %v7285_v0 }
 0x2f9   :  { %v1876_v47 = vmax.f32 %v1630_v13, 0.0 }
 0x2fa   :  { %2872 = vmatpush.bf16.msra.mxu3 %v7286_v8  ;;  %v7311_v8 = vld [vmem:[#allocation6 + $0x3f8] sm:$0xf0] }
 0x2fc   :  { %v1542_v9 = vpop.f32.mrf.mxu2 }
 0x2fd   :  { %v1543_v17 = vadd.f32 %v1542_v9, %v8943_v37  ;;  %v1631_v24 = vpop.f32.mrf.mxu3 }
 0x2fe   :  { %v1723_v52 = vpop.f32.mrf.mxu0 }
 0x2ff   :  { %v1632_v11 = vadd.f32 %v1631_v24, %v1543_v17  ;;  %v1724_v57 = vadd.f32 %v1723_v52, %v8934_v58  ;;  %v1812_v23 = vpop.f32.mrf.mxu1  ;;  %v1780_v24 = vadd.f32 %v9038_v43, %v1691_v21  ;;  %v7953_v43 = vld [vmem:[#allocation6 + $0x374] sm:$0xf]  ;;  %v7247_v21 = vld [vmem:[#allocation6 + $0x378] sm:$0xf0] }
 0x301   :  { %v1878_v63 = vmax.f32 %v1632_v11, 0.0  ;;  %v9145_v19 = vadd.f32 %v1812_v23, %v1724_v57  ;;  %2156 = vmatmul.bf16.gmra.mxu2 %v9032_v32  ;;  %2334 = vmatmul.bf16.gmra.mxu0 %v9032_v32  ;;  %v1855_v62 = vmax.f32 %v1780_v24, 0.0  ;;  %v1853_v57 = vmax.f32 %v9026_v27, 0.0 }
 0x302   :  { %2245 = vmatmul.bf16.gmra.mxu3 %v1905_v2  ;;  %2423 = vmatmul.bf16.gmra.mxu1 %v1905_v2  ;;  %v1696_v27 = vadd.f32 %v9052_v45, %v8934_v58 }
 0x303   :  { %v9149_v36 = vpack.c.bf16 %v1878_v63, %v1876_v47  ;;  %v1907_v22 = vpack.c.bf16 %v1855_v62, %v1853_v57 }
 0x304   :  { %v1545_v40 = vpop.f32.mrf.mxu2 }
 0x305   :  { %v1546_v13 = vadd.f32 %v1545_v40, %v8943_v37  ;;  %v1634_v1 = vpop.f32.mrf.mxu3 }
 0x306   :  { %v9154_v9 = vpop.f32.mrf.mxu0 }
 0x307   :  { %v1635_v32 = vadd.f32 %v1634_v1, %v1546_v13  ;;  %v9156_v17 = vpop.f32.mrf.mxu1  ;;  %v7250_v13 = vor.u32 %v7953_v43, %v7247_v21  ;;  %v7969_v1 = vld [vmem:[#allocation6 + $0x3f4] sm:$0xf] }
 0x308   :  { %v7314_v62 = vor.u32 %v7969_v1, %v7311_v8 }
 0x309   :  { %v1880_v33 = vmax.f32 %v1635_v32, 0.0  ;;  %2958 = vmatpush.bf16.msra.mxu0 %v7250_v13 }
 0x30a   :  { %3047 = vmatpush.bf16.msra.mxu1 %v7314_v62  ;;  %v7962_v62 = vld [vmem:[#allocation6 + $0x3b4] sm:$0xf0] }
 0x30c   :  { %v1547_v52 = vpop.f32.mrf.mxu2 }
 0x30d   :  { %v1548_v5 = vadd.f32 %v1547_v52, %v8943_v37  ;;  %v1636_v11 = vpop.f32.mrf.mxu3 }
 0x30e   :  { %v1728_v23 = vpop.f32.mrf.mxu0 }
 0x30f   :  { %v1637_v2 = vadd.f32 %v1636_v11, %v1548_v5  ;;  %v1729_v47 = vadd.f32 %v1728_v23, %v8934_v58  ;;  %v1817_v63 = vpop.f32.mrf.mxu1  ;;  %v1785_v11 = vadd.f32 %v9054_v50, %v1696_v27  ;;  %v7213_v50 = vld [vmem:[#allocation6 + $0x330] sm:$0xf]  ;;  %v7946_v27 = vld [vmem:[#allocation6 + $0x334] sm:$0xf0] }
 0x311   :  { %v1882_v40 = vmax.f32 %v1637_v2, 0.0  ;;  %v9162_v46 = vadd.f32 %v1817_v63, %v1729_v47  ;;  %2161 = vmatmul.bf16.gmra.mxu2 %v9047_v59  ;;  %2339 = vmatmul.bf16.gmra.mxu0 %v9047_v59  ;;  %v1859_v57 = vmax.f32 %v1785_v11, 0.0  ;;  %v1857_v47 = vmax.f32 %v9043_v31, 0.0 }
 0x312   :  { %2250 = vmatmul.bf16.gmra.mxu3 %v1907_v22  ;;  %2428 = vmatmul.bf16.gmra.mxu1 %v1907_v22  ;;  %v1701_v31 = vadd.f32 %v9069_v7, %v8934_v58 }
 0x313   :  { %v9166_v0 = vpack.c.bf16 %v1882_v40, %v1880_v33  ;;  %v1909_v43 = vpack.c.bf16 %v1859_v57, %v1857_v47 }
 0x314   :  { %v1550_v61 = vpop.f32.mrf.mxu2 }
 0x315   :  { %v1551_v32 = vadd.f32 %v1550_v61, %v8943_v37  ;;  %v1639_v24 = vpop.f32.mrf.mxu3 }
 0x316   :  { %v9171_v52 = vpop.f32.mrf.mxu0 }
 0x317   :  { %v1640_v59 = vadd.f32 %v1639_v24, %v1551_v32  ;;  %v9173_v5 = vpop.f32.mrf.mxu1  ;;  %v7214_v32 = vor.u32 %v7946_v27, %v7213_v50  ;;  %v7277_v24 = vld [vmem:[#allocation6 + $0x3b0] sm:$0xf] }
 0x318   :  { %v7278_v57 = vor.u32 %v7962_v62, %v7277_v24 }
 0x319   :  { %v1884_v21 = vmax.f32 %v1640_v59, 0.0  ;;  %2784 = vmatpush.bf16.msra.mxu2 %v7214_v32 }
 0x31a   :  { %2873 = vmatpush.bf16.msra.mxu3 %v7278_v57  ;;  %v7303_v57 = vld [vmem:[#allocation6 + $0x3e8] sm:$0xf0] }
 0x31c   :  { %v1552_v23 = vpop.f32.mrf.mxu2 }
 0x31d   :  { %v1553_v45 = vadd.f32 %v1552_v23, %v8943_v37  ;;  %v1641_v2 = vpop.f32.mrf.mxu3 }
 0x31e   :  { %v1733_v63 = vpop.f32.mrf.mxu0 }
 0x31f   :  { %v1642_v22 = vadd.f32 %v1641_v2, %v1553_v45  ;;  %v1734_v33 = vadd.f32 %v1733_v63, %v8934_v58  ;;  %v1822_v40 = vpop.f32.mrf.mxu1  ;;  %v1790_v2 = vadd.f32 %v9071_v42, %v1701_v31  ;;  %v7951_v42 = vld [vmem:[#allocation6 + $0x364] sm:$0xf]  ;;  %v7239_v31 = vld [vmem:[#allocation6 + $0x368] sm:$0xf0] }
 0x321   :  { %v1886_v61 = vmax.f32 %v1642_v22, 0.0  ;;  %v9179_v13 = vadd.f32 %v1822_v40, %v1734_v33  ;;  %2166 = vmatmul.bf16.gmra.mxu2 %v9064_v25  ;;  %2344 = vmatmul.bf16.gmra.mxu0 %v9064_v25  ;;  %v1863_v47 = vmax.f32 %v1790_v2, 0.0  ;;  %v1861_v33 = vmax.f32 %v9060_v35, 0.0 }
 0x322   :  { %2255 = vmatmul.bf16.gmra.mxu3 %v1909_v43  ;;  %2433 = vmatmul.bf16.gmra.mxu1 %v1909_v43  ;;  %v1706_v35 = vadd.f32 %v9086_v18, %v8934_v58 }
 0x323   :  { %v9183_v1 = vpack.c.bf16 %v1886_v61, %v1884_v21  ;;  %v1911_v50 = vpack.c.bf16 %v1863_v47, %v1861_v33  ;;  %v1962_v33 = vld [vmem:[#allocation7 + $0x6] sm:$0x3] }
 0x324   :  { %v1555_v8 = vpop.f32.mrf.mxu2 }
 0x325   :  { %v1556_v59 = vadd.f32 %v1555_v8, %v8943_v37  ;;  %v1644_v11 = vpop.f32.mrf.mxu3 }
 0x326   :  { %v9188_v23 = vpop.f32.mrf.mxu0 }
 0x327   :  { %v1645_v25 = vadd.f32 %v1644_v11, %v1556_v59  ;;  %v9190_v45 = vpop.f32.mrf.mxu1  ;;  %v7242_v59 = vor.u32 %v7951_v42, %v7239_v31  ;;  %v7967_v11 = vld [vmem:[#allocation6 + $0x3e4] sm:$0xf] }
 0x328   :  { %v7306_v47 = vor.u32 %v7967_v11, %v7303_v57 }
 0x329   :  { %v1888_v27 = vmax.f32 %v1645_v25, 0.0  ;;  %2959 = vmatpush.bf16.msra.mxu0 %v7242_v59 }
 0x32a   :  { %3048 = vmatpush.bf16.msra.mxu1 %v7306_v47 }
 0x32c   :  { %v1557_v63 = vpop.f32.mrf.mxu2 }
 0x32d   :  { %v1558_v7 = vadd.f32 %v1557_v63, %v8943_v37  ;;  %v1646_v22 = vpop.f32.mrf.mxu3 }
 0x32e   :  { %v1738_v40 = vpop.f32.mrf.mxu0 }
 0x32f   :  { %v1647_v43 = vadd.f32 %v1646_v22, %v1558_v7  ;;  %v1739_v21 = vadd.f32 %v1738_v40, %v8934_v58  ;;  %v1827_v61 = vpop.f32.mrf.mxu1  ;;  %v1795_v22 = vadd.f32 %v9088_v41, %v1706_v35  ;;  %v9210_v40 = vperm.slane %v1962_v33, 1 }
 0x330   :  { %v9219_v41 = vperm.slane %v1962_v33, 0 }
 0x331   :  { %v1890_v8 = vmax.f32 %v1647_v43, 0.0  ;;  %v9196_v32 = vadd.f32 %v1827_v61, %v1739_v21  ;;  %2171 = vmatmul.bf16.gmra.mxu2 %v9081_v51  ;;  %2349 = vmatmul.bf16.gmra.mxu0 %v9081_v51  ;;  %v1867_v18 = vmax.f32 %v1795_v22, 0.0  ;;  %v7960_v22 = vld [vmem:[#allocation6 + $0x3a4] sm:$0xf0] }
 0x332   :  { %2260 = vmatmul.bf16.gmra.mxu3 %v1911_v50  ;;  %2438 = vmatmul.bf16.gmra.mxu1 %v1911_v50  ;;  %v1865_v50 = vmax.f32 %v9077_v12, 0.0  ;;  %v7944_v12 = vld [vmem:[#allocation6 + $0x324] sm:$0xf0] }
 0x333   :  { %v9200_v24 = vpack.c.bf16 %v1890_v8, %v1888_v27 }
 0x334   :  { %v1560_v62 = vpop.f32.mrf.mxu2 }
 0x335   :  { %v1561_v25 = vadd.f32 %v1560_v62, %v8943_v37  ;;  %v1649_v2 = vpop.f32.mrf.mxu3  ;;  %v1913_v62 = vpack.c.bf16 %v1867_v18, %v1865_v50 }
 0x336   :  { %v9205_v63 = vpop.f32.mrf.mxu0 }
 0x337   :  { %v1650_v51 = vadd.f32 %v1649_v2, %v1561_v25  ;;  %v9207_v7 = vpop.f32.mrf.mxu1  ;;  %v1711_v25 = vadd.f32 %v9103_v55, %v8934_v58 }
 0x339   :  { %v1892_v59 = vmax.f32 %v1650_v51, 0.0  ;;  %v7269_v51 = vld [vmem:[#allocation6 + $0x3a0] sm:$0xf]  ;;  %v1800_v50 = vadd.f32 %v9105_v15, %v1711_v25  ;;  %v7949_v25 = vld [vmem:[#allocation6 + $0x354] sm:$0xf] }
 0x33c   :  { %v1562_v43 = vpop.f32.mrf.mxu2 }
 0x33d   :  { %v1563_v21 = vadd.f32 %v1562_v43, %v8943_v37  ;;  %v1651_v61 = vpop.f32.mrf.mxu3  ;;  %v7205_v37 = vld [vmem:[#allocation6 + $0x320] sm:$0xf] }
 0x33e   :  { %v2315_v27 = vpop.f32.mrf.mxu0  ;;  %v7206_v47 = vor.u32 %v7944_v12, %v7205_v37 }
 0x33f   :  { %v1652_v8 = vadd.f32 %v1651_v61, %v1563_v21  ;;  %v2316_v42 = vadd.f32 %v2315_v27, %v9210_v40  ;;  %v2404_v31 = vpop.f32.mrf.mxu1  ;;  %v7270_v21 = vor.u32 %v7960_v22, %v7269_v51  ;;  %v1871_v27 = vmax.f32 %v1800_v50, 0.0 }
 0x340   :  { %2785 = vmatpush.bf16.msra.mxu2 %v7206_v47  ;;  %v1716_v22 = vadd.f32 %v9120_v60, %v8934_v58 }
 0x341   :  { %v1894_v11 = vmax.f32 %v1652_v8, 0.0  ;;  %v9215_v57 = vadd.f32 %v2404_v31, %v2316_v42  ;;  %2176 = vmatmul.bf16.gmra.mxu2 %v9098_v44  ;;  %2354 = vmatmul.bf16.gmra.mxu0 %v9098_v44  ;;  %v1869_v31 = vmax.f32 %v9094_v53, 0.0  ;;  %v7231_v53 = vld [vmem:[#allocation6 + $0x358] sm:$0xf0] }
 0x342   :  { %2265 = vmatmul.bf16.gmra.mxu3 %v1913_v62  ;;  %2443 = vmatmul.bf16.gmra.mxu1 %v1913_v62 }
 0x343   :  { %v9221_v35 = vpack.c.bf16 %v1894_v11, %v1892_v59  ;;  %2874 = vmatpush.bf16.msra.mxu3 %v7270_v21  ;;  %v1915_v12 = vpack.c.bf16 %v1871_v27, %v1869_v31  ;;  %v7965_v21 = vld [vmem:[#allocation6 + $0x3d4] sm:$0xf]  ;;  %v1805_v31 = vadd.f32 %v9122_v10, %v1716_v22  ;;  %v7197_v10 = vld [vmem:[#allocation6 + $0x310] sm:$0xf]  ;;  %v7942_v22 = vld [vmem:[#allocation6 + $0x314] sm:$0xf0] }
 0x344   :  { %v2137_v2 = vpop.f32.mrf.mxu2 }
 0x345   :  { %v2138_v18 = vadd.f32 %v2137_v2, %v9219_v41  ;;  %v2226_v43 = vpop.f32.mrf.mxu3 }
 0x346   :  { %v9226_v44 = vpop.f32.mrf.mxu0 }
 0x347   :  { %v2227_v33 = vadd.f32 %v2226_v43, %v2138_v18  ;;  %v9228_v61 = vpop.f32.mrf.mxu1  ;;  %v7234_v43 = vor.u32 %v7949_v25, %v7231_v53 }
 0x349   :  { %v2484_v2 = vmax.f32 %v2227_v33, 0.0  ;;  %v7295_v33 = vld [vmem:[#allocation6 + $0x3d8] sm:$0xf0]  ;;  %2960 = vmatpush.bf16.msra.mxu0 %v7234_v43 }
 0x34c   :  { %v2139_v8 = vpop.f32.mrf.mxu2 }
 0x34d   :  { %v2140_v55 = vadd.f32 %v2139_v8, %v9219_v41  ;;  %v2228_v42 = vpop.f32.mrf.mxu3  ;;  %v7298_v8 = vor.u32 %v7965_v21, %v7295_v33 }
 0x34e   :  { %v2320_v62 = vpop.f32.mrf.mxu0 }
 0x34f   :  { %v2229_v59 = vadd.f32 %v2228_v42, %v2140_v55  ;;  %v2321_v11 = vadd.f32 %v2320_v62, %v9210_v40  ;;  %v2409_v37 = vpop.f32.mrf.mxu1  ;;  %3049 = vmatpush.bf16.msra.mxu1 %v7298_v8  ;;  %v1875_v62 = vmax.f32 %v1805_v31, 0.0  ;;  %v7261_v8 = vld [vmem:[#allocation6 + $0x390] sm:$0xf] }
 0x351   :  { %v2486_v47 = vmax.f32 %v2229_v59, 0.0  ;;  %v9234_v51 = vadd.f32 %v2409_v37, %v2321_v11  ;;  %2181 = vmatmul.bf16.gmra.mxu2 %v9115_v30  ;;  %2359 = vmatmul.bf16.gmra.mxu0 %v9115_v30  ;;  %v1873_v37 = vmax.f32 %v9111_v54, 0.0  ;;  %v1721_v54 = vadd.f32 %v9137_v16, %v8934_v58 }
 0x352   :  { %2270 = vmatmul.bf16.gmra.mxu3 %v1915_v12  ;;  %2448 = vmatmul.bf16.gmra.mxu1 %v1915_v12 }
 0x353   :  { %v9238_v15 = vpack.c.bf16 %v2486_v47, %v2484_v2  ;;  %v1917_v53 = vpack.c.bf16 %v1875_v62, %v1873_v37  ;;  %v1810_v37 = vadd.f32 %v9139_v34, %v1721_v54  ;;  %v7947_v34 = vld [vmem:[#allocation6 + $0x344] sm:$0xf]  ;;  %v7223_v54 = vld [vmem:[#allocation6 + $0x348] sm:$0xf0] }
 0x354   :  { %v2142_v18 = vpop.f32.mrf.mxu2 }
 0x355   :  { %v2143_v50 = vadd.f32 %v2142_v18, %v9219_v41  ;;  %v2231_v27 = vpop.f32.mrf.mxu3 }
 0x356   :  { %v9243_v55 = vpop.f32.mrf.mxu0 }
 0x357   :  { %v2232_v30 = vadd.f32 %v2231_v27, %v2143_v50  ;;  %v9245_v42 = vpop.f32.mrf.mxu1  ;;  %v7198_v27 = vor.u32 %v7942_v22, %v7197_v10 }
 0x359   :  { %v2488_v18 = vmax.f32 %v2232_v30, 0.0  ;;  %v7958_v30 = vld [vmem:[#allocation6 + $0x394] sm:$0xf0]  ;;  %2786 = vmatpush.bf16.msra.mxu2 %v7198_v27 }
 0x35c   :  { %v2144_v59 = vpop.f32.mrf.mxu2 }
 0x35d   :  { %v2145_v60 = vadd.f32 %v2144_v59, %v9219_v41  ;;  %v2233_v11 = vpop.f32.mrf.mxu3  ;;  %v7262_v59 = vor.u32 %v7958_v30, %v7261_v8 }
 0x35e   :  { %v2325_v12 = vpop.f32.mrf.mxu0 }
 0x35f   :  { %v2234_v2 = vadd.f32 %v2233_v11, %v2145_v60  ;;  %v2326_v47 = vadd.f32 %v2325_v12, %v9210_v40  ;;  %v2414_v25 = vpop.f32.mrf.mxu1  ;;  %2875 = vmatpush.bf16.msra.mxu3 %v7262_v59  ;;  %v1879_v12 = vmax.f32 %v1810_v37, 0.0  ;;  %v7963_v59 = vld [vmem:[#allocation6 + $0x3c4] sm:$0xf] }
 0x361   :  { %v2490_v43 = vmax.f32 %v2234_v2, 0.0  ;;  %v9251_v21 = vadd.f32 %v2414_v25, %v2326_v47  ;;  %2186 = vmatmul.bf16.gmra.mxu2 %v9132_v14  ;;  %2364 = vmatmul.bf16.gmra.mxu0 %v9132_v14  ;;  %v1877_v25 = vmax.f32 %v9128_v39, 0.0  ;;  %v1726_v39 = vadd.f32 %v9154_v9, %v8934_v58 }
 0x362   :  { %2275 = vmatmul.bf16.gmra.mxu3 %v1917_v53  ;;  %2453 = vmatmul.bf16.gmra.mxu1 %v1917_v53 }
 0x363   :  { %v9255_v33 = vpack.c.bf16 %v2490_v43, %v2488_v18  ;;  %v1919_v22 = vpack.c.bf16 %v1879_v12, %v1877_v25  ;;  %v1815_v25 = vadd.f32 %v9156_v17, %v1726_v39  ;;  %v7189_v17 = vld [vmem:[#allocation6 + $0x300] sm:$0xf]  ;;  %v7940_v39 = vld [vmem:[#allocation6 + $0x304] sm:$0xf0] }
 0x364   :  { %v2147_v50 = vpop.f32.mrf.mxu2 }
 0x365   :  { %v2148_v31 = vadd.f32 %v2147_v50, %v9219_v41  ;;  %v2236_v62 = vpop.f32.mrf.mxu3 }
 0x366   :  { %v9260_v60 = vpop.f32.mrf.mxu0 }
 0x367   :  { %v2237_v14 = vadd.f32 %v2236_v62, %v2148_v31  ;;  %v9262_v11 = vpop.f32.mrf.mxu1  ;;  %v7226_v62 = vor.u32 %v7947_v34, %v7223_v54 }
 0x369   :  { %v2492_v50 = vmax.f32 %v2237_v14, 0.0  ;;  %v7287_v14 = vld [vmem:[#allocation6 + $0x3c8] sm:$0xf0]  ;;  %2961 = vmatpush.bf16.msra.mxu0 %v7226_v62 }
 0x36c   :  { %v2149_v2 = vpop.f32.mrf.mxu2 }
 0x36d   :  { %v2150_v16 = vadd.f32 %v2149_v2, %v9219_v41  ;;  %v2238_v47 = vpop.f32.mrf.mxu3  ;;  %v7290_v2 = vor.u32 %v7963_v59, %v7287_v14 }
 0x36e   :  { %v2330_v53 = vpop.f32.mrf.mxu0 }
 0x36f   :  { %v2239_v18 = vadd.f32 %v2238_v47, %v2150_v16  ;;  %v2331_v43 = vadd.f32 %v2330_v53, %v9210_v40  ;;  %v2419_v10 = vpop.f32.mrf.mxu1  ;;  %3050 = vmatpush.bf16.msra.mxu1 %v7290_v2  ;;  %v1883_v53 = vmax.f32 %v1815_v25, 0.0  ;;  %v7253_v2 = vld [vmem:[#allocation6 + $0x380] sm:$0xf] }
 0x371   :  { %v2494_v27 = vmax.f32 %v2239_v18, 0.0  ;;  %v9268_v8 = vadd.f32 %v2419_v10, %v2331_v43  ;;  %2191 = vmatmul.bf16.gmra.mxu2 %v9149_v36  ;;  %2369 = vmatmul.bf16.gmra.mxu0 %v9149_v36  ;;  %v1881_v10 = vmax.f32 %v9145_v19, 0.0  ;;  %v1731_v19 = vadd.f32 %v9171_v52, %v8934_v58 }
 0x372   :  { %2280 = vmatmul.bf16.gmra.mxu3 %v1919_v22  ;;  %2458 = vmatmul.bf16.gmra.mxu1 %v1919_v22 }
 0x373   :  { %v9272_v30 = vpack.c.bf16 %v2494_v27, %v2492_v50  ;;  %v1921_v54 = vpack.c.bf16 %v1883_v53, %v1881_v10  ;;  %v1820_v10 = vadd.f32 %v9173_v5, %v1731_v19  ;;  %v7279_v19 = vld [vmem:[#allocation6 + $0x3b8] sm:$0xf0] }
 0x374   :  { %v2152_v31 = vpop.f32.mrf.mxu2 }
 0x375   :  { %v2153_v37 = vadd.f32 %v2152_v31, %v9219_v41  ;;  %v2241_v12 = vpop.f32.mrf.mxu3 }
 0x376   :  { %v9277_v16 = vpop.f32.mrf.mxu0 }
 0x377   :  { %v2242_v36 = vadd.f32 %v2241_v12, %v2153_v37  ;;  %v9279_v47 = vpop.f32.mrf.mxu1  ;;  %v7190_v12 = vor.u32 %v7940_v39, %v7189_v17 }
 0x379   :  { %v2496_v31 = vmax.f32 %v2242_v36, 0.0  ;;  %v7956_v36 = vld [vmem:[#allocation6 + $0x384] sm:$0xf0]  ;;  %2787 = vmatpush.bf16.msra.mxu2 %v7190_v12  ;;  %v7215_v12 = vld [vmem:[#allocation6 + $0x338] sm:$0xf0] }
 0x37c   :  { %v2154_v18 = vpop.f32.mrf.mxu2 }
 0x37d   :  { %v2155_v9 = vadd.f32 %v2154_v18, %v9219_v41  ;;  %v2243_v43 = vpop.f32.mrf.mxu3  ;;  %v7254_v18 = vor.u32 %v7956_v36, %v7253_v2  ;;  %v7961_v2 = vld [vmem:[#allocation6 + $0x3b4] sm:$0xf] }
 0x37e   :  { %v2335_v22 = vpop.f32.mrf.mxu0 }
 0x37f   :  { %v2244_v50 = vadd.f32 %v2243_v43, %v2155_v9  ;;  %v2336_v27 = vadd.f32 %v2335_v22, %v9210_v40  ;;  %v2424_v34 = vpop.f32.mrf.mxu1  ;;  %2876 = vmatpush.bf16.msra.mxu3 %v7254_v18  ;;  %v1887_v22 = vmax.f32 %v1820_v10, 0.0  ;;  %v1736_v18 = vadd.f32 %v9188_v23, %v8934_v58 }
 0x381   :  { %v2498_v62 = vmax.f32 %v2244_v50, 0.0  ;;  %v9285_v59 = vadd.f32 %v2424_v34, %v2336_v27  ;;  %2196 = vmatmul.bf16.gmra.mxu2 %v9166_v0  ;;  %2374 = vmatmul.bf16.gmra.mxu0 %v9166_v0  ;;  %v1885_v34 = vmax.f32 %v9162_v46, 0.0  ;;  %v7282_v46 = vor.u32 %v7961_v2, %v7279_v19  ;;  %v7957_v2 = vld [vmem:[#allocation6 + $0x394] sm:$0xf] }
 0x382   :  { %2285 = vmatmul.bf16.gmra.mxu3 %v1921_v54  ;;  %2463 = vmatmul.bf16.gmra.mxu1 %v1921_v54 }
 0x383   :  { %v9289_v14 = vpack.c.bf16 %v2498_v62, %v2496_v31  ;;  %v1923_v39 = vpack.c.bf16 %v1887_v22, %v1885_v34  ;;  %3051 = vmatpush.bf16.msra.mxu1 %v7282_v46 }
 0x384   :  { %v2157_v37 = vpop.f32.mrf.mxu2 }
 0x385   :  { %v2158_v25 = vadd.f32 %v2157_v37, %v9219_v41  ;;  %v2246_v53 = vpop.f32.mrf.mxu3  ;;  %v7945_v37 = vld [vmem:[#allocation6 + $0x334] sm:$0xf] }
 0x386   :  { %v9294_v9 = vpop.f32.mrf.mxu0  ;;  %v7218_v5 = vor.u32 %v7945_v37, %v7215_v12  ;;  %v7941_v37 = vld [vmem:[#allocation6 + $0x314] sm:$0xf]  ;;  %v7199_v12 = vld [vmem:[#allocation6 + $0x318] sm:$0xf0] }
 0x387   :  { %v2247_v0 = vadd.f32 %v2246_v53, %v2158_v25  ;;  %v9296_v43 = vpop.f32.mrf.mxu1 }
 0x388   :  { %2962 = vmatpush.bf16.msra.mxu0 %v7218_v5 }
 0x389   :  { %v2500_v36 = vmax.f32 %v2247_v0, 0.0  ;;  %v7943_v0 = vld [vmem:[#allocation6 + $0x324] sm:$0xf] }
 0x38c   :  { %v2159_v50 = vpop.f32.mrf.mxu2 }
 0x38d   :  { %v2160_v52 = vadd.f32 %v2159_v50, %v9219_v41  ;;  %v2248_v27 = vpop.f32.mrf.mxu3  ;;  %v7207_v50 = vld [vmem:[#allocation6 + $0x328] sm:$0xf0] }
 0x38e   :  { %v2340_v54 = vpop.f32.mrf.mxu0 }
 0x38f   :  { %v2249_v31 = vadd.f32 %v2248_v27, %v2160_v52  ;;  %v2341_v62 = vadd.f32 %v2340_v54, %v9210_v40  ;;  %v2429_v17 = vpop.f32.mrf.mxu1  ;;  %v7959_v52 = vld [vmem:[#allocation6 + $0x3a4] sm:$0xf]  ;;  %v7271_v54 = vld [vmem:[#allocation6 + $0x3a8] sm:$0xf0] }
 0x391   :  { %v2502_v25 = vmax.f32 %v2249_v31, 0.0  ;;  %v9302_v53 = vadd.f32 %v2429_v17, %v2341_v62  ;;  %2201 = vmatmul.bf16.gmra.mxu2 %v9183_v1  ;;  %2379 = vmatmul.bf16.gmra.mxu0 %v9183_v1  ;;  %v7210_v1 = vor.u32 %v7943_v0, %v7207_v50  ;;  %v7274_v62 = vor.u32 %v7959_v52, %v7271_v54  ;;  %v7191_v0 = vld [vmem:[#allocation6 + $0x308] sm:$0xf0]  ;;  %v7955_v50 = vld [vmem:[#allocation6 + $0x384] sm:$0xf] }
 0x392   :  { %2290 = vmatmul.bf16.gmra.mxu3 %v1923_v39  ;;  %2468 = vmatmul.bf16.gmra.mxu1 %v1923_v39  ;;  %v1825_v17 = vadd.f32 %v9190_v45, %v1736_v18 }
 0x393   :  { %v9308_v10 = vpack.c.bf16 %v2502_v25, %v2500_v36  ;;  %2963 = vmatpush.bf16.msra.mxu0 %v7210_v1  ;;  %3052 = vmatpush.bf16.msra.mxu1 %v7274_v62  ;;  %v7202_v36 = vor.u32 %v7941_v37, %v7199_v12  ;;  %v7263_v25 = vld [vmem:[#allocation6 + $0x398] sm:$0xf0] }
 0x394   :  { %v2162_v22 = vpop.f32.mrf.mxu2  ;;  %v7266_v5 = vor.u32 %v7957_v2, %v7263_v25  ;;  %v1891_v19 = vmax.f32 %v1825_v17, 0.0 }
 0x395   :  { %v2163_v27 = vadd.f32 %v2162_v22, %v9219_v41  ;;  %v2251_v34 = vpop.f32.mrf.mxu3  ;;  %v7939_v22 = vld [vmem:[#allocation6 + $0x304] sm:$0xf] }
 0x396   :  { %v9311_v31 = vpop.f32.mrf.mxu0  ;;  %v7194_v52 = vor.u32 %v7939_v22, %v7191_v0  ;;  %v1741_v22 = vadd.f32 %v9205_v63, %v8934_v58 }
 0x397   :  { %v2252_v39 = vadd.f32 %v2251_v34, %v2163_v27  ;;  %v9314_v23 = vpop.f32.mrf.mxu1  ;;  %2964 = vmatpush.bf16.msra.mxu0 %v7202_v36  ;;  %3053 = vmatpush.bf16.msra.mxu1 %v7266_v5  ;;  %v7255_v27 = vld [vmem:[#allocation6 + $0x388] sm:$0xf0]  ;;  %v1889_v34 = vmax.f32 %v9179_v13, 0.0  ;;  %v7373_v13 = vld [vmem:[#allocation4 + $0x70] sm:$0xf] }
 0x398   :  { %v7258_v54 = vor.u32 %v7955_v50, %v7255_v27  ;;  %v7986_v5 = vld [vmem:[#allocation4 + $0x74] sm:$0xf0]  ;;  %v7437_v50 = vld [vmem:[#allocation4 + $0xf0] sm:$0xf] }
 0x399   :  { %v1925_v17 = vpack.c.bf16 %v1891_v19, %v1889_v34  ;;  %v2504_v2 = vmax.f32 %v2252_v39, 0.0  ;;  %v7374_v19 = vor.u32 %v7986_v5, %v7373_v13  ;;  %v8002_v39 = vld [vmem:[#allocation4 + $0xf4] sm:$0xf0] }
 0x39b   :  { %2965 = vmatpush.bf16.msra.mxu0 %v7194_v52  ;;  %3054 = vmatpush.bf16.msra.mxu1 %v7258_v54  ;;  %v7438_v52 = vor.u32 %v8002_v39, %v7437_v50 }
 0x39c   :  { %v2164_v46 = vpop.f32.mrf.mxu2  ;;  %3687 = vmatpush.bf16.msrb.mxu2 %v7374_v19 }
 0x39d   :  { %v2165_v45 = vadd.f32 %v2164_v46, %v9219_v41  ;;  %v2253_v18 = vpop.f32.mrf.mxu3  ;;  %3776 = vmatpush.bf16.msrb.mxu3 %v7438_v52 }
 0x39e   :  { %v2345_v1 = vpop.f32.mrf.mxu0 }
 0x39f   :  { %v2254_v62 = vadd.f32 %v2253_v18, %v2165_v45  ;;  %v2346_v37 = vadd.f32 %v2345_v1, %v9210_v40  ;;  %v2434_v12 = vpop.f32.mrf.mxu1  ;;  %v1830_v1 = vadd.f32 %v9207_v7, %v1741_v22 }
 0x3a1   :  { %v2506_v36 = vmax.f32 %v2254_v62, 0.0  ;;  %v9319_v25 = vadd.f32 %v2434_v12, %v2346_v37  ;;  %2206 = vmatmul.bf16.gmra.mxu2 %v9200_v24  ;;  %2384 = vmatmul.bf16.gmra.mxu0 %v9200_v24  ;;  %v1895_v54 = vmax.f32 %v1830_v1, 0.0  ;;  %v1893_v37 = vmax.f32 %v9196_v32, 0.0 }
 0x3a2   :  { %2295 = vmatmul.bf16.gmra.mxu3 %v1925_v17  ;;  %2473 = vmatmul.bf16.gmra.mxu1 %v1925_v17  ;;  %v2318_v32 = vadd.f32 %v9226_v44, %v9210_v40 }
 0x3a3   :  { %v9323_v46 = vpack.c.bf16 %v2506_v36, %v2504_v2  ;;  %v1927_v13 = vpack.c.bf16 %v1895_v54, %v1893_v37 }
 0x3a4   :  { %v2167_v0 = vpop.f32.mrf.mxu2 }
 0x3a5   :  { %v2168_v45 = vadd.f32 %v2167_v0, %v9219_v41  ;;  %v2256_v18 = vpop.f32.mrf.mxu3 }
 0x3a6   :  { %v9328_v27 = vpop.f32.mrf.mxu0 }
 0x3a7   :  { %v2257_v24 = vadd.f32 %v2256_v18, %v2168_v45  ;;  %v9330_v34 = vpop.f32.mrf.mxu1 }
 0x3a9   :  { %v2508_v5 = vmax.f32 %v2257_v24, 0.0  ;;  %v2407_v24 = vadd.f32 %v9228_v61, %v2318_v32  ;;  %v7365_v61 = vld [vmem:[#allocation4 + $0x60] sm:$0xf] }
 0x3ab   :  { %v2487_v1 = vmax.f32 %v2407_v24, 0.0 }
 0x3ac   :  { %v2169_v62 = vpop.f32.mrf.mxu2 }
 0x3ad   :  { %v2170_v58 = vadd.f32 %v2169_v62, %v9219_v41  ;;  %v2258_v63 = vpop.f32.mrf.mxu3 }
 0x3ae   :  { %v2350_v12 = vpop.f32.mrf.mxu0 }
 0x3af   :  { %v2259_v17 = vadd.f32 %v2258_v63, %v2170_v58  ;;  %v2351_v2 = vadd.f32 %v2350_v12, %v9210_v40  ;;  %v2439_v36 = vpop.f32.mrf.mxu1  ;;  %v2485_v58 = vmax.f32 %v9215_v57, 0.0  ;;  %v2323_v57 = vadd.f32 %v9243_v55, %v9210_v40 }
 0x3b1   :  { %v2510_v0 = vmax.f32 %v2259_v17, 0.0  ;;  %v9336_v19 = vadd.f32 %v2439_v36, %v2351_v2  ;;  %2211 = vmatmul.bf16.gmra.mxu2 %v9221_v35  ;;  %2389 = vmatmul.bf16.gmra.mxu0 %v9221_v35  ;;  %v2549_v17 = vpack.c.bf16 %v2487_v1, %v2485_v58 }
 0x3b2   :  { %2300 = vmatmul.bf16.gmra.mxu3 %v1927_v13  ;;  %2478 = vmatmul.bf16.gmra.mxu1 %v1927_v13 }
 0x3b3   :  { %v9340_v7 = vpack.c.bf16 %v2510_v0, %v2508_v5  ;;  %v7984_v5 = vld [vmem:[#allocation4 + $0x64] sm:$0xf0] }
 0x3b4   :  { %v2172_v22 = vpop.f32.mrf.mxu2 }
 0x3b5   :  { %v2173_v50 = vadd.f32 %v2172_v22, %v9219_v41  ;;  %v2261_v39 = vpop.f32.mrf.mxu3  ;;  %v7366_v22 = vor.u32 %v7984_v5, %v7365_v61 }
 0x3b6   :  { %v9345_v45 = vpop.f32.mrf.mxu0 }
 0x3b7   :  { %v2262_v18 = vadd.f32 %v2261_v39, %v2173_v50  ;;  %v9347_v52 = vpop.f32.mrf.mxu1  ;;  %v7429_v50 = vld [vmem:[#allocation4 + $0xe0] sm:$0xf]  ;;  %v8000_v39 = vld [vmem:[#allocation4 + $0xe4] sm:$0xf0]  ;;  %3688 = vmatpush.bf16.msrb.mxu2 %v7366_v22 }
 0x3b8   :  { %v7430_v1 = vor.u32 %v8000_v39, %v7429_v50 }
 0x3b9   :  { %v2512_v2 = vmax.f32 %v2262_v18, 0.0 }
 0x3ba   :  { %3777 = vmatpush.bf16.msrb.mxu3 %v7430_v1 }
 0x3bc   :  { %v2174_v35 = vpop.f32.mrf.mxu2 }
 0x3bd   :  { %v2175_v54 = vadd.f32 %v2174_v35, %v9219_v41  ;;  %v2263_v62 = vpop.f32.mrf.mxu3 }
 0x3be   :  { %v2355_v63 = vpop.f32.mrf.mxu0 }
 0x3bf   :  { %v2264_v44 = vadd.f32 %v2263_v62, %v2175_v54  ;;  %v2356_v37 = vadd.f32 %v2355_v63, %v9210_v40  ;;  %v2444_v12 = vpop.f32.mrf.mxu1  ;;  %v2412_v62 = vadd.f32 %v9245_v42, %v2323_v57 }
 0x3c1   :  { %v2514_v36 = vmax.f32 %v2264_v44, 0.0  ;;  %v9353_v13 = vadd.f32 %v2444_v12, %v2356_v37  ;;  %2788 = vmatmul.bf16.vlgmr.msra.gmra.mxu2 %v9238_v15  ;;  %2966 = vmatmul.bf16.vlgmr.msra.gmra.mxu0 %v9238_v15  ;;  %v2491_v58 = vmax.f32 %v2412_v62, 0.0  ;;  %v2489_v37 = vmax.f32 %v9234_v51, 0.0 }
 0x3c2   :  { %2877 = vmatmul.bf16.vlgmr.msra.gmra.mxu3 %v2549_v17  ;;  %3055 = vmatmul.bf16.vlgmr.msra.gmra.mxu1 %v2549_v17  ;;  %v2328_v51 = vadd.f32 %v9260_v60, %v9210_v40 }
 0x3c3   :  { %v9357_v0 = vpack.c.bf16 %v2514_v36, %v2512_v2  ;;  %v2551_v61 = vpack.c.bf16 %v2491_v58, %v2489_v37 }
 0x3c4   :  { %v2177_v32 = vpop.f32.mrf.mxu2 }
 0x3c5   :  { %v2178_v18 = vadd.f32 %v2177_v32, %v9219_v41  ;;  %v2266_v24 = vpop.f32.mrf.mxu3 }
 0x3c6   :  { %v9362_v35 = vpop.f32.mrf.mxu0 }
 0x3c7   :  { %v2267_v15 = vadd.f32 %v2266_v24, %v2178_v18  ;;  %v9364_v54 = vpop.f32.mrf.mxu1 }
 0x3c9   :  { %v2516_v5 = vmax.f32 %v2267_v15, 0.0  ;;  %v2417_v15 = vadd.f32 %v9262_v11, %v2328_v51  ;;  %v7357_v11 = vld [vmem:[#allocation4 + $0x50] sm:$0xf] }
 0x3cb   :  { %v2495_v62 = vmax.f32 %v2417_v15, 0.0 }
 0x3cc   :  { %v2179_v63 = vpop.f32.mrf.mxu2 }
 0x3cd   :  { %v2180_v55 = vadd.f32 %v2179_v63, %v9219_v41  ;;  %v2268_v44 = vpop.f32.mrf.mxu3 }
 0x3ce   :  { %v2360_v12 = vpop.f32.mrf.mxu0 }
 0x3cf   :  { %v2269_v17 = vadd.f32 %v2268_v44, %v2180_v55  ;;  %v2361_v2 = vadd.f32 %v2360_v12, %v9210_v40  ;;  %v2449_v36 = vpop.f32.mrf.mxu1  ;;  %v2493_v55 = vmax.f32 %v9251_v21, 0.0  ;;  %v2333_v21 = vadd.f32 %v9277_v16, %v9210_v40 }
 0x3d1   :  { %v2518_v32 = vmax.f32 %v2269_v17, 0.0  ;;  %v9370_v22 = vadd.f32 %v2449_v36, %v2361_v2  ;;  %2793 = vmatmul.bf16.gmra.mxu2 %v9255_v33  ;;  %2971 = vmatmul.bf16.gmra.mxu0 %v9255_v33  ;;  %v2553_v17 = vpack.c.bf16 %v2495_v62, %v2493_v55 }
 0x3d2   :  { %2882 = vmatmul.bf16.gmra.mxu3 %v2551_v61  ;;  %3060 = vmatmul.bf16.gmra.mxu1 %v2551_v61 }
 0x3d3   :  { %v9374_v42 = vpack.c.bf16 %v2518_v32, %v2516_v5  ;;  %v7982_v5 = vld [vmem:[#allocation4 + $0x54] sm:$0xf0] }
 0x3d4   :  { %v2182_v57 = vpop.f32.mrf.mxu2 }
 0x3d5   :  { %v2183_v50 = vadd.f32 %v2182_v57, %v9219_v41  ;;  %v2271_v39 = vpop.f32.mrf.mxu3  ;;  %v7358_v57 = vor.u32 %v7982_v5, %v7357_v11 }
 0x3d6   :  { %v9379_v18 = vpop.f32.mrf.mxu0 }
 0x3d7   :  { %v2272_v24 = vadd.f32 %v2271_v39, %v2183_v50  ;;  %v9381_v1 = vpop.f32.mrf.mxu1  ;;  %v7421_v50 = vld [vmem:[#allocation4 + $0xd0] sm:$0xf]  ;;  %v7998_v39 = vld [vmem:[#allocation4 + $0xd4] sm:$0xf0]  ;;  %3689 = vmatpush.bf16.msrb.mxu2 %v7358_v57 }
 0x3d8   :  { %v7422_v62 = vor.u32 %v7998_v39, %v7421_v50 }
 0x3d9   :  { %v2520_v2 = vmax.f32 %v2272_v24, 0.0 }
 0x3da   :  { %3778 = vmatpush.bf16.msrb.mxu3 %v7422_v62 }
 0x3dc   :  { %v2184_v33 = vpop.f32.mrf.mxu2 }
 0x3dd   :  { %v2185_v58 = vadd.f32 %v2184_v33, %v9219_v41  ;;  %v2273_v63 = vpop.f32.mrf.mxu3 }
 0x3de   :  { %v2365_v44 = vpop.f32.mrf.mxu0 }
 0x3df   :  { %v2274_v60 = vadd.f32 %v2273_v63, %v2185_v58  ;;  %v2366_v37 = vadd.f32 %v2365_v44, %v9210_v40  ;;  %v2454_v12 = vpop.f32.mrf.mxu1  ;;  %v2422_v63 = vadd.f32 %v9279_v47, %v2333_v21 }
 0x3e1   :  { %v2522_v36 = vmax.f32 %v2274_v60, 0.0  ;;  %v9387_v61 = vadd.f32 %v2454_v12, %v2366_v37  ;;  %2798 = vmatmul.bf16.gmra.mxu2 %v9272_v30  ;;  %2976 = vmatmul.bf16.gmra.mxu0 %v9272_v30  ;;  %v2499_v55 = vmax.f32 %v2422_v63, 0.0  ;;  %v2497_v37 = vmax.f32 %v9268_v8, 0.0 }
 0x3e2   :  { %2887 = vmatmul.bf16.gmra.mxu3 %v2553_v17  ;;  %3065 = vmatmul.bf16.gmra.mxu1 %v2553_v17  ;;  %v2338_v8 = vadd.f32 %v9294_v9, %v9210_v40 }
 0x3e3   :  { %v9391_v32 = vpack.c.bf16 %v2522_v36, %v2520_v2  ;;  %v2555_v11 = vpack.c.bf16 %v2499_v55, %v2497_v37 }
 0x3e4   :  { %v2187_v51 = vpop.f32.mrf.mxu2 }
 0x3e5   :  { %v2188_v24 = vadd.f32 %v2187_v51, %v9219_v41  ;;  %v2276_v15 = vpop.f32.mrf.mxu3 }
 0x3e6   :  { %v9396_v33 = vpop.f32.mrf.mxu0 }
 0x3e7   :  { %v2277_v30 = vadd.f32 %v2276_v15, %v2188_v24  ;;  %v9398_v58 = vpop.f32.mrf.mxu1 }
 0x3e9   :  { %v2524_v5 = vmax.f32 %v2277_v30, 0.0  ;;  %v2427_v30 = vadd.f32 %v9296_v43, %v2338_v8  ;;  %v7349_v43 = vld [vmem:[#allocation4 + $0x40] sm:$0xf] }
 0x3eb   :  { %v2503_v63 = vmax.f32 %v2427_v30, 0.0 }
 0x3ec   :  { %v2189_v44 = vpop.f32.mrf.mxu2 }
 0x3ed   :  { %v2190_v16 = vadd.f32 %v2189_v44, %v9219_v41  ;;  %v2278_v60 = vpop.f32.mrf.mxu3 }
 0x3ee   :  { %v2370_v12 = vpop.f32.mrf.mxu0 }
 0x3ef   :  { %v2279_v17 = vadd.f32 %v2278_v60, %v2190_v16  ;;  %v2371_v2 = vadd.f32 %v2370_v12, %v9210_v40  ;;  %v2459_v36 = vpop.f32.mrf.mxu1  ;;  %v2501_v16 = vmax.f32 %v9285_v59, 0.0  ;;  %v2343_v59 = vadd.f32 %v9311_v31, %v9210_v40 }
 0x3f1   :  { %v2526_v51 = vmax.f32 %v2279_v17, 0.0  ;;  %v9404_v57 = vadd.f32 %v2459_v36, %v2371_v2  ;;  %2803 = vmatmul.bf16.gmra.mxu2 %v9289_v14  ;;  %2981 = vmatmul.bf16.gmra.mxu0 %v9289_v14  ;;  %v2557_v17 = vpack.c.bf16 %v2503_v63, %v2501_v16 }
 0x3f2   :  { %2892 = vmatmul.bf16.gmra.mxu3 %v2555_v11  ;;  %3070 = vmatmul.bf16.gmra.mxu1 %v2555_v11 }
 0x3f3   :  { %v9408_v47 = vpack.c.bf16 %v2526_v51, %v2524_v5  ;;  %v7980_v5 = vld [vmem:[#allocation4 + $0x44] sm:$0xf0] }
 0x3f4   :  { %v2192_v21 = vpop.f32.mrf.mxu2 }
 0x3f5   :  { %v2193_v50 = vadd.f32 %v2192_v21, %v9219_v41  ;;  %v2281_v39 = vpop.f32.mrf.mxu3  ;;  %v7350_v21 = vor.u32 %v7980_v5, %v7349_v43 }
 0x3f6   :  { %v9413_v24 = vpop.f32.mrf.mxu0 }
 0x3f7   :  { %v2282_v15 = vadd.f32 %v2281_v39, %v2193_v50  ;;  %v9415_v62 = vpop.f32.mrf.mxu1  ;;  %v7413_v50 = vld [vmem:[#allocation4 + $0xc0] sm:$0xf]  ;;  %v7996_v39 = vld [vmem:[#allocation4 + $0xc4] sm:$0xf0]  ;;  %3690 = vmatpush.bf16.msrb.mxu2 %v7350_v21 }
 0x3f8   :  { %v7414_v63 = vor.u32 %v7996_v39, %v7413_v50 }
 0x3f9   :  { %v2528_v2 = vmax.f32 %v2282_v15, 0.0 }
 0x3fa   :  { %3779 = vmatpush.bf16.msrb.mxu3 %v7414_v63 }
 0x3fc   :  { %v2194_v14 = vpop.f32.mrf.mxu2 }
 0x3fd   :  { %v2195_v55 = vadd.f32 %v2194_v14, %v9219_v41  ;;  %v2283_v44 = vpop.f32.mrf.mxu3 }
 0x3fe   :  { %v2375_v60 = vpop.f32.mrf.mxu0 }
 0x3ff   :  { %v2284_v9 = vadd.f32 %v2283_v44, %v2195_v55  ;;  %v2376_v37 = vadd.f32 %v2375_v60, %v9210_v40  ;;  %v2464_v12 = vpop.f32.mrf.mxu1  ;;  %v2432_v44 = vadd.f32 %v9314_v23, %v2343_v59 }
 0x401   :  { %v2530_v36 = vmax.f32 %v2284_v9, 0.0  ;;  %v9421_v11 = vadd.f32 %v2464_v12, %v2376_v37  ;;  %2808 = vmatmul.bf16.gmra.mxu2 %v9308_v10  ;;  %2986 = vmatmul.bf16.gmra.mxu0 %v9308_v10  ;;  %v2507_v16 = vmax.f32 %v2432_v44, 0.0  ;;  %v2505_v37 = vmax.f32 %v9302_v53, 0.0 }
 0x402   :  { %2897 = vmatmul.bf16.gmra.mxu3 %v2557_v17  ;;  %3075 = vmatmul.bf16.gmra.mxu1 %v2557_v17  ;;  %v2348_v53 = vadd.f32 %v9328_v27, %v9210_v40 }
 0x403   :  { %v9425_v51 = vpack.c.bf16 %v2530_v36, %v2528_v2  ;;  %v2559_v43 = vpack.c.bf16 %v2507_v16, %v2505_v37 }
 0x404   :  { %v2197_v8 = vpop.f32.mrf.mxu2 }
 0x405   :  { %v2198_v15 = vadd.f32 %v2197_v8, %v9219_v41  ;;  %v2286_v30 = vpop.f32.mrf.mxu3 }
 0x406   :  { %v9430_v14 = vpop.f32.mrf.mxu0 }
 0x407   :  { %v2287_v10 = vadd.f32 %v2286_v30, %v2198_v15  ;;  %v9432_v55 = vpop.f32.mrf.mxu1 }
 0x409   :  { %v2532_v5 = vmax.f32 %v2287_v10, 0.0  ;;  %v2437_v10 = vadd.f32 %v9330_v34, %v2348_v53  ;;  %v7341_v34 = vld [vmem:[#allocation4 + $0x30] sm:$0xf] }
 0x40b   :  { %v2511_v44 = vmax.f32 %v2437_v10, 0.0 }
 0x40c   :  { %v2199_v60 = vpop.f32.mrf.mxu2 }
 0x40d   :  { %v2200_v31 = vadd.f32 %v2199_v60, %v9219_v41  ;;  %v2288_v9 = vpop.f32.mrf.mxu3 }
 0x40e   :  { %v2380_v12 = vpop.f32.mrf.mxu0 }
 0x40f   :  { %v2289_v17 = vadd.f32 %v2288_v9, %v2200_v31  ;;  %v2381_v2 = vadd.f32 %v2380_v12, %v9210_v40  ;;  %v2469_v36 = vpop.f32.mrf.mxu1  ;;  %v2509_v31 = vmax.f32 %v9319_v25, 0.0  ;;  %v2353_v25 = vadd.f32 %v9345_v45, %v9210_v40 }
 0x411   :  { %v2534_v8 = vmax.f32 %v2289_v17, 0.0  ;;  %v9438_v21 = vadd.f32 %v2469_v36, %v2381_v2  ;;  %2813 = vmatmul.bf16.gmra.mxu2 %v9323_v46  ;;  %2991 = vmatmul.bf16.gmra.mxu0 %v9323_v46  ;;  %v2561_v17 = vpack.c.bf16 %v2511_v44, %v2509_v31 }
 0x412   :  { %2902 = vmatmul.bf16.gmra.mxu3 %v2559_v43  ;;  %3080 = vmatmul.bf16.gmra.mxu1 %v2559_v43 }
 0x413   :  { %v9442_v23 = vpack.c.bf16 %v2534_v8, %v2532_v5  ;;  %v7978_v5 = vld [vmem:[#allocation4 + $0x34] sm:$0xf0] }
 0x414   :  { %v2202_v59 = vpop.f32.mrf.mxu2 }
 0x415   :  { %v2203_v50 = vadd.f32 %v2202_v59, %v9219_v41  ;;  %v2291_v39 = vpop.f32.mrf.mxu3  ;;  %v7342_v59 = vor.u32 %v7978_v5, %v7341_v34 }
 0x416   :  { %v9447_v15 = vpop.f32.mrf.mxu0 }
 0x417   :  { %v2292_v30 = vadd.f32 %v2291_v39, %v2203_v50  ;;  %v9449_v63 = vpop.f32.mrf.mxu1  ;;  %v7405_v50 = vld [vmem:[#allocation4 + $0xb0] sm:$0xf]  ;;  %v7994_v39 = vld [vmem:[#allocation4 + $0xb4] sm:$0xf0]  ;;  %3691 = vmatpush.bf16.msrb.mxu2 %v7342_v59 }
 0x418   :  { %v7406_v44 = vor.u32 %v7994_v39, %v7405_v50 }
 0x419   :  { %v2536_v2 = vmax.f32 %v2292_v30, 0.0 }
 0x41a   :  { %3780 = vmatpush.bf16.msrb.mxu3 %v7406_v44 }
 0x41c   :  { %v2204_v46 = vpop.f32.mrf.mxu2 }
 0x41d   :  { %v2205_v16 = vadd.f32 %v2204_v46, %v9219_v41  ;;  %v2293_v60 = vpop.f32.mrf.mxu3 }
 0x41e   :  { %v2385_v9 = vpop.f32.mrf.mxu0 }
 0x41f   :  { %v2294_v27 = vadd.f32 %v2293_v60, %v2205_v16  ;;  %v2386_v37 = vadd.f32 %v2385_v9, %v9210_v40  ;;  %v2474_v12 = vpop.f32.mrf.mxu1  ;;  %v2442_v60 = vadd.f32 %v9347_v52, %v2353_v25 }
 0x421   :  { %v2538_v36 = vmax.f32 %v2294_v27, 0.0  ;;  %v9455_v43 = vadd.f32 %v2474_v12, %v2386_v37  ;;  %2818 = vmatmul.bf16.gmra.mxu2 %v9340_v7  ;;  %2996 = vmatmul.bf16.gmra.mxu0 %v9340_v7  ;;  %v2515_v31 = vmax.f32 %v2442_v60, 0.0  ;;  %v2513_v37 = vmax.f32 %v9336_v19, 0.0  ;;  %v8018_v60 = vld [vmem:[#allocation4 + $0x174] sm:$0xf0] }
 0x422   :  { %2907 = vmatmul.bf16.gmra.mxu3 %v2561_v17  ;;  %3085 = vmatmul.bf16.gmra.mxu1 %v2561_v17  ;;  %v2358_v19 = vadd.f32 %v9362_v35, %v9210_v40 }
 0x423   :  { %v9459_v8 = vpack.c.bf16 %v2538_v36, %v2536_v2  ;;  %v2563_v34 = vpack.c.bf16 %v2515_v31, %v2513_v37  ;;  %v7985_v37 = vld [vmem:[#allocation4 + $0x74] sm:$0xf] }
 0x424   :  { %v2207_v53 = vpop.f32.mrf.mxu2 }
 0x425   :  { %v2208_v30 = vadd.f32 %v2207_v53, %v9219_v41  ;;  %v2296_v10 = vpop.f32.mrf.mxu3 }
 0x426   :  { %v9464_v46 = vpop.f32.mrf.mxu0 }
 0x427   :  { %v2297_v7 = vadd.f32 %v2296_v10, %v2208_v30  ;;  %v9466_v16 = vpop.f32.mrf.mxu1 }
 0x429   :  { %v2540_v5 = vmax.f32 %v2297_v7, 0.0  ;;  %v7501_v7 = vld [vmem:[#allocation4 + $0x170] sm:$0xf] }
 0x42a   :  { %v7502_v31 = vor.u32 %v8018_v60, %v7501_v7  ;;  %v2363_v60 = vadd.f32 %v9379_v18, %v9210_v40 }
 0x42c   :  { %v2209_v9 = vpop.f32.mrf.mxu2  ;;  %3865 = vmatpush.bf16.msrb.mxu0 %v7502_v31  ;;  %v7397_v31 = vld [vmem:[#allocation4 + $0xa0] sm:$0xf] }
 0x42d   :  { %v2210_v45 = vadd.f32 %v2209_v9, %v9219_v41  ;;  %v2298_v27 = vpop.f32.mrf.mxu3 }
 0x42e   :  { %v2390_v12 = vpop.f32.mrf.mxu0 }
 0x42f   :  { %v2299_v17 = vadd.f32 %v2298_v27, %v2210_v45  ;;  %v2391_v2 = vadd.f32 %v2390_v12, %v9210_v40  ;;  %v2479_v36 = vpop.f32.mrf.mxu1  ;;  %v7375_v12 = vld [vmem:[#allocation4 + $0x78] sm:$0xf0] }
 0x431   :  { %v2542_v53 = vmax.f32 %v2299_v17, 0.0  ;;  %v9472_v59 = vadd.f32 %v2479_v36, %v2391_v2  ;;  %2823 = vmatmul.bf16.gmra.mxu2 %v9357_v0  ;;  %3001 = vmatmul.bf16.gmra.mxu0 %v9357_v0  ;;  %v2447_v0 = vadd.f32 %v9364_v54, %v2358_v19  ;;  %v2517_v17 = vmax.f32 %v9353_v13, 0.0  ;;  %v7333_v13 = vld [vmem:[#allocation4 + $0x20] sm:$0xf] }
 0x432   :  { %2912 = vmatmul.bf16.gmra.mxu3 %v2563_v34  ;;  %3090 = vmatmul.bf16.gmra.mxu1 %v2563_v34  ;;  %v7378_v36 = vor.u32 %v7985_v37, %v7375_v12 }
 0x433   :  { %v9476_v52 = vpack.c.bf16 %v2542_v53, %v2540_v5  ;;  %v2519_v9 = vmax.f32 %v2447_v0, 0.0  ;;  %v2614_v5 = vld [vmem:[#allocation7 + $0x8] sm:$0x3] }
 0x434   :  { %v2212_v25 = vpop.f32.mrf.mxu2  ;;  %3954 = vmatpush.bf16.msrb.mxu1 %v7378_v36  ;;  %v9490_v19 = vperm.slane %v2614_v5, 0  ;;  %v2452_v36 = vadd.f32 %v9381_v1, %v2363_v60  ;;  %v7493_v60 = vld [vmem:[#allocation4 + $0x160] sm:$0xf] }
 0x435   :  { %v2213_v50 = vadd.f32 %v2212_v25, %v9219_v41  ;;  %v2301_v39 = vpop.f32.mrf.mxu3  ;;  %v2565_v25 = vpack.c.bf16 %v2519_v9, %v2517_v17  ;;  %v7992_v9 = vld [vmem:[#allocation4 + $0xa4] sm:$0xf0] }
 0x436   :  { %v9481_v30 = vpop.f32.mrf.mxu0 }
 0x437   :  { %v2302_v10 = vadd.f32 %v2301_v39, %v2213_v50  ;;  %v9483_v44 = vpop.f32.mrf.mxu1  ;;  %v7976_v39 = vld [vmem:[#allocation4 + $0x24] sm:$0xf0] }
 0x439   :  { %v2544_v50 = vmax.f32 %v2302_v10, 0.0  ;;  %v7334_v10 = vor.u32 %v7976_v39, %v7333_v13 }
 0x43b   :  { %3692 = vmatpush.bf16.msrb.mxu2 %v7334_v10 }
 0x43c   :  { %v2214_v45 = vpop.f32.mrf.mxu2 }
 0x43d   :  { %v2215_v27 = vadd.f32 %v2214_v45, %v9219_v41  ;;  %v2303_v35 = vpop.f32.mrf.mxu3  ;;  %v9492_v41 = vperm.slane %v2614_v5, 1  ;;  %v2523_v5 = vmax.f32 %v2452_v36, 0.0 }
 0x43e   :  { %v2967_v2 = vpop.f32.mrf.mxu0 }
 0x43f   :  { %v2304_v34 = vadd.f32 %v2303_v35, %v2215_v27  ;;  %v3056_v53 = vpop.f32.mrf.mxu1  ;;  %v7398_v27 = vor.u32 %v7992_v9, %v7397_v31  ;;  %v2968_v35 = vadd.f32 %v2967_v2, %v9492_v41 }
 0x441   :  { %v2546_v54 = vmax.f32 %v2304_v34, 0.0  ;;  %2828 = vmatmul.bf16.gmra.mxu2 %v9374_v42  ;;  %3006 = vmatmul.bf16.gmra.mxu0 %v9374_v42  ;;  %v3057_v18 = vadd.f32 %v3056_v53, %v2968_v35  ;;  %v8016_v35 = vld [vmem:[#allocation4 + $0x164] sm:$0xf0] }
 0x442   :  { %2917 = vmatmul.bf16.gmra.mxu3 %v2565_v25  ;;  %3095 = vmatmul.bf16.gmra.mxu1 %v2565_v25 }
 0x443   :  { %v9494_v7 = vpack.c.bf16 %v2546_v54, %v2544_v50  ;;  %3781 = vmatpush.bf16.msrb.mxu3 %v7398_v27  ;;  %v3137_v2 = vmax.f32 %v3057_v18, 0.0 }
 0x444   :  { %v2789_v0 = vpop.f32.mrf.mxu2 }
 0x445   :  { %v2790_v45 = vadd.f32 %v2789_v0, %v9490_v19  ;;  %v2878_v42 = vpop.f32.mrf.mxu3  ;;  %v2521_v0 = vmax.f32 %v9370_v22, 0.0  ;;  %v2368_v22 = vadd.f32 %v9396_v33, %v9210_v40 }
 0x446   :  { %v2969_v37 = vpop.f32.mrf.mxu0 }
 0x447   :  { %v2879_v12 = vadd.f32 %v2878_v42, %v2790_v45  ;;  %v3058_v17 = vpop.f32.mrf.mxu1  ;;  %v2970_v34 = vadd.f32 %v2969_v37, %v9492_v41  ;;  %v2567_v42 = vpack.c.bf16 %v2523_v5, %v2521_v0  ;;  %v2457_v33 = vadd.f32 %v9398_v58, %v2368_v22 }
 0x449   :  { %v3136_v25 = vmax.f32 %v2879_v12, 0.0  ;;  %v3059_v54 = vadd.f32 %v3058_v17, %v2970_v34  ;;  %v7494_v17 = vor.u32 %v8016_v35, %v7493_v60  ;;  %v7983_v60 = vld [vmem:[#allocation4 + $0x64] sm:$0xf]  ;;  %v7367_v35 = vld [vmem:[#allocation4 + $0x68] sm:$0xf0] }
 0x44b   :  { %v3200_v45 = vpack.c.bf16 %v3137_v2, %v3136_v25  ;;  %v3139_v27 = vmax.f32 %v3059_v54, 0.0  ;;  %3866 = vmatpush.bf16.msrb.mxu0 %v7494_v17 }
 0x44c   :  { %v2791_v50 = vpop.f32.mrf.mxu2 }
 0x44d   :  { %v2792_v13 = vadd.f32 %v2791_v50, %v9490_v19  ;;  %v2880_v39 = vpop.f32.mrf.mxu3  ;;  %v3264_v37 = vunpack.c.l.b16 %v3200_v45  ;;  %v3265_v36 = vunpack.c.h.b16 %v3200_v45  ;;  %v2527_v45 = vmax.f32 %v2457_v33, 0.0 }
 0x44e   :  { %v2972_v31 = vpop.f32.mrf.mxu0 }
 0x44f   :  { %v2881_v10 = vadd.f32 %v2880_v39, %v2792_v13  ;;  %v3061_v9 = vpop.f32.mrf.mxu1  ;;  %v2973_v50 = vadd.f32 %v2972_v31, %v9492_v41 }
 0x451   :  { %v3138_v1 = vmax.f32 %v2881_v10, 0.0  ;;  %2833 = vmatmul.bf16.gmra.mxu2 %v9391_v32  ;;  %3011 = vmatmul.bf16.gmra.mxu0 %v9391_v32  ;;  %v3062_v10 = vadd.f32 %v3061_v9, %v2973_v50  ;;  %v7325_v50 = vld [vmem:[#allocation4 + $0x10] sm:$0xf] }
 0x452   :  { %2922 = vmatmul.bf16.gmra.mxu3 %v2567_v42  ;;  %3100 = vmatmul.bf16.gmra.mxu1 %v2567_v42 }
 0x453   :  { %v3201_v53 = vpack.c.bf16 %v3139_v27, %v3138_v1 }
 0x454   :  { %v2794_v12 = vpop.f32.mrf.mxu2 }
 0x455   :  { %v3266_v34 = vunpack.c.l.b16 %v3201_v53  ;;  %v3267_v18 = vunpack.c.h.b16 %v3201_v53  ;;  %v2795_v5 = vadd.f32 %v2794_v12, %v9490_v19  ;;  %v2883_v25 = vpop.f32.mrf.mxu3  ;;  %v3141_v12 = vmax.f32 %v3062_v10, 0.0  ;;  %v7389_v10 = vld [vmem:[#allocation4 + $0x90] sm:$0xf] }
 0x456   :  { %v2974_v32 = vpop.f32.mrf.mxu0 }
 0x457   :  { %v9510_v54 = vpack.c.b16 %v3266_v34, %v3264_v37  ;;  %v9512_v13 = vpack.c.b16 %v3267_v18, %v3265_v36  ;;  %v2884_v39 = vadd.f32 %v2883_v25, %v2795_v5  ;;  %v3063_v0 = vpop.f32.mrf.mxu1  ;;  %v2975_v2 = vadd.f32 %v2974_v32, %v9492_v41  ;;  %v7974_v32 = vld [vmem:[#allocation4 + $0x14] sm:$0xf0] }
 0x458   :  { %v2525_v37 = vmax.f32 %v9387_v61, 0.0  ;;  %v7370_v36 = vor.u32 %v7983_v60, %v7367_v35  ;;  %v2373_v61 = vadd.f32 %v9413_v24, %v9210_v40 }
 0x459   :  { %v3140_v42 = vmax.f32 %v2884_v39, 0.0  ;;  %v3064_v1 = vadd.f32 %v3063_v0, %v2975_v2  ;;  %v7326_v2 = vor.u32 %v7974_v32, %v7325_v50  ;;  %v2529_v32 = vmax.f32 %v9404_v57, 0.0 }
 0x45a   :  { %v2569_v22 = vpack.c.bf16 %v2527_v45, %v2525_v37  ;;  %3955 = vmatpush.bf16.msrb.mxu1 %v7370_v36  ;;  %v7990_v45 = vld [vmem:[#allocation4 + $0x94] sm:$0xf0]  ;;  %v2462_v36 = vadd.f32 %v9415_v62, %v2373_v61  ;;  %v7485_v61 = vld [vmem:[#allocation4 + $0x150] sm:$0xf]  ;;  %v2378_v57 = vadd.f32 %v9430_v14, %v9210_v40 }
 0x45b   :  { %v3202_v58 = vpack.c.bf16 %v3141_v12, %v3140_v42  ;;  %v3143_v9 = vmax.f32 %v3064_v1, 0.0  ;;  %v7390_v1 = vor.u32 %v7990_v45, %v7389_v10  ;;  %3693 = vmatpush.bf16.msrb.mxu2 %v7326_v2 }
 0x45c   :  { %v2796_v27 = vpop.f32.mrf.mxu2  ;;  %v2467_v14 = vadd.f32 %v9432_v55, %v2378_v57 }
 0x45d   :  { %v2797_v53 = vadd.f32 %v2796_v27, %v9490_v19  ;;  %v2885_v31 = vpop.f32.mrf.mxu3  ;;  %v3268_v39 = vunpack.c.l.b16 %v3202_v58  ;;  %v3269_v0 = vunpack.c.h.b16 %v3202_v58  ;;  %3782 = vmatpush.bf16.msrb.mxu3 %v7390_v1 }
 0x45e   :  { %v2977_v17 = vpop.f32.mrf.mxu0 }
 0x45f   :  { %v2886_v34 = vadd.f32 %v2885_v31, %v2797_v53  ;;  %v3066_v18 = vpop.f32.mrf.mxu1  ;;  %v2978_v31 = vadd.f32 %v2977_v17, %v9492_v41 }
 0x461   :  { %v3142_v5 = vmax.f32 %v2886_v34, 0.0  ;;  %2838 = vmatmul.bf16.gmra.mxu2 %v9408_v47  ;;  %3016 = vmatmul.bf16.gmra.mxu0 %v9408_v47  ;;  %v3067_v58 = vadd.f32 %v3066_v18, %v2978_v31 }
 0x462   :  { %2927 = vmatmul.bf16.gmra.mxu3 %v2569_v22  ;;  %3105 = vmatmul.bf16.gmra.mxu1 %v2569_v22  ;;  %v2531_v22 = vmax.f32 %v2462_v36, 0.0 }
 0x463   :  { %v3203_v25 = vpack.c.bf16 %v3143_v9, %v3142_v5 }
 0x464   :  { %v2799_v33 = vpop.f32.mrf.mxu2  ;;  %v2571_v45 = vpack.c.bf16 %v2531_v22, %v2529_v32 }
 0x465   :  { %v2800_v42 = vadd.f32 %v2799_v33, %v9490_v19  ;;  %v2888_v27 = vpop.f32.mrf.mxu3  ;;  %v3270_v53 = vunpack.c.l.b16 %v3203_v25  ;;  %v3271_v47 = vunpack.c.h.b16 %v3203_v25  ;;  %v3145_v33 = vmax.f32 %v3067_v58, 0.0 }
 0x466   :  { %v2979_v60 = vpop.f32.mrf.mxu0 }
 0x467   :  { %v2889_v35 = vadd.f32 %v2888_v27, %v2800_v42  ;;  %v3068_v37 = vpop.f32.mrf.mxu1  ;;  %v9524_v24 = vpack.c.b16 %v3270_v53, %v3268_v39  ;;  %v9526_v12 = vpack.c.b16 %v3271_v47, %v3269_v0  ;;  %v2980_v34 = vadd.f32 %v2979_v60, %v9492_v41  ;;  %v8014_v27 = vld [vmem:[#allocation4 + $0x154] sm:$0xf0] }
 0x468   :  { %v7486_v47 = vor.u32 %v8014_v27, %v7485_v61 }
 0x469   :  { %v3144_v9 = vmax.f32 %v2889_v35, 0.0  ;;  %v3069_v25 = vadd.f32 %v3068_v37, %v2980_v34 }
 0x46a   :  { %3867 = vmatpush.bf16.msrb.mxu0 %v7486_v47 }
 0x46b   :  { %v3204_v0 = vpack.c.bf16 %v3145_v33, %v3144_v9  ;;  %v3147_v42 = vmax.f32 %v3069_v25, 0.0 }
 0x46c   :  { %v2801_v5 = vpop.f32.mrf.mxu2 }
 0x46d   :  { %v2802_v17 = vadd.f32 %v2801_v5, %v9490_v19  ;;  %v2890_v50 = vpop.f32.mrf.mxu3  ;;  %v3272_v1 = vunpack.c.l.b16 %v3204_v0  ;;  %v3273_v31 = vunpack.c.h.b16 %v3204_v0 }
 0x46e   :  { %v2982_v2 = vpop.f32.mrf.mxu0 }
 0x46f   :  { %v2891_v39 = vadd.f32 %v2890_v50, %v2802_v17  ;;  %v3071_v10 = vpop.f32.mrf.mxu1  ;;  %v2983_v34 = vadd.f32 %v2982_v2, %v9492_v41  ;;  %v2535_v50 = vmax.f32 %v2467_v14, 0.0 }
 0x471   :  { %v3146_v62 = vmax.f32 %v2891_v39, 0.0  ;;  %2843 = vmatmul.bf16.gmra.mxu2 %v9425_v51  ;;  %3021 = vmatmul.bf16.gmra.mxu0 %v9425_v51  ;;  %v3072_v17 = vadd.f32 %v3071_v10, %v2983_v34 }
 0x472   :  { %2932 = vmatmul.bf16.gmra.mxu3 %v2571_v45  ;;  %3110 = vmatmul.bf16.gmra.mxu1 %v2571_v45  ;;  %v7981_v45 = vld [vmem:[#allocation4 + $0x54] sm:$0xf] }
 0x473   :  { %v3205_v18 = vpack.c.bf16 %v3147_v42, %v3146_v62  ;;  %v7359_v42 = vld [vmem:[#allocation4 + $0x58] sm:$0xf0]  ;;  %v2533_v62 = vmax.f32 %v9421_v11, 0.0  ;;  %v2383_v11 = vadd.f32 %v9447_v15, %v9210_v40 }
 0x474   :  { %v2804_v53 = vpop.f32.mrf.mxu2  ;;  %v7362_v27 = vor.u32 %v7981_v45, %v7359_v42 }
 0x475   :  { %v2805_v60 = vadd.f32 %v2804_v53, %v9490_v19  ;;  %v2893_v35 = vpop.f32.mrf.mxu3  ;;  %v3274_v37 = vunpack.c.l.b16 %v3205_v18  ;;  %v3275_v36 = vunpack.c.h.b16 %v3205_v18  ;;  %v3149_v18 = vmax.f32 %v3072_v17, 0.0 }
 0x476   :  { %v2984_v51 = vpop.f32.mrf.mxu0  ;;  %v2573_v57 = vpack.c.bf16 %v2535_v50, %v2533_v62  ;;  %3956 = vmatpush.bf16.msrb.mxu1 %v7362_v27  ;;  %v2472_v45 = vadd.f32 %v9449_v63, %v2383_v11 }
 0x477   :  { %v2894_v58 = vadd.f32 %v2893_v35, %v2805_v60  ;;  %v3073_v22 = vpop.f32.mrf.mxu1  ;;  %v9538_v9 = vpack.c.b16 %v3274_v37, %v3272_v1  ;;  %v9540_v5 = vpack.c.b16 %v3275_v36, %v3273_v31  ;;  %v2985_v25 = vadd.f32 %v2984_v51, %v9492_v41  ;;  %v7317_v60 = vld [vmem:[#allocation4] sm:$0xf]  ;;  %v7972_v35 = vld [vmem:[#allocation4 + $0x4] sm:$0xf0] }
 0x478   :  { %v7318_v51 = vor.u32 %v7972_v35, %v7317_v60  ;;  %v2537_v60 = vmax.f32 %v9438_v21, 0.0  ;;  %v2388_v21 = vadd.f32 %v9464_v46, %v9210_v40 }
 0x479   :  { %v3148_v32 = vmax.f32 %v2894_v58, 0.0  ;;  %v3074_v39 = vadd.f32 %v3073_v22, %v2985_v25  ;;  %v7381_v58 = vld [vmem:[#allocation4 + $0x80] sm:$0xf]  ;;  %v7988_v22 = vld [vmem:[#allocation4 + $0x84] sm:$0xf0] }
 0x47a   :  { %v7382_v17 = vor.u32 %v7988_v22, %v7381_v58  ;;  %3694 = vmatpush.bf16.msrb.mxu2 %v7318_v51  ;;  %v8010_v51 = vld [vmem:[#allocation4 + $0x134] sm:$0xf0] }
 0x47b   :  { %v3206_v55 = vpack.c.bf16 %v3149_v18, %v3148_v32  ;;  %v3151_v10 = vmax.f32 %v3074_v39, 0.0  ;;  %v2539_v18 = vmax.f32 %v2472_v45, 0.0 }
 0x47c   :  { %v2806_v33 = vpop.f32.mrf.mxu2  ;;  %3783 = vmatpush.bf16.msrb.mxu3 %v7382_v17 }
 0x47d   :  { %v2807_v0 = vadd.f32 %v2806_v33, %v9490_v19  ;;  %v2895_v2 = vpop.f32.mrf.mxu3  ;;  %v3276_v37 = vunpack.c.l.b16 %v3206_v55  ;;  %v3277_v36 = vunpack.c.h.b16 %v3206_v55  ;;  %v7477_v55 = vld [vmem:[#allocation4 + $0x140] sm:$0xf]  ;;  %v2575_v11 = vpack.c.bf16 %v2539_v18, %v2537_v60 }
 0x47e   :  { %v2987_v61 = vpop.f32.mrf.mxu0 }
 0x47f   :  { %v2896_v1 = vadd.f32 %v2895_v2, %v2807_v0  ;;  %v3076_v53 = vpop.f32.mrf.mxu1  ;;  %v2988_v32 = vadd.f32 %v2987_v61, %v9492_v41 }
 0x481   :  { %v3150_v47 = vmax.f32 %v2896_v1, 0.0  ;;  %2848 = vmatmul.bf16.gmra.mxu2 %v9442_v23  ;;  %3026 = vmatmul.bf16.gmra.mxu0 %v9442_v23  ;;  %v3077_v62 = vadd.f32 %v3076_v53, %v2988_v32  ;;  %v7469_v53 = vld [vmem:[#allocation4 + $0x130] sm:$0xf]  ;;  %v7461_v32 = vld [vmem:[#allocation4 + $0x120] sm:$0xf] }
 0x482   :  { %2937 = vmatmul.bf16.gmra.mxu3 %v2573_v57  ;;  %3115 = vmatmul.bf16.gmra.mxu1 %v2573_v57  ;;  %v8012_v57 = vld [vmem:[#allocation4 + $0x144] sm:$0xf0] }
 0x483   :  { %v3207_v31 = vpack.c.bf16 %v3151_v10, %v3150_v47  ;;  %v3153_v35 = vmax.f32 %v3077_v62, 0.0 }
 0x484   :  { %v2809_v34 = vpop.f32.mrf.mxu2 }
 0x485   :  { %v2810_v14 = vadd.f32 %v2809_v34, %v9490_v19  ;;  %v2898_v25 = vpop.f32.mrf.mxu3  ;;  %v3278_v50 = vunpack.c.l.b16 %v3207_v31  ;;  %v3279_v23 = vunpack.c.h.b16 %v3207_v31  ;;  %v7478_v31 = vor.u32 %v8012_v57, %v7477_v55 }
 0x486   :  { %v2989_v33 = vpop.f32.mrf.mxu0  ;;  %v2477_v57 = vadd.f32 %v9466_v16, %v2388_v21  ;;  %v2541_v16 = vmax.f32 %v9455_v43, 0.0  ;;  %v7439_v43 = vld [vmem:[#allocation4 + $0xf8] sm:$0xf0] }
 0x487   :  { %v2899_v39 = vadd.f32 %v2898_v25, %v2810_v14  ;;  %v3078_v0 = vpop.f32.mrf.mxu1  ;;  %v9552_v15 = vpack.c.b16 %v3278_v50, %v3276_v37  ;;  %v9554_v2 = vpack.c.b16 %v3279_v23, %v3277_v36  ;;  %v2990_v42 = vadd.f32 %v2989_v33, %v9492_v41  ;;  %3868 = vmatpush.bf16.msrb.mxu0 %v7478_v31  ;;  %v8008_v33 = vld [vmem:[#allocation4 + $0x124] sm:$0xf0] }
 0x488   :  { %v7470_v14 = vor.u32 %v8010_v51, %v7469_v53  ;;  %v7462_v45 = vor.u32 %v8008_v33, %v7461_v32 }
 0x489   :  { %v3152_v27 = vmax.f32 %v2899_v39, 0.0  ;;  %v3079_v61 = vadd.f32 %v3078_v0, %v2990_v42 }
 0x48b   :  { %v3208_v63 = vpack.c.bf16 %v3153_v35, %v3152_v27  ;;  %v3155_v58 = vmax.f32 %v3079_v61, 0.0  ;;  %3869 = vmatpush.bf16.msrb.mxu0 %v7470_v14  ;;  %v7453_v61 = vld [vmem:[#allocation4 + $0x110] sm:$0xf]  ;;  %v2543_v35 = vmax.f32 %v2477_v57, 0.0  ;;  %v7351_v14 = vld [vmem:[#allocation4 + $0x48] sm:$0xf0] }
 0x48c   :  { %v2811_v1 = vpop.f32.mrf.mxu2  ;;  %v8017_v57 = vld [vmem:[#allocation4 + $0x174] sm:$0xf] }
 0x48d   :  { %v2812_v10 = vadd.f32 %v2811_v1, %v9490_v19  ;;  %v2900_v47 = vpop.f32.mrf.mxu3  ;;  %v3280_v17 = vunpack.c.l.b16 %v3208_v63  ;;  %v3281_v50 = vunpack.c.h.b16 %v3208_v63  ;;  %v7445_v63 = vld [vmem:[#allocation4 + $0x100] sm:$0xf]  ;;  %v2577_v33 = vpack.c.bf16 %v2543_v35, %v2541_v16 }
 0x48e   :  { %v2992_v37 = vpop.f32.mrf.mxu0 }
 0x48f   :  { %v2901_v36 = vadd.f32 %v2900_v47, %v2812_v10  ;;  %v3081_v34 = vpop.f32.mrf.mxu1  ;;  %3870 = vmatpush.bf16.msrb.mxu0 %v7462_v45  ;;  %v8006_v10 = vld [vmem:[#allocation4 + $0x114] sm:$0xf0] }
 0x490   :  { %v7454_v31 = vor.u32 %v8006_v10, %v7453_v61  ;;  %v7503_v61 = vld [vmem:[#allocation4 + $0x178] sm:$0xf0] }
 0x491   :  { %v3154_v22 = vmax.f32 %v2901_v36, 0.0  ;;  %2853 = vmatmul.bf16.gmra.mxu2 %v9459_v8  ;;  %3031 = vmatmul.bf16.gmra.mxu0 %v9459_v8  ;;  %v2993_v8 = vadd.f32 %v2992_v37, %v9492_v41 }
 0x492   :  { %2942 = vmatmul.bf16.gmra.mxu3 %v2575_v11  ;;  %3120 = vmatmul.bf16.gmra.mxu1 %v2575_v11  ;;  %v8004_v11 = vld [vmem:[#allocation4 + $0x104] sm:$0xf0] }
 0x493   :  { %v3209_v25 = vpack.c.bf16 %v3155_v58, %v3154_v22  ;;  %v3082_v60 = vadd.f32 %v3081_v34, %v2993_v8  ;;  %3871 = vmatpush.bf16.msrb.mxu0 %v7454_v31  ;;  %v7979_v22 = vld [vmem:[#allocation4 + $0x44] sm:$0xf]  ;;  %v7506_v31 = vor.u32 %v8017_v57, %v7503_v61 }
 0x494   :  { %v2814_v23 = vpop.f32.mrf.mxu2 }
 0x495   :  { %v2815_v39 = vadd.f32 %v2814_v23, %v9490_v19  ;;  %v2903_v0 = vpop.f32.mrf.mxu3  ;;  %v3282_v42 = vunpack.c.l.b16 %v3209_v25  ;;  %v3283_v62 = vunpack.c.h.b16 %v3209_v25  ;;  %v7446_v25 = vor.u32 %v8004_v11, %v7445_v63  ;;  %4132 = vmatpush.bf16.msra.mxu3 %v7506_v31 }
 0x496   :  { %v2994_v18 = vpop.f32.mrf.mxu0  ;;  %v3157_v21 = vmax.f32 %v3082_v60, 0.0 }
 0x497   :  { %v2904_v27 = vadd.f32 %v2903_v0, %v2815_v39  ;;  %v3083_v1 = vpop.f32.mrf.mxu1  ;;  %v9566_v55 = vpack.c.b16 %v3282_v42, %v3280_v17  ;;  %v9568_v46 = vpack.c.b16 %v3283_v62, %v3281_v50  ;;  %v2995_v47 = vadd.f32 %v2994_v18, %v9492_v41  ;;  %3872 = vmatpush.bf16.msrb.mxu0 %v7446_v25  ;;  %v8001_v42 = vld [vmem:[#allocation4 + $0xf4] sm:$0xf] }
 0x498   :  { %v7354_v50 = vor.u32 %v7979_v22, %v7351_v14  ;;  %v2393_v62 = vadd.f32 %v9481_v30, %v9210_v40 }
 0x499   :  { %v3156_v36 = vmax.f32 %v2904_v27, 0.0  ;;  %v3084_v53 = vadd.f32 %v3083_v1, %v2995_v47  ;;  %v7442_v1 = vor.u32 %v8001_v42, %v7439_v43 }
 0x49a   :  { %3957 = vmatpush.bf16.msrb.mxu1 %v7354_v50  ;;  %v2482_v11 = vadd.f32 %v9483_v44, %v2393_v62 }
 0x49b   :  { %v3210_v32 = vpack.c.bf16 %v3157_v21, %v3156_v36  ;;  %v3159_v39 = vmax.f32 %v3084_v53, 0.0  ;;  %4043 = vmatpush.bf16.msra.mxu2 %v7442_v1 }
 0x49c   :  { %v2816_v37 = vpop.f32.mrf.mxu2 }
 0x49d   :  { %v2817_v51 = vadd.f32 %v2816_v37, %v9490_v19  ;;  %v2905_v58 = vpop.f32.mrf.mxu3  ;;  %v3284_v8 = vunpack.c.l.b16 %v3210_v32  ;;  %v3285_v18 = vunpack.c.h.b16 %v3210_v32 }
 0x49e   :  { %v2997_v17 = vpop.f32.mrf.mxu0 }
 0x49f   :  { %v2906_v23 = vadd.f32 %v2905_v58, %v2817_v51  ;;  %v3086_v34 = vpop.f32.mrf.mxu1  ;;  %v2998_v35 = vadd.f32 %v2997_v17, %v9492_v41  ;;  %v2547_v58 = vmax.f32 %v2482_v11, 0.0  ;;  %v2545_v17 = vmax.f32 %v9472_v59, 0.0  ;;  %v7977_v11 = vld [vmem:[#allocation4 + $0x34] sm:$0xf] }
 0x4a1   :  { %v3158_v0 = vmax.f32 %v2906_v23, 0.0  ;;  %2858 = vmatmul.bf16.gmra.mxu2 %v9476_v52  ;;  %3036 = vmatmul.bf16.gmra.mxu0 %v9476_v52  ;;  %v3087_v51 = vadd.f32 %v3086_v34, %v2998_v35 }
 0x4a2   :  { %2947 = vmatmul.bf16.gmra.mxu3 %v2577_v33  ;;  %3125 = vmatmul.bf16.gmra.mxu1 %v2577_v33 }
 0x4a3   :  { %v3211_v45 = vpack.c.bf16 %v3159_v39, %v3158_v0  ;;  %v3161_v50 = vmax.f32 %v3087_v51, 0.0  ;;  %v2579_v0 = vpack.c.bf16 %v2547_v58, %v2545_v17 }
 0x4a4   :  { %v2819_v27 = vpop.f32.mrf.mxu2 }
 0x4a5   :  { %v2820_v10 = vadd.f32 %v2819_v27, %v9490_v19  ;;  %v2908_v47 = vpop.f32.mrf.mxu3  ;;  %v3286_v60 = vunpack.c.l.b16 %v3211_v45  ;;  %v3287_v52 = vunpack.c.h.b16 %v3211_v45 }
 0x4a6   :  { %v2999_v36 = vpop.f32.mrf.mxu0 }
 0x4a7   :  { %v2909_v37 = vadd.f32 %v2908_v47, %v2820_v10  ;;  %v3088_v63 = vpop.f32.mrf.mxu1  ;;  %v9580_v40 = vpack.c.b16 %v3286_v60, %v3284_v8  ;;  %v9582_v30 = vpack.c.b16 %v3287_v52, %v3285_v18  ;;  %v3000_v53 = vadd.f32 %v2999_v36, %v9492_v41 }
 0x4a9   :  { %v3160_v22 = vmax.f32 %v2909_v37, 0.0  ;;  %v3089_v25 = vadd.f32 %v3088_v63, %v3000_v53  ;;  %v7343_v53 = vld [vmem:[#allocation4 + $0x38] sm:$0xf0] }
 0x4ab   :  { %v3212_v39 = vpack.c.bf16 %v3161_v50, %v3160_v22  ;;  %v3163_v45 = vmax.f32 %v3089_v25, 0.0  ;;  %v7346_v22 = vor.u32 %v7977_v11, %v7343_v53 }
 0x4ac   :  { %v2821_v14 = vpop.f32.mrf.mxu2 }
 0x4ad   :  { %v2822_v16 = vadd.f32 %v2821_v14, %v9490_v19  ;;  %v2910_v21 = vpop.f32.mrf.mxu3  ;;  %v3288_v42 = vunpack.c.l.b16 %v3212_v39  ;;  %v3289_v62 = vunpack.c.h.b16 %v3212_v39  ;;  %3958 = vmatpush.bf16.msrb.mxu1 %v7346_v22 }
 0x4ae   :  { %v3002_v23 = vpop.f32.mrf.mxu0 }
 0x4af   :  { %v2911_v32 = vadd.f32 %v2910_v21, %v2822_v16  ;;  %v3091_v33 = vpop.f32.mrf.mxu1  ;;  %v3003_v1 = vadd.f32 %v3002_v23, %v9492_v41  ;;  %v7999_v23 = vld [vmem:[#allocation4 + $0xe4] sm:$0xf] }
 0x4b1   :  { %v3162_v44 = vmax.f32 %v2911_v32, 0.0  ;;  %2863 = vmatmul.bf16.gmra.mxu2 %v9494_v7  ;;  %3041 = vmatmul.bf16.gmra.mxu0 %v9494_v7  ;;  %v3092_v60 = vadd.f32 %v3091_v33, %v3003_v1  ;;  %v7431_v32 = vld [vmem:[#allocation4 + $0xe8] sm:$0xf0] }
 0x4b2   :  { %2952 = vmatmul.bf16.gmra.mxu3 %v2579_v0  ;;  %3130 = vmatmul.bf16.gmra.mxu1 %v2579_v0 }
 0x4b3   :  { %v3213_v34 = vpack.c.bf16 %v3163_v45, %v3162_v44  ;;  %v3165_v51 = vmax.f32 %v3092_v60, 0.0  ;;  %v7434_v45 = vor.u32 %v7999_v23, %v7431_v32  ;;  %v8015_v44 = vld [vmem:[#allocation4 + $0x164] sm:$0xf] }
 0x4b4   :  { %v2824_v43 = vpop.f32.mrf.mxu2 }
 0x4b5   :  { %v2825_v59 = vadd.f32 %v2824_v43, %v9490_v19  ;;  %v2913_v8 = vpop.f32.mrf.mxu3  ;;  %v3290_v18 = vunpack.c.l.b16 %v3213_v34  ;;  %v3291_v27 = vunpack.c.h.b16 %v3213_v34  ;;  %v7495_v34 = vld [vmem:[#allocation4 + $0x168] sm:$0xf0]  ;;  %4044 = vmatpush.bf16.msra.mxu2 %v7434_v45 }
 0x4b6   :  { %v3004_v57 = vpop.f32.mrf.mxu0 }
 0x4b7   :  { %v2914_v61 = vadd.f32 %v2913_v8, %v2825_v59  ;;  %v3093_v10 = vpop.f32.mrf.mxu1  ;;  %v9592_v47 = vpack.c.b16 %v3290_v18, %v3288_v42  ;;  %v9594_v31 = vpack.c.b16 %v3291_v27, %v3289_v62  ;;  %v3005_v7 = vadd.f32 %v3004_v57, %v9492_v41 }
 0x4b8   :  { %v7498_v62 = vor.u32 %v8015_v44, %v7495_v34 }
 0x4b9   :  { %v3164_v52 = vmax.f32 %v2914_v61, 0.0  ;;  %v3094_v36 = vadd.f32 %v3093_v10, %v3005_v7 }
 0x4ba   :  { %4133 = vmatpush.bf16.msra.mxu3 %v7498_v62 }
 0x4bb   :  { %v3214_v16 = vpack.c.bf16 %v3165_v51, %v3164_v52  ;;  %v3167_v21 = vmax.f32 %v3094_v36, 0.0 }
 0x4bc   :  { %v2826_v35 = vpop.f32.mrf.mxu2 }
 0x4bd   :  { %v2827_v37 = vadd.f32 %v2826_v35, %v9490_v19  ;;  %v2915_v63 = vpop.f32.mrf.mxu3  ;;  %v3292_v33 = vunpack.c.l.b16 %v3214_v16  ;;  %v3293_v39 = vunpack.c.h.b16 %v3214_v16 }
 0x4be   :  { %v3007_v58 = vpop.f32.mrf.mxu0 }
 0x4bf   :  { %v2916_v14 = vadd.f32 %v2915_v63, %v2827_v37  ;;  %v3096_v25 = vpop.f32.mrf.mxu1  ;;  %v3008_v18 = vadd.f32 %v3007_v58, %v9492_v41 }
 0x4c1   :  { %v3166_v17 = vmax.f32 %v2916_v14, 0.0  ;;  %3695 = vmatmul.bf16.vlgmr.msrb.gmra.mxu2 %v8510_v3  ;;  %3873 = vmatmul.bf16.vlgmr.msrb.gmra.mxu0 %v9512_v13  ;;  %v3097_v60 = vadd.f32 %v3096_v25, %v3008_v18 }
 0x4c2   :  { %3784 = vmatmul.bf16.vlgmr.msrb.gmra.mxu3 %v9510_v54 }
 0x4c3   :  { %v3215_v50 = vpack.c.bf16 %v3167_v21, %v3166_v17  ;;  %v3169_v11 = vmax.f32 %v3097_v60, 0.0  ;;  %v7335_v60 = vld [vmem:[#allocation4 + $0x28] sm:$0xf0] }
 0x4c4   :  { %v2829_v0 = vpop.f32.mrf.mxu2 }
 0x4c5   :  { %v2830_v42 = vadd.f32 %v2829_v0, %v9490_v19  ;;  %v2918_v43 = vpop.f32.mrf.mxu3  ;;  %v3294_v59 = vunpack.c.l.b16 %v3215_v50  ;;  %v3295_v8 = vunpack.c.h.b16 %v3215_v50 }
 0x4c6   :  { %v3009_v27 = vpop.f32.mrf.mxu0 }
 0x4c7   :  { %v2919_v1 = vadd.f32 %v2918_v43, %v2830_v42  ;;  %v3098_v57 = vpop.f32.mrf.mxu1  ;;  %v9603_v61 = vpack.c.b16 %v3294_v59, %v3292_v33  ;;  %v9605_v10 = vpack.c.b16 %v3295_v8, %v3293_v39  ;;  %v3010_v7 = vadd.f32 %v3009_v27, %v9492_v41 }
 0x4c9   :  { %11138 = vst [vmem:[#allocation17_spill] sm:$0xff] %v9605_v10  ;;  %v3168_v52 = vmax.f32 %v2919_v1, 0.0  ;;  %v3099_v36 = vadd.f32 %v3098_v57, %v3010_v7  ;;  %v7975_v7 = vld [vmem:[#allocation4 + $0x24] sm:$0xf] }
 0x4cb   :  { %v3216_v22 = vpack.c.bf16 %v3169_v11, %v3168_v52  ;;  %v3171_v14 = vmax.f32 %v3099_v36, 0.0  ;;  %v7338_v36 = vor.u32 %v7975_v7, %v7335_v60 }
 0x4cc   :  { %v2831_v35 = vpop.f32.mrf.mxu2 }
 0x4cd   :  { %v2832_v37 = vadd.f32 %v2831_v35, %v9490_v19  ;;  %v2920_v63 = vpop.f32.mrf.mxu3  ;;  %v3296_v21 = vunpack.c.l.b16 %v3216_v22  ;;  %v3297_v50 = vunpack.c.h.b16 %v3216_v22  ;;  %3959 = vmatpush.bf16.msrb.mxu1 %v7338_v36  ;;  %v7997_v22 = vld [vmem:[#allocation4 + $0xd4] sm:$0xf] }
 0x4ce   :  { %v3012_v53 = vpop.f32.mrf.mxu0 }
 0x4cf   :  { %v2921_v51 = vadd.f32 %v2920_v63, %v2832_v37  ;;  %v3101_v58 = vpop.f32.mrf.mxu1  ;;  %v3013_v0 = vadd.f32 %v3012_v53, %v9492_v41 }
 0x4d1   :  { %v3170_v16 = vmax.f32 %v2921_v51, 0.0  ;;  %3700 = vmatmul.bf16.gmra.mxu2 %v8518_v28  ;;  %3878 = vmatmul.bf16.gmra.mxu0 %v9526_v12  ;;  %v3102_v59 = vadd.f32 %v3101_v58, %v3013_v0 }
 0x4d2   :  { %3789 = vmatmul.bf16.gmra.mxu3 %v9524_v24 }
 0x4d3   :  { %v3217_v25 = vpack.c.bf16 %v3171_v14, %v3170_v16  ;;  %v3173_v52 = vmax.f32 %v3102_v59, 0.0  ;;  %v7423_v14 = vld [vmem:[#allocation4 + $0xd8] sm:$0xf0] }
 0x4d4   :  { %v2834_v17 = vpop.f32.mrf.mxu2 }
 0x4d5   :  { %v2835_v23 = vadd.f32 %v2834_v17, %v9490_v19  ;;  %v2923_v32 = vpop.f32.mrf.mxu3  ;;  %v3298_v33 = vunpack.c.l.b16 %v3217_v25  ;;  %v3299_v39 = vunpack.c.h.b16 %v3217_v25  ;;  %v7426_v17 = vor.u32 %v7997_v22, %v7423_v14 }
 0x4d6   :  { %v3014_v45 = vpop.f32.mrf.mxu0 }
 0x4d7   :  { %v2924_v44 = vadd.f32 %v2923_v32, %v2835_v23  ;;  %v3103_v34 = vpop.f32.mrf.mxu1  ;;  %v9614_v42 = vpack.c.b16 %v3298_v33, %v3296_v21  ;;  %v9616_v43 = vpack.c.b16 %v3299_v39, %v3297_v50  ;;  %v3015_v62 = vadd.f32 %v3014_v45, %v9492_v41  ;;  %v8013_v50 = vld [vmem:[#allocation4 + $0x154] sm:$0xf]  ;;  %v7487_v23 = vld [vmem:[#allocation4 + $0x158] sm:$0xf0]  ;;  %4045 = vmatpush.bf16.msra.mxu2 %v7426_v17 }
 0x4d8   :  { %v7490_v39 = vor.u32 %v8013_v50, %v7487_v23 }
 0x4d9   :  { %v3172_v8 = vmax.f32 %v2924_v44, 0.0  ;;  %v3104_v27 = vadd.f32 %v3103_v34, %v3015_v62 }
 0x4da   :  { %4134 = vmatpush.bf16.msra.mxu3 %v7490_v39 }
 0x4db   :  { %v3218_v11 = vpack.c.bf16 %v3173_v52, %v3172_v8  ;;  %v3175_v53 = vmax.f32 %v3104_v27, 0.0 }
 0x4dc   :  { %v2836_v18 = vpop.f32.mrf.mxu2 }
 0x4dd   :  { %v2837_v1 = vadd.f32 %v2836_v18, %v9490_v19  ;;  %v2925_v57 = vpop.f32.mrf.mxu3  ;;  %v3300_v16 = vunpack.c.l.b16 %v3218_v11  ;;  %v3301_v25 = vunpack.c.h.b16 %v3218_v11 }
 0x4de   :  { %v3017_v35 = vpop.f32.mrf.mxu0 }
 0x4df   :  { %v2926_v37 = vadd.f32 %v2925_v57, %v2837_v1  ;;  %v3106_v63 = vpop.f32.mrf.mxu1  ;;  %v3018_v44 = vadd.f32 %v3017_v35, %v9492_v41 }
 0x4e1   :  { %v3174_v51 = vmax.f32 %v2926_v37, 0.0  ;;  %3705 = vmatmul.bf16.gmra.mxu2 %v8526_v48  ;;  %3883 = vmatmul.bf16.gmra.mxu0 %v9540_v5  ;;  %v3107_v1 = vadd.f32 %v3106_v63, %v3018_v44 }
 0x4e2   :  { %3794 = vmatmul.bf16.gmra.mxu3 %v9538_v9 }
 0x4e3   :  { %v3219_v58 = vpack.c.bf16 %v3175_v53, %v3174_v51  ;;  %v3177_v37 = vmax.f32 %v3107_v1, 0.0 }
 0x4e4   :  { %v2839_v21 = vpop.f32.mrf.mxu2 }
 0x4e5   :  { %v2840_v32 = vadd.f32 %v2839_v21, %v9490_v19  ;;  %v2928_v33 = vpop.f32.mrf.mxu3  ;;  %v3302_v0 = vunpack.c.l.b16 %v3219_v58  ;;  %v3303_v45 = vunpack.c.h.b16 %v3219_v58 }
 0x4e6   :  { %v3019_v34 = vpop.f32.mrf.mxu0 }
 0x4e7   :  { %v2929_v62 = vadd.f32 %v2928_v33, %v2840_v32  ;;  %v3108_v59 = vpop.f32.mrf.mxu1  ;;  %v9625_v8 = vpack.c.b16 %v3302_v0, %v3300_v16  ;;  %v9627_v18 = vpack.c.b16 %v3303_v45, %v3301_v25  ;;  %v3020_v27 = vadd.f32 %v3019_v34, %v9492_v41 }
 0x4e9   :  { %v3176_v57 = vmax.f32 %v2929_v62, 0.0  ;;  %v3109_v60 = vadd.f32 %v3108_v59, %v3020_v27 }
 0x4eb   :  { %v3220_v51 = vpack.c.bf16 %v3177_v37, %v3176_v57  ;;  %v3179_v58 = vmax.f32 %v3109_v60, 0.0  ;;  %v7973_v60 = vld [vmem:[#allocation4 + $0x14] sm:$0xf] }
 0x4ec   :  { %v2841_v7 = vpop.f32.mrf.mxu2 }
 0x4ed   :  { %v2842_v52 = vadd.f32 %v2841_v7, %v9490_v19  ;;  %v2930_v36 = vpop.f32.mrf.mxu3  ;;  %v3304_v14 = vunpack.c.l.b16 %v3220_v51  ;;  %v3305_v25 = vunpack.c.h.b16 %v3220_v51 }
 0x4ee   :  { %v3022_v35 = vpop.f32.mrf.mxu0 }
 0x4ef   :  { %v2931_v11 = vadd.f32 %v2930_v36, %v2842_v52  ;;  %v3111_v53 = vpop.f32.mrf.mxu1  ;;  %v3023_v32 = vadd.f32 %v3022_v35, %v9492_v41  ;;  %v7327_v52 = vld [vmem:[#allocation4 + $0x18] sm:$0xf0] }
 0x4f0   :  { %v7330_v35 = vor.u32 %v7973_v60, %v7327_v52 }
 0x4f1   :  { %v3178_v22 = vmax.f32 %v2931_v11, 0.0  ;;  %3710 = vmatmul.bf16.gmra.mxu2 %v8534_v6  ;;  %3888 = vmatmul.bf16.gmra.mxu0 %v9554_v2  ;;  %v3112_v62 = vadd.f32 %v3111_v53, %v3023_v32  ;;  %v7479_v32 = vld [vmem:[#allocation4 + $0x148] sm:$0xf0] }
 0x4f2   :  { %3799 = vmatmul.bf16.gmra.mxu3 %v9552_v15  ;;  %3960 = vmatpush.bf16.msrb.mxu1 %v7330_v35 }
 0x4f3   :  { %v3221_v63 = vpack.c.bf16 %v3179_v58, %v3178_v22  ;;  %v3181_v36 = vmax.f32 %v3112_v62, 0.0 }
 0x4f4   :  { %v2844_v16 = vpop.f32.mrf.mxu2 }
 0x4f5   :  { %v2845_v21 = vadd.f32 %v2844_v16, %v9490_v19  ;;  %v2933_v17 = vpop.f32.mrf.mxu3  ;;  %v3306_v50 = vunpack.c.l.b16 %v3221_v63  ;;  %v3307_v23 = vunpack.c.h.b16 %v3221_v63  ;;  %v7415_v16 = vld [vmem:[#allocation4 + $0xc8] sm:$0xf0] }
 0x4f6   :  { %v3024_v33 = vpop.f32.mrf.mxu0 }
 0x4f7   :  { %v2934_v39 = vadd.f32 %v2933_v17, %v2845_v21  ;;  %v3113_v0 = vpop.f32.mrf.mxu1  ;;  %v9636_v45 = vpack.c.b16 %v3306_v50, %v3304_v14  ;;  %v9638_v44 = vpack.c.b16 %v3307_v23, %v3305_v25  ;;  %v3025_v34 = vadd.f32 %v3024_v33, %v9492_v41  ;;  %v7995_v14 = vld [vmem:[#allocation4 + $0xc4] sm:$0xf] }
 0x4f8   :  { %v7418_v50 = vor.u32 %v7995_v14, %v7415_v16  ;;  %v8011_v23 = vld [vmem:[#allocation4 + $0x144] sm:$0xf] }
 0x4f9   :  { %v3180_v59 = vmax.f32 %v2934_v39, 0.0  ;;  %v3114_v1 = vadd.f32 %v3113_v0, %v3025_v34  ;;  %v7482_v0 = vor.u32 %v8011_v23, %v7479_v32 }
 0x4fa   :  { %4046 = vmatpush.bf16.msra.mxu2 %v7418_v50 }
 0x4fb   :  { %v3222_v58 = vpack.c.bf16 %v3181_v36, %v3180_v59  ;;  %v3183_v22 = vmax.f32 %v3114_v1, 0.0  ;;  %4135 = vmatpush.bf16.msra.mxu3 %v7482_v0 }
 0x4fc   :  { %v2846_v27 = vpop.f32.mrf.mxu2 }
 0x4fd   :  { %v2847_v57 = vadd.f32 %v2846_v27, %v9490_v19  ;;  %v2935_v7 = vpop.f32.mrf.mxu3  ;;  %v3308_v25 = vunpack.c.l.b16 %v3222_v58  ;;  %v3309_v21 = vunpack.c.h.b16 %v3222_v58 }
 0x4fe   :  { %v3027_v37 = vpop.f32.mrf.mxu0 }
 0x4ff   :  { %v2936_v11 = vadd.f32 %v2935_v7, %v2847_v57  ;;  %v3116_v51 = vpop.f32.mrf.mxu1  ;;  %v3028_v59 = vadd.f32 %v3027_v37, %v9492_v41 }
 0x501   :  { %v3182_v63 = vmax.f32 %v2936_v11, 0.0  ;;  %3715 = vmatmul.bf16.gmra.mxu2 %v8542_v26  ;;  %3893 = vmatmul.bf16.gmra.mxu0 %v9568_v46  ;;  %v3117_v36 = vadd.f32 %v3116_v51, %v3028_v59 }
 0x502   :  { %3804 = vmatmul.bf16.gmra.mxu3 %v9566_v55 }
 0x503   :  { %v3223_v53 = vpack.c.bf16 %v3183_v22, %v3182_v63 }
 0x504   :  { %v2849_v17 = vpop.f32.mrf.mxu2 }
 0x505   :  { %v2850_v33 = vadd.f32 %v2849_v17, %v9490_v19  ;;  %v2938_v39 = vpop.f32.mrf.mxu3  ;;  %v3310_v34 = vunpack.c.l.b16 %v3223_v53  ;;  %v3311_v62 = vunpack.c.h.b16 %v3223_v53  ;;  %v3185_v53 = vmax.f32 %v3117_v36, 0.0 }
 0x506   :  { %v3029_v27 = vpop.f32.mrf.mxu0 }
 0x507   :  { %v2939_v1 = vadd.f32 %v2938_v39, %v2850_v33  ;;  %v3118_v57 = vpop.f32.mrf.mxu1  ;;  %v9647_v7 = vpack.c.b16 %v3310_v34, %v3308_v25  ;;  %v9649_v60 = vpack.c.b16 %v3311_v62, %v3309_v21  ;;  %v3030_v52 = vadd.f32 %v3029_v27, %v9492_v41 }
 0x509   :  { %v3184_v35 = vmax.f32 %v2939_v1, 0.0  ;;  %v3119_v58 = vadd.f32 %v3118_v57, %v3030_v52 }
 0x50b   :  { %v3224_v17 = vpack.c.bf16 %v3185_v53, %v3184_v35  ;;  %v3187_v50 = vmax.f32 %v3119_v58, 0.0 }
 0x50c   :  { %v2851_v11 = vpop.f32.mrf.mxu2 }
 0x50d   :  { %v2852_v22 = vadd.f32 %v2851_v11, %v9490_v19  ;;  %v2940_v63 = vpop.f32.mrf.mxu3  ;;  %v3312_v25 = vunpack.c.l.b16 %v3224_v17  ;;  %v3313_v32 = vunpack.c.h.b16 %v3224_v17  ;;  %v7319_v17 = vld [vmem:[#allocation4 + $0x8] sm:$0xf0] }
 0x50e   :  { %v3032_v37 = vpop.f32.mrf.mxu0 }
 0x50f   :  { %v2941_v14 = vadd.f32 %v2940_v63, %v2852_v22  ;;  %v3121_v16 = vpop.f32.mrf.mxu1  ;;  %v3033_v59 = vadd.f32 %v3032_v37, %v9492_v41 }
 0x511   :  { %v3186_v23 = vmax.f32 %v2941_v14, 0.0  ;;  %3720 = vmatmul.bf16.gmra.mxu2 %v8550_v56  ;;  %3898 = vmatmul.bf16.gmra.mxu0 %v9582_v30  ;;  %v3122_v35 = vadd.f32 %v3121_v16, %v3033_v59  ;;  %v7971_v14 = vld [vmem:[#allocation4 + $0x4] sm:$0xf]  ;;  %v8009_v59 = vld [vmem:[#allocation4 + $0x134] sm:$0xf] }
 0x512   :  { %3809 = vmatmul.bf16.gmra.mxu3 %v9580_v40 }
 0x513   :  { %v3225_v51 = vpack.c.bf16 %v3187_v50, %v3186_v23  ;;  %v7322_v23 = vor.u32 %v7971_v14, %v7319_v17  ;;  %v3189_v37 = vmax.f32 %v3122_v35, 0.0 }
 0x514   :  { %v2854_v21 = vpop.f32.mrf.mxu2 }
 0x515   :  { %v2855_v33 = vadd.f32 %v2854_v21, %v9490_v19  ;;  %v2943_v39 = vpop.f32.mrf.mxu3  ;;  %v3314_v0 = vunpack.c.l.b16 %v3225_v51  ;;  %v3315_v34 = vunpack.c.h.b16 %v3225_v51  ;;  %3961 = vmatpush.bf16.msrb.mxu1 %v7322_v23 }
 0x516   :  { %v3034_v62 = vpop.f32.mrf.mxu0 }
 0x517   :  { %v2944_v27 = vadd.f32 %v2943_v39, %v2855_v33  ;;  %v3123_v1 = vpop.f32.mrf.mxu1  ;;  %v9658_v57 = vpack.c.b16 %v3314_v0, %v3312_v25  ;;  %v9660_v52 = vpack.c.b16 %v3315_v34, %v3313_v32  ;;  %v3035_v36 = vadd.f32 %v3034_v62, %v9492_v41  ;;  %v7993_v39 = vld [vmem:[#allocation4 + $0xb4] sm:$0xf]  ;;  %v7407_v0 = vld [vmem:[#allocation4 + $0xb8] sm:$0xf0] }
 0x518   :  { %3962 = vmatmul.bf16.vlgmr.msrb.gmra.mxu1 %v8510_v3  ;;  %v7410_v62 = vor.u32 %v7993_v39, %v7407_v0 }
 0x519   :  { %11139 = vst [vmem:[#allocation18_spill] sm:$0xff] %v9660_v52  ;;  %v3188_v58 = vmax.f32 %v2944_v27, 0.0  ;;  %v3124_v22 = vadd.f32 %v3123_v1, %v3035_v36  ;;  %v7471_v27 = vld [vmem:[#allocation4 + $0x138] sm:$0xf0] }
 0x51a   :  { %4047 = vmatpush.bf16.msra.mxu2 %v7410_v62 }
 0x51b   :  { %v3226_v25 = vpack.c.bf16 %v3189_v37, %v3188_v58  ;;  %v3191_v32 = vmax.f32 %v3124_v22, 0.0 }
 0x51c   :  { %v2856_v11 = vpop.f32.mrf.mxu2 }
 0x51d   :  { %v2857_v63 = vadd.f32 %v2856_v11, %v9490_v19  ;;  %v2945_v53 = vpop.f32.mrf.mxu3  ;;  %v3316_v1 = vunpack.c.l.b16 %v3226_v25  ;;  %v7474_v11 = vor.u32 %v8009_v59, %v7471_v27  ;;  %v3317_v22 = vunpack.c.h.b16 %v3226_v25 }
 0x51e   :  { %v3037_v50 = vpop.f32.mrf.mxu0 }
 0x51f   :  { %v2946_v51 = vadd.f32 %v2945_v53, %v2857_v63  ;;  %v3126_v21 = vpop.f32.mrf.mxu1  ;;  %v3038_v63 = vadd.f32 %v3037_v50, %v9492_v41  ;;  %4136 = vmatpush.bf16.msra.mxu3 %v7474_v11 }
 0x521   :  { %v3190_v33 = vmax.f32 %v2946_v51, 0.0  ;;  %3725 = vmatmul.bf16.gmra.mxu2 %v8558_v38  ;;  %3903 = vmatmul.bf16.gmra.mxu0 %v9594_v31 }
 0x522   :  { %3814 = vmatmul.bf16.gmra.mxu3 %v9592_v47 }
 0x523   :  { %v3227_v16 = vpack.c.bf16 %v3191_v32, %v3190_v33  ;;  %v3127_v32 = vadd.f32 %v3126_v21, %v3038_v63 }
 0x524   :  { %v2859_v34 = vpop.f32.mrf.mxu2 }
 0x525   :  { %v2860_v36 = vadd.f32 %v2859_v34, %v9490_v19  ;;  %v2948_v35 = vpop.f32.mrf.mxu3  ;;  %v3318_v58 = vunpack.c.l.b16 %v3227_v16  ;;  %v3319_v14 = vunpack.c.h.b16 %v3227_v16  ;;  %v3193_v50 = vmax.f32 %v3127_v32, 0.0 }
 0x526   :  { %v3039_v53 = vpop.f32.mrf.mxu0 }
 0x527   :  { %v2949_v17 = vadd.f32 %v2948_v35, %v2860_v36  ;;  %v9670_v23 = vpack.c.b16 %v3318_v58, %v3316_v1  ;;  %v3128_v3 = vpop.f32.mrf.mxu1  ;;  %v9672_v37 = vpack.c.b16 %v3319_v14, %v3317_v22  ;;  %v3040_v51 = vadd.f32 %v3039_v53, %v9492_v41  ;;  %v7565_v53 = vld [vmem:[#allocation6 + $0x470] sm:$0xf]  ;;  %v8034_v14 = vld [vmem:[#allocation6 + $0x474] sm:$0xf0] }
 0x528   :  { %3967 = vmatmul.bf16.gmra.mxu1 %v8518_v28 }
 0x529   :  { %11140 = vst [vmem:[#allocation19_spill] sm:$0xff] %v9672_v37  ;;  %v3192_v33 = vmax.f32 %v2949_v17, 0.0  ;;  %v3129_v0 = vadd.f32 %v3128_v3, %v3040_v51 }
 0x52b   :  { %v3228_v16 = vpack.c.bf16 %v3193_v50, %v3192_v33  ;;  %v3195_v27 = vmax.f32 %v3129_v0, 0.0  ;;  %v7566_v33 = vor.u32 %v8034_v14, %v7565_v53  ;;  %v7629_v50 = vld [vmem:[#allocation6 + $0x4f0] sm:$0xf] }
 0x52c   :  { %v2861_v39 = vpop.f32.mrf.mxu2 }
 0x52d   :  { %v2862_v25 = vadd.f32 %v2861_v39, %v9490_v19  ;;  %v2950_v34 = vpop.f32.mrf.mxu3  ;;  %v3320_v35 = vunpack.c.l.b16 %v3228_v16  ;;  %v3321_v58 = vunpack.c.h.b16 %v3228_v16  ;;  %4517 = vmatpush.bf16.msra.mxu0 %v7566_v33 }
 0x52e   :  { %v3042_v59 = vpop.f32.mrf.mxu0 }
 0x52f   :  { %v2951_v62 = vadd.f32 %v2950_v34, %v2862_v25  ;;  %v3131_v1 = vpop.f32.mrf.mxu1  ;;  %v3043_v51 = vadd.f32 %v3042_v59, %v9492_v41 }
 0x531   :  { %v3194_v36 = vmax.f32 %v2951_v62, 0.0  ;;  %3730 = vmatmul.bf16.gmra.mxu2 %v8566_v20  ;;  %3908 = vmatmul.bf16.gmra.mxu0 %v9605_v10  ;;  %v3132_v34 = vadd.f32 %v3131_v1, %v3043_v51  ;;  %v8050_v62 = vld [vmem:[#allocation6 + $0x4f4] sm:$0xf0]  ;;  %v8007_v51 = vld [vmem:[#allocation4 + $0x124] sm:$0xf] }
 0x532   :  { %3819 = vmatmul.bf16.gmra.mxu3 %v9603_v61 }
 0x533   :  { %v3229_v21 = vpack.c.bf16 %v3195_v27, %v3194_v36  ;;  %v3197_v53 = vmax.f32 %v3132_v34, 0.0 }
 0x534   :  { %v2864_v11 = vpop.f32.mrf.mxu2 }
 0x535   :  { %v2865_v22 = vadd.f32 %v2864_v11, %v9490_v19  ;;  %v2953_v63 = vpop.f32.mrf.mxu3  ;;  %v3322_v17 = vunpack.c.l.b16 %v3229_v21  ;;  %v3323_v3 = vunpack.c.h.b16 %v3229_v21  ;;  %v7630_v11 = vor.u32 %v8050_v62, %v7629_v50 }
 0x536   :  { %v3044_v32 = vpop.f32.mrf.mxu0 }
 0x537   :  { %v2954_v39 = vadd.f32 %v2953_v63, %v2865_v22  ;;  %v9682_v0 = vpack.c.b16 %v3322_v17, %v3320_v35  ;;  %v9684_v25 = vpack.c.b16 %v3323_v3, %v3321_v58  ;;  %v3045_v28 = vadd.f32 %v3044_v32, %v9492_v41  ;;  %v3133_v27 = vpop.f32.mrf.mxu1  ;;  %v9688_v35 = vld [vmem:[#allocation7 + $0xa] sm:$0x3]  ;;  %4606 = vmatpush.bf16.msra.mxu1 %v7630_v11  ;;  %v7991_v17 = vld [vmem:[#allocation4 + $0xa4] sm:$0xf]  ;;  %v7399_v3 = vld [vmem:[#allocation4 + $0xa8] sm:$0xf0] }
 0x538   :  { %v9693_v1 = vperm.slane %v9688_v35, 0  ;;  %3972 = vmatmul.bf16.gmra.mxu1 %v8526_v48 }
 0x539   :  { %v3196_v16 = vmax.f32 %v2954_v39, 0.0  ;;  %v3134_v21 = vadd.f32 %v3133_v27, %v3045_v28  ;;  %v7402_v39 = vor.u32 %v7991_v17, %v7399_v3  ;;  %v7463_v28 = vld [vmem:[#allocation4 + $0x128] sm:$0xf0] }
 0x53a   :  { %v7466_v62 = vor.u32 %v8007_v51, %v7463_v28  ;;  %v7557_v51 = vld [vmem:[#allocation6 + $0x460] sm:$0xf] }
 0x53b   :  { %v3230_v63 = vpack.c.bf16 %v3197_v53, %v3196_v16  ;;  %v3199_v14 = vmax.f32 %v3134_v21, 0.0  ;;  %4048 = vmatpush.bf16.msra.mxu2 %v7402_v39 }
 0x53c   :  { %v2866_v36 = vpop.f32.mrf.mxu2  ;;  %4137 = vmatpush.bf16.msra.mxu3 %v7466_v62 }
 0x53d   :  { %v2867_v59 = vadd.f32 %v2866_v36, %v9490_v19  ;;  %v2955_v10 = vpop.f32.mrf.mxu3  ;;  %v3324_v32 = vunpack.c.l.b16 %v3230_v63 }
 0x53e   :  { %v3874_v22 = vpop.f32.mrf.mxu0 }
 0x53f   :  { %v2956_v58 = vadd.f32 %v2955_v10, %v2867_v59  ;;  %v3325_v10 = vunpack.c.h.b16 %v3230_v63 }
 0x541   :  { %v3198_v41 = vmax.f32 %v2956_v58, 0.0  ;;  %3735 = vmatmul.bf16.gmra.mxu2 %v8512_v4  ;;  %3913 = vmatmul.bf16.gmra.mxu0 %v9616_v43 }
 0x542   :  { %3824 = vmatmul.bf16.gmra.mxu3 %v9614_v42 }
 0x543   :  { %v3231_v19 = vpack.c.bf16 %v3199_v14, %v3198_v41 }
 0x544   :  { %v3696_v33 = vpop.f32.mrf.mxu2 }
 0x545   :  { %v3697_v34 = vadd.f32 %v3696_v33, %v9693_v1  ;;  %v3785_v50 = vpop.f32.mrf.mxu3  ;;  %v3326_v16 = vunpack.c.l.b16 %v3231_v19  ;;  %v3327_v27 = vunpack.c.h.b16 %v3231_v19 }
 0x546   :  { %v3876_v36 = vpop.f32.mrf.mxu0 }
 0x547   :  { %v3786_v11 = vadd.f32 %v3785_v50, %v3697_v34  ;;  %v9698_v21 = vpack.c.b16 %v3326_v16, %v3324_v32  ;;  %v9700_v59 = vpack.c.b16 %v3327_v27, %v3325_v10  ;;  %v8032_v32 = vld [vmem:[#allocation6 + $0x464] sm:$0xf0]  ;;  %v7621_v16 = vld [vmem:[#allocation6 + $0x4e0] sm:$0xf] }
 0x548   :  { %3977 = vmatmul.bf16.gmra.mxu1 %v8534_v6  ;;  %v7558_v10 = vor.u32 %v8032_v32, %v7557_v51  ;;  %v8048_v27 = vld [vmem:[#allocation6 + $0x4e4] sm:$0xf0]  ;;  %v8005_v32 = vld [vmem:[#allocation4 + $0x114] sm:$0xf] }
 0x549   :  { %11141 = vst [vmem:[#allocation20_spill] sm:$0xff] %v9700_v59  ;;  %v3875_v48 = vadd.f32 %v3874_v22, %v3786_v11  ;;  %v7622_v11 = vor.u32 %v8048_v27, %v7621_v16 }
 0x54a   :  { %4518 = vmatpush.bf16.msra.mxu0 %v7558_v10 }
 0x54b   :  { %v4221_v19 = vmax.f32 %v3875_v48, 0.0  ;;  %4607 = vmatpush.bf16.msra.mxu1 %v7622_v11 }
 0x54c   :  { %v3698_v53 = vpop.f32.mrf.mxu2 }
 0x54d   :  { %v3699_v58 = vadd.f32 %v3698_v53, %v9693_v1  ;;  %v3787_v63 = vpop.f32.mrf.mxu3 }
 0x54e   :  { %v3879_v14 = vpop.f32.mrf.mxu0 }
 0x54f   :  { %v3788_v41 = vadd.f32 %v3787_v63, %v3699_v58 }
 0x551   :  { %v3877_v17 = vadd.f32 %v3876_v36, %v3788_v41  ;;  %3740 = vmatmul.bf16.gmra.mxu2 %v8520_v29  ;;  %3918 = vmatmul.bf16.gmra.mxu0 %v9627_v18 }
 0x552   :  { %3829 = vmatmul.bf16.gmra.mxu3 %v9625_v8 }
 0x553   :  { %v4223_v3 = vmax.f32 %v3877_v17, 0.0 }
 0x554   :  { %v3701_v22 = vpop.f32.mrf.mxu2 }
 0x555   :  { %v9707_v33 = vpack.c.bf16 %v4223_v3, %v4221_v19  ;;  %v3702_v39 = vadd.f32 %v3701_v22, %v9693_v1  ;;  %v3790_v28 = vpop.f32.mrf.mxu3  ;;  %v7391_v19 = vld [vmem:[#allocation4 + $0x98] sm:$0xf0] }
 0x556   :  { %v3881_v34 = vpop.f32.mrf.mxu0  ;;  %v7455_v22 = vld [vmem:[#allocation4 + $0x118] sm:$0xf0] }
 0x557   :  { %11142 = vst [vmem:[#allocation21_spill] sm:$0xff] %v9707_v33  ;;  %v3791_v50 = vadd.f32 %v3790_v28, %v3702_v39  ;;  %v7458_v28 = vor.u32 %v8005_v32, %v7455_v22 }
 0x558   :  { %3982 = vmatmul.bf16.gmra.mxu1 %v8542_v26 }
 0x559   :  { %v3880_v62 = vadd.f32 %v3879_v14, %v3791_v50  ;;  %v7989_v14 = vld [vmem:[#allocation4 + $0x94] sm:$0xf]  ;;  %4138 = vmatpush.bf16.msra.mxu3 %v7458_v28  ;;  %v7613_v28 = vld [vmem:[#allocation6 + $0x4d0] sm:$0xf] }
 0x55a   :  { %v7394_v51 = vor.u32 %v7989_v14, %v7391_v19  ;;  %v8030_v14 = vld [vmem:[#allocation6 + $0x454] sm:$0xf0] }
 0x55b   :  { %v4225_v41 = vmax.f32 %v3880_v62, 0.0 }
 0x55c   :  { %v3703_v36 = vpop.f32.mrf.mxu2  ;;  %4049 = vmatpush.bf16.msra.mxu2 %v7394_v51 }
 0x55d   :  { %v3704_v48 = vadd.f32 %v3703_v36, %v9693_v1  ;;  %v3792_v53 = vpop.f32.mrf.mxu3 }
 0x55e   :  { %v3884_v58 = vpop.f32.mrf.mxu0 }
 0x55f   :  { %v3793_v6 = vadd.f32 %v3792_v53, %v3704_v48 }
 0x561   :  { %v3882_v63 = vadd.f32 %v3881_v34, %v3793_v6  ;;  %3745 = vmatmul.bf16.gmra.mxu2 %v8528_v49  ;;  %3923 = vmatmul.bf16.gmra.mxu0 %v9638_v44  ;;  %v11143_v6 = vld [vmem:[#allocation12_spill] sm:$0xff] }
 0x562   :  { %3834 = vmatmul.bf16.gmra.mxu3 %v9636_v45 }
 0x563   :  { %v4227_v17 = vmax.f32 %v3882_v63, 0.0 }
 0x564   :  { %v3706_v3 = vpop.f32.mrf.mxu2 }
 0x565   :  { %v3707_v10 = vadd.f32 %v3706_v3, %v9693_v1  ;;  %v3795_v39 = vpop.f32.mrf.mxu3  ;;  %v9716_v34 = vpack.c.bf16 %v4227_v17, %v4225_v41  ;;  %v7549_v17 = vld [vmem:[#allocation6 + $0x450] sm:$0xf] }
 0x566   :  { %v3886_v50 = vpop.f32.mrf.mxu0  ;;  %v7550_v19 = vor.u32 %v8030_v14, %v7549_v17  ;;  %v7383_v17 = vld [vmem:[#allocation4 + $0x88] sm:$0xf0] }
 0x567   :  { %v3796_v16 = vadd.f32 %v3795_v39, %v3707_v10 }
 0x568   :  { %3987 = vmatmul.bf16.gmra.mxu1 %v8550_v56  ;;  %4519 = vmatpush.bf16.msra.mxu0 %v7550_v19  ;;  %v8003_v19 = vld [vmem:[#allocation4 + $0x104] sm:$0xf] }
 0x569   :  { %v3885_v62 = vadd.f32 %v3884_v58, %v3796_v16 }
 0x56b   :  { %v4229_v63 = vmax.f32 %v3885_v62, 0.0 }
 0x56c   :  { %v3708_v27 = vpop.f32.mrf.mxu2 }
 0x56d   :  { %v3709_v36 = vadd.f32 %v3708_v27, %v9693_v1  ;;  %v3797_v11 = vpop.f32.mrf.mxu3 }
 0x56e   :  { %v3889_v26 = vpop.f32.mrf.mxu0 }
 0x56f   :  { %v3798_v48 = vadd.f32 %v3797_v11, %v3709_v36 }
 0x571   :  { %v3887_v53 = vadd.f32 %v3886_v50, %v3798_v48  ;;  %3750 = vmatmul.bf16.gmra.mxu2 %v11143_v6  ;;  %3928 = vmatmul.bf16.gmra.mxu0 %v9649_v60  ;;  %v8046_v50 = vld [vmem:[#allocation6 + $0x4d4] sm:$0xf0] }
 0x572   :  { %3839 = vmatmul.bf16.gmra.mxu3 %v9647_v7  ;;  %v7614_v62 = vor.u32 %v8046_v50, %v7613_v28 }
 0x573   :  { %v4231_v41 = vmax.f32 %v3887_v53, 0.0  ;;  %v11144_v53 = vld [vmem:[#allocation13_spill] sm:$0xff] }
 0x574   :  { %v3711_v58 = vpop.f32.mrf.mxu2  ;;  %4608 = vmatpush.bf16.msra.mxu1 %v7614_v62 }
 0x575   :  { %v3712_v3 = vadd.f32 %v3711_v58, %v9693_v1  ;;  %v3800_v51 = vpop.f32.mrf.mxu3  ;;  %v9724_v32 = vpack.c.bf16 %v4231_v41, %v4229_v63 }
 0x576   :  { %v3891_v22 = vpop.f32.mrf.mxu0 }
 0x577   :  { %v3801_v10 = vadd.f32 %v3800_v51, %v3712_v3  ;;  %v7447_v3 = vld [vmem:[#allocation4 + $0x108] sm:$0xf0] }
 0x578   :  { %3992 = vmatmul.bf16.gmra.mxu1 %v8558_v38 }
 0x579   :  { %v3890_v39 = vadd.f32 %v3889_v26, %v3801_v10  ;;  %v7987_v26 = vld [vmem:[#allocation4 + $0x84] sm:$0xf] }
 0x57a   :  { %v7386_v58 = vor.u32 %v7987_v26, %v7383_v17 }
 0x57b   :  { %v4233_v63 = vmax.f32 %v3890_v39, 0.0 }
 0x57c   :  { %v3713_v16 = vpop.f32.mrf.mxu2  ;;  %4050 = vmatpush.bf16.msra.mxu2 %v7386_v58 }
 0x57d   :  { %v3714_v27 = vadd.f32 %v3713_v16, %v9693_v1  ;;  %v3802_v36 = vpop.f32.mrf.mxu3 }
 0x57e   :  { %v3894_v11 = vpop.f32.mrf.mxu0 }
 0x57f   :  { %v3803_v56 = vadd.f32 %v3802_v36, %v3714_v27  ;;  %v7541_v27 = vld [vmem:[#allocation6 + $0x440] sm:$0xf]  ;;  %v8028_v36 = vld [vmem:[#allocation6 + $0x444] sm:$0xf0] }
 0x581   :  { %v3892_v48 = vadd.f32 %v3891_v22, %v3803_v56  ;;  %3755 = vmatmul.bf16.gmra.mxu2 %v11144_v53  ;;  %3933 = vmatmul.bf16.gmra.mxu0 %v9660_v52  ;;  %v7450_v22 = vor.u32 %v8003_v19, %v7447_v3  ;;  %v8026_v52 = vld [vmem:[#allocation6 + $0x434] sm:$0xf0] }
 0x582   :  { %3844 = vmatmul.bf16.gmra.mxu3 %v9658_v57 }
 0x583   :  { %v4235_v41 = vmax.f32 %v3892_v48, 0.0  ;;  %4139 = vmatpush.bf16.msra.mxu3 %v7450_v22  ;;  %v7542_v48 = vor.u32 %v8028_v36, %v7541_v27 }
 0x584   :  { %v3716_v14 = vpop.f32.mrf.mxu2 }
 0x585   :  { %v3717_v51 = vadd.f32 %v3716_v14, %v9693_v1  ;;  %v3805_v10 = vpop.f32.mrf.mxu3  ;;  %v9732_v28 = vpack.c.bf16 %v4235_v41, %v4233_v63  ;;  %4520 = vmatpush.bf16.msra.mxu0 %v7542_v48  ;;  %v7533_v14 = vld [vmem:[#allocation6 + $0x430] sm:$0xf]  ;;  %v11145_v63 = vld [vmem:[#allocation14_spill] sm:$0xff] }
 0x586   :  { %v3896_v50 = vpop.f32.mrf.mxu0  ;;  %v7534_v41 = vor.u32 %v8026_v52, %v7533_v14  ;;  %v7517_v52 = vld [vmem:[#allocation6 + $0x410] sm:$0xf]  ;;  %v7605_v48 = vld [vmem:[#allocation6 + $0x4c0] sm:$0xf] }
 0x587   :  { %v3806_v16 = vadd.f32 %v3805_v10, %v3717_v51  ;;  %v7525_v51 = vld [vmem:[#allocation6 + $0x420] sm:$0xf]  ;;  %v8024_v10 = vld [vmem:[#allocation6 + $0x424] sm:$0xf0] }
 0x588   :  { %3997 = vmatmul.bf16.gmra.mxu1 %v8566_v20 }
 0x589   :  { %v3895_v39 = vadd.f32 %v3894_v11, %v3806_v16  ;;  %4521 = vmatpush.bf16.msra.mxu0 %v7534_v41  ;;  %v8020_v41 = vld [vmem:[#allocation6 + $0x404] sm:$0xf0] }
 0x58b   :  { %v4237_v11 = vmax.f32 %v3895_v39, 0.0 }
 0x58c   :  { %v3718_v62 = vpop.f32.mrf.mxu2 }
 0x58d   :  { %v3719_v38 = vadd.f32 %v3718_v62, %v9693_v1  ;;  %v3807_v56 = vpop.f32.mrf.mxu3  ;;  %v7526_v62 = vor.u32 %v8024_v10, %v7525_v51 }
 0x58e   :  { %v3899_v26 = vpop.f32.mrf.mxu0 }
 0x58f   :  { %v3808_v17 = vadd.f32 %v3807_v56, %v3719_v38  ;;  %4522 = vmatpush.bf16.msra.mxu0 %v7526_v62  ;;  %v8022_v38 = vld [vmem:[#allocation6 + $0x414] sm:$0xf0]  ;;  %v8033_v62 = vld [vmem:[#allocation6 + $0x474] sm:$0xf] }
 0x590   :  { %v7518_v39 = vor.u32 %v8022_v38, %v7517_v52 }
 0x591   :  { %v3897_v19 = vadd.f32 %v3896_v50, %v3808_v17  ;;  %3760 = vmatmul.bf16.gmra.mxu2 %v11145_v63  ;;  %3938 = vmatmul.bf16.gmra.mxu0 %v9672_v37  ;;  %v8044_v17 = vld [vmem:[#allocation6 + $0x4c4] sm:$0xf0] }
 0x592   :  { %3849 = vmatmul.bf16.gmra.mxu3 %v9670_v23  ;;  %v7606_v14 = vor.u32 %v8044_v17, %v7605_v48  ;;  %v7631_v48 = vld [vmem:[#allocation6 + $0x4f8] sm:$0xf0] }
 0x593   :  { %v4239_v58 = vmax.f32 %v3897_v19, 0.0  ;;  %4523 = vmatpush.bf16.msra.mxu0 %v7518_v39  ;;  %v7509_v19 = vld [vmem:[#allocation6 + $0x400] sm:$0xf]  ;;  %v8049_v39 = vld [vmem:[#allocation6 + $0x4f4] sm:$0xf] }
 0x594   :  { %v3721_v3 = vpop.f32.mrf.mxu2  ;;  %v7510_v51 = vor.u32 %v8020_v41, %v7509_v19  ;;  %4609 = vmatpush.bf16.msra.mxu1 %v7606_v14 }
 0x595   :  { %v3722_v22 = vadd.f32 %v3721_v3, %v9693_v1  ;;  %v3810_v16 = vpop.f32.mrf.mxu3  ;;  %v9740_v50 = vpack.c.bf16 %v4239_v58, %v4237_v11  ;;  %v9750_v41 = vpop.f32.mrf.mxu1 }
 0x596   :  { %v3901_v27 = vpop.f32.mrf.mxu0 }
 0x597   :  { %v3811_v36 = vadd.f32 %v3810_v16, %v3722_v22  ;;  %4524 = vmatpush.bf16.msra.mxu0 %v7510_v51  ;;  %v11146_v22 = vld [vmem:[#allocation15_spill] sm:$0xff] }
 0x598   :  { %4002 = vmatmul.bf16.gmra.mxu1 %v8512_v4 }
 0x599   :  { %v3900_v56 = vadd.f32 %v3899_v26, %v3811_v36  ;;  %v7567_v36 = vld [vmem:[#allocation6 + $0x478] sm:$0xf0] }
 0x59a   :  { %v7570_v38 = vor.u32 %v8033_v62, %v7567_v36  ;;  %v11147_v36 = vld [vmem:[#allocation16_spill] sm:$0xff] }
 0x59b   :  { %v4241_v26 = vmax.f32 %v3900_v56, 0.0 }
 0x59c   :  { %v3723_v20 = vpop.f32.mrf.mxu2  ;;  %4695 = vmatpush.bf16.msrb.mxu2 %v7570_v38 }
 0x59d   :  { %v3724_v3 = vadd.f32 %v3723_v20, %v9693_v1  ;;  %v3812_v37 = vpop.f32.mrf.mxu3 }
 0x59e   :  { %v3904_v11 = vpop.f32.mrf.mxu0 }
 0x59f   :  { %v3813_v58 = vadd.f32 %v3812_v37, %v3724_v3 }
 0x5a1   :  { %v3902_v10 = vadd.f32 %v3901_v27, %v3813_v58  ;;  %3765 = vmatmul.bf16.gmra.mxu2 %v11146_v22  ;;  %3943 = vmatmul.bf16.gmra.mxu0 %v9684_v25  ;;  %v7634_v27 = vor.u32 %v8049_v39, %v7631_v48 }
 0x5a2   :  { %3854 = vmatmul.bf16.gmra.mxu3 %v9682_v0 }
 0x5a3   :  { %v4243_v16 = vmax.f32 %v3902_v10, 0.0  ;;  %4784 = vmatpush.bf16.msrb.mxu3 %v7634_v27 }
 0x5a4   :  { %v3726_v52 = vpop.f32.mrf.mxu2 }
 0x5a5   :  { %v3727_v37 = vadd.f32 %v3726_v52, %v9693_v1  ;;  %v3815_v17 = vpop.f32.mrf.mxu3  ;;  %v9748_v20 = vpack.c.bf16 %v4243_v16, %v4241_v26  ;;  %v9756_v52 = vpop.f32.mrf.mxu1 }
 0x5a6   :  { %v3906_v14 = vpop.f32.mrf.mxu0 }
 0x5a7   :  { %v3816_v19 = vadd.f32 %v3815_v17, %v3727_v37 }
 0x5a8   :  { %4007 = vmatmul.bf16.gmra.mxu1 %v8520_v29 }
 0x5a9   :  { %v3905_v56 = vadd.f32 %v3904_v11, %v3816_v19  ;;  %v8042_v19 = vld [vmem:[#allocation6 + $0x4b4] sm:$0xf0] }
 0x5ab   :  { %v4245_v26 = vmax.f32 %v3905_v56, 0.0 }
 0x5ac   :  { %v3728_v3 = vpop.f32.mrf.mxu2 }
 0x5ad   :  { %v3729_v4 = vadd.f32 %v3728_v3, %v9693_v1  ;;  %v3817_v51 = vpop.f32.mrf.mxu3  ;;  %v9762_v3 = vpop.f32.mrf.mxu1 }
 0x5ae   :  { %v3909_v58 = vpop.f32.mrf.mxu0 }
 0x5af   :  { %v3818_v10 = vadd.f32 %v3817_v51, %v3729_v4 }
 0x5b1   :  { %v3907_v62 = vadd.f32 %v3906_v14, %v3818_v10  ;;  %3770 = vmatmul.bf16.gmra.mxu2 %v11147_v36  ;;  %3948 = vmatmul.bf16.gmra.mxu0 %v9700_v59  ;;  %v7597_v14 = vld [vmem:[#allocation6 + $0x4b0] sm:$0xf] }
 0x5b2   :  { %3859 = vmatmul.bf16.gmra.mxu3 %v9698_v21  ;;  %v7598_v56 = vor.u32 %v8042_v19, %v7597_v14  ;;  %v8047_v14 = vld [vmem:[#allocation6 + $0x4e4] sm:$0xf]  ;;  %v7623_v19 = vld [vmem:[#allocation6 + $0x4e8] sm:$0xf0] }
 0x5b3   :  { %v4247_v16 = vmax.f32 %v3907_v62, 0.0 }
 0x5b4   :  { %v3731_v11 = vpop.f32.mrf.mxu2  ;;  %4610 = vmatpush.bf16.msra.mxu1 %v7598_v56 }
 0x5b5   :  { %v3732_v38 = vadd.f32 %v3731_v11, %v9693_v1  ;;  %v3820_v39 = vpop.f32.mrf.mxu3  ;;  %v9760_v48 = vpack.c.bf16 %v4247_v16, %v4245_v26  ;;  %v8031_v16 = vld [vmem:[#allocation6 + $0x464] sm:$0xf]  ;;  %v7559_v11 = vld [vmem:[#allocation6 + $0x468] sm:$0xf0] }
 0x5b6   :  { %v3911_v37 = vpop.f32.mrf.mxu0 }
 0x5b7   :  { %v3821_v17 = vadd.f32 %v3820_v39, %v3732_v38  ;;  %v9768_v38 = vpop.f32.mrf.mxu1 }
 0x5b8   :  { %4012 = vmatmul.bf16.gmra.mxu1 %v8528_v49 }
 0x5b9   :  { %v3910_v27 = vadd.f32 %v3909_v58, %v3821_v17  ;;  %v7562_v17 = vor.u32 %v8031_v16, %v7559_v11 }
 0x5bb   :  { %v4249_v58 = vmax.f32 %v3910_v27, 0.0  ;;  %4696 = vmatpush.bf16.msrb.mxu2 %v7562_v17 }
 0x5bc   :  { %v3733_v4 = vpop.f32.mrf.mxu2 }
 0x5bd   :  { %v3734_v51 = vadd.f32 %v3733_v4, %v9693_v1  ;;  %v3822_v10 = vpop.f32.mrf.mxu3 }
 0x5be   :  { %v3914_v62 = vpop.f32.mrf.mxu0 }
 0x5bf   :  { %v3823_v29 = vadd.f32 %v3822_v10, %v3734_v51  ;;  %v9774_v27 = vpop.f32.mrf.mxu1 }
 0x5c1   :  { %v3912_v59 = vadd.f32 %v3911_v37, %v3823_v29  ;;  %4051 = vmatmul.bf16.vlgmr.msra.gmra.mxu2 %v9510_v54  ;;  %4525 = vmatmul.bf16.vlgmr.msra.gmra.mxu0 %v9707_v33  ;;  %v7626_v54 = vor.u32 %v8047_v14, %v7623_v19 }
 0x5c2   :  { %4140 = vmatmul.bf16.vlgmr.msra.gmra.mxu3 %v9512_v13 }
 0x5c3   :  { %v4251_v26 = vmax.f32 %v3912_v59, 0.0  ;;  %4785 = vmatpush.bf16.msrb.mxu3 %v7626_v54 }
 0x5c4   :  { %v3736_v39 = vpop.f32.mrf.mxu2 }
 0x5c5   :  { %v3737_v37 = vadd.f32 %v3736_v39, %v9693_v1  ;;  %v3825_v4 = vpop.f32.mrf.mxu3  ;;  %v9772_v56 = vpack.c.bf16 %v4251_v26, %v4249_v58 }
 0x5c6   :  { %v3916_v51 = vpop.f32.mrf.mxu0 }
 0x5c7   :  { %11148 = vst [vmem:[#allocation12_spill] sm:$0xff] %v9772_v56  ;;  %v3826_v13 = vadd.f32 %v3825_v4, %v3737_v37  ;;  %v9780_v39 = vpop.f32.mrf.mxu1 }
 0x5c8   :  { %4017 = vmatmul.bf16.gmra.mxu1 %v11143_v6 }
 0x5c9   :  { %v3915_v59 = vadd.f32 %v3914_v62, %v3826_v13 }
 0x5cb   :  { %v4253_v58 = vmax.f32 %v3915_v59, 0.0 }
 0x5cc   :  { %v3738_v10 = vpop.f32.mrf.mxu2 }
 0x5cd   :  { %v3739_v49 = vadd.f32 %v3738_v10, %v9693_v1  ;;  %v3827_v29 = vpop.f32.mrf.mxu3 }
 0x5ce   :  { %v3919_v16 = vpop.f32.mrf.mxu0 }
 0x5cf   :  { %v3828_v11 = vadd.f32 %v3827_v29, %v3739_v49  ;;  %v9786_v13 = vpop.f32.mrf.mxu1 }
 0x5d1   :  { %v3917_v33 = vadd.f32 %v3916_v51, %v3828_v11  ;;  %4056 = vmatmul.bf16.gmra.mxu2 %v9524_v24  ;;  %4530 = vmatmul.bf16.gmra.mxu0 %v9716_v34  ;;  %v7589_v24 = vld [vmem:[#allocation6 + $0x4a0] sm:$0xf]  ;;  %v8040_v51 = vld [vmem:[#allocation6 + $0x4a4] sm:$0xf0] }
 0x5d2   :  { %4145 = vmatmul.bf16.gmra.mxu3 %v9526_v12  ;;  %v7590_v59 = vor.u32 %v8040_v51, %v7589_v24  ;;  %v7615_v24 = vld [vmem:[#allocation6 + $0x4d8] sm:$0xf0] }
 0x5d3   :  { %v4255_v26 = vmax.f32 %v3917_v33, 0.0 }
 0x5d4   :  { %v3741_v62 = vpop.f32.mrf.mxu2  ;;  %4611 = vmatpush.bf16.msra.mxu1 %v7590_v59 }
 0x5d5   :  { %v3742_v17 = vadd.f32 %v3741_v62, %v9693_v1  ;;  %v3830_v14 = vpop.f32.mrf.mxu3  ;;  %v9784_v19 = vpack.c.bf16 %v4255_v26, %v4253_v58  ;;  %v8029_v58 = vld [vmem:[#allocation6 + $0x454] sm:$0xf]  ;;  %v7551_v26 = vld [vmem:[#allocation6 + $0x458] sm:$0xf0] }
 0x5d6   :  { %v3921_v37 = vpop.f32.mrf.mxu0 }
 0x5d7   :  { %v3831_v4 = vadd.f32 %v3830_v14, %v3742_v17  ;;  %v9792_v62 = vpop.f32.mrf.mxu1  ;;  %v7554_v14 = vor.u32 %v8029_v58, %v7551_v26 }
 0x5d8   :  { %4022 = vmatmul.bf16.gmra.mxu1 %v11144_v53 }
 0x5d9   :  { %v3920_v54 = vadd.f32 %v3919_v16, %v3831_v4  ;;  %v8045_v4 = vld [vmem:[#allocation6 + $0x4d4] sm:$0xf]  ;;  %4697 = vmatpush.bf16.msrb.mxu2 %v7554_v14 }
 0x5db   :  { %v4257_v16 = vmax.f32 %v3920_v54, 0.0 }
 0x5dc   :  { %v3743_v12 = vpop.f32.mrf.mxu2 }
 0x5dd   :  { %v3744_v33 = vadd.f32 %v3743_v12, %v9693_v1  ;;  %v3832_v10 = vpop.f32.mrf.mxu3 }
 0x5de   :  { %v3924_v49 = vpop.f32.mrf.mxu0 }
 0x5df   :  { %v3833_v6 = vadd.f32 %v3832_v10, %v3744_v33  ;;  %v9798_v33 = vpop.f32.mrf.mxu1 }
 0x5e1   :  { %v3922_v29 = vadd.f32 %v3921_v37, %v3833_v6  ;;  %4061 = vmatmul.bf16.gmra.mxu2 %v9538_v9  ;;  %4535 = vmatmul.bf16.gmra.mxu0 %v9724_v32  ;;  %v7618_v9 = vor.u32 %v8045_v4, %v7615_v24 }
 0x5e2   :  { %4150 = vmatmul.bf16.gmra.mxu3 %v9540_v5 }
 0x5e3   :  { %v4259_v11 = vmax.f32 %v3922_v29, 0.0  ;;  %4786 = vmatpush.bf16.msrb.mxu3 %v7618_v9 }
 0x5e4   :  { %v3746_v17 = vpop.f32.mrf.mxu2 }
 0x5e5   :  { %v3747_v37 = vadd.f32 %v3746_v17, %v9693_v1  ;;  %v3835_v51 = vpop.f32.mrf.mxu3  ;;  %v9796_v12 = vpack.c.bf16 %v4259_v11, %v4257_v16 }
 0x5e6   :  { %v3926_v59 = vpop.f32.mrf.mxu0 }
 0x5e7   :  { %11149 = vst [vmem:[#allocation13_spill] sm:$0xff] %v9796_v12  ;;  %v3836_v5 = vadd.f32 %v3835_v51, %v3747_v37  ;;  %v9804_v17 = vpop.f32.mrf.mxu1 }
 0x5e8   :  { %4027 = vmatmul.bf16.gmra.mxu1 %v11145_v63 }
 0x5e9   :  { %v3925_v54 = vadd.f32 %v3924_v49, %v3836_v5 }
 0x5eb   :  { %v4261_v16 = vmax.f32 %v3925_v54, 0.0 }
 0x5ec   :  { %v3748_v10 = vpop.f32.mrf.mxu2 }
 0x5ed   :  { %v3749_v53 = vadd.f32 %v3748_v10, %v9693_v1  ;;  %v3837_v6 = vpop.f32.mrf.mxu3 }
 0x5ee   :  { %v3929_v29 = vpop.f32.mrf.mxu0 }
 0x5ef   :  { %v3838_v58 = vadd.f32 %v3837_v6, %v3749_v53  ;;  %v9810_v5 = vpop.f32.mrf.mxu1 }
 0x5f1   :  { %v3927_v26 = vadd.f32 %v3926_v59, %v3838_v58  ;;  %4066 = vmatmul.bf16.gmra.mxu2 %v9552_v15  ;;  %4540 = vmatmul.bf16.gmra.mxu0 %v9732_v28  ;;  %v7581_v15 = vld [vmem:[#allocation6 + $0x490] sm:$0xf]  ;;  %v8038_v59 = vld [vmem:[#allocation6 + $0x494] sm:$0xf0] }
 0x5f2   :  { %4155 = vmatmul.bf16.gmra.mxu3 %v9554_v2  ;;  %v7582_v54 = vor.u32 %v8038_v59, %v7581_v15  ;;  %v7607_v15 = vld [vmem:[#allocation6 + $0x4c8] sm:$0xf0] }
 0x5f3   :  { %v4263_v11 = vmax.f32 %v3927_v26, 0.0 }
 0x5f4   :  { %v3751_v49 = vpop.f32.mrf.mxu2  ;;  %4612 = vmatpush.bf16.msra.mxu1 %v7582_v54 }
 0x5f5   :  { %v3752_v14 = vadd.f32 %v3751_v49, %v9693_v1  ;;  %v3840_v4 = vpop.f32.mrf.mxu3  ;;  %v9808_v24 = vpack.c.bf16 %v4263_v11, %v4261_v16  ;;  %v8027_v16 = vld [vmem:[#allocation6 + $0x444] sm:$0xf]  ;;  %v7543_v11 = vld [vmem:[#allocation6 + $0x448] sm:$0xf0] }
 0x5f6   :  { %v3931_v37 = vpop.f32.mrf.mxu0 }
 0x5f7   :  { %11150 = vst [vmem:[#allocation14_spill] sm:$0xff] %v9808_v24  ;;  %v3841_v51 = vadd.f32 %v3840_v4, %v3752_v14  ;;  %v9816_v49 = vpop.f32.mrf.mxu1  ;;  %v7546_v4 = vor.u32 %v8027_v16, %v7543_v11 }
 0x5f8   :  { %4032 = vmatmul.bf16.gmra.mxu1 %v11146_v22 }
 0x5f9   :  { %v3930_v9 = vadd.f32 %v3929_v29, %v3841_v51  ;;  %v8043_v51 = vld [vmem:[#allocation6 + $0x4c4] sm:$0xf]  ;;  %4698 = vmatpush.bf16.msrb.mxu2 %v7546_v4 }
 0x5fb   :  { %v4265_v29 = vmax.f32 %v3930_v9, 0.0 }
 0x5fc   :  { %v3753_v2 = vpop.f32.mrf.mxu2 }
 0x5fd   :  { %v3754_v10 = vadd.f32 %v3753_v2, %v9693_v1  ;;  %v3842_v53 = vpop.f32.mrf.mxu3 }
 0x5fe   :  { %v3934_v6 = vpop.f32.mrf.mxu0 }
 0x5ff   :  { %v3843_v63 = vadd.f32 %v3842_v53, %v3754_v10  ;;  %v9822_v53 = vpop.f32.mrf.mxu1 }
 0x601   :  { %v3932_v58 = vadd.f32 %v3931_v37, %v3843_v63  ;;  %4071 = vmatmul.bf16.gmra.mxu2 %v9566_v55  ;;  %4545 = vmatmul.bf16.gmra.mxu0 %v9740_v50  ;;  %v7610_v55 = vor.u32 %v8043_v51, %v7607_v15 }
 0x602   :  { %4160 = vmatmul.bf16.gmra.mxu3 %v9568_v46 }
 0x603   :  { %v4267_v26 = vmax.f32 %v3932_v58, 0.0  ;;  %4787 = vmatpush.bf16.msrb.mxu3 %v7610_v55 }
 0x604   :  { %v3756_v14 = vpop.f32.mrf.mxu2 }
 0x605   :  { %v3757_v37 = vadd.f32 %v3756_v14, %v9693_v1  ;;  %v3845_v59 = vpop.f32.mrf.mxu3  ;;  %v9820_v2 = vpack.c.bf16 %v4267_v26, %v4265_v29 }
 0x606   :  { %v3936_v54 = vpop.f32.mrf.mxu0 }
 0x607   :  { %11151 = vst [vmem:[#allocation15_spill] sm:$0xff] %v9820_v2  ;;  %v3846_v46 = vadd.f32 %v3845_v59, %v3757_v37  ;;  %v9832_v37 = vpop.f32.mrf.mxu1 }
 0x608   :  { %4037 = vmatmul.bf16.gmra.mxu1 %v11147_v36 }
 0x609   :  { %v3935_v9 = vadd.f32 %v3934_v6, %v3846_v46 }
 0x60b   :  { %v4269_v29 = vmax.f32 %v3935_v9, 0.0 }
 0x60c   :  { %v3758_v10 = vpop.f32.mrf.mxu2 }
 0x60d   :  { %v3759_v22 = vadd.f32 %v3758_v10, %v9693_v1  ;;  %v3847_v63 = vpop.f32.mrf.mxu3 }
 0x60e   :  { %v3939_v58 = vpop.f32.mrf.mxu0 }
 0x60f   :  { %v3848_v16 = vadd.f32 %v3847_v63, %v3759_v22  ;;  %v9835_v63 = vpop.f32.mrf.mxu1 }
 0x611   :  { %v3937_v11 = vadd.f32 %v3936_v54, %v3848_v16  ;;  %4076 = vmatmul.bf16.gmra.mxu2 %v9580_v40  ;;  %4550 = vmatmul.bf16.gmra.mxu0 %v9748_v20  ;;  %v7573_v40 = vld [vmem:[#allocation6 + $0x480] sm:$0xf]  ;;  %v8036_v54 = vld [vmem:[#allocation6 + $0x484] sm:$0xf0] }
 0x612   :  { %4165 = vmatmul.bf16.gmra.mxu3 %v9582_v30  ;;  %v7574_v10 = vor.u32 %v8036_v54, %v7573_v40 }
 0x613   :  { %v4271_v26 = vmax.f32 %v3937_v11, 0.0 }
 0x614   :  { %v3761_v6 = vpop.f32.mrf.mxu2  ;;  %4613 = vmatpush.bf16.msra.mxu1 %v7574_v10 }
 0x615   :  { %v3762_v14 = vadd.f32 %v3761_v6, %v9693_v1  ;;  %v3850_v4 = vpop.f32.mrf.mxu3  ;;  %v9830_v51 = vpack.c.bf16 %v4271_v26, %v4269_v29  ;;  %v8025_v29 = vld [vmem:[#allocation6 + $0x434] sm:$0xf]  ;;  %v7535_v26 = vld [vmem:[#allocation6 + $0x438] sm:$0xf0] }
 0x616   :  { %v3941_v15 = vpop.f32.mrf.mxu0 }
 0x617   :  { %11152 = vst [vmem:[#allocation16_spill] sm:$0xff] %v9830_v51  ;;  %v3851_v59 = vadd.f32 %v3850_v4, %v3762_v14  ;;  %v7538_v14 = vor.u32 %v8025_v29, %v7535_v26  ;;  %v8041_v4 = vld [vmem:[#allocation6 + $0x4b4] sm:$0xf] }
 0x619   :  { %v3940_v55 = vadd.f32 %v3939_v58, %v3851_v59  ;;  %v7599_v59 = vld [vmem:[#allocation6 + $0x4b8] sm:$0xf0]  ;;  %4699 = vmatpush.bf16.msrb.mxu2 %v7538_v14  ;;  %v7693_v14 = vld [vmem:[#allocation6 + $0x570] sm:$0xf] }
 0x61b   :  { %v4273_v58 = vmax.f32 %v3940_v55, 0.0 }
 0x61c   :  { %v3763_v46 = vpop.f32.mrf.mxu2 }
 0x61d   :  { %v3764_v30 = vadd.f32 %v3763_v46, %v9693_v1  ;;  %v3852_v9 = vpop.f32.mrf.mxu3  ;;  %v7602_v46 = vor.u32 %v8041_v4, %v7599_v59  ;;  %v8066_v4 = vld [vmem:[#allocation6 + $0x574] sm:$0xf0] }
 0x61e   :  { %v3944_v22 = vpop.f32.mrf.mxu0 }
 0x61f   :  { %v3853_v36 = vadd.f32 %v3852_v9, %v3764_v30  ;;  %4788 = vmatpush.bf16.msrb.mxu3 %v7602_v46 }
 0x621   :  { %v3942_v16 = vadd.f32 %v3941_v15, %v3853_v36  ;;  %4081 = vmatmul.bf16.gmra.mxu2 %v9592_v47  ;;  %4555 = vmatmul.bf16.gmra.mxu0 %v9760_v48 }
 0x622   :  { %4170 = vmatmul.bf16.gmra.mxu3 %v9594_v31  ;;  %v9843_v31 = vpop.f32.mrf.mxu1 }
 0x623   :  { %v4275_v11 = vmax.f32 %v3942_v16, 0.0 }
 0x624   :  { %v3766_v6 = vpop.f32.mrf.mxu2 }
 0x625   :  { %v3767_v40 = vadd.f32 %v3766_v6, %v9693_v1  ;;  %v3855_v54 = vpop.f32.mrf.mxu3  ;;  %v9841_v10 = vpack.c.bf16 %v4275_v11, %v4273_v58  ;;  %v11154_v58 = vld [vmem:[#allocation17_spill] sm:$0xff] }
 0x626   :  { %v3946_v15 = vpop.f32.mrf.mxu0 }
 0x627   :  { %11153 = vst [vmem:[#allocation22_spill] sm:$0xff] %v9841_v10  ;;  %v3856_v47 = vadd.f32 %v3855_v54, %v3767_v40  ;;  %v7694_v40 = vor.u32 %v8066_v4, %v7693_v14 }
 0x629   :  { %v3945_v30 = vadd.f32 %v3944_v22, %v3856_v47  ;;  %5169 = vmatpush.bf16.msrb.mxu0 %v7694_v40  ;;  %v9863_v40 = vperm.slane %v9688_v35, 1 }
 0x62a   :  { %v9849_v59 = vpop.f32.mrf.mxu1 }
 0x62b   :  { %v4277_v11 = vmax.f32 %v3945_v30, 0.0 }
 0x62c   :  { %v3768_v55 = vpop.f32.mrf.mxu2 }
 0x62d   :  { %v3769_v9 = vadd.f32 %v3768_v55, %v9693_v1  ;;  %v3857_v36 = vpop.f32.mrf.mxu3 }
 0x62e   :  { %v3949_v16 = vpop.f32.mrf.mxu0 }
 0x62f   :  { %v3858_v29 = vadd.f32 %v3857_v36, %v3769_v9  ;;  %v7757_v9 = vld [vmem:[#allocation6 + $0x5f0] sm:$0xf]  ;;  %v8082_v36 = vld [vmem:[#allocation6 + $0x5f4] sm:$0xf0] }
 0x631   :  { %v3947_v26 = vadd.f32 %v3946_v15, %v3858_v29  ;;  %4086 = vmatmul.bf16.gmra.mxu2 %v9603_v61  ;;  %4560 = vmatmul.bf16.gmra.mxu0 %v9772_v56  ;;  %v7758_v29 = vor.u32 %v8082_v36, %v7757_v9 }
 0x632   :  { %4175 = vmatmul.bf16.gmra.mxu3 %v11154_v58  ;;  %v9857_v14 = vpop.f32.mrf.mxu1 }
 0x633   :  { %v4279_v6 = vmax.f32 %v3947_v26, 0.0  ;;  %5258 = vmatpush.bf16.msrb.mxu1 %v7758_v29 }
 0x634   :  { %v3771_v22 = vpop.f32.mrf.mxu2 }
 0x635   :  { %v3772_v54 = vadd.f32 %v3771_v22, %v9693_v1  ;;  %v3860_v46 = vpop.f32.mrf.mxu3  ;;  %v9852_v47 = vpack.c.bf16 %v4279_v6, %v4277_v11  ;;  %v7527_v11 = vld [vmem:[#allocation6 + $0x428] sm:$0xf0]  ;;  %v8039_v6 = vld [vmem:[#allocation6 + $0x4a4] sm:$0xf] }
 0x636   :  { %v3951_v15 = vpop.f32.mrf.mxu0 }
 0x637   :  { %11155 = vst [vmem:[#allocation17_spill] sm:$0xff] %v9852_v47  ;;  %v3861_v61 = vadd.f32 %v3860_v46, %v3772_v54 }
 0x639   :  { %v3950_v55 = vadd.f32 %v3949_v16, %v3861_v61  ;;  %v8023_v16 = vld [vmem:[#allocation6 + $0x424] sm:$0xf]  ;;  %v7591_v61 = vld [vmem:[#allocation6 + $0x4a8] sm:$0xf0] }
 0x63a   :  { %v7530_v46 = vor.u32 %v8023_v16, %v7527_v11  ;;  %v7594_v36 = vor.u32 %v8039_v6, %v7591_v61 }
 0x63c   :  { %v3773_v30 = vpop.f32.mrf.mxu2  ;;  %4700 = vmatpush.bf16.msrb.mxu2 %v7530_v46  ;;  %4789 = vmatpush.bf16.msrb.mxu3 %v7594_v36  ;;  %v8064_v46 = vld [vmem:[#allocation6 + $0x564] sm:$0xf0] }
 0x63d   :  { %v3774_v26 = vadd.f32 %v3773_v30, %v9693_v1  ;;  %v3862_v58 = vpop.f32.mrf.mxu3  ;;  %v4281_v1 = vmax.f32 %v3950_v55, 0.0  ;;  %v9871_v30 = vpop.f32.mrf.mxu1  ;;  %v3966_v55 = vadd.f32 %v9756_v52, %v9863_v40 }
 0x63e   :  { %v9855_v56 = vpop.f32.mrf.mxu0 }
 0x63f   :  { %v3863_v4 = vadd.f32 %v3862_v58, %v3774_v26 }
 0x641   :  { %v3952_v22 = vadd.f32 %v3951_v15, %v3863_v4  ;;  %4091 = vmatmul.bf16.gmra.mxu2 %v9614_v42  ;;  %4565 = vmatmul.bf16.gmra.mxu0 %v9784_v19 }
 0x642   :  { %4180 = vmatmul.bf16.gmra.mxu3 %v9616_v43  ;;  %v3964_v43 = vadd.f32 %v9750_v41, %v9863_v40 }
 0x643   :  { %v4283_v54 = vmax.f32 %v3952_v22, 0.0 }
 0x644   :  { %v4052_v9 = vpop.f32.mrf.mxu2 }
 0x645   :  { %v4141_v29 = vpop.f32.mrf.mxu3  ;;  %v9865_v15 = vpack.c.bf16 %v4283_v54, %v4281_v1  ;;  %v4053_v35 = vadd.f32 %v4052_v9, %v3964_v43  ;;  %v9880_v41 = vpop.f32.mrf.mxu1  ;;  %v7685_v54 = vld [vmem:[#allocation6 + $0x560] sm:$0xf] }
 0x646   :  { %v9867_v42 = vpop.f32.mrf.mxu0  ;;  %v7686_v61 = vor.u32 %v8064_v46, %v7685_v54 }
 0x647   :  { %11156 = vst [vmem:[#allocation23_spill] sm:$0xff] %v9865_v15  ;;  %v4142_v58 = vadd.f32 %v4141_v29, %v4053_v35  ;;  %v7749_v35 = vld [vmem:[#allocation6 + $0x5e0] sm:$0xf] }
 0x648   :  { %5170 = vmatpush.bf16.msrb.mxu0 %v7686_v61 }
 0x649   :  { %v4222_v6 = vmax.f32 %v4142_v58, 0.0 }
 0x64c   :  { %v4054_v26 = vpop.f32.mrf.mxu2 }
 0x64d   :  { %v4055_v4 = vadd.f32 %v4054_v26, %v3966_v55  ;;  %v4143_v22 = vpop.f32.mrf.mxu3  ;;  %v3971_v26 = vadd.f32 %v9768_v38, %v9863_v40  ;;  %v7519_v38 = vld [vmem:[#allocation6 + $0x418] sm:$0xf0] }
 0x64e   :  { %v9875_v16 = vpop.f32.mrf.mxu0 }
 0x64f   :  { %v4144_v11 = vadd.f32 %v4143_v22, %v4055_v4  ;;  %v9891_v4 = vpop.f32.mrf.mxu1 }
 0x651   :  { %v4224_v1 = vmax.f32 %v4144_v11, 0.0  ;;  %4096 = vmatmul.bf16.gmra.mxu2 %v9625_v8  ;;  %4570 = vmatmul.bf16.gmra.mxu0 %v9796_v12  ;;  %v3969_v8 = vadd.f32 %v9762_v3, %v9863_v40  ;;  %v8021_v3 = vld [vmem:[#allocation6 + $0x414] sm:$0xf] }
 0x652   :  { %4185 = vmatmul.bf16.gmra.mxu3 %v9627_v18  ;;  %v8080_v18 = vld [vmem:[#allocation6 + $0x5e4] sm:$0xf0] }
 0x653   :  { %v9882_v52 = vpack.c.bf16 %v4224_v1, %v4222_v6  ;;  %v7750_v55 = vor.u32 %v8080_v18, %v7749_v35  ;;  %v7522_v35 = vor.u32 %v8021_v3, %v7519_v38 }
 0x654   :  { %v4057_v9 = vpop.f32.mrf.mxu2 }
 0x655   :  { %v4146_v36 = vpop.f32.mrf.mxu3  ;;  %4614 = vmatmul.bf16.vlgmr.msra.gmra.mxu1 %v9882_v52  ;;  %v4058_v43 = vadd.f32 %v4057_v9, %v3969_v8  ;;  %v8037_v9 = vld [vmem:[#allocation6 + $0x494] sm:$0xf]  ;;  %4701 = vmatpush.bf16.msrb.mxu2 %v7522_v35 }
 0x656   :  { %v9885_v29 = vpop.f32.mrf.mxu0  ;;  %5259 = vmatpush.bf16.msrb.mxu1 %v7750_v55 }
 0x657   :  { %v4147_v22 = vadd.f32 %v4146_v36, %v4058_v43  ;;  %v7583_v36 = vld [vmem:[#allocation6 + $0x498] sm:$0xf0] }
 0x658   :  { %v7586_v18 = vor.u32 %v8037_v9, %v7583_v36  ;;  %v8062_v36 = vld [vmem:[#allocation6 + $0x554] sm:$0xf0] }
 0x659   :  { %v4226_v46 = vmax.f32 %v4147_v22, 0.0  ;;  %v3976_v22 = vadd.f32 %v9780_v39, %v9863_v40 }
 0x65a   :  { %4790 = vmatpush.bf16.msrb.mxu3 %v7586_v18 }
 0x65c   :  { %v4059_v58 = vpop.f32.mrf.mxu2 }
 0x65d   :  { %v4060_v11 = vadd.f32 %v4059_v58, %v3971_v26  ;;  %v4148_v6 = vpop.f32.mrf.mxu3 }
 0x65e   :  { %v9893_v1 = vpop.f32.mrf.mxu0 }
 0x65f   :  { %v4149_v54 = vadd.f32 %v4148_v6, %v4060_v11 }
 0x661   :  { %v4228_v61 = vmax.f32 %v4149_v54, 0.0  ;;  %4101 = vmatmul.bf16.gmra.mxu2 %v9636_v45  ;;  %4575 = vmatmul.bf16.gmra.mxu0 %v9808_v24  ;;  %v9903_v45 = vpop.f32.mrf.mxu1 }
 0x662   :  { %4190 = vmatmul.bf16.gmra.mxu3 %v9638_v44  ;;  %v3974_v44 = vadd.f32 %v9774_v27, %v9863_v40  ;;  %v7677_v27 = vld [vmem:[#allocation6 + $0x550] sm:$0xf] }
 0x663   :  { %v9898_v8 = vpack.c.bf16 %v4228_v61, %v4226_v46 }
 0x664   :  { %v4062_v43 = vpop.f32.mrf.mxu2 }
 0x665   :  { %v4151_v55 = vpop.f32.mrf.mxu3  ;;  %4619 = vmatmul.bf16.gmra.mxu1 %v9898_v8  ;;  %v4063_v58 = vadd.f32 %v4062_v43, %v3974_v44  ;;  %v7678_v43 = vor.u32 %v8062_v36, %v7677_v27 }
 0x666   :  { %v9901_v26 = vpop.f32.mrf.mxu0 }
 0x667   :  { %v4152_v6 = vadd.f32 %v4151_v55, %v4063_v58  ;;  %5171 = vmatpush.bf16.msrb.mxu0 %v7678_v43  ;;  %v3979_v58 = vadd.f32 %v9786_v13, %v9863_v40  ;;  %v11157_v13 = vld [vmem:[#allocation18_spill] sm:$0xff] }
 0x669   :  { %v9911_v38 = vpop.f32.mrf.mxu1  ;;  %v4230_v9 = vmax.f32 %v4152_v6, 0.0 }
 0x66c   :  { %v4064_v11 = vpop.f32.mrf.mxu2 }
 0x66d   :  { %v4065_v54 = vadd.f32 %v4064_v11, %v3976_v22  ;;  %v4153_v46 = vpop.f32.mrf.mxu3  ;;  %v7741_v22 = vld [vmem:[#allocation6 + $0x5d0] sm:$0xf]  ;;  %v8078_v11 = vld [vmem:[#allocation6 + $0x5d4] sm:$0xf0] }
 0x66e   :  { %v9909_v61 = vpop.f32.mrf.mxu0 }
 0x66f   :  { %v4154_v3 = vadd.f32 %v4153_v46, %v4065_v54  ;;  %v3981_v54 = vadd.f32 %v9792_v62, %v9863_v40 }
 0x671   :  { %v4232_v35 = vmax.f32 %v4154_v3, 0.0  ;;  %4106 = vmatmul.bf16.gmra.mxu2 %v9647_v7  ;;  %4580 = vmatmul.bf16.gmra.mxu0 %v9820_v2  ;;  %v9923_v6 = vpop.f32.mrf.mxu1 }
 0x672   :  { %4195 = vmatmul.bf16.gmra.mxu3 %v9649_v60  ;;  %v7742_v60 = vor.u32 %v8078_v11, %v7741_v22  ;;  %v8035_v22 = vld [vmem:[#allocation6 + $0x484] sm:$0xf] }
 0x673   :  { %v9916_v39 = vpack.c.bf16 %v4232_v35, %v4230_v9 }
 0x674   :  { %v4067_v18 = vpop.f32.mrf.mxu2  ;;  %5260 = vmatpush.bf16.msrb.mxu1 %v7742_v60 }
 0x675   :  { %v4156_v55 = vpop.f32.mrf.mxu3  ;;  %4624 = vmatmul.bf16.gmra.mxu1 %v9916_v39  ;;  %v4068_v7 = vadd.f32 %v4067_v18, %v3979_v58  ;;  %v8019_v18 = vld [vmem:[#allocation6 + $0x404] sm:$0xf]  ;;  %v7511_v58 = vld [vmem:[#allocation6 + $0x408] sm:$0xf0] }
 0x676   :  { %v9919_v44 = vpop.f32.mrf.mxu0  ;;  %v7514_v11 = vor.u32 %v8019_v18, %v7511_v58 }
 0x677   :  { %v4157_v3 = vadd.f32 %v4156_v55, %v4068_v7  ;;  %v7575_v55 = vld [vmem:[#allocation6 + $0x488] sm:$0xf0] }
 0x678   :  { %4702 = vmatpush.bf16.msrb.mxu2 %v7514_v11 }
 0x679   :  { %v4234_v43 = vmax.f32 %v4157_v3, 0.0  ;;  %v9934_v60 = vpop.f32.mrf.mxu1  ;;  %v3984_v3 = vadd.f32 %v9798_v33, %v9863_v40  ;;  %v11158_v33 = vld [vmem:[#allocation19_spill] sm:$0xff] }
 0x67c   :  { %v4069_v46 = vpop.f32.mrf.mxu2 }
 0x67d   :  { %v4070_v9 = vadd.f32 %v4069_v46, %v3981_v54  ;;  %v4158_v35 = vpop.f32.mrf.mxu3  ;;  %v7578_v54 = vor.u32 %v8035_v22, %v7575_v55 }
 0x67e   :  { %v9927_v27 = vpop.f32.mrf.mxu0 }
 0x67f   :  { %v4159_v36 = vadd.f32 %v4158_v35, %v4070_v9  ;;  %4791 = vmatpush.bf16.msrb.mxu3 %v7578_v54  ;;  %v8060_v54 = vld [vmem:[#allocation6 + $0x544] sm:$0xf0] }
 0x681   :  { %v4236_v2 = vmax.f32 %v4159_v36, 0.0  ;;  %4111 = vmatmul.bf16.gmra.mxu2 %v9658_v57  ;;  %4585 = vmatmul.bf16.gmra.mxu0 %v9830_v51  ;;  %v9945_v58 = vpop.f32.mrf.mxu1 }
 0x682   :  { %4200 = vmatmul.bf16.gmra.mxu3 %v11157_v13 }
 0x683   :  { %v9932_v62 = vpack.c.bf16 %v4236_v2, %v4234_v43  ;;  %v3986_v2 = vadd.f32 %v9804_v17, %v9863_v40 }
 0x684   :  { %v4072_v7 = vpop.f32.mrf.mxu2 }
 0x685   :  { %v4161_v46 = vpop.f32.mrf.mxu3  ;;  %4629 = vmatmul.bf16.gmra.mxu1 %v9932_v62  ;;  %v4073_v9 = vadd.f32 %v4072_v7, %v3984_v3  ;;  %v7669_v7 = vld [vmem:[#allocation6 + $0x540] sm:$0xf] }
 0x686   :  { %v9937_v57 = vpop.f32.mrf.mxu0 }
 0x687   :  { %v4162_v36 = vadd.f32 %v4161_v46, %v4073_v9  ;;  %v7670_v46 = vor.u32 %v8060_v54, %v7669_v7 }
 0x689   :  { %v4238_v11 = vmax.f32 %v4162_v36, 0.0  ;;  %5172 = vmatpush.bf16.msrb.mxu0 %v7670_v46 }
 0x68c   :  { %v4074_v35 = vpop.f32.mrf.mxu2 }
 0x68d   :  { %v4075_v43 = vadd.f32 %v4074_v35, %v3986_v2  ;;  %v4163_v13 = vpop.f32.mrf.mxu3  ;;  %v3989_v35 = vadd.f32 %v9810_v5, %v9863_v40 }
 0x68e   :  { %v9943_v18 = vpop.f32.mrf.mxu0 }
 0x68f   :  { %v4164_v22 = vadd.f32 %v4163_v13, %v4075_v43  ;;  %v7733_v43 = vld [vmem:[#allocation6 + $0x5c0] sm:$0xf]  ;;  %v8076_v13 = vld [vmem:[#allocation6 + $0x5c4] sm:$0xf0] }
 0x691   :  { %v4240_v55 = vmax.f32 %v4164_v22, 0.0  ;;  %4116 = vmatmul.bf16.gmra.mxu2 %v9670_v23  ;;  %4590 = vmatmul.bf16.gmra.mxu0 %v9841_v10  ;;  %v9957_v23 = vpop.f32.mrf.mxu1  ;;  %v7734_v22 = vor.u32 %v8076_v13, %v7733_v43 }
 0x692   :  { %4205 = vmatmul.bf16.gmra.mxu3 %v11158_v33 }
 0x693   :  { %v9950_v17 = vpack.c.bf16 %v4240_v55, %v4238_v11  ;;  %v3991_v11 = vadd.f32 %v9816_v49, %v9863_v40  ;;  %5261 = vmatpush.bf16.msrb.mxu1 %v7734_v22  ;;  %v7695_v49 = vld [vmem:[#allocation6 + $0x578] sm:$0xf0] }
 0x694   :  { %v4077_v3 = vpop.f32.mrf.mxu2 }
 0x695   :  { %v4166_v9 = vpop.f32.mrf.mxu3  ;;  %4634 = vmatmul.bf16.gmra.mxu1 %v9950_v17  ;;  %v4078_v36 = vadd.f32 %v4077_v3, %v3989_v35  ;;  %v8065_v3 = vld [vmem:[#allocation6 + $0x574] sm:$0xf] }
 0x696   :  { %v9953_v2 = vpop.f32.mrf.mxu0  ;;  %v8081_v35 = vld [vmem:[#allocation6 + $0x5f4] sm:$0xf] }
 0x697   :  { %v4167_v33 = vadd.f32 %v4166_v9, %v4078_v36  ;;  %v7698_v9 = vor.u32 %v8065_v3, %v7695_v49  ;;  %v7759_v36 = vld [vmem:[#allocation6 + $0x5f8] sm:$0xf0] }
 0x698   :  { %v7762_v22 = vor.u32 %v8081_v35, %v7759_v36  ;;  %v7661_v35 = vld [vmem:[#allocation6 + $0x530] sm:$0xf] }
 0x699   :  { %v4242_v51 = vmax.f32 %v4167_v33, 0.0  ;;  %v9966_v5 = vpop.f32.mrf.mxu1  ;;  %5347 = vmatpush.bf16.msra.mxu2 %v7698_v9  ;;  %v8058_v9 = vld [vmem:[#allocation6 + $0x534] sm:$0xf0] }
 0x69a   :  { %5436 = vmatpush.bf16.msra.mxu3 %v7762_v22 }
 0x69c   :  { %v4079_v55 = vpop.f32.mrf.mxu2 }
 0x69d   :  { %v4080_v7 = vadd.f32 %v4079_v55, %v3991_v11  ;;  %v4168_v54 = vpop.f32.mrf.mxu3  ;;  %v3996_v55 = vadd.f32 %v9832_v37, %v9863_v40 }
 0x69e   :  { %v9961_v46 = vpop.f32.mrf.mxu0 }
 0x69f   :  { %v4169_v10 = vadd.f32 %v4168_v54, %v4080_v7 }
 0x6a1   :  { %v4244_v24 = vmax.f32 %v4169_v10, 0.0  ;;  %4121 = vmatmul.bf16.gmra.mxu2 %v9682_v0  ;;  %4595 = vmatmul.bf16.gmra.mxu0 %v9852_v47 }
 0x6a2   :  { %4210 = vmatmul.bf16.gmra.mxu3 %v9684_v25  ;;  %v3994_v25 = vadd.f32 %v9822_v53, %v9863_v40  ;;  %v7662_v53 = vor.u32 %v8058_v9, %v7661_v35  ;;  %v7725_v9 = vld [vmem:[#allocation6 + $0x5b0] sm:$0xf] }
 0x6a3   :  { %v9968_v43 = vpack.c.bf16 %v4244_v24, %v4242_v51  ;;  %v9977_v24 = vpop.f32.mrf.mxu1 }
 0x6a4   :  { %v4082_v13 = vpop.f32.mrf.mxu2  ;;  %5173 = vmatpush.bf16.msrb.mxu0 %v7662_v53 }
 0x6a5   :  { %v4171_v11 = vpop.f32.mrf.mxu3  ;;  %4639 = vmatmul.bf16.gmra.mxu1 %v9968_v43  ;;  %v4083_v10 = vadd.f32 %v4082_v13, %v3994_v25  ;;  %v11160_v13 = vld [vmem:[#allocation20_spill] sm:$0xff]  ;;  %v7653_v25 = vld [vmem:[#allocation6 + $0x520] sm:$0xf] }
 0x6a6   :  { %v9971_v0 = vpop.f32.mrf.mxu0 }
 0x6a7   :  { %v4172_v33 = vadd.f32 %v4171_v11, %v4083_v10  ;;  %v8056_v10 = vld [vmem:[#allocation6 + $0x524] sm:$0xf0] }
 0x6a9   :  { %v4246_v36 = vmax.f32 %v4172_v33, 0.0 }
 0x6ac   :  { %v4084_v51 = vpop.f32.mrf.mxu2 }
 0x6ad   :  { %v4085_v7 = vadd.f32 %v4084_v51, %v3996_v55  ;;  %v4173_v54 = vpop.f32.mrf.mxu3  ;;  %v7654_v51 = vor.u32 %v8056_v10, %v7653_v25  ;;  %v7637_v10 = vld [vmem:[#allocation6 + $0x500] sm:$0xf] }
 0x6ae   :  { %v9979_v3 = vpop.f32.mrf.mxu0 }
 0x6af   :  { %11159 = vst [vmem:[#allocation18_spill] sm:$0xff] %v9979_v3  ;;  %v4174_v49 = vadd.f32 %v4173_v54, %v4085_v7  ;;  %v9987_v7 = vpop.f32.mrf.mxu1  ;;  %5174 = vmatpush.bf16.msrb.mxu0 %v7654_v51  ;;  %v7645_v54 = vld [vmem:[#allocation6 + $0x510] sm:$0xf] }
 0x6b1   :  { %v4248_v22 = vmax.f32 %v4174_v49, 0.0  ;;  %4126 = vmatmul.bf16.gmra.mxu2 %v9698_v21  ;;  %4600 = vmatmul.bf16.gmra.mxu0 %v9865_v15  ;;  %v3999_v21 = vadd.f32 %v9835_v63, %v9863_v40  ;;  %v8054_v49 = vld [vmem:[#allocation6 + $0x514] sm:$0xf0]  ;;  %v8052_v15 = vld [vmem:[#allocation6 + $0x504] sm:$0xf0] }
 0x6b2   :  { %4215 = vmatmul.bf16.gmra.mxu3 %v11160_v13  ;;  %v4001_v13 = vadd.f32 %v9843_v31, %v9863_v40  ;;  %v7638_v63 = vor.u32 %v8052_v15, %v7637_v10  ;;  %v8063_v31 = vld [vmem:[#allocation6 + $0x564] sm:$0xf]  ;;  %v7751_v15 = vld [vmem:[#allocation6 + $0x5e8] sm:$0xf0] }
 0x6b3   :  { %v9984_v37 = vpack.c.bf16 %v4248_v22, %v4246_v36  ;;  %v8074_v36 = vld [vmem:[#allocation6 + $0x5b4] sm:$0xf0]  ;;  %v7646_v22 = vor.u32 %v8054_v49, %v7645_v54 }
 0x6b4   :  { %v4087_v11 = vpop.f32.mrf.mxu2  ;;  %v7726_v53 = vor.u32 %v8074_v36, %v7725_v9  ;;  %v11162_v49 = vld [vmem:[#allocation21_spill] sm:$0xff]  ;;  %v7687_v9 = vld [vmem:[#allocation6 + $0x568] sm:$0xf0] }
 0x6b5   :  { %v4176_v55 = vpop.f32.mrf.mxu3  ;;  %4644 = vmatmul.bf16.gmra.mxu1 %v9984_v37  ;;  %v4088_v35 = vadd.f32 %v4087_v11, %v3999_v21  ;;  %5175 = vmatpush.bf16.msrb.mxu0 %v7646_v22 }
 0x6b6   :  { %v9989_v33 = vpop.f32.mrf.mxu0  ;;  %5262 = vmatpush.bf16.msrb.mxu1 %v7726_v53 }
 0x6b7   :  { %11161 = vst [vmem:[#allocation19_spill] sm:$0xff] %v9989_v33  ;;  %v4177_v47 = vadd.f32 %v4176_v55, %v4088_v35  ;;  %v9995_v3 = vpop.f32.mrf.mxu1  ;;  %v7690_v55 = vor.u32 %v8063_v31, %v7687_v9 }
 0x6b9   :  { %5176 = vmatpush.bf16.msrb.mxu0 %v7638_v63  ;;  %v4250_v21 = vmax.f32 %v4177_v47, 0.0  ;;  %5348 = vmatpush.bf16.msra.mxu2 %v7690_v55  ;;  %v4004_v47 = vadd.f32 %v9849_v59, %v9863_v40 }
 0x6bc   :  { %v4089_v25 = vpop.f32.mrf.mxu2 }
 0x6bd   :  { %v4090_v12 = vadd.f32 %v4089_v25, %v4001_v13  ;;  %v4178_v33 = vpop.f32.mrf.mxu3  ;;  %v4006_v25 = vadd.f32 %v9857_v14, %v9863_v40 }
 0x6be   :  { %v9997_v11 = vpop.f32.mrf.mxu0 }
 0x6bf   :  { %v4179_v51 = vadd.f32 %v4178_v33, %v4090_v12  ;;  %v8079_v12 = vld [vmem:[#allocation6 + $0x5e4] sm:$0xf]  ;;  %v10006_v13 = vpop.f32.mrf.mxu1 }
 0x6c0   :  { %v7754_v33 = vor.u32 %v8079_v12, %v7751_v15 }
 0x6c1   :  { %v4252_v54 = vmax.f32 %v4179_v51, 0.0  ;;  %4703 = vmatmul.bf16.vlgmr.msrb.gmra.mxu2 %v11162_v49  ;;  %v10012_v49 = vld [vmem:[#allocation7 + $0xc] sm:$0x3] }
 0x6c2   :  { %4792 = vmatmul.bf16.vlgmr.msrb.gmra.mxu3 %v9882_v52  ;;  %v10017_v55 = vperm.slane %v10012_v49, 0 }
 0x6c3   :  { %v10001_v36 = vpack.c.bf16 %v4252_v54, %v4250_v21  ;;  %5437 = vmatpush.bf16.msra.mxu3 %v7754_v33 }
 0x6c4   :  { %v4092_v35 = vpop.f32.mrf.mxu2  ;;  %v4527_v15 = vadd.f32 %v9855_v56, %v10017_v55 }
 0x6c5   :  { %v4181_v22 = vpop.f32.mrf.mxu3  ;;  %4649 = vmatmul.bf16.gmra.mxu1 %v10001_v36  ;;  %v4093_v53 = vadd.f32 %v4092_v35, %v4004_v47 }
 0x6c6   :  { %v10008_v52 = vpop.f32.mrf.mxu0 }
 0x6c7   :  { %11163 = vst [vmem:[#allocation20_spill] sm:$0xff] %v10008_v52  ;;  %v4182_v63 = vadd.f32 %v4181_v22, %v4093_v53  ;;  %v7717_v53 = vld [vmem:[#allocation6 + $0x5a0] sm:$0xf] }
 0x6c9   :  { %v4254_v31 = vmax.f32 %v4182_v63, 0.0 }
 0x6cc   :  { %v4094_v10 = vpop.f32.mrf.mxu2 }
 0x6cd   :  { %v4095_v51 = vadd.f32 %v4094_v10, %v4006_v25  ;;  %v4183_v21 = vpop.f32.mrf.mxu3  ;;  %v8072_v25 = vld [vmem:[#allocation6 + $0x5a4] sm:$0xf0] }
 0x6ce   :  { %v10021_v14 = vpop.f32.mrf.mxu0  ;;  %v7718_v63 = vor.u32 %v8072_v25, %v7717_v53  ;;  %v7743_v25 = vld [vmem:[#allocation6 + $0x5d8] sm:$0xf0] }
 0x6cf   :  { %v4184_v54 = vadd.f32 %v4183_v21, %v4095_v51  ;;  %11164 = vst [vmem:[#allocation21_spill] sm:$0xff] %v10021_v14  ;;  %v4011_v51 = vadd.f32 %v9880_v41, %v9863_v40 }
 0x6d0   :  { %5263 = vmatpush.bf16.msrb.mxu1 %v7718_v63 }
 0x6d1   :  { %v4256_v9 = vmax.f32 %v4184_v54, 0.0  ;;  %4708 = vmatmul.bf16.gmra.mxu2 %v9716_v34  ;;  %v4009_v34 = vadd.f32 %v9871_v30, %v9863_v40 }
 0x6d2   :  { %4797 = vmatmul.bf16.gmra.mxu3 %v9898_v8  ;;  %v4615_v59 = vpop.f32.mrf.mxu1  ;;  %v4529_v8 = vadd.f32 %v9867_v42, %v10017_v55 }
 0x6d3   :  { %v10019_v35 = vpack.c.bf16 %v4256_v9, %v4254_v31  ;;  %v4616_v33 = vadd.f32 %v4615_v59, %v4527_v15 }
 0x6d4   :  { %v4097_v22 = vpop.f32.mrf.mxu2 }
 0x6d5   :  { %v4186_v12 = vpop.f32.mrf.mxu3  ;;  %4654 = vmatmul.bf16.gmra.mxu1 %v10019_v35  ;;  %v4098_v47 = vadd.f32 %v4097_v22, %v4009_v34  ;;  %v4873_v31 = vmax.f32 %v4616_v33, 0.0  ;;  %v8061_v34 = vld [vmem:[#allocation6 + $0x554] sm:$0xf] }
 0x6d6   :  { %v10032_v52 = vpop.f32.mrf.mxu0 }
 0x6d7   :  { %v4187_v56 = vadd.f32 %v4186_v12, %v4098_v47 }
 0x6d9   :  { %v4258_v22 = vmax.f32 %v4187_v56, 0.0  ;;  %v4016_v56 = vadd.f32 %v9903_v45, %v9863_v40 }
 0x6da   :  { %v4617_v10 = vpop.f32.mrf.mxu1 }
 0x6db   :  { %v4618_v21 = vadd.f32 %v4617_v10, %v4529_v8  ;;  %v7679_v8 = vld [vmem:[#allocation6 + $0x558] sm:$0xf0] }
 0x6dc   :  { %v4099_v54 = vpop.f32.mrf.mxu2  ;;  %v7682_v33 = vor.u32 %v8061_v34, %v7679_v8 }
 0x6dd   :  { %v4875_v9 = vmax.f32 %v4618_v21, 0.0  ;;  %v4100_v14 = vadd.f32 %v4099_v54, %v4011_v51  ;;  %v4188_v30 = vpop.f32.mrf.mxu3  ;;  %v4534_v51 = vadd.f32 %v9885_v29, %v10017_v55 }
 0x6de   :  { %5349 = vmatpush.bf16.msra.mxu2 %v7682_v33  ;;  %v10046_v63 = vpop.f32.mrf.mxu0 }
 0x6df   :  { %v10034_v42 = vpack.c.bf16 %v4875_v9, %v4873_v31  ;;  %v4189_v59 = vadd.f32 %v4188_v30, %v4100_v14  ;;  %v8077_v14 = vld [vmem:[#allocation6 + $0x5d4] sm:$0xf] }
 0x6e0   :  { %v7746_v10 = vor.u32 %v8077_v14, %v7743_v25  ;;  %v4537_v25 = vadd.f32 %v9893_v1, %v10017_v55 }
 0x6e1   :  { %v4260_v15 = vmax.f32 %v4189_v59, 0.0  ;;  %4713 = vmatmul.bf16.gmra.mxu2 %v9724_v32  ;;  %5177 = vmatmul.bf16.vlgmr.msrb.gmra.mxu0 %v10034_v42  ;;  %v4532_v32 = vadd.f32 %v9875_v16, %v10017_v55 }
 0x6e2   :  { %4802 = vmatmul.bf16.gmra.mxu3 %v9916_v39  ;;  %v4620_v41 = vpop.f32.mrf.mxu1  ;;  %v4014_v39 = vadd.f32 %v9891_v4, %v9863_v40 }
 0x6e3   :  { %v10039_v12 = vpack.c.bf16 %v4260_v15, %v4258_v22  ;;  %5438 = vmatpush.bf16.msra.mxu3 %v7746_v10  ;;  %v4621_v21 = vadd.f32 %v4620_v41, %v4532_v32  ;;  %v4019_v10 = vadd.f32 %v9911_v38, %v9863_v40 }
 0x6e4   :  { %v4102_v47 = vpop.f32.mrf.mxu2 }
 0x6e5   :  { %v4191_v53 = vpop.f32.mrf.mxu3  ;;  %4659 = vmatmul.bf16.gmra.mxu1 %v10039_v12  ;;  %v4103_v54 = vadd.f32 %v4102_v47, %v4014_v39  ;;  %v4877_v59 = vmax.f32 %v4621_v21, 0.0 }
 0x6e6   :  { %v10056_v29 = vpop.f32.mrf.mxu0 }
 0x6e7   :  { %v4192_v22 = vadd.f32 %v4191_v53, %v4103_v54 }
 0x6e9   :  { %v4262_v33 = vmax.f32 %v4192_v22, 0.0 }
 0x6ea   :  { %v4622_v31 = vpop.f32.mrf.mxu1 }
 0x6eb   :  { %v4623_v9 = vadd.f32 %v4622_v31, %v4534_v51  ;;  %v7709_v51 = vld [vmem:[#allocation6 + $0x590] sm:$0xf]  ;;  %v4021_v31 = vadd.f32 %v9923_v6, %v9863_v40 }
 0x6ec   :  { %v4104_v30 = vpop.f32.mrf.mxu2 }
 0x6ed   :  { %v4879_v16 = vmax.f32 %v4623_v9, 0.0  ;;  %v4105_v15 = vadd.f32 %v4104_v30, %v4016_v56  ;;  %v4193_v34 = vpop.f32.mrf.mxu3 }
 0x6ee   :  { %v10070_v9 = vpop.f32.mrf.mxu0 }
 0x6ef   :  { %v4194_v4 = vadd.f32 %v4193_v34, %v4105_v15  ;;  %v10052_v8 = vpack.c.bf16 %v4879_v16, %v4877_v59 }
 0x6f1   :  { %v4264_v14 = vmax.f32 %v4194_v4, 0.0  ;;  %4718 = vmatmul.bf16.gmra.mxu2 %v9732_v28  ;;  %5182 = vmatmul.bf16.gmra.mxu0 %v10052_v8  ;;  %v4539_v28 = vadd.f32 %v9901_v26, %v10017_v55 }
 0x6f2   :  { %4807 = vmatmul.bf16.gmra.mxu3 %v9932_v62  ;;  %v4625_v45 = vpop.f32.mrf.mxu1  ;;  %v8070_v62 = vld [vmem:[#allocation6 + $0x594] sm:$0xf0] }
 0x6f3   :  { %v10059_v41 = vpack.c.bf16 %v4264_v14, %v4262_v33  ;;  %v4626_v32 = vadd.f32 %v4625_v45, %v4537_v25  ;;  %v7710_v54 = vor.u32 %v8070_v62, %v7709_v51  ;;  %v8059_v33 = vld [vmem:[#allocation6 + $0x544] sm:$0xf]  ;;  %v7671_v14 = vld [vmem:[#allocation6 + $0x548] sm:$0xf0]  ;;  %v4544_v51 = vadd.f32 %v9919_v44, %v10017_v55 }
 0x6f4   :  { %v4107_v47 = vpop.f32.mrf.mxu2 }
 0x6f5   :  { %v4196_v53 = vpop.f32.mrf.mxu3  ;;  %4664 = vmatmul.bf16.gmra.mxu1 %v10059_v41  ;;  %v4108_v39 = vadd.f32 %v4107_v47, %v4019_v10  ;;  %v4881_v1 = vmax.f32 %v4626_v32, 0.0  ;;  %v7674_v47 = vor.u32 %v8059_v33, %v7671_v14  ;;  %v8075_v10 = vld [vmem:[#allocation6 + $0x5c4] sm:$0xf]  ;;  %v4547_v14 = vadd.f32 %v9927_v27, %v10017_v55 }
 0x6f6   :  { %5264 = vmatpush.bf16.msrb.mxu1 %v7710_v54  ;;  %v10080_v32 = vpop.f32.mrf.mxu0 }
 0x6f7   :  { %v4197_v59 = vadd.f32 %v4196_v53, %v4108_v39  ;;  %5350 = vmatpush.bf16.msra.mxu2 %v7674_v47  ;;  %v4542_v39 = vadd.f32 %v9909_v61, %v10017_v55  ;;  %v4029_v47 = vadd.f32 %v9957_v23, %v9863_v40 }
 0x6f9   :  { %v4266_v34 = vmax.f32 %v4197_v59, 0.0 }
 0x6fa   :  { %v4627_v21 = vpop.f32.mrf.mxu1 }
 0x6fb   :  { %v4628_v56 = vadd.f32 %v4627_v21, %v4539_v28  ;;  %v7735_v28 = vld [vmem:[#allocation6 + $0x5c8] sm:$0xf0] }
 0x6fc   :  { %v4109_v30 = vpop.f32.mrf.mxu2 }
 0x6fd   :  { %v4883_v38 = vmax.f32 %v4628_v56, 0.0  ;;  %v4110_v22 = vadd.f32 %v4109_v30, %v4021_v31  ;;  %v4198_v16 = vpop.f32.mrf.mxu3  ;;  %v4026_v31 = vadd.f32 %v9945_v58, %v9863_v40 }
 0x6ff   :  { %v4199_v26 = vadd.f32 %v4198_v16, %v4110_v22  ;;  %v10072_v15 = vpack.c.bf16 %v4883_v38, %v4881_v1 }
 0x701   :  { %v4268_v4 = vmax.f32 %v4199_v26, 0.0  ;;  %4723 = vmatmul.bf16.gmra.mxu2 %v9740_v50  ;;  %5187 = vmatmul.bf16.gmra.mxu0 %v10072_v15  ;;  %v7738_v50 = vor.u32 %v8075_v10, %v7735_v28  ;;  %v7701_v10 = vld [vmem:[#allocation6 + $0x580] sm:$0xf] }
 0x702   :  { %4812 = vmatmul.bf16.gmra.mxu3 %v9950_v17  ;;  %v4630_v6 = vpop.f32.mrf.mxu1  ;;  %v4024_v17 = vadd.f32 %v9934_v60, %v9863_v40  ;;  %v10092_v60 = vpop.f32.mrf.mxu0 }
 0x703   :  { %v10077_v45 = vpack.c.bf16 %v4268_v4, %v4266_v34  ;;  %5439 = vmatpush.bf16.msra.mxu3 %v7738_v50  ;;  %v4631_v62 = vadd.f32 %v4630_v6, %v4542_v39 }
 0x704   :  { %v4112_v53 = vpop.f32.mrf.mxu2 }
 0x705   :  { %v4201_v25 = vpop.f32.mrf.mxu3  ;;  %4669 = vmatmul.bf16.gmra.mxu1 %v10077_v45  ;;  %v4113_v21 = vadd.f32 %v4112_v53, %v4024_v17  ;;  %v4885_v1 = vmax.f32 %v4631_v62, 0.0  ;;  %v4031_v17 = vadd.f32 %v9966_v5, %v9863_v40 }
 0x707   :  { %v4202_v59 = vadd.f32 %v4201_v25, %v4113_v21 }
 0x709   :  { %v4270_v34 = vmax.f32 %v4202_v59, 0.0  ;;  %v8057_v59 = vld [vmem:[#allocation6 + $0x534] sm:$0xf] }
 0x70a   :  { %v4632_v54 = vpop.f32.mrf.mxu1  ;;  %v10106_v28 = vpop.f32.mrf.mxu0 }
 0x70b   :  { %v4633_v56 = vadd.f32 %v4632_v54, %v4544_v51 }
 0x70c   :  { %v4114_v30 = vpop.f32.mrf.mxu2 }
 0x70d   :  { %v4887_v38 = vmax.f32 %v4633_v56, 0.0  ;;  %v4115_v22 = vadd.f32 %v4114_v30, %v4026_v31  ;;  %v4203_v61 = vpop.f32.mrf.mxu3 }
 0x70f   :  { %v4204_v16 = vadd.f32 %v4203_v61, %v4115_v22  ;;  %v10090_v26 = vpack.c.bf16 %v4887_v38, %v4885_v1  ;;  %v7663_v38 = vld [vmem:[#allocation6 + $0x538] sm:$0xf0] }
 0x710   :  { %v7666_v61 = vor.u32 %v8057_v59, %v7663_v38 }
 0x711   :  { %v4272_v44 = vmax.f32 %v4204_v16, 0.0  ;;  %4728 = vmatmul.bf16.gmra.mxu2 %v9748_v20  ;;  %5192 = vmatmul.bf16.gmra.mxu0 %v10090_v26  ;;  %v4549_v20 = vadd.f32 %v9937_v57, %v10017_v55 }
 0x712   :  { %4817 = vmatmul.bf16.gmra.mxu3 %v9968_v43  ;;  %v4635_v58 = vpop.f32.mrf.mxu1  ;;  %v8068_v43 = vld [vmem:[#allocation6 + $0x584] sm:$0xf0]  ;;  %v10117_v16 = vpop.f32.mrf.mxu0  ;;  %5351 = vmatpush.bf16.msra.mxu2 %v7666_v61 }
 0x713   :  { %v10097_v4 = vpack.c.bf16 %v4272_v44, %v4270_v34  ;;  %v4636_v53 = vadd.f32 %v4635_v58, %v4547_v14  ;;  %v7702_v39 = vor.u32 %v8068_v43, %v7701_v10  ;;  %v8073_v58 = vld [vmem:[#allocation6 + $0x5b4] sm:$0xf]  ;;  %v4554_v14 = vadd.f32 %v9953_v2, %v10017_v55 }
 0x714   :  { %v4117_v6 = vpop.f32.mrf.mxu2 }
 0x715   :  { %v4206_v33 = vpop.f32.mrf.mxu3  ;;  %4674 = vmatmul.bf16.gmra.mxu1 %v10097_v4  ;;  %v4118_v25 = vadd.f32 %v4117_v6, %v4029_v47  ;;  %v4889_v27 = vmax.f32 %v4636_v53, 0.0  ;;  %v7727_v6 = vld [vmem:[#allocation6 + $0x5b8] sm:$0xf0] }
 0x716   :  { %5265 = vmatpush.bf16.msrb.mxu1 %v7702_v39 }
 0x717   :  { %v4207_v21 = vadd.f32 %v4206_v33, %v4118_v25  ;;  %v4552_v33 = vadd.f32 %v9943_v18, %v10017_v55  ;;  %v4036_v25 = vadd.f32 %v9987_v7, %v9863_v40 }
 0x719   :  { %v4274_v30 = vmax.f32 %v4207_v21, 0.0 }
 0x71a   :  { %v4637_v50 = vpop.f32.mrf.mxu1 }
 0x71b   :  { %v4638_v51 = vadd.f32 %v4637_v50, %v4549_v20 }
 0x71c   :  { %v4119_v62 = vpop.f32.mrf.mxu2 }
 0x71d   :  { %v4891_v23 = vmax.f32 %v4638_v51, 0.0  ;;  %v4120_v54 = vadd.f32 %v4119_v62, %v4031_v17  ;;  %v4208_v31 = vpop.f32.mrf.mxu3  ;;  %v10128_v62 = vpop.f32.mrf.mxu0 }
 0x71f   :  { %v4209_v57 = vadd.f32 %v4208_v31, %v4120_v54  ;;  %v10110_v56 = vpack.c.bf16 %v4891_v23, %v4889_v27  ;;  %v11165_v23 = vld [vmem:[#allocation12_spill] sm:$0xff] }
 0x721   :  { %v4276_v1 = vmax.f32 %v4209_v57, 0.0  ;;  %4733 = vmatmul.bf16.gmra.mxu2 %v9760_v48  ;;  %5197 = vmatmul.bf16.gmra.mxu0 %v10110_v56  ;;  %v7730_v48 = vor.u32 %v8073_v58, %v7727_v6  ;;  %v4041_v58 = vadd.f32 %v10006_v13, %v9863_v40  ;;  %v8055_v13 = vld [vmem:[#allocation6 + $0x524] sm:$0xf] }
 0x722   :  { %4822 = vmatmul.bf16.gmra.mxu3 %v9984_v37  ;;  %v4640_v5 = vpop.f32.mrf.mxu1  ;;  %v4034_v37 = vadd.f32 %v9977_v24, %v9863_v40 }
 0x723   :  { %v10115_v22 = vpack.c.bf16 %v4276_v1, %v4274_v30  ;;  %5440 = vmatpush.bf16.msra.mxu3 %v7730_v48  ;;  %v4641_v47 = vadd.f32 %v4640_v5, %v4552_v33  ;;  %v8090_v30 = vld [vmem:[%s11107_s5 + $0x38] sm:$0xff]  ;;  %v4557_v1 = vadd.f32 %v9961_v46, %v10017_v55  ;;  %v4039_v5 = vadd.f32 %v9995_v3, %v9863_v40 }
 0x724   :  { %v4122_v34 = vpop.f32.mrf.mxu2  ;;  %5753 = vmatpush.bf16.msra.mxu0 %v8090_v30 }
 0x725   :  { %v4211_v44 = vpop.f32.mrf.mxu3  ;;  %4679 = vmatmul.bf16.gmra.mxu1 %v10115_v22  ;;  %v4123_v20 = vadd.f32 %v4122_v34, %v4034_v37  ;;  %v4893_v50 = vmax.f32 %v4641_v47, 0.0  ;;  %v10145_v59 = vpop.f32.mrf.mxu0  ;;  %v8098_v34 = vld [vmem:[%s11107_s5 + $0x78] sm:$0xff] }
 0x726   :  { %5842 = vmatpush.bf16.msra.mxu1 %v8098_v34 }
 0x727   :  { %v4212_v39 = vadd.f32 %v4211_v44, %v4123_v20 }
 0x729   :  { %v4278_v21 = vmax.f32 %v4212_v39, 0.0 }
 0x72a   :  { %v4642_v53 = vpop.f32.mrf.mxu1 }
 0x72b   :  { %v4643_v10 = vadd.f32 %v4642_v53, %v4554_v14 }
 0x72c   :  { %v4124_v43 = vpop.f32.mrf.mxu2 }
 0x72d   :  { %v4895_v17 = vmax.f32 %v4643_v10, 0.0  ;;  %v4125_v51 = vadd.f32 %v4124_v43, %v4036_v25  ;;  %v4213_v18 = vpop.f32.mrf.mxu3  ;;  %v10158_v25 = vpop.f32.mrf.mxu0  ;;  %v7655_v10 = vld [vmem:[#allocation6 + $0x528] sm:$0xf0] }
 0x72f   :  { %v4214_v24 = vadd.f32 %v4213_v18, %v4125_v51  ;;  %v10130_v27 = vpack.c.bf16 %v4895_v17, %v4893_v50  ;;  %v7658_v50 = vor.u32 %v8055_v13, %v7655_v10  ;;  %v10164_v17 = vperm.slane %v10012_v49, 1  ;;  %v7719_v18 = vld [vmem:[#allocation6 + $0x5a8] sm:$0xf0] }
 0x731   :  { %v4280_v2 = vmax.f32 %v4214_v24, 0.0  ;;  %4738 = vmatmul.bf16.gmra.mxu2 %v11165_v23  ;;  %5202 = vmatmul.bf16.gmra.mxu0 %v10130_v27 }
 0x732   :  { %4827 = vmatmul.bf16.gmra.mxu3 %v10001_v36  ;;  %v4645_v7 = vpop.f32.mrf.mxu1  ;;  %v4559_v36 = vadd.f32 %v9971_v0, %v10017_v55  ;;  %5352 = vmatpush.bf16.msra.mxu2 %v7658_v50  ;;  %v8097_v50 = vld [vmem:[%s11107_s5 + $0x70] sm:$0xff] }
 0x733   :  { %v10135_v54 = vpack.c.bf16 %v4280_v2, %v4278_v21  ;;  %v4646_v38 = vadd.f32 %v4645_v7, %v4557_v1  ;;  %v11166_v21 = vld [vmem:[#allocation18_spill] sm:$0xff]  ;;  %v11167_v2 = vld [vmem:[#allocation19_spill] sm:$0xff]  ;;  %5843 = vmatpush.bf16.msra.mxu1 %v8097_v50 }
 0x734   :  { %v4127_v31 = vpop.f32.mrf.mxu2  ;;  %v4564_v23 = vadd.f32 %v11167_v2, %v10017_v55 }
 0x735   :  { %v4216_v57 = vpop.f32.mrf.mxu3  ;;  %4684 = vmatmul.bf16.gmra.mxu1 %v10135_v54  ;;  %v4128_v61 = vadd.f32 %v4127_v31, %v4039_v5  ;;  %v4897_v3 = vmax.f32 %v4646_v38, 0.0  ;;  %v10172_v30 = vpop.f32.mrf.mxu0 }
 0x737   :  { %v4217_v48 = vadd.f32 %v4216_v57, %v4128_v61 }
 0x739   :  { %v4282_v20 = vmax.f32 %v4217_v48, 0.0 }
 0x73a   :  { %v4647_v44 = vpop.f32.mrf.mxu1 }
 0x73b   :  { %v4648_v46 = vadd.f32 %v4647_v44, %v4559_v36 }
 0x73c   :  { %v4129_v6 = vpop.f32.mrf.mxu2 }
 0x73d   :  { %v4899_v33 = vmax.f32 %v4648_v46, 0.0  ;;  %v4130_v37 = vadd.f32 %v4129_v6, %v4041_v58  ;;  %v4218_v14 = vpop.f32.mrf.mxu3 }
 0x73f   :  { %v4219_v47 = vadd.f32 %v4218_v14, %v4130_v37  ;;  %v10154_v0 = vpack.c.bf16 %v4899_v33, %v4897_v3  ;;  %v11168_v3 = vld [vmem:[#allocation13_spill] sm:$0xff] }
 0x741   :  { %v4284_v53 = vmax.f32 %v4219_v47, 0.0  ;;  %4743 = vmatmul.bf16.gmra.mxu2 %v9784_v19  ;;  %5207 = vmatmul.bf16.gmra.mxu0 %v10154_v0  ;;  %v8071_v19 = vld [vmem:[#allocation6 + $0x5a4] sm:$0xf]  ;;  %v8089_v47 = vld [vmem:[%s11107_s5 + $0x30] sm:$0xff] }
 0x742   :  { %4832 = vmatmul.bf16.gmra.mxu3 %v10019_v35  ;;  %v4650_v40 = vpop.f32.mrf.mxu1  ;;  %v7722_v24 = vor.u32 %v8071_v19, %v7719_v18  ;;  %v4562_v35 = vadd.f32 %v11166_v21, %v10017_v55  ;;  %5754 = vmatpush.bf16.msra.mxu0 %v8089_v47 }
 0x743   :  { %v10161_v43 = vpack.c.bf16 %v4284_v53, %v4282_v20  ;;  %v10186_v20 = vpop.f32.mrf.mxu0  ;;  %v4567_v53 = vadd.f32 %v9997_v11, %v10017_v55 }
 0x744   :  { %v4704_v39 = vpop.f32.mrf.mxu2  ;;  %5441 = vmatpush.bf16.msra.mxu3 %v7722_v24  ;;  %v4651_v7 = vadd.f32 %v4650_v40, %v4562_v35  ;;  %v11169_v40 = vld [vmem:[#allocation20_spill] sm:$0xff] }
 0x745   :  { %v4793_v51 = vpop.f32.mrf.mxu3  ;;  %4689 = vmatmul.bf16.gmra.mxu1 %v10161_v43  ;;  %v4705_v31 = vadd.f32 %v4704_v39, %v10164_v17 }
 0x746   :  { %v4901_v5 = vmax.f32 %v4651_v7, 0.0 }
 0x747   :  { %v4794_v36 = vadd.f32 %v4793_v51, %v4705_v31 }
 0x749   :  { %v4874_v46 = vmax.f32 %v4794_v36, 0.0  ;;  %v7647_v36 = vld [vmem:[#allocation6 + $0x518] sm:$0xf0] }
 0x74a   :  { %v4652_v57 = vpop.f32.mrf.mxu1 }
 0x74b   :  { %v4653_v49 = vadd.f32 %v4652_v57, %v4564_v23 }
 0x74c   :  { %v4706_v1 = vpop.f32.mrf.mxu2 }
 0x74d   :  { %v4903_v38 = vmax.f32 %v4653_v49, 0.0  ;;  %v4707_v61 = vadd.f32 %v4706_v1, %v10164_v17  ;;  %v4795_v34 = vpop.f32.mrf.mxu3  ;;  %v11170_v49 = vld [vmem:[#allocation14_spill] sm:$0xff] }
 0x74f   :  { %v4796_v44 = vadd.f32 %v4795_v34, %v4707_v61  ;;  %v10175_v58 = vpack.c.bf16 %v4903_v38, %v4901_v5  ;;  %v8053_v5 = vld [vmem:[#allocation6 + $0x514] sm:$0xf] }
 0x750   :  { %v7650_v61 = vor.u32 %v8053_v5, %v7647_v36  ;;  %v4577_v36 = vadd.f32 %v10046_v63, %v10017_v55 }
 0x751   :  { %v4876_v6 = vmax.f32 %v4796_v44, 0.0  ;;  %4748 = vmatmul.bf16.gmra.mxu2 %v11168_v3  ;;  %5212 = vmatmul.bf16.gmra.mxu0 %v10175_v58 }
 0x752   :  { %4837 = vmatmul.bf16.gmra.mxu3 %v10039_v12  ;;  %v4655_v48 = vpop.f32.mrf.mxu1  ;;  %v4569_v12 = vadd.f32 %v11169_v40, %v10017_v55  ;;  %5353 = vmatpush.bf16.msra.mxu2 %v7650_v61 }
 0x753   :  { %v10180_v33 = vpack.c.bf16 %v4876_v6, %v4874_v46  ;;  %v4656_v13 = vadd.f32 %v4655_v48, %v4567_v53  ;;  %v8069_v46 = vld [vmem:[#allocation6 + $0x594] sm:$0xf]  ;;  %v7711_v6 = vld [vmem:[#allocation6 + $0x598] sm:$0xf0] }
 0x754   :  { %v4709_v37 = vpop.f32.mrf.mxu2  ;;  %v7714_v48 = vor.u32 %v8069_v46, %v7711_v6 }
 0x755   :  { %v4798_v14 = vpop.f32.mrf.mxu3  ;;  %5266 = vmatmul.bf16.vlgmr.msrb.gmra.mxu1 %v10180_v33  ;;  %v4710_v10 = vadd.f32 %v4709_v37, %v10164_v17  ;;  %v4905_v18 = vmax.f32 %v4656_v13, 0.0  ;;  %v11171_v37 = vld [vmem:[#allocation21_spill] sm:$0xff] }
 0x756   :  { %5442 = vmatpush.bf16.msra.mxu3 %v7714_v48 }
 0x757   :  { %v4799_v24 = vadd.f32 %v4798_v14, %v4710_v10  ;;  %v4572_v14 = vadd.f32 %v11171_v37, %v10017_v55 }
 0x759   :  { %v4878_v31 = vmax.f32 %v4799_v24, 0.0 }
 0x75a   :  { %v4657_v39 = vpop.f32.mrf.mxu1 }
 0x75b   :  { %v4658_v51 = vadd.f32 %v4657_v39, %v4569_v12 }
 0x75c   :  { %v4711_v19 = vpop.f32.mrf.mxu2 }
 0x75d   :  { %v4907_v21 = vmax.f32 %v4658_v51, 0.0  ;;  %v4712_v11 = vadd.f32 %v4711_v19, %v10164_v17  ;;  %v4800_v35 = vpop.f32.mrf.mxu3 }
 0x75e   :  { %v10197_v2 = vpop.f32.mrf.mxu0 }
 0x75f   :  { %v4801_v23 = vadd.f32 %v4800_v35, %v4712_v11  ;;  %v10199_v7 = vpack.c.bf16 %v4907_v21, %v4905_v18 }
 0x761   :  { %v4880_v57 = vmax.f32 %v4801_v23, 0.0  ;;  %4753 = vmatmul.bf16.gmra.mxu2 %v11170_v49  ;;  %5217 = vmatmul.bf16.gmra.mxu0 %v10199_v7 }
 0x762   :  { %4842 = vmatmul.bf16.gmra.mxu3 %v10059_v41  ;;  %v4660_v1 = vpop.f32.mrf.mxu1  ;;  %v4574_v41 = vadd.f32 %v10032_v52, %v10017_v55  ;;  %v11172_v52 = vld [vmem:[#allocation15_spill] sm:$0xff] }
 0x763   :  { %v10204_v38 = vpack.c.bf16 %v4880_v57, %v4878_v31  ;;  %v4661_v47 = vadd.f32 %v4660_v1, %v4572_v14  ;;  %v8088_v1 = vld [vmem:[%s11107_s5 + $0x28] sm:$0xff] }
 0x764   :  { %v4714_v34 = vpop.f32.mrf.mxu2  ;;  %5755 = vmatpush.bf16.msra.mxu0 %v8088_v1  ;;  %v4582_v1 = vadd.f32 %v10070_v9, %v10017_v55 }
 0x765   :  { %v4803_v44 = vpop.f32.mrf.mxu3  ;;  %5271 = vmatmul.bf16.gmra.mxu1 %v10204_v38  ;;  %v4715_v53 = vadd.f32 %v4714_v34, %v10164_v17  ;;  %v4909_v10 = vmax.f32 %v4661_v47, 0.0 }
 0x766   :  { %v10207_v3 = vpop.f32.mrf.mxu0 }
 0x767   :  { %v4804_v50 = vadd.f32 %v4803_v44, %v4715_v53  ;;  %v8096_v44 = vld [vmem:[%s11107_s5 + $0x68] sm:$0xff] }
 0x768   :  { %5844 = vmatpush.bf16.msra.mxu1 %v8096_v44 }
 0x769   :  { %v4882_v11 = vmax.f32 %v4804_v50, 0.0 }
 0x76a   :  { %v4662_v40 = vpop.f32.mrf.mxu1 }
 0x76b   :  { %v4663_v12 = vadd.f32 %v4662_v40, %v4574_v41 }
 0x76c   :  { %v4716_v13 = vpop.f32.mrf.mxu2 }
 0x76d   :  { %v4911_v39 = vmax.f32 %v4663_v12, 0.0  ;;  %v4717_v51 = vadd.f32 %v4716_v13, %v10164_v17  ;;  %v4805_v19 = vpop.f32.mrf.mxu3 }
 0x76e   :  { %v10215_v18 = vpop.f32.mrf.mxu0 }
 0x76f   :  { %v4806_v24 = vadd.f32 %v4805_v19, %v4717_v51  ;;  %v10217_v21 = vpack.c.bf16 %v4911_v39, %v4909_v10  ;;  %v11173_v10 = vld [vmem:[#allocation16_spill] sm:$0xff]  ;;  %v8051_v39 = vld [vmem:[#allocation6 + $0x504] sm:$0xf]  ;;  %v7639_v51 = vld [vmem:[#allocation6 + $0x508] sm:$0xf0] }
 0x771   :  { %v4884_v35 = vmax.f32 %v4806_v24, 0.0  ;;  %4758 = vmatmul.bf16.gmra.mxu2 %v11172_v52  ;;  %5222 = vmatmul.bf16.gmra.mxu0 %v10217_v21  ;;  %v7642_v24 = vor.u32 %v8051_v39, %v7639_v51  ;;  %v8067_v52 = vld [vmem:[#allocation6 + $0x584] sm:$0xf] }
 0x772   :  { %4847 = vmatmul.bf16.gmra.mxu3 %v10077_v45  ;;  %v4665_v23 = vpop.f32.mrf.mxu1  ;;  %v4579_v45 = vadd.f32 %v10056_v29, %v10017_v55  ;;  %v8087_v39 = vld [vmem:[%s11107_s5 + $0x20] sm:$0xff] }
 0x773   :  { %v10222_v31 = vpack.c.bf16 %v4884_v35, %v4882_v11  ;;  %v4666_v61 = vadd.f32 %v4665_v23, %v4577_v36  ;;  %5354 = vmatpush.bf16.msra.mxu2 %v7642_v24  ;;  %v7703_v23 = vld [vmem:[#allocation6 + $0x588] sm:$0xf0]  ;;  %v4587_v24 = vadd.f32 %v10092_v60, %v10017_v55  ;;  %5756 = vmatpush.bf16.msra.mxu0 %v8087_v39 }
 0x774   :  { %v4719_v57 = vpop.f32.mrf.mxu2 }
 0x775   :  { %v4808_v49 = vpop.f32.mrf.mxu3  ;;  %5276 = vmatmul.bf16.gmra.mxu1 %v10222_v31  ;;  %v4720_v34 = vadd.f32 %v4719_v57, %v10164_v17  ;;  %v4913_v37 = vmax.f32 %v4666_v61, 0.0 }
 0x776   :  { %v10228_v5 = vpop.f32.mrf.mxu0 }
 0x777   :  { %v4809_v14 = vadd.f32 %v4808_v49, %v4720_v34  ;;  %v7706_v49 = vor.u32 %v8067_v52, %v7703_v23  ;;  %v8095_v52 = vld [vmem:[%s11107_s5 + $0x60] sm:$0xff] }
 0x778   :  { %5845 = vmatpush.bf16.msra.mxu1 %v8095_v52 }
 0x779   :  { %v4886_v12 = vmax.f32 %v4809_v14, 0.0  ;;  %5443 = vmatpush.bf16.msra.mxu3 %v7706_v49 }
 0x77a   :  { %v4667_v46 = vpop.f32.mrf.mxu1 }
 0x77b   :  { %v4668_v6 = vadd.f32 %v4667_v46, %v4579_v45 }
 0x77c   :  { %v4721_v48 = vpop.f32.mrf.mxu2 }
 0x77d   :  { %v4915_v41 = vmax.f32 %v4668_v6, 0.0  ;;  %v4722_v63 = vadd.f32 %v4721_v48, %v10164_v17  ;;  %v4810_v47 = vpop.f32.mrf.mxu3 }
 0x77e   :  { %v10239_v53 = vpop.f32.mrf.mxu0 }
 0x77f   :  { %v4811_v29 = vadd.f32 %v4810_v47, %v4722_v63  ;;  %v10241_v40 = vpack.c.bf16 %v4915_v41, %v4913_v37 }
 0x781   :  { %v4888_v13 = vmax.f32 %v4811_v29, 0.0  ;;  %4763 = vmatmul.bf16.gmra.mxu2 %v11173_v10  ;;  %5227 = vmatmul.bf16.gmra.mxu0 %v10241_v40 }
 0x782   :  { %4852 = vmatmul.bf16.gmra.mxu3 %v10097_v4  ;;  %v4670_v50 = vpop.f32.mrf.mxu1  ;;  %v4584_v4 = vadd.f32 %v10080_v32, %v10017_v55  ;;  %v11174_v32 = vld [vmem:[#allocation22_spill] sm:$0xff] }
 0x783   :  { %v10246_v19 = vpack.c.bf16 %v4888_v13, %v4886_v12  ;;  %v4671_v36 = vadd.f32 %v4670_v50, %v4582_v1 }
 0x784   :  { %v4724_v11 = vpop.f32.mrf.mxu2 }
 0x785   :  { %v4813_v35 = vpop.f32.mrf.mxu3  ;;  %5281 = vmatmul.bf16.gmra.mxu1 %v10246_v19  ;;  %v4725_v45 = vadd.f32 %v4724_v11, %v10164_v17  ;;  %v4917_v46 = vmax.f32 %v4671_v36, 0.0 }
 0x786   :  { %v10249_v57 = vpop.f32.mrf.mxu0 }
 0x787   :  { %v4814_v6 = vadd.f32 %v4813_v35, %v4725_v45 }
 0x789   :  { %v4890_v47 = vmax.f32 %v4814_v6, 0.0 }
 0x78a   :  { %v4672_v61 = vpop.f32.mrf.mxu1 }
 0x78b   :  { %v4673_v34 = vadd.f32 %v4672_v61, %v4584_v4 }
 0x78c   :  { %v4726_v44 = vpop.f32.mrf.mxu2 }
 0x78d   :  { %v4919_v48 = vmax.f32 %v4673_v34, 0.0  ;;  %v4727_v37 = vadd.f32 %v4726_v44, %v10164_v17  ;;  %v4815_v14 = vpop.f32.mrf.mxu3 }
 0x78e   :  { %v10257_v41 = vpop.f32.mrf.mxu0 }
 0x78f   :  { %v4816_v63 = vadd.f32 %v4815_v14, %v4727_v37  ;;  %v10259_v9 = vpack.c.bf16 %v4919_v48, %v4917_v46  ;;  %v11175_v48 = vld [vmem:[#allocation17_spill] sm:$0xff] }
 0x791   :  { %v4892_v29 = vmax.f32 %v4816_v63, 0.0  ;;  %4768 = vmatmul.bf16.gmra.mxu2 %v11174_v32  ;;  %5232 = vmatmul.bf16.gmra.mxu0 %v10259_v9  ;;  %v4592_v32 = vadd.f32 %v10117_v16, %v10017_v55 }
 0x792   :  { %4857 = vmatmul.bf16.gmra.mxu3 %v10115_v22  ;;  %v4675_v12 = vpop.f32.mrf.mxu1  ;;  %v4589_v22 = vadd.f32 %v10106_v28, %v10017_v55 }
 0x793   :  { %v10264_v13 = vpack.c.bf16 %v4892_v29, %v4890_v47  ;;  %v4676_v11 = vadd.f32 %v4675_v12, %v4587_v24  ;;  %v4594_v12 = vadd.f32 %v10128_v62, %v10017_v55  ;;  %v11176_v62 = vld [vmem:[#allocation23_spill] sm:$0xff] }
 0x794   :  { %v4729_v10 = vpop.f32.mrf.mxu2 }
 0x795   :  { %v4818_v50 = vpop.f32.mrf.mxu3  ;;  %5286 = vmatmul.bf16.gmra.mxu1 %v10264_v13  ;;  %v4730_v35 = vadd.f32 %v4729_v10, %v10164_v17  ;;  %v4921_v4 = vmax.f32 %v4676_v11, 0.0 }
 0x796   :  { %v10270_v51 = vpop.f32.mrf.mxu0 }
 0x797   :  { %v4819_v36 = vadd.f32 %v4818_v50, %v4730_v35 }
 0x799   :  { %v4894_v46 = vmax.f32 %v4819_v36, 0.0 }
 0x79a   :  { %v4677_v23 = vpop.f32.mrf.mxu1 }
 0x79b   :  { %v4678_v49 = vadd.f32 %v4677_v23, %v4589_v22 }
 0x79c   :  { %v4731_v1 = vpop.f32.mrf.mxu2 }
 0x79d   :  { %v4923_v45 = vmax.f32 %v4678_v49, 0.0  ;;  %v4732_v60 = vadd.f32 %v4731_v1, %v10164_v17  ;;  %v4820_v61 = vpop.f32.mrf.mxu3 }
 0x79e   :  { %v10281_v34 = vpop.f32.mrf.mxu0 }
 0x79f   :  { %v4821_v28 = vadd.f32 %v4820_v61, %v4732_v60  ;;  %v10283_v44 = vpack.c.bf16 %v4923_v45, %v4921_v4  ;;  %v8086_v45 = vld [vmem:[%s11107_s5 + $0x18] sm:$0xff] }
 0x7a0   :  { %5757 = vmatpush.bf16.msra.mxu0 %v8086_v45 }
 0x7a1   :  { %v4896_v6 = vmax.f32 %v4821_v28, 0.0  ;;  %4773 = vmatmul.bf16.gmra.mxu2 %v11175_v48  ;;  %5237 = vmatmul.bf16.gmra.mxu0 %v10283_v44  ;;  %v4597_v48 = vadd.f32 %v10145_v59, %v10017_v55 }
 0x7a2   :  { %4862 = vmatmul.bf16.gmra.mxu3 %v10135_v54  ;;  %v4680_v37 = vpop.f32.mrf.mxu1 }
 0x7a3   :  { %v10288_v14 = vpack.c.bf16 %v4896_v6, %v4894_v46  ;;  %v4681_v10 = vadd.f32 %v4680_v37, %v4592_v32  ;;  %v8085_v6 = vld [vmem:[%s11107_s5 + $0x10] sm:$0xff]  ;;  %v4599_v37 = vadd.f32 %v10158_v25, %v10017_v55  ;;  %v8094_v32 = vld [vmem:[%s11107_s5 + $0x58] sm:$0xff] }
 0x7a4   :  { %v4734_v63 = vpop.f32.mrf.mxu2  ;;  %5758 = vmatpush.bf16.msra.mxu0 %v8085_v6  ;;  %5846 = vmatpush.bf16.msra.mxu1 %v8094_v32 }
 0x7a5   :  { %v4823_v47 = vpop.f32.mrf.mxu3  ;;  %5291 = vmatmul.bf16.gmra.mxu1 %v10288_v14  ;;  %v4735_v50 = vadd.f32 %v4734_v63, %v10164_v17  ;;  %v4925_v22 = vmax.f32 %v4681_v10, 0.0 }
 0x7a6   :  { %v10291_v29 = vpop.f32.mrf.mxu0 }
 0x7a7   :  { %v4824_v11 = vadd.f32 %v4823_v47, %v4735_v50 }
 0x7a9   :  { %v4898_v16 = vmax.f32 %v4824_v11, 0.0  ;;  %v8083_v11 = vld [vmem:[%s11107_s5] sm:$0xff] }
 0x7aa   :  { %v4682_v39 = vpop.f32.mrf.mxu1 }
 0x7ab   :  { %v4683_v54 = vadd.f32 %v4682_v39, %v4594_v12  ;;  %v8084_v12 = vld [vmem:[%s11107_s5 + $0x8] sm:$0xff] }
 0x7ac   :  { %v4736_v24 = vpop.f32.mrf.mxu2  ;;  %5759 = vmatpush.bf16.msra.mxu0 %v8084_v12 }
 0x7ad   :  { %v4927_v35 = vmax.f32 %v4683_v54, 0.0  ;;  %v4737_v52 = vadd.f32 %v4736_v24, %v10164_v17  ;;  %v4825_v23 = vpop.f32.mrf.mxu3 }
 0x7ae   :  { %v10299_v1 = vpop.f32.mrf.mxu0 }
 0x7af   :  { %v4826_v49 = vadd.f32 %v4825_v23, %v4737_v52  ;;  %v10301_v4 = vpack.c.bf16 %v4927_v35, %v4925_v22 }
 0x7b0   :  { %5760 = vmatpush.bf16.msra.mxu0 %v8083_v11 }
 0x7b1   :  { %v4900_v36 = vmax.f32 %v4826_v49, 0.0  ;;  %4778 = vmatmul.bf16.gmra.mxu2 %v11176_v62  ;;  %5242 = vmatmul.bf16.gmra.mxu0 %v10301_v4 }
 0x7b2   :  { %4867 = vmatmul.bf16.gmra.mxu3 %v10161_v43  ;;  %v4685_v60 = vpop.f32.mrf.mxu1 }
 0x7b3   :  { %v10309_v61 = vpack.c.bf16 %v4900_v36, %v4898_v16  ;;  %v4686_v43 = vadd.f32 %v4685_v60, %v4597_v48 }
 0x7b4   :  { %v4739_v28 = vpop.f32.mrf.mxu2 }
 0x7b5   :  { %v4828_v46 = vpop.f32.mrf.mxu3  ;;  %5296 = vmatmul.bf16.gmra.mxu1 %v10309_v61  ;;  %v4740_v63 = vadd.f32 %v4739_v28, %v10164_v17  ;;  %v4929_v39 = vmax.f32 %v4686_v43, 0.0  ;;  %v4602_v28 = vadd.f32 %v10172_v30, %v10017_v55  ;;  %v10352_v30 = vld [vmem:[#allocation7 + $0xe] sm:$0x3] }
 0x7b6   :  { %v10320_v47 = vpop.f32.mrf.mxu0 }
 0x7b7   :  { %v4829_v25 = vadd.f32 %v4828_v46, %v4740_v63  ;;  %v4604_v46 = vadd.f32 %v10186_v20, %v10017_v55 }
 0x7b9   :  { %v4902_v23 = vmax.f32 %v4829_v25, 0.0 }
 0x7ba   :  { %v4687_v10 = vpop.f32.mrf.mxu1 }
 0x7bb   :  { %v4688_v50 = vadd.f32 %v4687_v10, %v4599_v37 }
 0x7bc   :  { %v4741_v59 = vpop.f32.mrf.mxu2 }
 0x7bd   :  { %v4931_v54 = vmax.f32 %v4688_v50, 0.0  ;;  %v4742_v24 = vadd.f32 %v4741_v59, %v10164_v17  ;;  %v4830_v22 = vpop.f32.mrf.mxu3 }
 0x7be   :  { %v10337_v36 = vpop.f32.mrf.mxu0 }
 0x7bf   :  { %v4831_v35 = vadd.f32 %v4830_v22, %v4742_v24  ;;  %v10332_v52 = vpack.c.bf16 %v4931_v54, %v4929_v39  ;;  %v10358_v54 = vperm.slane %v10352_v30, 0 }
 0x7c1   :  { %v4904_v49 = vmax.f32 %v4831_v35, 0.0  ;;  %5247 = vmatmul.bf16.gmra.mxu0 %v10332_v52  ;;  %5355 = vmatmul.bf16.vlgmr.msra.gmra.mxu2 %v10034_v42  ;;  %v5179_v35 = vadd.f32 %v10197_v2, %v10358_v54 }
 0x7c2   :  { %5444 = vmatmul.bf16.vlgmr.msra.gmra.mxu3 %v10180_v33  ;;  %v4690_v16 = vpop.f32.mrf.mxu1 }
 0x7c3   :  { %v10339_v62 = vpack.c.bf16 %v4904_v49, %v4902_v23  ;;  %v4691_v6 = vadd.f32 %v4690_v16, %v4602_v28  ;;  %v8093_v16 = vld [vmem:[%s11107_s5 + $0x50] sm:$0xff] }
 0x7c4   :  { %v4744_v45 = vpop.f32.mrf.mxu2  ;;  %5847 = vmatpush.bf16.msra.mxu1 %v8093_v16 }
 0x7c5   :  { %v4833_v60 = vpop.f32.mrf.mxu3  ;;  %5301 = vmatmul.bf16.gmra.mxu1 %v10339_v62  ;;  %v4745_v42 = vadd.f32 %v4744_v45, %v10164_v17  ;;  %v4933_v43 = vmax.f32 %v4691_v6, 0.0 }
 0x7c6   :  { %v10347_v32 = vpop.f32.mrf.mxu0 }
 0x7c7   :  { %v4834_v63 = vadd.f32 %v4833_v60, %v4745_v42 }
 0x7c9   :  { %v4906_v55 = vmax.f32 %v4834_v63, 0.0 }
 0x7ca   :  { %v4692_v48 = vpop.f32.mrf.mxu1 }
 0x7cb   :  { %v4693_v33 = vadd.f32 %v4692_v48, %v4604_v46 }
 0x7cc   :  { %v4746_v37 = vpop.f32.mrf.mxu2 }
 0x7cd   :  { %v4935_v12 = vmax.f32 %v4693_v33, 0.0  ;;  %v4747_v10 = vadd.f32 %v4746_v37, %v10164_v17  ;;  %v4835_v50 = vpop.f32.mrf.mxu3 }
 0x7ce   :  { %v10365_v23 = vpop.f32.mrf.mxu0 }
 0x7cf   :  { %v4836_v59 = vadd.f32 %v4835_v50, %v4747_v10  ;;  %v10350_v39 = vpack.c.bf16 %v4935_v12, %v4933_v43 }
 0x7d1   :  { %v4908_v20 = vmax.f32 %v4836_v59, 0.0  ;;  %5252 = vmatmul.bf16.gmra.mxu0 %v10350_v39  ;;  %5360 = vmatmul.bf16.gmra.mxu2 %v10052_v8  ;;  %v5181_v8 = vadd.f32 %v10207_v3, %v10358_v54 }
 0x7d2   :  { %5449 = vmatmul.bf16.gmra.mxu3 %v10204_v38  ;;  %v5267_v25 = vpop.f32.mrf.mxu1 }
 0x7d3   :  { %v10360_v24 = vpack.c.bf16 %v4908_v20, %v4906_v55  ;;  %v5268_v49 = vadd.f32 %v5267_v25, %v5179_v35  ;;  %v5184_v55 = vadd.f32 %v10215_v18, %v10358_v54  ;;  %v5186_v20 = vadd.f32 %v10228_v5, %v10358_v54 }
 0x7d4   :  { %v4749_v22 = vpop.f32.mrf.mxu2 }
 0x7d5   :  { %v4838_v11 = vpop.f32.mrf.mxu3  ;;  %5306 = vmatmul.bf16.gmra.mxu1 %v10360_v24  ;;  %v4750_v38 = vadd.f32 %v4749_v22, %v10164_v17  ;;  %v5525_v46 = vmax.f32 %v5268_v49, 0.0 }
 0x7d6   :  { %v10374_v43 = vpop.f32.mrf.mxu0 }
 0x7d7   :  { %v4839_v6 = vadd.f32 %v4838_v11, %v4750_v38 }
 0x7d9   :  { %v4910_v3 = vmax.f32 %v4839_v6, 0.0 }
 0x7da   :  { %v5269_v45 = vpop.f32.mrf.mxu1 }
 0x7db   :  { %v5270_v60 = vadd.f32 %v5269_v45, %v5181_v8 }
 0x7dc   :  { %v4751_v28 = vpop.f32.mrf.mxu2 }
 0x7dd   :  { %v5527_v42 = vmax.f32 %v5270_v60, 0.0  ;;  %v4752_v2 = vadd.f32 %v4751_v28, %v10164_v17  ;;  %v4840_v48 = vpop.f32.mrf.mxu3 }
 0x7de   :  { %v10386_v11 = vpop.f32.mrf.mxu0 }
 0x7df   :  { %v5589_v33 = vpack.c.bf16 %v5527_v42, %v5525_v46  ;;  %v4841_v37 = vadd.f32 %v4840_v48, %v4752_v2 }
 0x7e1   :  { %v4912_v63 = vmax.f32 %v4841_v37, 0.0  ;;  %5365 = vmatmul.bf16.gmra.mxu2 %v10072_v15  ;;  %5761 = vmatmul.bf16.vlgmr.msra.gmra.mxu0 %v5589_v33  ;;  %v5189_v33 = vadd.f32 %v10239_v53, %v10358_v54  ;;  %v5191_v37 = vadd.f32 %v10249_v57, %v10358_v54 }
 0x7e2   :  { %5454 = vmatmul.bf16.gmra.mxu3 %v10222_v31  ;;  %v5272_v12 = vpop.f32.mrf.mxu1 }
 0x7e3   :  { %v10378_v10 = vpack.c.bf16 %v4912_v63, %v4910_v3  ;;  %v5273_v25 = vadd.f32 %v5272_v12, %v5184_v55 }
 0x7e4   :  { %v4754_v50 = vpop.f32.mrf.mxu2 }
 0x7e5   :  { %v4843_v59 = vpop.f32.mrf.mxu3  ;;  %5311 = vmatmul.bf16.gmra.mxu1 %v10378_v10  ;;  %v4755_v22 = vadd.f32 %v4754_v50, %v10164_v17  ;;  %v5529_v8 = vmax.f32 %v5273_v25, 0.0 }
 0x7e6   :  { %v10393_v2 = vpop.f32.mrf.mxu0 }
 0x7e7   :  { %v4844_v49 = vadd.f32 %v4843_v59, %v4755_v22 }
 0x7e9   :  { %v4914_v18 = vmax.f32 %v4844_v49, 0.0 }
 0x7ea   :  { %v5274_v15 = vpop.f32.mrf.mxu1 }
 0x7eb   :  { %v5275_v31 = vadd.f32 %v5274_v15, %v5186_v20 }
 0x7ec   :  { %v4756_v35 = vpop.f32.mrf.mxu2 }
 0x7ed   :  { %v5531_v38 = vmax.f32 %v5275_v31, 0.0  ;;  %v4757_v16 = vadd.f32 %v4756_v35, %v10164_v17  ;;  %v4845_v45 = vpop.f32.mrf.mxu3 }
 0x7ee   :  { %v10405_v22 = vpop.f32.mrf.mxu0 }
 0x7ef   :  { %v4846_v60 = vadd.f32 %v4845_v45, %v4757_v16  ;;  %v5591_v28 = vpack.c.bf16 %v5531_v38, %v5529_v8  ;;  %v5194_v45 = vadd.f32 %v10257_v41, %v10358_v54 }
 0x7f1   :  { %v4916_v46 = vmax.f32 %v4846_v60, 0.0  ;;  %5370 = vmatmul.bf16.gmra.mxu2 %v10090_v26  ;;  %5766 = vmatmul.bf16.gmra.mxu0 %v5591_v28  ;;  %v5196_v60 = vadd.f32 %v10270_v51, %v10358_v54 }
 0x7f2   :  { %5459 = vmatmul.bf16.gmra.mxu3 %v10246_v19  ;;  %v5277_v5 = vpop.f32.mrf.mxu1  ;;  %v8092_v19 = vld [vmem:[%s11107_s5 + $0x48] sm:$0xff] }
 0x7f3   :  { %v10391_v6 = vpack.c.bf16 %v4916_v46, %v4914_v18  ;;  %v5278_v3 = vadd.f32 %v5277_v5, %v5189_v33  ;;  %5848 = vmatpush.bf16.msra.mxu1 %v8092_v19 }
 0x7f4   :  { %v4759_v42 = vpop.f32.mrf.mxu2 }
 0x7f5   :  { %v4848_v48 = vpop.f32.mrf.mxu3  ;;  %5316 = vmatmul.bf16.gmra.mxu1 %v10391_v6  ;;  %v4760_v26 = vadd.f32 %v4759_v42, %v10164_v17  ;;  %v5533_v59 = vmax.f32 %v5278_v3, 0.0 }
 0x7f6   :  { %v10416_v28 = vpop.f32.mrf.mxu0 }
 0x7f7   :  { %v4849_v55 = vadd.f32 %v4848_v48, %v4760_v26 }
 0x7f9   :  { %v4918_v31 = vmax.f32 %v4849_v55, 0.0 }
 0x7fa   :  { %v5279_v63 = vpop.f32.mrf.mxu1 }
 0x7fb   :  { %v5280_v12 = vadd.f32 %v5279_v63, %v5191_v37 }
 0x7fc   :  { %v4761_v50 = vpop.f32.mrf.mxu2 }
 0x7fd   :  { %v5535_v20 = vmax.f32 %v5280_v12, 0.0  ;;  %v4762_v25 = vadd.f32 %v4761_v50, %v10164_v17  ;;  %v4850_v53 = vpop.f32.mrf.mxu3 }
 0x7fe   :  { %v10422_v12 = vpop.f32.mrf.mxu0 }
 0x7ff   :  { %v4851_v57 = vadd.f32 %v4850_v53, %v4762_v25  ;;  %v5593_v15 = vpack.c.bf16 %v5535_v20, %v5533_v59  ;;  %v5199_v20 = vadd.f32 %v10281_v34, %v10358_v54  ;;  %v5201_v25 = vadd.f32 %v10291_v29, %v10358_v54 }
 0x801   :  { %v4920_v35 = vmax.f32 %v4851_v57, 0.0  ;;  %5375 = vmatmul.bf16.gmra.mxu2 %v10110_v56  ;;  %5771 = vmatmul.bf16.gmra.mxu0 %v5593_v15 }
 0x802   :  { %5464 = vmatmul.bf16.gmra.mxu3 %v10264_v13  ;;  %v5282_v8 = vpop.f32.mrf.mxu1 }
 0x803   :  { %v10409_v49 = vpack.c.bf16 %v4920_v35, %v4918_v31  ;;  %v5283_v18 = vadd.f32 %v5282_v8, %v5194_v45 }
 0x804   :  { %v4764_v38 = vpop.f32.mrf.mxu2 }
 0x805   :  { %v4853_v16 = vpop.f32.mrf.mxu3  ;;  %5321 = vmatmul.bf16.gmra.mxu1 %v10409_v49  ;;  %v4765_v56 = vadd.f32 %v4764_v38, %v10164_v17  ;;  %v5537_v42 = vmax.f32 %v5283_v18, 0.0 }
 0x806   :  { %v10435_v35 = vpop.f32.mrf.mxu0 }
 0x807   :  { %v4854_v48 = vadd.f32 %v4853_v16, %v4765_v56 }
 0x809   :  { %v4922_v41 = vmax.f32 %v4854_v48, 0.0  ;;  %v5204_v48 = vadd.f32 %v10299_v1, %v10358_v54 }
 0x80a   :  { %v5284_v46 = vpop.f32.mrf.mxu1 }
 0x80b   :  { %v5285_v13 = vadd.f32 %v5284_v46, %v5196_v60 }
 0x80c   :  { %v4766_v5 = vpop.f32.mrf.mxu2 }
 0x80d   :  { %v5539_v33 = vmax.f32 %v5285_v13, 0.0  ;;  %v4767_v37 = vadd.f32 %v4766_v5, %v10164_v17  ;;  %v4855_v3 = vpop.f32.mrf.mxu3 }
 0x80f   :  { %v4856_v26 = vadd.f32 %v4855_v3, %v4767_v37  ;;  %v5595_v19 = vpack.c.bf16 %v5539_v33, %v5537_v42  ;;  %v10445_v33 = vpop.f32.mrf.mxu0  ;;  %v5206_v37 = vadd.f32 %v10320_v47, %v10358_v54 }
 0x811   :  { %v4924_v63 = vmax.f32 %v4856_v26, 0.0  ;;  %5380 = vmatmul.bf16.gmra.mxu2 %v10130_v27  ;;  %5776 = vmatmul.bf16.gmra.mxu0 %v5595_v19 }
 0x812   :  { %5469 = vmatmul.bf16.gmra.mxu3 %v10288_v14  ;;  %v5287_v51 = vpop.f32.mrf.mxu1  ;;  %v8091_v14 = vld [vmem:[%s11107_s5 + $0x40] sm:$0xff] }
 0x813   :  { %v10424_v50 = vpack.c.bf16 %v4924_v63, %v4922_v41  ;;  %v5288_v53 = vadd.f32 %v5287_v51, %v5199_v20  ;;  %5849 = vmatpush.bf16.msra.mxu1 %v8091_v14 }
 0x814   :  { %v4769_v59 = vpop.f32.mrf.mxu2 }
 0x815   :  { %v4858_v55 = vpop.f32.mrf.mxu3  ;;  %5326 = vmatmul.bf16.gmra.mxu1 %v10424_v50  ;;  %v4770_v27 = vadd.f32 %v4769_v59, %v10164_v17  ;;  %v5541_v8 = vmax.f32 %v5288_v53, 0.0 }
 0x817   :  { %v4859_v38 = vadd.f32 %v4858_v55, %v4770_v27  ;;  %v10451_v1 = vpop.f32.mrf.mxu0 }
 0x819   :  { %v4926_v18 = vmax.f32 %v4859_v38, 0.0 }
 0x81a   :  { %v5289_v57 = vpop.f32.mrf.mxu1 }
 0x81b   :  { %v5290_v15 = vadd.f32 %v5289_v57, %v5201_v25 }
 0x81c   :  { %v4771_v31 = vpop.f32.mrf.mxu2 }
 0x81d   :  { %v5543_v16 = vmax.f32 %v5290_v15, 0.0  ;;  %v4772_v34 = vadd.f32 %v4771_v31, %v10164_v17  ;;  %v4860_v45 = vpop.f32.mrf.mxu3  ;;  %v5209_v31 = vadd.f32 %v10337_v36, %v10358_v54 }
 0x81f   :  { %v4861_v29 = vadd.f32 %v4860_v45, %v4772_v34  ;;  %v5597_v60 = vpack.c.bf16 %v5543_v16, %v5541_v8  ;;  %v5211_v8 = vadd.f32 %v10347_v32, %v10358_v54  ;;  %v10463_v34 = vpop.f32.mrf.mxu0 }
 0x821   :  { %v4928_v56 = vmax.f32 %v4861_v29, 0.0  ;;  %5385 = vmatmul.bf16.gmra.mxu2 %v10154_v0  ;;  %5781 = vmatmul.bf16.gmra.mxu0 %v5597_v60 }
 0x822   :  { %5474 = vmatmul.bf16.gmra.mxu3 %v10309_v61  ;;  %v5292_v46 = vpop.f32.mrf.mxu1 }
 0x823   :  { %v10440_v13 = vpack.c.bf16 %v4928_v56, %v4926_v18  ;;  %v5293_v3 = vadd.f32 %v5292_v46, %v5204_v48 }
 0x824   :  { %v4774_v5 = vpop.f32.mrf.mxu2 }
 0x825   :  { %v4863_v42 = vpop.f32.mrf.mxu3  ;;  %5331 = vmatmul.bf16.gmra.mxu1 %v10440_v13  ;;  %v4775_v0 = vadd.f32 %v4774_v5, %v10164_v17  ;;  %v5545_v41 = vmax.f32 %v5293_v3, 0.0 }
 0x827   :  { %v4864_v63 = vadd.f32 %v4863_v42, %v4775_v0  ;;  %v10470_v0 = vpop.f32.mrf.mxu0 }
 0x829   :  { %v4930_v53 = vmax.f32 %v4864_v63, 0.0 }
 0x82a   :  { %v5294_v26 = vpop.f32.mrf.mxu1 }
 0x82b   :  { %v5295_v61 = vadd.f32 %v5294_v26, %v5206_v37  ;;  %v10473_v26 = vperm.slane %v10352_v30, 1 }
 0x82c   :  { %v4776_v19 = vpop.f32.mrf.mxu2 }
 0x82d   :  { %v5547_v51 = vmax.f32 %v5295_v61, 0.0  ;;  %v4777_v59 = vadd.f32 %v4776_v19, %v10164_v17  ;;  %v4865_v55 = vpop.f32.mrf.mxu3  ;;  %v5214_v61 = vadd.f32 %v10365_v23, %v10358_v54 }
 0x82f   :  { %v4866_v20 = vadd.f32 %v4865_v55, %v4777_v59  ;;  %v5599_v25 = vpack.c.bf16 %v5547_v51, %v5545_v41 }
 0x831   :  { %v4932_v27 = vmax.f32 %v4866_v20, 0.0  ;;  %5390 = vmatmul.bf16.gmra.mxu2 %v10175_v58  ;;  %5786 = vmatmul.bf16.gmra.mxu0 %v5599_v25 }
 0x832   :  { %5479 = vmatmul.bf16.gmra.mxu3 %v10339_v62  ;;  %v5297_v47 = vpop.f32.mrf.mxu1 }
 0x833   :  { %v10455_v14 = vpack.c.bf16 %v4932_v27, %v4930_v53  ;;  %v5298_v38 = vadd.f32 %v5297_v47, %v5209_v31  ;;  %v10482_v53 = vpop.f32.mrf.mxu0 }
 0x834   :  { %v4779_v57 = vpop.f32.mrf.mxu2 }
 0x835   :  { %v4868_v15 = vpop.f32.mrf.mxu3  ;;  %5336 = vmatmul.bf16.gmra.mxu1 %v10455_v14  ;;  %v4780_v16 = vadd.f32 %v4779_v57, %v10164_v17  ;;  %v5549_v29 = vmax.f32 %v5298_v38, 0.0  ;;  %v5219_v38 = vadd.f32 %v10386_v11, %v10358_v54 }
 0x837   :  { %v4869_v60 = vadd.f32 %v4868_v15, %v4780_v16  ;;  %v5221_v16 = vadd.f32 %v10393_v2, %v10358_v54 }
 0x839   :  { %v4934_v36 = vmax.f32 %v4869_v60, 0.0 }
 0x83a   :  { %v5299_v58 = vpop.f32.mrf.mxu1 }
 0x83b   :  { %v5300_v62 = vadd.f32 %v5299_v58, %v5211_v8  ;;  %v10490_v58 = vpop.f32.mrf.mxu0 }
 0x83c   :  { %v4781_v45 = vpop.f32.mrf.mxu2 }
 0x83d   :  { %v5551_v18 = vmax.f32 %v5300_v62, 0.0  ;;  %v4782_v56 = vadd.f32 %v4781_v45, %v10164_v17  ;;  %v4870_v46 = vpop.f32.mrf.mxu3 }
 0x83f   :  { %v4871_v5 = vadd.f32 %v4870_v46, %v4782_v56  ;;  %v5601_v42 = vpack.c.bf16 %v5551_v18, %v5549_v29 }
 0x841   :  { %v4936_v48 = vmax.f32 %v4871_v5, 0.0  ;;  %5395 = vmatmul.bf16.gmra.mxu2 %v10199_v7  ;;  %5791 = vmatmul.bf16.gmra.mxu0 %v5601_v42  ;;  %v5216_v7 = vadd.f32 %v10374_v43, %v10358_v54 }
 0x842   :  { %5484 = vmatmul.bf16.gmra.mxu3 %v10360_v24  ;;  %v5302_v32 = vpop.f32.mrf.mxu1 }
 0x843   :  { %v10468_v37 = vpack.c.bf16 %v4936_v48, %v4934_v36  ;;  %v5303_v19 = vadd.f32 %v5302_v32, %v5214_v61  ;;  %v10496_v32 = vpop.f32.mrf.mxu0 }
 0x844   :  { %v5356_v3 = vpop.f32.mrf.mxu2 }
 0x845   :  { %v5445_v17 = vpop.f32.mrf.mxu3  ;;  %5341 = vmatmul.bf16.gmra.mxu1 %v10468_v37  ;;  %v5357_v24 = vadd.f32 %v5356_v3, %v10473_v26  ;;  %v5553_v59 = vmax.f32 %v5303_v19, 0.0  ;;  %v5226_v19 = vadd.f32 %v10416_v28, %v10358_v54 }
 0x847   :  { %v5446_v55 = vadd.f32 %v5445_v17, %v5357_v24 }
 0x849   :  { %v5526_v23 = vmax.f32 %v5446_v55, 0.0 }
 0x84a   :  { %v5304_v41 = vpop.f32.mrf.mxu1 }
 0x84b   :  { %v5305_v63 = vadd.f32 %v5304_v41, %v5216_v7  ;;  %v5224_v7 = vadd.f32 %v10405_v22, %v10358_v54 }
 0x84c   :  { %v5358_v51 = vpop.f32.mrf.mxu2 }
 0x84d   :  { %v5555_v20 = vmax.f32 %v5305_v63, 0.0  ;;  %v5359_v30 = vadd.f32 %v5358_v51, %v10473_v26  ;;  %v5447_v25 = vpop.f32.mrf.mxu3 }
 0x84f   :  { %v5448_v27 = vadd.f32 %v5447_v25, %v5359_v30  ;;  %v5603_v47 = vpack.c.bf16 %v5555_v20, %v5553_v59 }
 0x851   :  { %v5528_v57 = vmax.f32 %v5448_v27, 0.0  ;;  %5400 = vmatmul.bf16.gmra.mxu2 %v10217_v21  ;;  %5796 = vmatmul.bf16.gmra.mxu0 %v5603_v47 }
 0x852   :  { %5489 = vmatmul.bf16.gmra.mxu3 %v10378_v10  ;;  %v5307_v43 = vpop.f32.mrf.mxu1 }
 0x853   :  { %v5590_v15 = vpack.c.bf16 %v5528_v57, %v5526_v23  ;;  %v5308_v62 = vadd.f32 %v5307_v43, %v5219_v38  ;;  %v5231_v38 = vadd.f32 %v10435_v35, %v10358_v54 }
 0x854   :  { %v5361_v31 = vpop.f32.mrf.mxu2 }
 0x855   :  { %v5450_v8 = vpop.f32.mrf.mxu3  ;;  %5850 = vmatmul.bf16.vlgmr.msra.gmra.mxu1 %v5590_v15  ;;  %v5362_v45 = vadd.f32 %v5361_v31, %v10473_v26  ;;  %v5557_v10 = vmax.f32 %v5308_v62, 0.0  ;;  %v5229_v31 = vadd.f32 %v10422_v12, %v10358_v54 }
 0x857   :  { %v5451_v18 = vadd.f32 %v5450_v8, %v5362_v45 }
 0x859   :  { %v5530_v11 = vmax.f32 %v5451_v18, 0.0 }
 0x85a   :  { %v5309_v21 = vpop.f32.mrf.mxu1 }
 0x85b   :  { %v5310_v29 = vadd.f32 %v5309_v21, %v5221_v16 }
 0x85c   :  { %v5363_v60 = vpop.f32.mrf.mxu2 }
 0x85d   :  { %v5559_v56 = vmax.f32 %v5310_v29, 0.0  ;;  %v5364_v46 = vadd.f32 %v5363_v60, %v10473_v26  ;;  %v5452_v5 = vpop.f32.mrf.mxu3 }
 0x85f   :  { %v5453_v42 = vadd.f32 %v5452_v5, %v5364_v46  ;;  %v5605_v36 = vpack.c.bf16 %v5559_v56, %v5557_v10 }
 0x861   :  { %v5532_v48 = vmax.f32 %v5453_v42, 0.0  ;;  %5405 = vmatmul.bf16.gmra.mxu2 %v10241_v40  ;;  %5801 = vmatmul.bf16.gmra.mxu0 %v5605_v36 }
 0x862   :  { %5494 = vmatmul.bf16.gmra.mxu3 %v10391_v6  ;;  %v5312_v2 = vpop.f32.mrf.mxu1  ;;  %v10503_v6 = vpop.f32.mrf.mxu0 }
 0x863   :  { %v5592_v3 = vpack.c.bf16 %v5532_v48, %v5530_v11  ;;  %v5313_v24 = vadd.f32 %v5312_v2, %v5224_v7  ;;  %v5234_v2 = vadd.f32 %v10445_v33, %v10358_v54 }
 0x864   :  { %v5366_v17 = vpop.f32.mrf.mxu2 }
 0x865   :  { %v5455_v61 = vpop.f32.mrf.mxu3  ;;  %5855 = vmatmul.bf16.gmra.mxu1 %v5592_v3  ;;  %v5367_v41 = vadd.f32 %v5366_v17, %v10473_v26  ;;  %v5561_v59 = vmax.f32 %v5313_v24, 0.0  ;;  %v5236_v3 = vadd.f32 %v10451_v1, %v10358_v54 }
 0x867   :  { %v5456_v55 = vadd.f32 %v5455_v61, %v5367_v41 }
 0x869   :  { %v5534_v22 = vmax.f32 %v5456_v55, 0.0 }
 0x86a   :  { %v5314_v40 = vpop.f32.mrf.mxu1  ;;  %v10510_v8 = vpop.f32.mrf.mxu0 }
 0x86b   :  { %v5315_v63 = vadd.f32 %v5314_v40, %v5226_v19 }
 0x86c   :  { %v5368_v51 = vpop.f32.mrf.mxu2 }
 0x86d   :  { %v5563_v20 = vmax.f32 %v5315_v63, 0.0  ;;  %v5369_v30 = vadd.f32 %v5368_v51, %v10473_v26  ;;  %v5457_v25 = vpop.f32.mrf.mxu3 }
 0x86f   :  { %v5458_v27 = vadd.f32 %v5457_v25, %v5369_v30  ;;  %v5607_v47 = vpack.c.bf16 %v5563_v20, %v5561_v59 }
 0x871   :  { %v5536_v23 = vmax.f32 %v5458_v27, 0.0  ;;  %5410 = vmatmul.bf16.gmra.mxu2 %v10259_v9  ;;  %5806 = vmatmul.bf16.gmra.mxu0 %v5607_v47 }
 0x872   :  { %5499 = vmatmul.bf16.gmra.mxu3 %v10409_v49  ;;  %v5317_v28 = vpop.f32.mrf.mxu1  ;;  %v10516_v12 = vpop.f32.mrf.mxu0 }
 0x873   :  { %v5594_v57 = vpack.c.bf16 %v5536_v23, %v5534_v22  ;;  %v5318_v16 = vadd.f32 %v5317_v28, %v5229_v31  ;;  %v5239_v22 = vadd.f32 %v10463_v34, %v10358_v54  ;;  %v5241_v23 = vadd.f32 %v10470_v0, %v10358_v54 }
 0x874   :  { %v5371_v43 = vpop.f32.mrf.mxu2 }
 0x875   :  { %v5460_v15 = vpop.f32.mrf.mxu3  ;;  %5860 = vmatmul.bf16.gmra.mxu1 %v5594_v57  ;;  %v5372_v62 = vadd.f32 %v5371_v43, %v10473_v26  ;;  %v5565_v49 = vmax.f32 %v5318_v16, 0.0 }
 0x877   :  { %v5461_v29 = vadd.f32 %v5460_v15, %v5372_v62 }
 0x879   :  { %v5538_v5 = vmax.f32 %v5461_v29, 0.0 }
 0x87a   :  { %v5319_v9 = vpop.f32.mrf.mxu1  ;;  %v10525_v19 = vpop.f32.mrf.mxu0 }
 0x87b   :  { %v5320_v45 = vadd.f32 %v5319_v9, %v5231_v38 }
 0x87c   :  { %v5373_v21 = vpop.f32.mrf.mxu2 }
 0x87d   :  { %v5567_v60 = vmax.f32 %v5320_v45, 0.0  ;;  %v5374_v10 = vadd.f32 %v5373_v21, %v10473_v26  ;;  %v5462_v18 = vpop.f32.mrf.mxu3 }
 0x87f   :  { %v5463_v56 = vadd.f32 %v5462_v18, %v5374_v10  ;;  %v5609_v46 = vpack.c.bf16 %v5567_v60, %v5565_v49  ;;  %v5244_v18 = vadd.f32 %v10482_v53, %v10358_v54 }
 0x881   :  { %v5540_v42 = vmax.f32 %v5463_v56, 0.0  ;;  %5415 = vmatmul.bf16.gmra.mxu2 %v10283_v44  ;;  %5811 = vmatmul.bf16.gmra.mxu0 %v5609_v46  ;;  %v5246_v56 = vadd.f32 %v10490_v58, %v10358_v54 }
 0x882   :  { %5504 = vmatmul.bf16.gmra.mxu3 %v10424_v50  ;;  %v5322_v35 = vpop.f32.mrf.mxu1  ;;  %v10530_v27 = vpop.f32.mrf.mxu0 }
 0x883   :  { %v5596_v36 = vpack.c.bf16 %v5540_v42, %v5538_v5  ;;  %v5323_v17 = vadd.f32 %v5322_v35, %v5234_v2 }
 0x884   :  { %v5376_v11 = vpop.f32.mrf.mxu2 }
 0x885   :  { %v5465_v48 = vpop.f32.mrf.mxu3  ;;  %5865 = vmatmul.bf16.gmra.mxu1 %v5596_v36  ;;  %v5377_v61 = vadd.f32 %v5376_v11, %v10473_v26  ;;  %v5569_v50 = vmax.f32 %v5323_v17, 0.0 }
 0x887   :  { %v5466_v41 = vadd.f32 %v5465_v48, %v5377_v61 }
 0x889   :  { %v5542_v33 = vmax.f32 %v5466_v41, 0.0 }
 0x88a   :  { %v5324_v7 = vpop.f32.mrf.mxu1  ;;  %v10538_v9 = vpop.f32.mrf.mxu0 }
 0x88b   :  { %v5325_v44 = vadd.f32 %v5324_v7, %v5236_v3 }
 0x88c   :  { %v5378_v24 = vpop.f32.mrf.mxu2 }
 0x88d   :  { %v5571_v40 = vmax.f32 %v5325_v44, 0.0  ;;  %v5379_v63 = vadd.f32 %v5378_v24, %v10473_v26  ;;  %v5467_v51 = vpop.f32.mrf.mxu3 }
 0x88f   :  { %v5468_v59 = vadd.f32 %v5467_v51, %v5379_v63  ;;  %v5611_v55 = vpack.c.bf16 %v5571_v40, %v5569_v50  ;;  %v5249_v40 = vadd.f32 %v10496_v32, %v10358_v54  ;;  %v5251_v63 = vadd.f32 %v10503_v6, %v10358_v54 }
 0x891   :  { %v5544_v20 = vmax.f32 %v5468_v59, 0.0  ;;  %5420 = vmatmul.bf16.gmra.mxu2 %v10301_v4  ;;  %5816 = vmatmul.bf16.gmra.mxu0 %v5611_v55 }
 0x892   :  { %5509 = vmatmul.bf16.gmra.mxu3 %v10440_v13  ;;  %v5327_v1 = vpop.f32.mrf.mxu1  ;;  %v10546_v46 = vpop.f32.mrf.mxu0 }
 0x893   :  { %v5598_v30 = vpack.c.bf16 %v5544_v20, %v5542_v33  ;;  %v5328_v28 = vadd.f32 %v5327_v1, %v5239_v22 }
 0x894   :  { %v5381_v25 = vpop.f32.mrf.mxu2 }
 0x895   :  { %v5470_v47 = vpop.f32.mrf.mxu3  ;;  %5870 = vmatmul.bf16.gmra.mxu1 %v5598_v30  ;;  %v5382_v57 = vadd.f32 %v5381_v25, %v10473_v26  ;;  %v5573_v13 = vmax.f32 %v5328_v28, 0.0 }
 0x897   :  { %v5471_v31 = vadd.f32 %v5470_v47, %v5382_v57 }
 0x899   :  { %v5546_v34 = vmax.f32 %v5471_v31, 0.0  ;;  %v5256_v31 = vadd.f32 %v10516_v12, %v10358_v54 }
 0x89a   :  { %v5329_v4 = vpop.f32.mrf.mxu1  ;;  %v10552_v44 = vpop.f32.mrf.mxu0 }
 0x89b   :  { %v5330_v43 = vadd.f32 %v5329_v4, %v5241_v23 }
 0x89c   :  { %v5383_v15 = vpop.f32.mrf.mxu2 }
 0x89d   :  { %v5575_v38 = vmax.f32 %v5330_v43, 0.0  ;;  %v5384_v16 = vadd.f32 %v5383_v15, %v10473_v26  ;;  %v5472_v62 = vpop.f32.mrf.mxu3  ;;  %v5254_v15 = vadd.f32 %v10510_v8, %v10358_v54 }
 0x89f   :  { %v5473_v45 = vadd.f32 %v5472_v62, %v5384_v16  ;;  %v5613_v21 = vpack.c.bf16 %v5575_v38, %v5573_v13 }
 0x8a1   :  { %v5548_v49 = vmax.f32 %v5473_v45, 0.0  ;;  %5425 = vmatmul.bf16.gmra.mxu2 %v10332_v52  ;;  %5821 = vmatmul.bf16.gmra.mxu0 %v5613_v21 }
 0x8a2   :  { %5514 = vmatmul.bf16.gmra.mxu3 %v10455_v14  ;;  %v5332_v0 = vpop.f32.mrf.mxu1 }
 0x8a3   :  { %v5600_v29 = vpack.c.bf16 %v5548_v49, %v5546_v34  ;;  %v5333_v5 = vadd.f32 %v5332_v0, %v5244_v18  ;;  %v10572_v34 = vld [vmem:[%s11108_s6] ss:$0 sm:$0xff] }
 0x8a4   :  { %v5386_v60 = vpop.f32.mrf.mxu2  ;;  %v5763_v54 = vadd.f32 %v10572_v34, %v10525_v19  ;;  %v5765_v19 = vadd.f32 %v10572_v34, %v10530_v27  ;;  %v5768_v27 = vadd.f32 %v10572_v34, %v10538_v9 }
 0x8a5   :  { %v5475_v10 = vpop.f32.mrf.mxu3  ;;  %5875 = vmatmul.bf16.gmra.mxu1 %v5600_v29  ;;  %v5387_v42 = vadd.f32 %v5386_v60, %v10473_v26  ;;  %v5577_v14 = vmax.f32 %v5333_v5, 0.0 }
 0x8a7   :  { %v5476_v11 = vadd.f32 %v5475_v10, %v5387_v42 }
 0x8a9   :  { %v5550_v53 = vmax.f32 %v5476_v11, 0.0 }
 0x8aa   :  { %v5334_v52 = vpop.f32.mrf.mxu1 }
 0x8ab   :  { %v5335_v35 = vadd.f32 %v5334_v52, %v5246_v56 }
 0x8ac   :  { %v5388_v36 = vpop.f32.mrf.mxu2 }
 0x8ad   :  { %v5579_v48 = vmax.f32 %v5335_v35, 0.0  ;;  %v5389_v2 = vadd.f32 %v5388_v36, %v10473_v26  ;;  %v5477_v3 = vpop.f32.mrf.mxu3 }
 0x8af   :  { %v5478_v17 = vadd.f32 %v5477_v3, %v5389_v2  ;;  %v5615_v61 = vpack.c.bf16 %v5579_v48, %v5577_v14 }
 0x8b1   :  { %v5552_v7 = vmax.f32 %v5478_v17, 0.0  ;;  %5430 = vmatmul.bf16.gmra.mxu2 %v10350_v39  ;;  %5826 = vmatmul.bf16.gmra.mxu0 %v5615_v61 }
 0x8b2   :  { %5519 = vmatmul.bf16.gmra.mxu3 %v10468_v37  ;;  %v5337_v58 = vpop.f32.mrf.mxu1  ;;  %v10559_v37 = vpop.f32.mrf.mxu0 }
 0x8b3   :  { %v5602_v24 = vpack.c.bf16 %v5552_v7, %v5550_v53  ;;  %v5338_v51 = vadd.f32 %v5337_v58, %v5249_v40 }
 0x8b4   :  { %v5391_v50 = vpop.f32.mrf.mxu2 }
 0x8b5   :  { %v5480_v41 = vpop.f32.mrf.mxu3  ;;  %5880 = vmatmul.bf16.gmra.mxu1 %v5602_v24  ;;  %v5392_v59 = vadd.f32 %v5391_v50, %v10473_v26  ;;  %v5581_v20 = vmax.f32 %v5338_v51, 0.0 }
 0x8b7   :  { %v5481_v1 = vadd.f32 %v5480_v41, %v5392_v59 }
 0x8b9   :  { %v5554_v32 = vmax.f32 %v5481_v1, 0.0 }
 0x8ba   :  { %v5339_v39 = vpop.f32.mrf.mxu1  ;;  %v10564_v13 = vpop.f32.mrf.mxu0 }
 0x8bb   :  { %v5340_v55 = vadd.f32 %v5339_v39, %v5251_v63 }
 0x8bc   :  { %v5393_v33 = vpop.f32.mrf.mxu2 }
 0x8bd   :  { %v5583_v30 = vmax.f32 %v5340_v55, 0.0  ;;  %v5394_v25 = vadd.f32 %v5393_v33, %v10473_v26  ;;  %v5482_v47 = vpop.f32.mrf.mxu3 }
 0x8bf   :  { %v5483_v22 = vadd.f32 %v5482_v47, %v5394_v25  ;;  %v5617_v23 = vpack.c.bf16 %v5583_v30, %v5581_v20  ;;  %v5770_v20 = vadd.f32 %v10572_v34, %v10546_v46  ;;  %v5773_v46 = vadd.f32 %v10572_v34, %v10552_v44 }
 0x8c1   :  { %v5556_v28 = vmax.f32 %v5483_v22, 0.0  ;;  %5831 = vmatmul.bf16.gmra.mxu0 %v5617_v23 }
 0x8c2   :  { %v5342_v6 = vpop.f32.mrf.mxu1  ;;  %v10577_v12 = vpop.f32.mrf.mxu0 }
 0x8c3   :  { %v5604_v57 = vpack.c.bf16 %v5556_v28, %v5554_v32  ;;  %v5343_v38 = vadd.f32 %v5342_v6, %v5254_v15 }
 0x8c4   :  { %v5396_v4 = vpop.f32.mrf.mxu2 }
 0x8c5   :  { %v5485_v43 = vpop.f32.mrf.mxu3  ;;  %5885 = vmatmul.bf16.gmra.mxu1 %v5604_v57  ;;  %v5397_v16 = vadd.f32 %v5396_v4, %v10473_v26  ;;  %v5585_v49 = vmax.f32 %v5343_v38, 0.0 }
 0x8c7   :  { %v5486_v0 = vadd.f32 %v5485_v43, %v5397_v16 }
 0x8c9   :  { %v5558_v56 = vmax.f32 %v5486_v0, 0.0 }
 0x8ca   :  { %v5344_v62 = vpop.f32.mrf.mxu1  ;;  %v10591_v50 = vpop.f32.mrf.mxu0 }
 0x8cb   :  { %v5345_v45 = vadd.f32 %v5344_v62, %v5256_v31 }
 0x8cc   :  { %v5398_v21 = vpop.f32.mrf.mxu2 }
 0x8cd   :  { %v5587_v29 = vmax.f32 %v5345_v45, 0.0  ;;  %v5399_v8 = vadd.f32 %v5398_v21, %v10473_v26  ;;  %v5487_v60 = vpop.f32.mrf.mxu3  ;;  %v5775_v21 = vadd.f32 %v10572_v34, %v10559_v37 }
 0x8cf   :  { %v5488_v10 = vadd.f32 %v5487_v60, %v5399_v8  ;;  %v5619_v18 = vpack.c.bf16 %v5587_v29, %v5585_v49 }
 0x8d1   :  { %v5560_v5 = vmax.f32 %v5488_v10, 0.0  ;;  %5836 = vmatmul.bf16.gmra.mxu0 %v5619_v18 }
 0x8d2   :  { %v5851_v42 = vpop.f32.mrf.mxu1  ;;  %v10602_v30 = vpop.f32.mrf.mxu0 }
 0x8d3   :  { %v5606_v52 = vpack.c.bf16 %v5560_v5, %v5558_v56  ;;  %v10579_v35 = vadd.f32 %v5851_v42, %v5763_v54  ;;  %v5778_v5 = vadd.f32 %v10572_v34, %v10564_v13 }
 0x8d4   :  { %v5401_v36 = vpop.f32.mrf.mxu2 }
 0x8d5   :  { %v5490_v14 = vpop.f32.mrf.mxu3  ;;  %5890 = vmatmul.bf16.gmra.mxu1 %v5606_v52  ;;  %v5932_v11 = vsel %vm5931_vm0, %v10579_v35, -inf  ;;  %v5402_v48 = vadd.f32 %v5401_v36, %v10473_v26 }
 0x8d6   :  { %5933 = vmax.xlane.f32.xlu0 %v5932_v11 }
 0x8d7   :  { %v5491_v61 = vadd.f32 %v5490_v14, %v5402_v48 }
 0x8d9   :  { %v5562_v41 = vmax.f32 %v5491_v61, 0.0 }
 0x8da   :  { %v5853_v2 = vpop.f32.mrf.mxu1  ;;  %v10613_v38 = vpop.f32.mrf.mxu0 }
 0x8db   :  { %v10586_v3 = vadd.f32 %v5853_v2, %v5765_v19 }
 0x8dc   :  { %v5403_v17 = vpop.f32.mrf.mxu2 }
 0x8dd   :  { %v5404_v53 = vadd.f32 %v5403_v17, %v10473_v26  ;;  %v5492_v7 = vpop.f32.mrf.mxu3  ;;  %v5935_v58 = vsel %vm5931_vm0, %v10586_v3, -inf  ;;  %v5780_v17 = vadd.f32 %v10572_v34, %v10577_v12 }
 0x8de   :  { %5936 = vmax.xlane.f32.xlu0 %v5935_v58 }
 0x8df   :  { %v5493_v24 = vadd.f32 %v5492_v7, %v5404_v53 }
 0x8e1   :  { %v5564_v40 = vmax.f32 %v5493_v24, 0.0 }
 0x8e2   :  { %v5856_v63 = vpop.f32.mrf.mxu1  ;;  %v5789_v54 = vpop.f32.mrf.mxu0 }
 0x8e3   :  { %v5608_v51 = vpack.c.bf16 %v5564_v40, %v5562_v41  ;;  %v10595_v59 = vadd.f32 %v5856_v63, %v5768_v27  ;;  %v5783_v63 = vadd.f32 %v10572_v34, %v10591_v50 }
 0x8e4   :  { %v5406_v39 = vpop.f32.mrf.mxu2 }
 0x8e5   :  { %v5495_v55 = vpop.f32.mrf.mxu3  ;;  %5895 = vmatmul.bf16.gmra.mxu1 %v5608_v51  ;;  %v5938_v33 = vsel %vm5931_vm0, %v10595_v59, -inf  ;;  %v5407_v1 = vadd.f32 %v5406_v39, %v10473_v26 }
 0x8e6   :  { %5939 = vmax.xlane.f32.xlu1 %v5938_v33 }
 0x8e7   :  { %v5496_v22 = vadd.f32 %v5495_v55, %v5407_v1 }
 0x8e9   :  { %v5566_v57 = vmax.f32 %v5496_v22, 0.0  ;;  %v5785_v22 = vadd.f32 %v10572_v34, %v10602_v30 }
 0x8ea   :  { %v5858_v9 = vpop.f32.mrf.mxu1  ;;  %v5792_v2 = vpop.f32.mrf.mxu0 }
 0x8eb   :  { %v10604_v25 = vadd.f32 %v5858_v9, %v5770_v20 }
 0x8ec   :  { %v5408_v47 = vpop.f32.mrf.mxu2 }
 0x8ed   :  { %v5409_v23 = vadd.f32 %v5408_v47, %v10473_v26  ;;  %v5497_v32 = vpop.f32.mrf.mxu3  ;;  %v5941_v28 = vsel %vm5931_vm0, %v10604_v25, -inf }
 0x8ee   :  { %5942 = vmax.xlane.f32.xlu1 %v5941_v28 }
 0x8ef   :  { %v5498_v6 = vadd.f32 %v5497_v32, %v5409_v23 }
 0x8f1   :  { %v5568_v4 = vmax.f32 %v5498_v6, 0.0 }
 0x8f2   :  { %v5861_v43 = vpop.f32.mrf.mxu1  ;;  %v5794_v39 = vpop.f32.mrf.mxu0 }
 0x8f3   :  { %v5610_v15 = vpack.c.bf16 %v5568_v4, %v5566_v57  ;;  %v10611_v31 = vadd.f32 %v5861_v43, %v5773_v46 }
 0x8f4   :  { %v5411_v16 = vpop.f32.mrf.mxu2 }
 0x8f5   :  { %v5500_v62 = vpop.f32.mrf.mxu3  ;;  %5900 = vmatmul.bf16.gmra.mxu1 %v5610_v15  ;;  %v5944_v45 = vsel %vm5931_vm0, %v10611_v31, -inf  ;;  %v5412_v44 = vadd.f32 %v5411_v16, %v10473_v26  ;;  %v5788_v16 = vadd.f32 %v10572_v34, %v10613_v38 }
 0x8f6   :  { %5945 = vmax.xlane.f32.xlu2 %v5944_v45 }
 0x8f7   :  { %v5501_v8 = vadd.f32 %v5500_v62, %v5412_v44 }
 0x8f9   :  { %v5570_v37 = vmax.f32 %v5501_v8, 0.0 }
 0x8fa   :  { %v5863_v49 = vpop.f32.mrf.mxu1  ;;  %v5797_v28 = vpop.f32.mrf.mxu0 }
 0x8fb   :  { %v10620_v0 = vadd.f32 %v5863_v49, %v5775_v21 }
 0x8fc   :  { %v5413_v29 = vpop.f32.mrf.mxu2 }
 0x8fd   :  { %v5414_v60 = vadd.f32 %v5413_v29, %v10473_v26  ;;  %v5502_v10 = vpop.f32.mrf.mxu3  ;;  %v5947_v18 = vsel %vm5931_vm0, %v10620_v0, -inf }
 0x8fe   :  { %5948 = vmax.xlane.f32.xlu2 %v5947_v18 }
 0x8ff   :  { %v5503_v56 = vadd.f32 %v5502_v10, %v5414_v60  ;;  %v5790_v10 = vadd.f32 %v10572_v34, %v5789_v54 }
 0x901   :  { %v5572_v42 = vmax.f32 %v5503_v56, 0.0 }
 0x902   :  { %v5866_v52 = vpop.f32.mrf.mxu1  ;;  %v5799_v60 = vpop.f32.mrf.mxu0 }
 0x903   :  { %v5612_v36 = vpack.c.bf16 %v5572_v42, %v5570_v37  ;;  %v10627_v14 = vadd.f32 %v5866_v52, %v5778_v5 }
 0x904   :  { %v5416_v11 = vpop.f32.mrf.mxu2 }
 0x905   :  { %v5505_v19 = vpop.f32.mrf.mxu3  ;;  %5905 = vmatmul.bf16.gmra.mxu1 %v5612_v36  ;;  %v5950_v48 = vsel %vm5931_vm0, %v10627_v14, -inf  ;;  %v5417_v61 = vadd.f32 %v5416_v11, %v10473_v26 }
 0x906   :  { %5951 = vmax.xlane.f32.xlu0 %v5950_v48  ;;  %v5793_v48 = vadd.f32 %v10572_v34, %v5792_v2 }
 0x907   :  { %v5506_v58 = vadd.f32 %v5505_v19, %v5417_v61 }
 0x909   :  { %v5574_v51 = vmax.f32 %v5506_v58, 0.0 }
 0x90a   :  { %v5868_v13 = vpop.f32.mrf.mxu1  ;;  %v5802_v19 = vpop.f32.mrf.mxu0 }
 0x90b   :  { %v10634_v53 = vadd.f32 %v5868_v13, %v5780_v17 }
 0x90c   :  { %v5418_v7 = vpop.f32.mrf.mxu2 }
 0x90d   :  { %v5419_v24 = vadd.f32 %v5418_v7, %v10473_v26  ;;  %v5507_v27 = vpop.f32.mrf.mxu3  ;;  %v5953_v41 = vsel %vm5931_vm0, %v10634_v53, -inf }
 0x90e   :  { %5954 = vmax.xlane.f32.xlu1 %v5953_v41  ;;  %v5795_v41 = vadd.f32 %v10572_v34, %v5794_v39 }
 0x90f   :  { %v5508_v40 = vadd.f32 %v5507_v27, %v5419_v24 }
 0x911   :  { %v5576_v12 = vmax.f32 %v5508_v40, 0.0 }
 0x912   :  { %v5871_v55 = vpop.f32.mrf.mxu1 }
 0x913   :  { %v5614_v33 = vpack.c.bf16 %v5576_v12, %v5574_v51  ;;  %v10641_v20 = vadd.f32 %v5871_v55, %v5783_v63  ;;  %v5804_v63 = vpop.f32.mrf.mxu0 }
 0x914   :  { %v5421_v1 = vpop.f32.mrf.mxu2 }
 0x915   :  { %v5510_v9 = vpop.f32.mrf.mxu3  ;;  %5910 = vmatmul.bf16.gmra.mxu1 %v5614_v33  ;;  %v5956_v47 = vsel %vm5931_vm0, %v10641_v20, -inf  ;;  %v5422_v23 = vadd.f32 %v5421_v1, %v10473_v26 }
 0x916   :  { %5957 = vmax.xlane.f32.xlu2 %v5956_v47 }
 0x917   :  { %v5511_v46 = vadd.f32 %v5510_v9, %v5422_v23 }
 0x919   :  { %v5578_v30 = vmax.f32 %v5511_v46, 0.0 }
 0x91a   :  { %v5873_v50 = vpop.f32.mrf.mxu1 }
 0x91b   :  { %v10648_v32 = vadd.f32 %v5873_v50, %v5785_v22  ;;  %v5798_v22 = vadd.f32 %v10572_v34, %v5797_v28 }
 0x91c   :  { %v5423_v6 = vpop.f32.mrf.mxu2 }
 0x91d   :  { %v5424_v57 = vadd.f32 %v5423_v6, %v10473_v26  ;;  %v5512_v4 = vpop.f32.mrf.mxu3  ;;  %v5959_v43 = vsel %vm5931_vm0, %v10648_v32, -inf }
 0x91e   :  { %5960 = vmax.xlane.f32.xlu0 %v5959_v43 }
 0x91f   :  { %v5513_v15 = vadd.f32 %v5512_v4, %v5424_v57  ;;  %v5807_v57 = vpop.f32.mrf.mxu0 }
 0x921   :  { %v5580_v62 = vmax.f32 %v5513_v15, 0.0 }
 0x922   :  { %v5876_v45 = vpop.f32.mrf.mxu1 }
 0x923   :  { %v5616_v21 = vpack.c.bf16 %v5580_v62, %v5578_v30  ;;  %v10655_v44 = vadd.f32 %v5876_v45, %v5788_v16 }
 0x924   :  { %v5426_v49 = vpop.f32.mrf.mxu2 }
 0x925   :  { %v5515_v29 = vpop.f32.mrf.mxu3  ;;  %5915 = vmatmul.bf16.gmra.mxu1 %v5616_v21  ;;  %v5962_v8 = vsel %vm5931_vm0, %v10655_v44, -inf  ;;  %v5427_v18 = vadd.f32 %v5426_v49, %v10473_v26  ;;  %v5803_v21 = vadd.f32 %v10572_v34, %v5802_v19 }
 0x926   :  { %5963 = vmax.xlane.f32.xlu1 %v5962_v8 }
 0x927   :  { %v5516_v37 = vadd.f32 %v5515_v29, %v5427_v18  ;;  %v5809_v45 = vpop.f32.mrf.mxu0 }
 0x929   :  { %v5582_v17 = vmax.f32 %v5516_v37, 0.0  ;;  %v5805_v37 = vadd.f32 %v10572_v34, %v5804_v63 }
 0x92a   :  { %v5878_v56 = vpop.f32.mrf.mxu1 }
 0x92b   :  { %v10661_v38 = vadd.f32 %v5878_v56, %v5790_v10 }
 0x92c   :  { %v5428_v5 = vpop.f32.mrf.mxu2 }
 0x92d   :  { %v5429_v42 = vadd.f32 %v5428_v5, %v10473_v26  ;;  %v5517_v52 = vpop.f32.mrf.mxu3  ;;  %v5965_v36 = vsel %vm5931_vm0, %v10661_v38, -inf }
 0x92e   :  { %5966 = vmax.xlane.f32.xlu2 %v5965_v36 }
 0x92f   :  { %v5518_v11 = vadd.f32 %v5517_v52, %v5429_v42  ;;  %v5812_v5 = vpop.f32.mrf.mxu0 }
 0x931   :  { %v5584_v54 = vmax.f32 %v5518_v11, 0.0 }
 0x932   :  { %v5881_v61 = vpop.f32.mrf.mxu1 }
 0x933   :  { %v5618_v13 = vpack.c.bf16 %v5584_v54, %v5582_v17  ;;  %v10667_v7 = vadd.f32 %v5881_v61, %v5793_v48  ;;  %v5808_v54 = vadd.f32 %v10572_v34, %v5807_v57 }
 0x934   :  { %v5431_v58 = vpop.f32.mrf.mxu2 }
 0x935   :  { %v5520_v24 = vpop.f32.mrf.mxu3  ;;  %5920 = vmatmul.bf16.gmra.mxu1 %v5618_v13  ;;  %v5968_v27 = vsel %vm5931_vm0, %v10667_v7, -inf  ;;  %v5432_v40 = vadd.f32 %v5431_v58, %v10473_v26 }
 0x936   :  { %5969 = vmax.xlane.f32.xlu0 %v5968_v27 }
 0x937   :  { %v5521_v55 = vadd.f32 %v5520_v24, %v5432_v40  ;;  %v5814_v13 = vpop.f32.mrf.mxu0 }
 0x939   :  { %v5586_v23 = vmax.f32 %v5521_v55, 0.0 }
 0x93a   :  { %v5883_v51 = vpop.f32.mrf.mxu1 }
 0x93b   :  { %v10673_v2 = vadd.f32 %v5883_v51, %v5795_v41  ;;  %v5810_v51 = vadd.f32 %v10572_v34, %v5809_v45 }
 0x93c   :  { %v5433_v12 = vpop.f32.mrf.mxu2 }
 0x93d   :  { %v5434_v33 = vadd.f32 %v5433_v12, %v10473_v26  ;;  %v5971_v1 = vsel %vm5931_vm0, %v10673_v2, -inf  ;;  %v5522_v9 = vpop.f32.mrf.mxu3  ;;  %v5800_v26 = vadd.f32 %v10572_v34, %v5799_v60 }
 0x93e   :  { %5972 = vmax.xlane.f32.xlu1 %v5971_v1 }
 0x93f   :  { %v5523_v47 = vadd.f32 %v5522_v9, %v5434_v33  ;;  %v5817_v9 = vpop.f32.mrf.mxu0 }
 0x941   :  { %v5588_v39 = vmax.f32 %v5523_v47, 0.0 }
 0x942   :  { %v5886_v50 = vpop.f32.mrf.mxu1 }
 0x943   :  { %v5620_v6 = vpack.c.bf16 %v5588_v39, %v5586_v23  ;;  %v10679_v46 = vadd.f32 %v5886_v50, %v5798_v22  ;;  %v5813_v39 = vadd.f32 %v10572_v34, %v5812_v5 }
 0x945   :  { %5925 = vmatmul.bf16.gmra.mxu1 %v5620_v6  ;;  %v5974_v4 = vsel %vm5931_vm0, %v10679_v46, -inf }
 0x946   :  { %5975 = vmax.xlane.f32.xlu2 %v5974_v4 }
 0x949   :  { %v5934_v43 = vpop.xlane.xlu0 %5933 }
 0x94a   :  { %v6028_v15 = vsub.f32 %v10579_v35, %v5934_v43  ;;  %v5888_v16 = vpop.f32.mrf.mxu1 }
 0x94b   :  { %v10685_v30 = vadd.f32 %v5888_v16, %v5800_v26  ;;  %v5819_v16 = vpop.f32.mrf.mxu0 }
 0x94c   :  { %v6060_v28 = vmul.f32 1.442695, %v6028_v15 }
 0x94d   :  { %v5977_v62 = vsel %vm5931_vm0, %v10685_v30, -inf }
 0x94e   :  { %8124 = vpow2.f32 %v6060_v28  ;;  %5978 = vmax.xlane.f32.xlu0 %v5977_v62  ;;  %v5815_v28 = vadd.f32 %v10572_v34, %v5814_v13 }
 0x951   :  { %v5937_v49 = vpop.xlane.xlu0 %5936 }
 0x952   :  { %v6029_v29 = vsub.f32 %v10586_v3, %v5937_v49  ;;  %v5891_v8 = vpop.f32.mrf.mxu1 }
 0x953   :  { %v10691_v60 = vadd.f32 %v5891_v8, %v5803_v21 }
 0x954   :  { %v10693_v10 = vpop.eup %8124  ;;  %v6062_v35 = vmul.f32 1.442695, %v6029_v29 }
 0x955   :  { %v5980_v18 = vsel %vm5931_vm0, %v10691_v60, -inf  ;;  %v6124_v56 = vsel %vm5931_vm0, %v10693_v10, 0.0 }
 0x956   :  { %8126 = vpow2.f32 %v6062_v35  ;;  %5981 = vmax.xlane.f32.xlu1 %v5980_v18  ;;  %6125 = vadd.xlane.f32.xlu2 %v6124_v56  ;;  %v5822_v18 = vpop.f32.mrf.mxu0  ;;  %v5818_v56 = vadd.f32 %v10572_v34, %v5817_v9 }
 0x959   :  { %v5940_v42 = vpop.xlane.xlu1 %5939 }
 0x95a   :  { %v6030_v3 = vsub.f32 %v10595_v59, %v5940_v42  ;;  %v5893_v52 = vpop.f32.mrf.mxu1 }
 0x95b   :  { %v10701_v36 = vadd.f32 %v5893_v52, %v5805_v37 }
 0x95c   :  { %v10703_v11 = vpop.eup %8126  ;;  %v6064_v19 = vmul.f32 1.442695, %v6030_v3 }
 0x95d   :  { %v5983_v48 = vsel %vm5931_vm0, %v10701_v36, -inf  ;;  %v6127_v17 = vsel %vm5931_vm0, %v10703_v11, 0.0 }
 0x95e   :  { %8128 = vpow2.f32 %v6064_v19  ;;  %5984 = vmax.xlane.f32.xlu2 %v5983_v48  ;;  %6128 = vadd.xlane.f32.xlu0 %v6127_v17  ;;  %v5820_v17 = vadd.f32 %v10572_v34, %v5819_v16 }
 0x961   :  { %v5943_v61 = vpop.xlane.xlu1 %5942 }
 0x962   :  { %v6031_v59 = vsub.f32 %v10604_v25, %v5943_v61  ;;  %v5896_v58 = vpop.f32.mrf.mxu1  ;;  %v5824_v61 = vpop.f32.mrf.mxu0 }
 0x963   :  { %v10711_v24 = vadd.f32 %v5896_v58, %v5808_v54 }
 0x964   :  { %v10713_v27 = vpop.eup %8128  ;;  %v6066_v41 = vmul.f32 1.442695, %v6031_v59 }
 0x965   :  { %v6130_v40 = vsel %vm5931_vm0, %v10713_v27, 0.0  ;;  %v5986_v63 = vsel %vm5931_vm0, %v10711_v24, -inf }
 0x966   :  { %8130 = vpow2.f32 %v6066_v41  ;;  %6131 = vadd.xlane.f32.xlu1 %v6130_v40  ;;  %5987 = vmax.xlane.f32.xlu0 %v5986_v63 }
 0x969   :  { %v5946_v12 = vpop.xlane.xlu2 %5945 }
 0x96a   :  { %v6032_v25 = vsub.f32 %v10611_v31, %v5946_v12  ;;  %v5898_v55 = vpop.f32.mrf.mxu1 }
 0x96b   :  { %v10721_v33 = vadd.f32 %v5898_v55, %v5810_v51  ;;  %v5823_v51 = vadd.f32 %v10572_v34, %v5822_v18 }
 0x96c   :  { %v10723_v1 = vpop.eup %8130  ;;  %v6068_v47 = vmul.f32 1.442695, %v6032_v25 }
 0x96d   :  { %v5989_v22 = vsel %vm5931_vm0, %v10721_v33, -inf  ;;  %v6133_v23 = vsel %vm5931_vm0, %v10723_v1, 0.0 }
 0x96e   :  { %8132 = vpow2.f32 %v6068_v47  ;;  %5990 = vmax.xlane.f32.xlu1 %v5989_v22  ;;  %6134 = vadd.xlane.f32.xlu2 %v6133_v23  ;;  %v5827_v47 = vpop.f32.mrf.mxu0 }
 0x971   :  { %v5949_v50 = vpop.xlane.xlu2 %5948 }
 0x972   :  { %v6033_v31 = vsub.f32 %v10620_v0, %v5949_v50  ;;  %v5901_v6 = vpop.f32.mrf.mxu1  ;;  %v5825_v50 = vadd.f32 %v10572_v34, %v5824_v61 }
 0x973   :  { %v10731_v57 = vadd.f32 %v5901_v6, %v5813_v39 }
 0x974   :  { %v10733_v4 = vpop.eup %8132  ;;  %v6070_v26 = vmul.f32 1.442695, %v6033_v31 }
 0x975   :  { %v5992_v43 = vsel %vm5931_vm0, %v10731_v57, -inf  ;;  %v6136_v15 = vsel %vm5931_vm0, %v10733_v4, 0.0 }
 0x976   :  { %8134 = vpow2.f32 %v6070_v26  ;;  %5993 = vmax.xlane.f32.xlu2 %v5992_v43  ;;  %6137 = vadd.xlane.f32.xlu0 %v6136_v15 }
 0x979   :  { %v5952_v62 = vpop.xlane.xlu0 %5951 }
 0x97a   :  { %v6034_v0 = vsub.f32 %v10627_v14, %v5952_v62  ;;  %v5903_v45 = vpop.f32.mrf.mxu1  ;;  %v5829_v62 = vpop.f32.mrf.mxu0 }
 0x97b   :  { %v10741_v21 = vadd.f32 %v5903_v45, %v5815_v28 }
 0x97c   :  { %v10743_v49 = vpop.eup %8134  ;;  %v6072_v29 = vmul.f32 1.442695, %v6034_v0  ;;  %v5828_v0 = vadd.f32 %v10572_v34, %v5827_v47 }
 0x97d   :  { %v6139_v8 = vsel %vm5931_vm0, %v10743_v49, 0.0  ;;  %v5995_v35 = vsel %vm5931_vm0, %v10741_v21, -inf }
 0x97e   :  { %8136 = vpow2.f32 %v6072_v29  ;;  %6140 = vadd.xlane.f32.xlu1 %v6139_v8  ;;  %5996 = vmax.xlane.f32.xlu0 %v5995_v35 }
 0x981   :  { %v5955_v5 = vpop.xlane.xlu1 %5954 }
 0x982   :  { %v6035_v14 = vsub.f32 %v10634_v53, %v5955_v5  ;;  %v5906_v37 = vpop.f32.mrf.mxu1  ;;  %v5832_v18 = vpop.f32.mrf.mxu0 }
 0x983   :  { %v10751_v42 = vadd.f32 %v5906_v37, %v5818_v56  ;;  %v5830_v56 = vadd.f32 %v10572_v34, %v5829_v62 }
 0x984   :  { %v10753_v3 = vpop.eup %8136  ;;  %v6074_v52 = vmul.f32 1.442695, %v6035_v14 }
 0x985   :  { %v5998_v19 = vsel %vm5931_vm0, %v10751_v42, -inf  ;;  %v6142_v48 = vsel %vm5931_vm0, %v10753_v3, 0.0 }
 0x986   :  { %8138 = vpow2.f32 %v6074_v52  ;;  %5999 = vmax.xlane.f32.xlu1 %v5998_v19  ;;  %6143 = vadd.xlane.f32.xlu2 %v6142_v48  ;;  %v5833_v52 = vadd.f32 %v10572_v34, %v5832_v18 }
 0x989   :  { %v5958_v54 = vpop.xlane.xlu2 %5957 }
 0x98a   :  { %v6036_v53 = vsub.f32 %v10641_v20, %v5958_v54  ;;  %v5908_v13 = vpop.f32.mrf.mxu1  ;;  %v5834_v48 = vpop.f32.mrf.mxu0 }
 0x98b   :  { %v10761_v59 = vadd.f32 %v5908_v13, %v5820_v17 }
 0x98c   :  { %v10763_v58 = vpop.eup %8138  ;;  %v6076_v41 = vmul.f32 1.442695, %v6036_v53 }
 0x98d   :  { %v6145_v40 = vsel %vm5931_vm0, %v10763_v58, 0.0  ;;  %v6001_v63 = vsel %vm5931_vm0, %v10761_v59, -inf }
 0x98e   :  { %8140 = vpow2.f32 %v6076_v41  ;;  %6146 = vadd.xlane.f32.xlu0 %v6145_v40  ;;  %6002 = vmax.xlane.f32.xlu2 %v6001_v63  ;;  %v5835_v41 = vadd.f32 %v10572_v34, %v5834_v48 }
 0x991   :  { %v5961_v12 = vpop.xlane.xlu0 %5960 }
 0x992   :  { %v6037_v20 = vsub.f32 %v10648_v32, %v5961_v12  ;;  %v5911_v25 = vpop.f32.mrf.mxu1 }
 0x993   :  { %v10771_v55 = vadd.f32 %v5911_v25, %v5823_v51 }
 0x994   :  { %v10773_v9 = vpop.eup %8140  ;;  %v6078_v22 = vmul.f32 1.442695, %v6037_v20  ;;  %v5837_v20 = vpop.f32.mrf.mxu0 }
 0x995   :  { %v6148_v23 = vsel %vm5931_vm0, %v10773_v9, 0.0  ;;  %v6004_v39 = vsel %vm5931_vm0, %v10771_v55, -inf }
 0x996   :  { %8142 = vpow2.f32 %v6078_v22  ;;  %6149 = vadd.xlane.f32.xlu1 %v6148_v23  ;;  %6005 = vmax.xlane.f32.xlu0 %v6004_v39  ;;  %v5838_v22 = vadd.f32 %v10572_v34, %v5837_v20 }
 0x999   :  { %v5964_v31 = vpop.xlane.xlu1 %5963 }
 0x99a   :  { %v6038_v32 = vsub.f32 %v10655_v44, %v5964_v31  ;;  %v5913_v6 = vpop.f32.mrf.mxu1 }
 0x99b   :  { %v10781_v26 = vadd.f32 %v5913_v6, %v5825_v50 }
 0x99c   :  { %v10783_v43 = vpop.eup %8142  ;;  %v6080_v15 = vmul.f32 1.442695, %v6038_v32  ;;  %v5839_v62 = vpop.f32.mrf.mxu0 }
 0x99d   :  { %v6007_v16 = vsel %vm5931_vm0, %v10781_v26, -inf  ;;  %v6151_v28 = vsel %vm5931_vm0, %v10783_v43, 0.0 }
 0x99e   :  { %8144 = vpow2.f32 %v6080_v15  ;;  %6008 = vmax.xlane.f32.xlu1 %v6007_v16  ;;  %6152 = vadd.xlane.f32.xlu2 %v6151_v28 }
 0x9a1   :  { %v5967_v40 = vpop.xlane.xlu2 %5966 }
 0x9a2   :  { %v5916_v45 = vpop.f32.mrf.mxu1  ;;  %v6039_v6 = vsub.f32 %v10661_v38, %v5967_v40 }
 0x9a3   :  { %v10790_v44 = vadd.f32 %v5916_v45, %v5828_v0 }
 0x9a4   :  { %v10792_v29 = vpop.eup %8144  ;;  %v6082_v0 = vmul.f32 1.442695, %v6039_v6 }
 0x9a5   :  { %v6154_v8 = vsel %vm5931_vm0, %v10792_v29, 0.0  ;;  %v6010_v35 = vsel %vm5931_vm0, %v10790_v44, -inf }
 0x9a6   :  { %6155 = vadd.xlane.f32.xlu0 %v6154_v8  ;;  %6011 = vmax.xlane.f32.xlu2 %v6010_v35 }
 0x9a9   :  { %v5970_v19 = vpop.xlane.xlu0 %5969 }
 0x9aa   :  { %v5918_v5 = vpop.f32.mrf.mxu1  ;;  %v6040_v61 = vsub.f32 %v10667_v7, %v5970_v19 }
 0x9ab   :  { %v10799_v14 = vadd.f32 %v5918_v5, %v5830_v56 }
 0x9ac   :  { %v6084_v13 = vmul.f32 1.442695, %v6040_v61 }
 0x9ad   :  { %v6013_v37 = vsel %vm5931_vm0, %v10799_v14, -inf }
 0x9ae   :  { %6014 = vmax.xlane.f32.xlu0 %v6013_v37  ;;  %8146 = vpow2.f32 %v6084_v13 }
 0x9b1   :  { %v5973_v63 = vpop.xlane.xlu1 %5972 }
 0x9b2   :  { %v5921_v17 = vpop.f32.mrf.mxu1  ;;  %v6041_v25 = vsub.f32 %v10673_v2, %v5973_v63 }
 0x9b3   :  { %v10804_v54 = vadd.f32 %v5921_v17, %v5833_v52 }
 0x9b4   :  { %v6086_v7 = vmul.f32 1.442695, %v6041_v25  ;;  %v10816_v50 = vpop.eup %8146 }
 0x9b5   :  { %v6016_v53 = vsel %vm5931_vm0, %v10804_v54, -inf  ;;  %v6160_v28 = vsel %vm5931_vm0, %v10816_v50, 0.0 }
 0x9b6   :  { %6017 = vmax.xlane.f32.xlu1 %v6016_v53  ;;  %8148 = vpow2.f32 %v6086_v7 }
 0x9b9   :  { %v5976_v23 = vpop.xlane.xlu2 %5975 }
 0x9ba   :  { %v5923_v51 = vpop.f32.mrf.mxu1  ;;  %v6042_v56 = vsub.f32 %v10679_v46, %v5976_v23 }
 0x9bb   :  { %v10810_v12 = vadd.f32 %v5923_v51, %v5835_v41 }
 0x9bc   :  { %v10827_v38 = vpop.eup %8148 }
 0x9bd   :  { %v6019_v47 = vsel %vm5931_vm0, %v10810_v12, -inf }
 0x9be   :  { %6020 = vmax.xlane.f32.xlu2 %v6019_v47 }
 0x9c1   :  { %v5979_v39 = vpop.xlane.xlu0 %5978 }
 0x9c2   :  { %v6043_v31 = vsub.f32 %v10685_v30, %v5979_v39  ;;  %v5926_v32 = vpop.f32.mrf.mxu1  ;;  %v5840_v30 = vadd.f32 %v10572_v34, %v5839_v62  ;;  %v6163_v34 = vsel %vm5931_vm0, %v10827_v38, 0.0 }
 0x9c3   :  { %v10820_v15 = vadd.f32 %v5926_v32, %v5838_v22 }
 0x9c4   :  { %v6090_v2 = vmul.f32 1.442695, %v6043_v31 }
 0x9c5   :  { %v6022_v16 = vsel %vm5931_vm0, %v10820_v15, -inf }
 0x9c6   :  { %8150 = vpow2.f32 %v6090_v2  ;;  %6023 = vmax.xlane.f32.xlu0 %v6022_v16  ;;  %6161 = vadd.xlane.f32.xlu2 %v6160_v28 }
 0x9c9   :  { %v5982_v45 = vpop.xlane.xlu1 %5981  ;;  %v6126_v8 = vpop.xlane.xlu2 %6125 }
 0x9ca   :  { %v6044_v35 = vsub.f32 %v10691_v60, %v5982_v45  ;;  %8152 = vrcp.f32 %v6126_v8  ;;  %v5928_v18 = vpop.f32.mrf.mxu1  ;;  %v6088_v60 = vmul.f32 1.442695, %v6042_v56  ;;  %v6231_v63 = vand.u32 2147483648, %v6126_v8 }
 0x9cb   :  { %8154 = vpow2.f32 %v6082_v0  ;;  %v10831_v5 = vadd.f32 %v5928_v18, %v5840_v30  ;;  %v6229_v47 = vand.u32 2147483647, %v6126_v8  ;;  %vm6225_vm2 = vweird.f32 %v6126_v8 }
 0x9cc   :  { %v10833_v37 = vpop.eup %8150  ;;  %v6092_v52 = vmul.f32 1.442695, %v6044_v35  ;;  %v6232_v39 = vor.u32 1.1754944e-38, %v6231_v63 }
 0x9cd   :  { %v6025_v19 = vsel %vm5931_vm0, %v10831_v5, -inf  ;;  %v6169_v48 = vsel %vm5931_vm0, %v10833_v37, 0.0  ;;  %vm6230_vm4 = vcmp.eq.f32.partialorder %v6229_v47, 8.507059e+37 }
 0x9ce   :  { %8156 = vpow2.f32 %v6092_v52  ;;  %6026 = vmax.xlane.f32.xlu1 %v6025_v19  ;;  %6164 = vadd.xlane.f32.xlu0 %v6163_v34 }
 0x9cf   :  { %6170 = vadd.xlane.f32.xlu2 %v6169_v48 }
 0x9d0   :  { %v8153_v46 = vpop.eup %8152 }
 0x9d1   :  { %v10841_v17 = vpop.eup %8154  ;;  %v6221_v61 = vmul.f32 %v8153_v46, %v6126_v8  ;;  %v5985_v53 = vpop.xlane.xlu2 %5984  ;;  %vm6226_vm1 = vweird.f32 %v8153_v46 }
 0x9d2   :  { %v6129_v13 = vpop.xlane.xlu0 %6128  ;;  %v6045_v51 = vsub.f32 %v10701_v36, %v5985_v53  ;;  %v6157_v20 = vsel %vm5931_vm0, %v10841_v17, 0.0  ;;  %vm6227_vm3 = vmor %vm6225_vm2, %vm6226_vm1 }
 0x9d3   :  { %8158 = vrcp.f32 %v6129_v13  ;;  %v6222_v41 = vsub.f32 1.0, %v6221_v61  ;;  %v6246_v45 = vand.u32 2147483648, %v6129_v13  ;;  %v6244_v18 = vand.u32 2147483647, %v6129_v13 }
 0x9d4   :  { %8160 = vpow2.f32 %v6088_v60  ;;  %v10843_v40 = vpop.eup %8156  ;;  %v6094_v31 = vmul.f32 1.442695, %v6045_v51  ;;  %vm6240_vm6 = vweird.f32 %v6129_v13 }
 0x9d5   :  { %v6223_v25 = vmul.f32 %v8153_v46, %v6222_v41  ;;  %v6172_v7 = vsel %vm5931_vm0, %v10843_v40, 0.0  ;;  %vm6245_vm8 = vcmp.eq.f32.partialorder %v6244_v18, 8.507059e+37 }
 0x9d6   :  { %6158 = vadd.xlane.f32.xlu1 %v6157_v20  ;;  %6173 = vadd.xlane.f32.xlu0 %v6172_v7 }
 0x9d7   :  { %v6224_v22 = vadd.f32 %v8153_v46, %v6223_v25 }
 0x9d9   :  { %v8159_v23 = vpop.eup %8158  ;;  %v6228_v36 = vsel %vm6227_vm3, %v8153_v46, %v6224_v22  ;;  %v6132_v2 = vpop.xlane.xlu1 %6131 }
 0x9da   :  { %v10850_v32 = vpop.eup %8160  ;;  %v6236_v6 = vmul.f32 %v8159_v23, %v6129_v13  ;;  %v5988_v16 = vpop.xlane.xlu0 %5987  ;;  %v6233_v28 = vsel %vm6230_vm4, %v6232_v39, %v6228_v36  ;;  %8162 = vrcp.f32 %v6132_v2  ;;  %vm6241_vm5 = vweird.f32 %v8159_v23 }
 0x9db   :  { %v6234_v62 = vmul.f32 %v10693_v10, %v6233_v28  ;;  %v6046_v30 = vsub.f32 %v10711_v24, %v5988_v16  ;;  %8164 = vpow2.f32 %v6094_v31  ;;  %v6166_v8 = vsel %vm5931_vm0, %v10850_v32, 0.0  ;;  %vm6242_vm7 = vmor %vm6240_vm6, %vm6241_vm5 }
 0x9dc   :  { %v6237_v0 = vsub.f32 1.0, %v6236_v6  ;;  %v6247_v24 = vor.u32 1.1754944e-38, %v6246_v45  ;;  %v6261_v51 = vand.u32 2147483648, %v6132_v2  ;;  %v6259_v47 = vand.u32 2147483647, %v6132_v2 }
 0x9dd   :  { %6700 = vst.msk [vmem:[%s11109_s7] sm:$0xff] %vm5931_vm0, %v6234_v62  ;;  %v6096_v56 = vmul.f32 1.442695, %v6046_v30  ;;  %vm6255_vm10 = vweird.f32 %v6132_v2 }
 0x9de   :  { %v6238_v35 = vmul.f32 %v8159_v23, %v6237_v0  ;;  %6167 = vadd.xlane.f32.xlu1 %v6166_v8  ;;  %vm6260_vm12 = vcmp.eq.f32.partialorder %v6259_v47, 8.507059e+37 }
 0x9df   :  { %8166 = vpow2.f32 %v6096_v56 }
 0x9e0   :  { %v6239_v52 = vadd.f32 %v8159_v23, %v6238_v35  ;;  %v8163_v10 = vpop.eup %8162 }
 0x9e1   :  { %v6251_v34 = vmul.f32 %v8163_v10, %v6132_v2  ;;  %v5991_v48 = vpop.xlane.xlu1 %5990  ;;  %v6135_v60 = vpop.xlane.xlu2 %6134  ;;  %vm6256_vm9 = vweird.f32 %v8163_v10 }
 0x9e2   :  { %v6243_v19 = vsel %vm6242_vm7, %v8159_v23, %v6239_v52  ;;  %v10860_v46 = vpop.eup %8164  ;;  %v6047_v53 = vsub.f32 %v10721_v33, %v5991_v48  ;;  %8168 = vrcp.f32 %v6135_v60  ;;  %vm6257_vm11 = vmor %vm6255_vm10, %vm6256_vm9  ;;  %v6262_v23 = vor.u32 1.1754944e-38, %v6261_v51 }
 0x9e3   :  { %v6248_v61 = vsel %vm6245_vm8, %v6247_v24, %v6243_v19  ;;  %v6252_v63 = vsub.f32 1.0, %v6251_v34  ;;  %v6175_v7 = vsel %vm5931_vm0, %v10860_v46, 0.0  ;;  %v6276_v45 = vand.u32 2147483648, %v6135_v60 }
 0x9e4   :  { %v6249_v41 = vmul.f32 %v10703_v11, %v6248_v61  ;;  %v6098_v13 = vmul.f32 1.442695, %v6047_v53  ;;  %v6274_v35 = vand.u32 2147483647, %v6135_v60  ;;  %vm6270_vm14 = vweird.f32 %v6135_v60 }
 0x9e5   :  { %v10864_v20 = vpop.eup %8166  ;;  %v6253_v25 = vmul.f32 %v8163_v10, %v6252_v63  ;;  %v6277_v56 = vor.u32 1.1754944e-38, %v6276_v45 }
 0x9e6   :  { %6701 = vst.msk [vmem:[%s11109_s7 + $0x8] sm:$0xff] %vm5931_vm0, %v6249_v41  ;;  %8170 = vpow2.f32 %v6098_v13  ;;  %6176 = vadd.xlane.f32.xlu1 %v6175_v7  ;;  %v6178_v11 = vsel %vm5931_vm0, %v10864_v20, 0.0  ;;  %vm6275_vm1 = vcmp.eq.f32.partialorder %v6274_v35, 8.507059e+37 }
 0x9e7   :  { %v6254_v33 = vadd.f32 %v8163_v10, %v6253_v25  ;;  %6179 = vadd.xlane.f32.xlu2 %v6178_v11 }
 0x9e8   :  { %v8169_v22 = vpop.eup %8168 }
 0x9e9   :  { %v6258_v39 = vsel %vm6257_vm11, %v8163_v10, %v6254_v33  ;;  %v6266_v31 = vmul.f32 %v8169_v22, %v6135_v60  ;;  %v5994_v36 = vpop.xlane.xlu2 %5993  ;;  %v6138_v6 = vpop.xlane.xlu0 %6137  ;;  %vm6271_vm13 = vweird.f32 %v8169_v22 }
 0x9ea   :  { %v6263_v16 = vsel %vm6260_vm12, %v6262_v23, %v6258_v39  ;;  %v6048_v28 = vsub.f32 %v10731_v57, %v5994_v36  ;;  %8172 = vrcp.f32 %v6138_v6  ;;  %vm6272_vm15 = vmor %vm6270_vm14, %vm6271_vm13  ;;  %v6289_v63 = vand.u32 2147483647, %v6138_v6 }
 0x9eb   :  { %v6264_v62 = vmul.f32 %v10713_v27, %v6263_v16  ;;  %v6267_v0 = vsub.f32 1.0, %v6266_v31  ;;  %v6291_v51 = vand.u32 2147483648, %v6138_v6  ;;  %vm6285_vm3 = vweird.f32 %v6138_v6 }
 0x9ec   :  { %v10876_v30 = vpop.eup %8170  ;;  %v6100_v2 = vmul.f32 1.442695, %v6048_v28  ;;  %vm6290_vm5 = vcmp.eq.f32.partialorder %v6289_v63, 8.507059e+37 }
 0x9ed   :  { %6702 = vst.msk [vmem:[%s11109_s7 + $0x10] sm:$0xff] %vm5931_vm0, %v6264_v62  ;;  %v6268_v8 = vmul.f32 %v8169_v22, %v6267_v0  ;;  %v6181_v18 = vsel %vm5931_vm0, %v10876_v30, 0.0  ;;  %v6292_v47 = vor.u32 1.1754944e-38, %v6291_v51 }
 0x9ee   :  { %8174 = vpow2.f32 %v6100_v2  ;;  %6182 = vadd.xlane.f32.xlu0 %v6181_v18 }
 0x9ef   :  { %v6269_v57 = vadd.f32 %v8169_v22, %v6268_v8 }
 0x9f0   :  { %v8173_v27 = vpop.eup %8172 }
 0x9f1   :  { %v6273_v52 = vsel %vm6272_vm15, %v8169_v22, %v6269_v57  ;;  %v6281_v10 = vmul.f32 %v8173_v27, %v6138_v6  ;;  %v6141_v24 = vpop.xlane.xlu1 %6140  ;;  %v5997_v19 = vpop.xlane.xlu0 %5996  ;;  %vm6286_vm2 = vweird.f32 %v8173_v27 }
 0x9f2   :  { %v6278_v34 = vsel %vm6275_vm1, %v6277_v56, %v6273_v52  ;;  %8176 = vrcp.f32 %v6141_v24  ;;  %v6049_v53 = vsub.f32 %v10741_v21, %v5997_v19  ;;  %vm6287_vm4 = vmor %vm6285_vm3, %vm6286_vm2  ;;  %v6306_v16 = vand.u32 2147483648, %v6141_v24 }
 0x9f3   :  { %v6279_v48 = vmul.f32 %v10723_v1, %v6278_v34  ;;  %v6282_v61 = vsub.f32 1.0, %v6281_v10  ;;  %v6304_v0 = vand.u32 2147483647, %v6141_v24  ;;  %vm6300_vm7 = vweird.f32 %v6141_v24 }
 0x9f4   :  { %v10886_v41 = vpop.eup %8174  ;;  %v6102_v13 = vmul.f32 1.442695, %v6049_v53  ;;  %v6307_v2 = vor.u32 1.1754944e-38, %v6306_v16 }
 0x9f5   :  { %6703 = vst.msk [vmem:[%s11109_s7 + $0x18] sm:$0xff] %vm5931_vm0, %v6279_v48  ;;  %v6283_v60 = vmul.f32 %v8173_v27, %v6282_v61  ;;  %v6184_v25 = vsel %vm5931_vm0, %v10886_v41, 0.0  ;;  %vm6305_vm9 = vcmp.eq.f32.partialorder %v6304_v0, 8.507059e+37 }
 0x9f6   :  { %6185 = vadd.xlane.f32.xlu1 %v6184_v25  ;;  %8178 = vpow2.f32 %v6102_v13 }
 0x9f7   :  { %v6284_v1 = vadd.f32 %v8173_v27, %v6283_v60 }
 0x9f8   :  { %v8177_v21 = vpop.eup %8176 }
 0x9f9   :  { %v6288_v7 = vsel %vm6287_vm4, %v8173_v27, %v6284_v1  ;;  %v6296_v11 = vmul.f32 %v8177_v21, %v6141_v24  ;;  %v6000_v33 = vpop.xlane.xlu1 %5999  ;;  %v6144_v22 = vpop.xlane.xlu2 %6143  ;;  %vm6301_vm6 = vweird.f32 %v8177_v21 }
 0x9fa   :  { %v6293_v23 = vsel %vm6290_vm5, %v6292_v47, %v6288_v7  ;;  %v6050_v39 = vsub.f32 %v10751_v42, %v6000_v33  ;;  %8180 = vrcp.f32 %v6144_v22  ;;  %vm6302_vm8 = vmor %vm6300_vm7, %vm6301_vm6  ;;  %v6321_v34 = vand.u32 2147483648, %v6144_v22 }
 0x9fb   :  { %v6294_v31 = vmul.f32 %v10733_v4, %v6293_v23  ;;  %v6297_v36 = vsub.f32 1.0, %v6296_v11  ;;  %v6319_v61 = vand.u32 2147483647, %v6144_v22  ;;  %vm6315_vm11 = vweird.f32 %v6144_v22 }
 0x9fc   :  { %v6104_v28 = vmul.f32 1.442695, %v6050_v39  ;;  %v10896_v62 = vpop.eup %8178  ;;  %v6322_v63 = vor.u32 1.1754944e-38, %v6321_v34 }
 0x9fd   :  { %6704 = vst.msk [vmem:[%s11109_s7 + $0x20] sm:$0xff] %vm5931_vm0, %v6294_v31  ;;  %v6298_v6 = vmul.f32 %v8177_v21, %v6297_v36  ;;  %v6187_v42 = vsel %vm5931_vm0, %v10896_v62, 0.0  ;;  %vm6320_vm13 = vcmp.eq.f32.partialorder %v6319_v61, 8.507059e+37 }
 0x9fe   :  { %8182 = vpow2.f32 %v6104_v28  ;;  %6188 = vadd.xlane.f32.xlu2 %v6187_v42 }
 0x9ff   :  { %v6299_v45 = vadd.f32 %v8177_v21, %v6298_v6 }
 0xa00   :  { %v8181_v4 = vpop.eup %8180 }
 0xa01   :  { %v6303_v8 = vsel %vm6302_vm8, %v8177_v21, %v6299_v45  ;;  %v6311_v35 = vmul.f32 %v8181_v4, %v6144_v22  ;;  %v6003_v18 = vpop.xlane.xlu2 %6002  ;;  %v6147_v57 = vpop.xlane.xlu0 %6146  ;;  %vm6316_vm10 = vweird.f32 %v8181_v4 }
 0xa02   :  { %v6308_v27 = vsel %vm6305_vm9, %v6307_v2, %v6303_v8  ;;  %v6051_v56 = vsub.f32 %v10761_v59, %v6003_v18  ;;  %8184 = vrcp.f32 %v6147_v57  ;;  %vm6317_vm12 = vmor %vm6315_vm11, %vm6316_vm10  ;;  %v6334_v33 = vand.u32 2147483647, %v6147_v57 }
 0xa03   :  { %v6309_v52 = vmul.f32 %v10743_v49, %v6308_v27  ;;  %v6312_v10 = vsub.f32 1.0, %v6311_v35  ;;  %v6336_v23 = vand.u32 2147483648, %v6147_v57  ;;  %vm6330_vm15 = vweird.f32 %v6147_v57 }
 0xa04   :  { %v10906_v19 = vpop.eup %8182  ;;  %v6106_v24 = vmul.f32 1.442695, %v6051_v56  ;;  %vm6335_vm2 = vcmp.eq.f32.partialorder %v6334_v33, 8.507059e+37 }
 0xa05   :  { %6705 = vst.msk [vmem:[%s11109_s7 + $0x28] sm:$0xff] %vm5931_vm0, %v6309_v52  ;;  %v6313_v48 = vmul.f32 %v8181_v4, %v6312_v10  ;;  %v6190_v53 = vsel %vm5931_vm0, %v10906_v19, 0.0  ;;  %v6337_v36 = vor.u32 1.1754944e-38, %v6336_v23 }
 0xa06   :  { %8186 = vpow2.f32 %v6106_v24  ;;  %6191 = vadd.xlane.f32.xlu0 %v6190_v53 }
 0xa07   :  { %v6314_v59 = vadd.f32 %v8181_v4, %v6313_v48 }
 0xa08   :  { %v8185_v49 = vpop.eup %8184 }
 0xa09   :  { %v6318_v51 = vsel %vm6317_vm12, %v8181_v4, %v6314_v59  ;;  %v6326_v60 = vmul.f32 %v8185_v49, %v6147_v57  ;;  %v6150_v13 = vpop.xlane.xlu1 %6149  ;;  %v6006_v25 = vpop.xlane.xlu0 %6005  ;;  %vm6331_vm14 = vweird.f32 %v8185_v49 }
 0xa0a   :  { %v6323_v1 = vsel %vm6320_vm13, %v6322_v63, %v6318_v51  ;;  %8188 = vrcp.f32 %v6150_v13  ;;  %v6052_v7 = vsub.f32 %v10771_v55, %v6006_v25  ;;  %vm6332_vm1 = vmor %vm6330_vm15, %vm6331_vm14  ;;  %v6351_v8 = vand.u32 2147483648, %v6150_v13 }
 0xa0b   :  { %v6324_v21 = vmul.f32 %v10753_v3, %v6323_v1  ;;  %v6327_v47 = vsub.f32 1.0, %v6326_v60  ;;  %v6349_v27 = vand.u32 2147483647, %v6150_v13  ;;  %vm6345_vm4 = vweird.f32 %v6150_v13 }
 0xa0c   :  { %v10916_v11 = vpop.eup %8186  ;;  %v6108_v39 = vmul.f32 1.442695, %v6052_v7  ;;  %v6352_v52 = vor.u32 1.1754944e-38, %v6351_v8 }
 0xa0d   :  { %6706 = vst.msk [vmem:[%s11109_s7 + $0x30] sm:$0xff] %vm5931_vm0, %v6324_v21  ;;  %v6328_v22 = vmul.f32 %v8185_v49, %v6327_v47  ;;  %v6193_v31 = vsel %vm5931_vm0, %v10916_v11, 0.0  ;;  %vm6350_vm6 = vcmp.eq.f32.partialorder %v6349_v27, 8.507059e+37 }
 0xa0e   :  { %6194 = vadd.xlane.f32.xlu1 %v6193_v31  ;;  %8190 = vpow2.f32 %v6108_v39 }
 0xa0f   :  { %v6329_v3 = vadd.f32 %v8185_v49, %v6328_v22 }
 0xa10   :  { %v8189_v55 = vpop.eup %8188 }
 0xa11   :  { %v6333_v16 = vsel %vm6332_vm1, %v8185_v49, %v6329_v3  ;;  %v6341_v28 = vmul.f32 %v8189_v55, %v6150_v13  ;;  %v6009_v6 = vpop.xlane.xlu1 %6008  ;;  %v6153_v0 = vpop.xlane.xlu2 %6152  ;;  %vm6346_vm3 = vweird.f32 %v8189_v55 }
 0xa12   :  { %v6338_v42 = vsel %vm6335_vm2, %v6337_v36, %v6333_v16  ;;  %v6053_v45 = vsub.f32 %v10781_v26, %v6009_v6  ;;  %8192 = vrcp.f32 %v6153_v0  ;;  %vm6347_vm5 = vmor %vm6345_vm4, %vm6346_vm3  ;;  %v6366_v51 = vand.u32 2147483648, %v6153_v0 }
 0xa13   :  { %v6339_v4 = vmul.f32 %v10763_v58, %v6338_v42  ;;  %v6342_v2 = vsub.f32 1.0, %v6341_v28  ;;  %v6364_v25 = vand.u32 2147483647, %v6153_v0  ;;  %vm6360_vm8 = vweird.f32 %v6153_v0 }
 0xa14   :  { %v6110_v35 = vmul.f32 1.442695, %v6053_v45  ;;  %v10926_v18 = vpop.eup %8190  ;;  %v6367_v21 = vor.u32 1.1754944e-38, %v6366_v51 }
 0xa15   :  { %6707 = vst.msk [vmem:[%s11109_s7 + $0x38] sm:$0xff] %vm5931_vm0, %v6339_v4  ;;  %v6343_v57 = vmul.f32 %v8189_v55, %v6342_v2  ;;  %v6196_v26 = vsel %vm5931_vm0, %v10926_v18, 0.0  ;;  %vm6365_vm10 = vcmp.eq.f32.partialorder %v6364_v25, 8.507059e+37 }
 0xa16   :  { %8194 = vpow2.f32 %v6110_v35  ;;  %6197 = vadd.xlane.f32.xlu2 %v6196_v26 }
 0xa17   :  { %v6344_v56 = vadd.f32 %v8189_v55, %v6343_v57 }
 0xa18   :  { %v8193_v58 = vpop.eup %8192 }
 0xa19   :  { %v6348_v10 = vsel %vm6347_vm5, %v8189_v55, %v6344_v56  ;;  %v6356_v34 = vmul.f32 %v8193_v58, %v6153_v0  ;;  %v6012_v24 = vpop.xlane.xlu2 %6011  ;;  %v6156_v48 = vpop.xlane.xlu0 %6155  ;;  %vm6361_vm7 = vweird.f32 %v8193_v58 }
 0xa1a   :  { %v6353_v61 = vsel %vm6350_vm6, %v6352_v52, %v6348_v10  ;;  %v6054_v53 = vsub.f32 %v10790_v44, %v6012_v24  ;;  %8196 = vrcp.f32 %v6156_v48  ;;  %vm6362_vm9 = vmor %vm6360_vm8, %vm6361_vm7  ;;  %v6381_v55 = vand.u32 2147483648, %v6156_v48 }
 0xa1b   :  { %v6354_v59 = vmul.f32 %v10773_v9, %v6353_v61  ;;  %v6357_v49 = vsub.f32 1.0, %v6356_v34  ;;  %v6379_v28 = vand.u32 2147483647, %v6156_v48  ;;  %vm6375_vm12 = vweird.f32 %v6156_v48 }
 0xa1c   :  { %v10936_v63 = vpop.eup %8194  ;;  %v6112_v60 = vmul.f32 1.442695, %v6054_v53 }
 0xa1d   :  { %6708 = vst.msk [vmem:[%s11109_s7 + $0x40] sm:$0xff] %vm5931_vm0, %v6354_v59  ;;  %v6358_v13 = vmul.f32 %v8193_v58, %v6357_v49  ;;  %v6199_v1 = vsel %vm5931_vm0, %v10936_v63, 0.0  ;;  %vm6380_vm14 = vcmp.eq.f32.partialorder %v6379_v28, 8.507059e+37 }
 0xa1e   :  { %8198 = vpow2.f32 %v6112_v60  ;;  %6200 = vadd.xlane.f32.xlu0 %v6199_v1 }
 0xa1f   :  { %v6359_v44 = vadd.f32 %v8193_v58, %v6358_v13 }
 0xa20   :  { %v8197_v9 = vpop.eup %8196 }
 0xa21   :  { %v6363_v47 = vsel %vm6362_vm9, %v8193_v58, %v6359_v44  ;;  %v6371_v7 = vmul.f32 %v8197_v9, %v6156_v48  ;;  %v6015_v33 = vpop.xlane.xlu0 %6014  ;;  %vm6376_vm11 = vweird.f32 %v8197_v9 }
 0xa22   :  { %v6368_v23 = vsel %vm6365_vm10, %v6367_v21, %v6363_v47  ;;  %v6055_v22 = vsub.f32 %v10799_v14, %v6015_v33  ;;  %vm6377_vm13 = vmor %vm6375_vm12, %vm6376_vm11 }
 0xa23   :  { %v6369_v39 = vmul.f32 %v10783_v43, %v6368_v23  ;;  %v6372_v31 = vsub.f32 1.0, %v6371_v7  ;;  %v6382_v43 = vor.u32 1.1754944e-38, %v6381_v55 }
 0xa24   :  { %v10946_v3 = vpop.eup %8198  ;;  %v6114_v36 = vmul.f32 1.442695, %v6055_v22 }
 0xa25   :  { %6709 = vst.msk [vmem:[%s11109_s7 + $0x48] sm:$0xff] %vm5931_vm0, %v6369_v39  ;;  %v6373_v16 = vmul.f32 %v8197_v9, %v6372_v31  ;;  %v6202_v6 = vsel %vm5931_vm0, %v10946_v3, 0.0 }
 0xa26   :  { %8200 = vpow2.f32 %v6114_v36  ;;  %6203 = vadd.xlane.f32.xlu1 %v6202_v6 }
 0xa27   :  { %v6374_v14 = vadd.f32 %v8197_v9, %v6373_v16 }
 0xa29   :  { %v6378_v0 = vsel %vm6377_vm13, %v8197_v9, %v6374_v14  ;;  %v6018_v42 = vpop.xlane.xlu1 %6017 }
 0xa2a   :  { %v6383_v45 = vsel %vm6380_vm14, %v6382_v43, %v6378_v0  ;;  %v6056_v4 = vsub.f32 %v10804_v54, %v6018_v42 }
 0xa2b   :  { %v6384_v2 = vmul.f32 %v10792_v29, %v6383_v45 }
 0xa2c   :  { %v10956_v8 = vpop.eup %8200  ;;  %v6116_v35 = vmul.f32 1.442695, %v6056_v4 }
 0xa2d   :  { %6710 = vst.msk [vmem:[%s11109_s7 + $0x50] sm:$0xff] %vm5931_vm0, %v6384_v2  ;;  %v6205_v57 = vsel %vm5931_vm0, %v10956_v8, 0.0 }
 0xa2e   :  { %8202 = vpow2.f32 %v6116_v35  ;;  %6206 = vadd.xlane.f32.xlu2 %v6205_v57 }
 0xa31   :  { %v6021_v27 = vpop.xlane.xlu2 %6020 }
 0xa32   :  { %v6057_v26 = vsub.f32 %v10810_v12, %v6021_v27 }
 0xa34   :  { %v10965_v56 = vpop.eup %8202  ;;  %v6118_v54 = vmul.f32 1.442695, %v6057_v26 }
 0xa35   :  { %v6208_v29 = vsel %vm5931_vm0, %v10965_v56, 0.0 }
 0xa36   :  { %8204 = vpow2.f32 %v6118_v54  ;;  %6209 = vadd.xlane.f32.xlu0 %v6208_v29 }
 0xa39   :  { %v6162_v58 = vpop.xlane.xlu2 %6161  ;;  %v6024_v52 = vpop.xlane.xlu0 %6023 }
 0xa3a   :  { %8206 = vrcp.f32 %v6162_v58  ;;  %v6058_v10 = vsub.f32 %v10820_v15, %v6024_v52  ;;  %v6411_v13 = vand.u32 2147483648, %v6162_v58  ;;  %v6409_v44 = vand.u32 2147483647, %v6162_v58 }
 0xa3b   :  { %vm6405_vm1 = vweird.f32 %v6162_v58 }
 0xa3c   :  { %v10970_v34 = vpop.eup %8204  ;;  %v6120_v24 = vmul.f32 1.442695, %v6058_v10  ;;  %vm6410_vm3 = vcmp.eq.f32.partialorder %v6409_v44, 8.507059e+37 }
 0xa3d   :  { %v6211_v48 = vsel %vm5931_vm0, %v10970_v34, 0.0 }
 0xa3e   :  { %6212 = vadd.xlane.f32.xlu1 %v6211_v48  ;;  %8208 = vpow2.f32 %v6120_v24 }
 0xa40   :  { %v8207_v12 = vpop.eup %8206 }
 0xa41   :  { %v6401_v61 = vmul.f32 %v8207_v12, %v6162_v58  ;;  %v6027_v53 = vpop.xlane.xlu1 %6026  ;;  %v6165_v59 = vpop.xlane.xlu0 %6164  ;;  %vm6406_vm15 = vweird.f32 %v8207_v12 }
 0xa42   :  { %v6059_v49 = vsub.f32 %v10831_v5, %v6027_v53  ;;  %v6171_v51 = vpop.xlane.xlu2 %6170  ;;  %8210 = vrcp.f32 %v6165_v59  ;;  %vm6407_vm2 = vmor %vm6405_vm1, %vm6406_vm15  ;;  %v6412_v5 = vor.u32 1.1754944e-38, %v6411_v13  ;;  %v6426_v14 = vand.u32 2147483648, %v6165_v59 }
 0xa43   :  { %v6402_v60 = vsub.f32 1.0, %v6401_v61  ;;  %8212 = vrcp.f32 %v6171_v51  ;;  %v6456_v43 = vand.u32 2147483648, %v6171_v51  ;;  %v6424_v42 = vand.u32 2147483647, %v6165_v59 }
 0xa44   :  { %v6122_v15 = vmul.f32 1.442695, %v6059_v49  ;;  %v10975_v25 = vpop.eup %8208  ;;  %v6454_v4 = vand.u32 2147483647, %v6171_v51  ;;  %vm6420_vm6 = vweird.f32 %v6165_v59  ;;  %vm6450_vm7 = vweird.f32 %v6171_v51 }
 0xa45   :  { %v6403_v1 = vmul.f32 %v8207_v12, %v6402_v60  ;;  %v6214_v9 = vsel %vm5931_vm0, %v10975_v25, 0.0  ;;  %v6427_v27 = vor.u32 1.1754944e-38, %v6426_v14  ;;  %v6457_v26 = vor.u32 1.1754944e-38, %v6456_v43 }
 0xa46   :  { %8214 = vpow2.f32 %v6122_v15  ;;  %6215 = vadd.xlane.f32.xlu2 %v6214_v9  ;;  %vm6425_vm10 = vcmp.eq.f32.partialorder %v6424_v42, 8.507059e+37  ;;  %vm6455_vm11 = vcmp.eq.f32.partialorder %v6454_v4, 8.507059e+37 }
 0xa47   :  { %v6404_v21 = vadd.f32 %v8207_v12, %v6403_v1 }
 0xa48   :  { %v8211_v47 = vpop.eup %8210 }
 0xa49   :  { %v8213_v7 = vpop.eup %8212  ;;  %v6408_v33 = vsel %vm6407_vm2, %v8207_v12, %v6404_v21  ;;  %v6416_v23 = vmul.f32 %v8211_v47, %v6165_v59  ;;  %v10979_v22 = vpop.xlane.xlu1 %6158  ;;  %vm6421_vm4 = vweird.f32 %v8211_v47 }
 0xa4a   :  { %v10981_v39 = vpop.xlane.xlu0 %6173  ;;  %v6413_v31 = vsel %vm6410_vm3, %v6412_v5, %v6408_v33  ;;  %v6446_v55 = vmul.f32 %v8213_v7, %v6171_v51  ;;  %8216 = vrcp.f32 %v10979_v22  ;;  %vm6451_vm5 = vweird.f32 %v8213_v7  ;;  %vm6422_vm8 = vmor %vm6420_vm6, %vm6421_vm4 }
 0xa4b   :  { %v6414_v36 = vmul.f32 %v10816_v50, %v6413_v31  ;;  %v6417_v16 = vsub.f32 1.0, %v6416_v23  ;;  %8218 = vrcp.f32 %v10981_v39  ;;  %vm6452_vm9 = vmor %vm6450_vm7, %vm6451_vm5  ;;  %v6396_v49 = vand.u32 2147483648, %v10979_v22 }
 0xa4c   :  { %v10985_v28 = vpop.eup %8214  ;;  %v6447_v6 = vsub.f32 1.0, %v6446_v55  ;;  %v6394_v60 = vand.u32 2147483647, %v10979_v22  ;;  %vm6390_vm13 = vweird.f32 %v10979_v22  ;;  %v6469_v1 = vand.u32 2147483647, %v10981_v39 }
 0xa4d   :  { %6712 = vst.msk [vmem:[%s11109_s7 + $0x60] sm:$0xff] %vm5931_vm0, %v6414_v36  ;;  %v6418_v0 = vmul.f32 %v8211_v47, %v6417_v16  ;;  %v6217_v50 = vsel %vm5931_vm0, %v10985_v28, 0.0  ;;  %v6397_v9 = vor.u32 1.1754944e-38, %v6396_v49  ;;  %vm6465_vm1 = vweird.f32 %v10981_v39 }
 0xa4e   :  { %v6448_v45 = vmul.f32 %v8213_v7, %v6447_v6  ;;  %6218 = vadd.xlane.f32.xlu0 %v6217_v50  ;;  %vm6395_vm2 = vcmp.eq.f32.partialorder %v6394_v60, 8.507059e+37  ;;  %vm6470_vm4 = vcmp.eq.f32.partialorder %v6469_v1, 8.507059e+37 }
 0xa4f   :  { %v6419_v2 = vadd.f32 %v8211_v47, %v6418_v0 }
 0xa50   :  { %v8217_v35 = vpop.eup %8216  ;;  %v6449_v57 = vadd.f32 %v8213_v7, %v6448_v45 }
 0xa51   :  { %v6423_v54 = vsel %vm6422_vm8, %v8211_v47, %v6419_v2  ;;  %v6386_v29 = vmul.f32 %v8217_v35, %v10979_v22  ;;  %v6168_v58 = vpop.xlane.xlu1 %6167  ;;  %v8219_v52 = vpop.eup %8218  ;;  %vm6391_vm12 = vweird.f32 %v8217_v35 }
 0xa52   :  { %v6453_v10 = vsel %vm6452_vm9, %v8213_v7, %v6449_v57  ;;  %v6428_v24 = vsel %vm6425_vm10, %v6427_v27, %v6423_v54  ;;  %8220 = vrcp.f32 %v6168_v58  ;;  %v6461_v53 = vmul.f32 %v8219_v52, %v10981_v39  ;;  %vm6392_vm15 = vmor %vm6390_vm13, %vm6391_vm12 }
 0xa53   :  { %v6458_v48 = vsel %vm6455_vm11, %v6457_v26, %v6453_v10  ;;  %v6429_v12 = vmul.f32 %v10827_v38, %v6428_v24  ;;  %v6387_v61 = vsub.f32 1.0, %v6386_v29  ;;  %v6471_v38 = vand.u32 2147483648, %v10981_v39 }
 0xa54   :  { %v6459_v59 = vmul.f32 %v10833_v37, %v6458_v48  ;;  %v6462_v13 = vsub.f32 1.0, %v6461_v53  ;;  %vm6466_vm14 = vweird.f32 %v8219_v52  ;;  %v6441_v6 = vand.u32 2147483648, %v6168_v58 }
 0xa55   :  { %6713 = vst.msk [vmem:[%s11109_s7 + $0x68] sm:$0xff] %vm5931_vm0, %v6429_v12  ;;  %v6388_v51 = vmul.f32 %v8217_v35, %v6387_v61  ;;  %vm6467_vm3 = vmor %vm6465_vm1, %vm6466_vm14  ;;  %v6472_v23 = vor.u32 1.1754944e-38, %v6471_v38  ;;  %v6439_v43 = vand.u32 2147483647, %v6168_v58  ;;  %vm6435_vm6 = vweird.f32 %v6168_v58 }
 0xa56   :  { %6715 = vst.msk [vmem:[%s11109_s7 + $0x78] sm:$0xff] %vm5931_vm0, %v6459_v59  ;;  %v6463_v15 = vmul.f32 %v8219_v52, %v6462_v13  ;;  %v6442_v42 = vor.u32 1.1754944e-38, %v6441_v6 }
 0xa57   :  { %v6389_v37 = vadd.f32 %v8217_v35, %v6388_v51  ;;  %vm6440_vm8 = vcmp.eq.f32.partialorder %v6439_v43, 8.507059e+37 }
 0xa58   :  { %v8221_v44 = vpop.eup %8220  ;;  %v6464_v47 = vadd.f32 %v8219_v52, %v6463_v15 }
 0xa59   :  { %v6393_v21 = vsel %vm6392_vm15, %v8217_v35, %v6389_v37  ;;  %v6431_v5 = vmul.f32 %v8221_v44, %v6168_v58  ;;  %v6177_v7 = vpop.xlane.xlu1 %6176  ;;  %vm6436_vm5 = vweird.f32 %v8221_v44 }
 0xa5a   :  { %v6398_v33 = vsel %vm6395_vm2, %v6397_v9, %v6393_v21  ;;  %8222 = vrcp.f32 %v6177_v7  ;;  %v6180_v22 = vpop.xlane.xlu2 %6179  ;;  %v6468_v55 = vsel %vm6467_vm3, %v8219_v52, %v6464_v47  ;;  %vm6437_vm7 = vmor %vm6435_vm6, %vm6436_vm5  ;;  %v6484_v26 = vand.u32 2147483647, %v6177_v7 }
 0xa5b   :  { %v6399_v31 = vmul.f32 %v10841_v17, %v6398_v33  ;;  %v6432_v36 = vsub.f32 1.0, %v6431_v5  ;;  %v6473_v16 = vsel %vm6470_vm4, %v6472_v23, %v6468_v55  ;;  %8224 = vrcp.f32 %v6180_v22 }
 0xa5c   :  { %v6474_v39 = vmul.f32 %v10843_v40, %v6473_v16  ;;  %v6486_v54 = vand.u32 2147483648, %v6177_v7  ;;  %vm6480_vm10 = vweird.f32 %v6177_v7  ;;  %v6501_v52 = vand.u32 2147483648, %v6180_v22 }
 0xa5d   :  { %6711 = vst.msk [vmem:[%s11109_s7 + $0x58] sm:$0xff] %vm5931_vm0, %v6399_v31  ;;  %v6433_v14 = vmul.f32 %v8221_v44, %v6432_v36  ;;  %v6499_v48 = vand.u32 2147483647, %v6180_v22  ;;  %vm6485_vm13 = vcmp.eq.f32.partialorder %v6484_v26, 8.507059e+37  ;;  %vm6495_vm14 = vweird.f32 %v6180_v22 }
 0xa5e   :  { %6716 = vst.msk [vmem:[%s11109_s7 + $0x80] sm:$0xff] %vm5931_vm0, %v6474_v39  ;;  %v6502_v60 = vor.u32 1.1754944e-38, %v6501_v52 }
 0xa5f   :  { %v6434_v17 = vadd.f32 %v8221_v44, %v6433_v14  ;;  %vm6500_vm1 = vcmp.eq.f32.partialorder %v6499_v48, 8.507059e+37 }
 0xa60   :  { %v8223_v0 = vpop.eup %8222 }
 0xa61   :  { %v6438_v45 = vsel %vm6437_vm7, %v8221_v44, %v6434_v17  ;;  %v6476_v4 = vmul.f32 %v8223_v0, %v6177_v7  ;;  %v6183_v50 = vpop.xlane.xlu0 %6182  ;;  %v8225_v2 = vpop.eup %8224  ;;  %vm6481_vm9 = vweird.f32 %v8223_v0 }
 0xa62   :  { %v6443_v35 = vsel %vm6440_vm8, %v6442_v42, %v6438_v45  ;;  %8226 = vrcp.f32 %v6183_v50  ;;  %v6491_v27 = vmul.f32 %v8225_v2, %v6180_v22  ;;  %vm6496_vm11 = vweird.f32 %v8225_v2  ;;  %vm6482_vm12 = vmor %vm6480_vm10, %vm6481_vm9 }
 0xa63   :  { %v6444_v40 = vmul.f32 %v10850_v32, %v6443_v35  ;;  %v6477_v57 = vsub.f32 1.0, %v6476_v4  ;;  %v6487_v32 = vor.u32 1.1754944e-38, %v6486_v54  ;;  %vm6497_vm15 = vmor %vm6495_vm14, %vm6496_vm11  ;;  %v6516_v1 = vand.u32 2147483648, %v6183_v50 }
 0xa64   :  { %v6492_v58 = vsub.f32 1.0, %v6491_v27  ;;  %v6514_v21 = vand.u32 2147483647, %v6183_v50  ;;  %vm6510_vm3 = vweird.f32 %v6183_v50 }
 0xa65   :  { %6714 = vst.msk [vmem:[%s11109_s7 + $0x70] sm:$0xff] %vm5931_vm0, %v6444_v40  ;;  %v6478_v29 = vmul.f32 %v8223_v0, %v6477_v57  ;;  %v6517_v5 = vor.u32 1.1754944e-38, %v6516_v1 }
 0xa66   :  { %v6493_v24 = vmul.f32 %v8225_v2, %v6492_v58  ;;  %vm6515_vm5 = vcmp.eq.f32.partialorder %v6514_v21, 8.507059e+37 }
 0xa67   :  { %v6479_v10 = vadd.f32 %v8223_v0, %v6478_v29 }
 0xa68   :  { %v8227_v12 = vpop.eup %8226  ;;  %v6494_v53 = vadd.f32 %v8225_v2, %v6493_v24 }
 0xa69   :  { %v6483_v61 = vsel %vm6482_vm12, %v8223_v0, %v6479_v10  ;;  %v6506_v59 = vmul.f32 %v8227_v12, %v6183_v50  ;;  %v6186_v49 = vpop.xlane.xlu1 %6185  ;;  %vm6511_vm2 = vweird.f32 %v8227_v12 }
 0xa6a   :  { %v6488_v51 = vsel %vm6485_vm13, %v6487_v32, %v6483_v61  ;;  %8228 = vrcp.f32 %v6186_v49  ;;  %v6498_v38 = vsel %vm6497_vm15, %v8225_v2, %v6494_v53  ;;  %vm6512_vm4 = vmor %vm6510_vm3, %vm6511_vm2  ;;  %v6531_v55 = vand.u32 2147483648, %v6186_v49 }
 0xa6b   :  { %v6489_v13 = vmul.f32 %v10860_v46, %v6488_v51  ;;  %v6507_v37 = vsub.f32 1.0, %v6506_v59  ;;  %v6503_v15 = vsel %vm6500_vm1, %v6502_v60, %v6498_v38  ;;  %v6529_v16 = vand.u32 2147483647, %v6186_v49 }
 0xa6c   :  { %v6504_v44 = vmul.f32 %v10864_v20, %v6503_v15  ;;  %vm6525_vm7 = vweird.f32 %v6186_v49  ;;  %v6532_v39 = vor.u32 1.1754944e-38, %v6531_v55 }
 0xa6d   :  { %6717 = vst.msk [vmem:[%s11109_s7 + $0x88] sm:$0xff] %vm5931_vm0, %v6489_v13  ;;  %v6508_v9 = vmul.f32 %v8227_v12, %v6507_v37  ;;  %vm6530_vm9 = vcmp.eq.f32.partialorder %v6529_v16, 8.507059e+37 }
 0xa6e   :  { %6718 = vst.msk [vmem:[%s11109_s7 + $0x90] sm:$0xff] %vm5931_vm0, %v6504_v44 }
 0xa6f   :  { %v6509_v46 = vadd.f32 %v8227_v12, %v6508_v9 }
 0xa70   :  { %v8229_v47 = vpop.eup %8228 }
 0xa71   :  { %v6513_v7 = vsel %vm6512_vm4, %v8227_v12, %v6509_v46  ;;  %v6521_v33 = vmul.f32 %v8229_v47, %v6186_v49  ;;  %v6189_v22 = vpop.xlane.xlu2 %6188  ;;  %vm6526_vm6 = vweird.f32 %v8229_v47 }
 0xa72   :  { %v6518_v23 = vsel %vm6515_vm5, %v6517_v5, %v6513_v7  ;;  %8230 = vrcp.f32 %v6189_v22  ;;  %vm6527_vm8 = vmor %vm6525_vm7, %vm6526_vm6  ;;  %v6546_v4 = vand.u32 2147483648, %v6189_v22  ;;  %v6544_v2 = vand.u32 2147483647, %v6189_v22 }
 0xa73   :  { %v6519_v20 = vmul.f32 %v10876_v30, %v6518_v23  ;;  %v6522_v31 = vsub.f32 1.0, %v6521_v33  ;;  %vm6540_vm11 = vweird.f32 %v6189_v22 }
 0xa74   :  { %v6547_v57 = vor.u32 1.1754944e-38, %v6546_v4  ;;  %vm6545_vm13 = vcmp.eq.f32.partialorder %v6544_v2, 8.507059e+37 }
 0xa75   :  { %6719 = vst.msk [vmem:[%s11109_s7 + $0x98] sm:$0xff] %vm5931_vm0, %v6519_v20  ;;  %v6523_v36 = vmul.f32 %v8229_v47, %v6522_v31 }
 0xa77   :  { %v6524_v6 = vadd.f32 %v8229_v47, %v6523_v36 }
 0xa78   :  { %v8231_v14 = vpop.eup %8230 }
 0xa79   :  { %v6528_v43 = vsel %vm6527_vm8, %v8229_v47, %v6524_v6  ;;  %v6192_v17 = vpop.xlane.xlu0 %6191  ;;  %v6536_v0 = vmul.f32 %v8231_v14, %v6189_v22  ;;  %vm6541_vm10 = vweird.f32 %v8231_v14 }
 0xa7a   :  { %v6533_v30 = vsel %vm6530_vm9, %v6532_v39, %v6528_v43  ;;  %8232 = vrcp.f32 %v6192_v17  ;;  %vm6542_vm12 = vmor %vm6540_vm11, %vm6541_vm10  ;;  %v6561_v52 = vand.u32 2147483648, %v6192_v17  ;;  %v6559_v24 = vand.u32 2147483647, %v6192_v17 }
 0xa7b   :  { %v6534_v42 = vmul.f32 %v10886_v41, %v6533_v30  ;;  %v6537_v45 = vsub.f32 1.0, %v6536_v0  ;;  %vm6555_vm15 = vweird.f32 %v6192_v17 }
 0xa7c   :  { %v6562_v32 = vor.u32 1.1754944e-38, %v6561_v52  ;;  %vm6560_vm2 = vcmp.eq.f32.partialorder %v6559_v24, 8.507059e+37 }
 0xa7d   :  { %6720 = vst.msk [vmem:[%s11109_s7 + $0xa0] sm:$0xff] %vm5931_vm0, %v6534_v42  ;;  %v6538_v50 = vmul.f32 %v8231_v14, %v6537_v45 }
 0xa7f   :  { %v6539_v40 = vadd.f32 %v8231_v14, %v6538_v50 }
 0xa80   :  { %v8233_v35 = vpop.eup %8232 }
 0xa81   :  { %v6551_v27 = vmul.f32 %v8233_v35, %v6192_v17  ;;  %v6195_v26 = vpop.xlane.xlu1 %6194  ;;  %v6543_v54 = vsel %vm6542_vm12, %v8231_v14, %v6539_v40  ;;  %vm6556_vm14 = vweird.f32 %v8233_v35 }
 0xa82   :  { %8234 = vrcp.f32 %v6195_v26  ;;  %v6548_v41 = vsel %vm6545_vm13, %v6547_v57, %v6543_v54  ;;  %vm6557_vm1 = vmor %vm6555_vm15, %vm6556_vm14  ;;  %v6576_v60 = vand.u32 2147483648, %v6195_v26  ;;  %v6574_v38 = vand.u32 2147483647, %v6195_v26 }
 0xa83   :  { %v6552_v29 = vsub.f32 1.0, %v6551_v27  ;;  %v6549_v58 = vmul.f32 %v10896_v62, %v6548_v41  ;;  %vm6570_vm4 = vweird.f32 %v6195_v26 }
 0xa84   :  { %v6577_v15 = vor.u32 1.1754944e-38, %v6576_v60  ;;  %vm6575_vm6 = vcmp.eq.f32.partialorder %v6574_v38, 8.507059e+37 }
 0xa85   :  { %v6553_v10 = vmul.f32 %v8233_v35, %v6552_v29  ;;  %6721 = vst.msk [vmem:[%s11109_s7 + $0xa8] sm:$0xff] %vm5931_vm0, %v6549_v58 }
 0xa87   :  { %v6554_v48 = vadd.f32 %v8233_v35, %v6553_v10 }
 0xa88   :  { %v8235_v12 = vpop.eup %8234 }
 0xa89   :  { %v6558_v61 = vsel %vm6557_vm1, %v8233_v35, %v6554_v48  ;;  %v6566_v53 = vmul.f32 %v8235_v12, %v6195_v26  ;;  %v6198_v49 = vpop.xlane.xlu2 %6197  ;;  %vm6571_vm3 = vweird.f32 %v8235_v12 }
 0xa8a   :  { %v6563_v59 = vsel %vm6560_vm2, %v6562_v32, %v6558_v61  ;;  %8236 = vrcp.f32 %v6198_v49  ;;  %vm6572_vm5 = vmor %vm6570_vm4, %vm6571_vm3  ;;  %v6591_v5 = vand.u32 2147483648, %v6198_v49  ;;  %v6589_v33 = vand.u32 2147483647, %v6198_v49 }
 0xa8b   :  { %v6564_v62 = vmul.f32 %v10906_v19, %v6563_v59  ;;  %v6567_v51 = vsub.f32 1.0, %v6566_v53  ;;  %vm6585_vm8 = vweird.f32 %v6198_v49 }
 0xa8c   :  { %v6592_v20 = vor.u32 1.1754944e-38, %v6591_v5  ;;  %vm6590_vm10 = vcmp.eq.f32.partialorder %v6589_v33, 8.507059e+37 }
 0xa8d   :  { %6722 = vst.msk [vmem:[%s11109_s7 + $0xb0] sm:$0xff] %vm5931_vm0, %v6564_v62  ;;  %v6568_v13 = vmul.f32 %v8235_v12, %v6567_v51 }
 0xa8f   :  { %v6569_v37 = vadd.f32 %v8235_v12, %v6568_v13 }
 0xa90   :  { %v8237_v1 = vpop.eup %8236 }
 0xa91   :  { %v6573_v44 = vsel %vm6572_vm5, %v8235_v12, %v6569_v37  ;;  %v6201_v9 = vpop.xlane.xlu0 %6200  ;;  %v6581_v21 = vmul.f32 %v8237_v1, %v6198_v49  ;;  %vm6586_vm7 = vweird.f32 %v8237_v1 }
 0xa92   :  { %v6578_v19 = vsel %vm6575_vm6, %v6577_v15, %v6573_v44  ;;  %8238 = vrcp.f32 %v6201_v9  ;;  %vm6587_vm9 = vmor %vm6585_vm8, %vm6586_vm7  ;;  %v6606_v39 = vand.u32 2147483648, %v6201_v9  ;;  %v6604_v43 = vand.u32 2147483647, %v6201_v9 }
 0xa93   :  { %v6579_v46 = vmul.f32 %v10916_v11, %v6578_v19  ;;  %v6582_v47 = vsub.f32 1.0, %v6581_v21  ;;  %vm6600_vm12 = vweird.f32 %v6201_v9 }
 0xa94   :  { %v6607_v0 = vor.u32 1.1754944e-38, %v6606_v39  ;;  %vm6605_vm14 = vcmp.eq.f32.partialorder %v6604_v43, 8.507059e+37 }
 0xa95   :  { %6723 = vst.msk [vmem:[%s11109_s7 + $0xb8] sm:$0xff] %vm5931_vm0, %v6579_v46  ;;  %v6583_v7 = vmul.f32 %v8237_v1, %v6582_v47 }
 0xa97   :  { %v6584_v22 = vadd.f32 %v8237_v1, %v6583_v7 }
 0xa98   :  { %v8239_v23 = vpop.eup %8238 }
 0xa99   :  { %v6596_v31 = vmul.f32 %v8239_v23, %v6201_v9  ;;  %v6204_v55 = vpop.xlane.xlu1 %6203  ;;  %v6588_v36 = vsel %vm6587_vm9, %v8237_v1, %v6584_v22  ;;  %vm6601_vm11 = vweird.f32 %v8239_v23 }
 0xa9a   :  { %8240 = vrcp.f32 %v6204_v55  ;;  %v6593_v11 = vsel %vm6590_vm10, %v6592_v20, %v6588_v36  ;;  %vm6602_vm13 = vmor %vm6600_vm12, %vm6601_vm11  ;;  %v6621_v35 = vand.u32 2147483648, %v6204_v55  ;;  %v6619_v57 = vand.u32 2147483647, %v6204_v55 }
 0xa9b   :  { %v6597_v16 = vsub.f32 1.0, %v6596_v31  ;;  %v6594_v6 = vmul.f32 %v10926_v18, %v6593_v11  ;;  %vm6615_vm1 = vweird.f32 %v6204_v55 }
 0xa9c   :  { %v6622_v54 = vor.u32 1.1754944e-38, %v6621_v35  ;;  %vm6620_vm3 = vcmp.eq.f32.partialorder %v6619_v57, 8.507059e+37 }
 0xa9d   :  { %v6598_v14 = vmul.f32 %v8239_v23, %v6597_v16  ;;  %6724 = vst.msk [vmem:[%s11109_s7 + $0xc0] sm:$0xff] %vm5931_vm0, %v6594_v6 }
 0xa9f   :  { %v6599_v17 = vadd.f32 %v8239_v23, %v6598_v14 }
 0xaa0   :  { %v8241_v30 = vpop.eup %8240 }
 0xaa1   :  { %v6603_v42 = vsel %vm6602_vm13, %v8239_v23, %v6599_v17  ;;  %v6611_v45 = vmul.f32 %v8241_v30, %v6204_v55  ;;  %v6207_v4 = vpop.xlane.xlu2 %6206  ;;  %vm6616_vm15 = vweird.f32 %v8241_v30 }
 0xaa2   :  { %v6608_v50 = vsel %vm6605_vm14, %v6607_v0, %v6603_v42  ;;  %8242 = vrcp.f32 %v6207_v4  ;;  %vm6617_vm2 = vmor %vm6615_vm1, %vm6616_vm15  ;;  %v6636_v24 = vand.u32 2147483648, %v6207_v4  ;;  %v6634_v12 = vand.u32 2147483647, %v6207_v4 }
 0xaa3   :  { %v6609_v18 = vmul.f32 %v10936_v63, %v6608_v50  ;;  %v6612_v2 = vsub.f32 1.0, %v6611_v45  ;;  %vm6630_vm5 = vweird.f32 %v6207_v4 }
 0xaa4   :  { %v6637_v53 = vor.u32 1.1754944e-38, %v6636_v24  ;;  %vm6635_vm7 = vcmp.eq.f32.partialorder %v6634_v12, 8.507059e+37 }
 0xaa5   :  { %6725 = vst.msk [vmem:[%s11109_s7 + $0xc8] sm:$0xff] %vm5931_vm0, %v6609_v18  ;;  %v6613_v40 = vmul.f32 %v8241_v30, %v6612_v2 }
 0xaa7   :  { %v6614_v27 = vadd.f32 %v8241_v30, %v6613_v40 }
 0xaa8   :  { %v8243_v26 = vpop.eup %8242 }
 0xaa9   :  { %v6618_v41 = vsel %vm6617_vm2, %v8241_v30, %v6614_v27  ;;  %v6626_v29 = vmul.f32 %v8243_v26, %v6207_v4  ;;  %v6210_v58 = vpop.xlane.xlu0 %6209  ;;  %vm6631_vm4 = vweird.f32 %v8243_v26 }
 0xaaa   :  { %v6623_v63 = vsel %vm6620_vm3, %v6622_v54, %v6618_v41  ;;  %8244 = vrcp.f32 %v6210_v58  ;;  %vm6632_vm6 = vmor %vm6630_vm5, %vm6631_vm4  ;;  %v6651_v13 = vand.u32 2147483648, %v6210_v58  ;;  %v6649_v37 = vand.u32 2147483647, %v6210_v58 }
 0xaab   :  { %v6624_v52 = vmul.f32 %v10946_v3, %v6623_v63  ;;  %v6627_v10 = vsub.f32 1.0, %v6626_v29  ;;  %vm6645_vm9 = vweird.f32 %v6210_v58 }
 0xaac   :  { %v6652_v44 = vor.u32 1.1754944e-38, %v6651_v13  ;;  %vm6650_vm11 = vcmp.eq.f32.partialorder %v6649_v37, 8.507059e+37 }
 0xaad   :  { %6726 = vst.msk [vmem:[%s11109_s7 + $0xd0] sm:$0xff] %vm5931_vm0, %v6624_v52  ;;  %v6628_v48 = vmul.f32 %v8243_v26, %v6627_v10 }
 0xaaf   :  { %v6629_v32 = vadd.f32 %v8243_v26, %v6628_v48 }
 0xab0   :  { %v8245_v61 = vpop.eup %8244 }
 0xab1   :  { %v6633_v59 = vsel %vm6632_vm6, %v8243_v26, %v6629_v32  ;;  %v6641_v49 = vmul.f32 %v8245_v61, %v6210_v58  ;;  %v6213_v62 = vpop.xlane.xlu1 %6212  ;;  %vm6646_vm8 = vweird.f32 %v8245_v61 }
 0xab2   :  { %v6638_v3 = vsel %vm6635_vm7, %v6637_v53, %v6633_v59  ;;  %8246 = vrcp.f32 %v6213_v62  ;;  %vm6647_vm10 = vmor %vm6645_vm9, %vm6646_vm8  ;;  %v6666_v5 = vand.u32 2147483648, %v6213_v62  ;;  %v6664_v33 = vand.u32 2147483647, %v6213_v62 }
 0xab3   :  { %v6639_v51 = vmul.f32 %v10956_v8, %v6638_v3  ;;  %v6642_v60 = vsub.f32 1.0, %v6641_v49  ;;  %vm6660_vm13 = vweird.f32 %v6213_v62 }
 0xab4   :  { %v6667_v22 = vor.u32 1.1754944e-38, %v6666_v5  ;;  %vm6665_vm15 = vcmp.eq.f32.partialorder %v6664_v33, 8.507059e+37 }
 0xab5   :  { %6727 = vst.msk [vmem:[%s11109_s7 + $0xd8] sm:$0xff] %vm5931_vm0, %v6639_v51  ;;  %v6643_v38 = vmul.f32 %v8245_v61, %v6642_v60 }
 0xab7   :  { %v6644_v15 = vadd.f32 %v8245_v61, %v6643_v38 }
 0xab8   :  { %v8247_v1 = vpop.eup %8246 }
 0xab9   :  { %v6648_v9 = vsel %vm6647_vm10, %v8245_v61, %v6644_v15  ;;  %v6656_v19 = vmul.f32 %v8247_v1, %v6213_v62  ;;  %v6216_v8 = vpop.xlane.xlu2 %6215  ;;  %vm6661_vm12 = vweird.f32 %v8247_v1 }
 0xaba   :  { %v6653_v21 = vsel %vm6650_vm11, %v6652_v44, %v6648_v9  ;;  %8248 = vrcp.f32 %v6216_v8  ;;  %vm6662_vm14 = vmor %vm6660_vm13, %vm6661_vm12  ;;  %v6681_v6 = vand.u32 2147483648, %v6216_v8  ;;  %v6679_v14 = vand.u32 2147483647, %v6216_v8 }
 0xabb   :  { %v6654_v46 = vmul.f32 %v10965_v56, %v6653_v21  ;;  %v6657_v47 = vsub.f32 1.0, %v6656_v19  ;;  %vm6675_vm2 = vweird.f32 %v6216_v8 }
 0xabc   :  { %v6682_v30 = vor.u32 1.1754944e-38, %v6681_v6  ;;  %vm6680_vm4 = vcmp.eq.f32.partialorder %v6679_v14, 8.507059e+37 }
 0xabd   :  { %6728 = vst.msk [vmem:[%s11109_s7 + $0xe0] sm:$0xff] %vm5931_vm0, %v6654_v46  ;;  %v6658_v7 = vmul.f32 %v8247_v1, %v6657_v47 }
 0xabf   :  { %v6659_v23 = vadd.f32 %v8247_v1, %v6658_v7 }
 0xac0   :  { %v8249_v20 = vpop.eup %8248 }
 0xac1   :  { %v6663_v31 = vsel %vm6662_vm14, %v8247_v1, %v6659_v23  ;;  %v6671_v56 = vmul.f32 %v8249_v20, %v6216_v8  ;;  %v6219_v36 = vpop.xlane.xlu0 %6218  ;;  %vm6676_vm1 = vweird.f32 %v8249_v20 }
 0xac2   :  { %v6668_v55 = vsel %vm6665_vm15, %v6667_v22, %v6663_v31  ;;  %8250 = vrcp.f32 %v6219_v36  ;;  %vm6677_vm3 = vmor %vm6675_vm2, %vm6676_vm1  ;;  %v6696_v50 = vand.u32 2147483648, %v6219_v36  ;;  %v6694_v2 = vand.u32 2147483647, %v6219_v36 }
 0xac3   :  { %v6669_v11 = vmul.f32 %v10970_v34, %v6668_v55  ;;  %v6672_v16 = vsub.f32 1.0, %v6671_v56  ;;  %vm6690_vm6 = vweird.f32 %v6219_v36 }
 0xac4   :  { %v6697_v40 = vor.u32 1.1754944e-38, %v6696_v50  ;;  %vm6695_vm8 = vcmp.eq.f32.partialorder %v6694_v2, 8.507059e+37 }
 0xac5   :  { %6729 = vst.msk [vmem:[%s11109_s7 + $0xe8] sm:$0xff] %vm5931_vm0, %v6669_v11  ;;  %v6673_v39 = vmul.f32 %v8249_v20, %v6672_v16 }
 0xac7   :  { %v6674_v43 = vadd.f32 %v8249_v20, %v6673_v39 }
 0xac8   :  { %v8251_v17 = vpop.eup %8250 }
 0xac9   :  { %v6678_v0 = vsel %vm6677_vm3, %v8249_v20, %v6674_v43  ;;  %v6686_v42 = vmul.f32 %v8251_v17, %v6219_v36  ;;  %vm6691_vm5 = vweird.f32 %v8251_v17 }
 0xaca   :  { %v6683_v34 = vsel %vm6680_vm4, %v6682_v30, %v6678_v0  ;;  %vm6692_vm7 = vmor %vm6690_vm6, %vm6691_vm5 }
 0xacb   :  { %v6684_v45 = vmul.f32 %v10975_v25, %v6683_v34  ;;  %v6687_v4 = vsub.f32 1.0, %v6686_v42 }
 0xacd   :  { %6730 = vst.msk [vmem:[%s11109_s7 + $0xf0] sm:$0xff] %vm5931_vm0, %v6684_v45  ;;  %v6688_v18 = vmul.f32 %v8251_v17, %v6687_v4 }
 0xacf   :  { %v6689_v35 = vadd.f32 %v8251_v17, %v6688_v18 }
 0xad1   :  { %v6693_v57 = vsel %vm6692_vm7, %v8251_v17, %v6689_v35 }
 0xad2   :  { %v6698_v27 = vsel %vm6695_vm8, %v6697_v40, %v6693_v57 }
 0xad3   :  { %v6699_v26 = vmul.f32 %v10985_v28, %v6698_v27 }
 0xad5   :  { %6731 = vst.msk [vmem:[%s11109_s7 + $0xf8] sm:$0xff] %vm5931_vm0, %v6699_v26 }
 0xad6   :  { %6736 = vsyncpa [#allocation3], 1 }
 0xad7   :  { %6737 = vsyncpa [#allocation5], 1 }
 0xad8   :  { %6738 = vsyncpa [#allocation8], 1 }

</bundles_post_ra>
